<compile_context>
chip_gen: v5e
topology: v5e:2x2
jax: 0.10.0
libtpu: 0.0.40
codegen_flags: <defaults>
</compile_context>

<pallas_src>
import jax
import jax.numpy as jnp
from jax.experimental import pallas as pl
from jax.experimental.pallas import tpu as pltpu

BP = 8     # batch padded to one full sublane group
HP = 128   # hidden lane pitch == per-gate lane pitch (one full lane group per gate)


def ltlnet_kernel(x_ref, h0_ref, c0_ref, w_ih_ref, w_hh_ref, b_ref,
                  w_fc_ref, b_fc_ref,
                  out_ref, hn_ref, cn_ref,
                  zx_ref, seq_ref):
    """Whole eval-mode forward in one kernel; all data lives in VMEM (<< 1 MiB)."""
    TBP = x_ref.shape[0]          # T * BP
    L = h0_ref.shape[0]
    T = TBP // BP

    h = None
    for l in range(L):            # L is tiny and each layer hands state to the next
        w_ih = w_ih_ref[l]        # (HP, 4*HP) bf16, gate-block packed
        w_hh = w_hh_ref[l]        # (HP, 4*HP) bf16, gate-block packed
        b = b_ref[l]              # (1, 4*HP)  f32  (= b_ih + b_hh)

        # Batched input projection for ALL T timesteps in one MXU dot (M = T*BP),
        # bias folded once; parked in VMEM scratch for aligned per-step slicing.
        src = (x_ref[...] if l == 0 else seq_ref[...]).astype(jnp.bfloat16)
        zx_ref[...] = jnp.dot(src, w_ih, preferred_element_type=jnp.float32) + b

        h0 = h0_ref[l]            # (BP, HP) f32, padded lanes/rows are exactly zero
        c0 = c0_ref[l]
        write_seq = l < L - 1

        def step(t, carry, write_seq=write_seq, w_hh=w_hh):
            h, c = carry
            row = pl.multiple_of(t * BP, BP)     # full, aligned sublane-group slice
            # Serial per-step work: one small bf16 recurrent dot + elementwise gates.
            z = zx_ref[pl.ds(row, BP), :] + jnp.dot(
                h.astype(jnp.bfloat16), w_hh, preferred_element_type=jnp.float32)
            # Each gate owns its own 128-lane block -> whole-vreg picks, no rotates.
            i_g = jax.nn.sigmoid(z[:, 0 * HP:1 * HP])
            f_g = jax.nn.sigmoid(z[:, 1 * HP:2 * HP])
            g_g = jnp.tanh(z[:, 2 * HP:3 * HP])
            o_g = jax.nn.sigmoid(z[:, 3 * HP:4 * HP])
            c = f_g * c + i_g * g_g
            h = o_g * jnp.tanh(c)
            if write_seq:                        # retire h immediately into scratch
                seq_ref[pl.ds(row, BP), :] = h
            return h, c

        h, c = jax.lax.fori_loop(0, T, step, (h0, c0), unroll=True)

        hn_ref[l] = h.astype(hn_ref.dtype)
        cn_ref[l] = c.astype(cn_ref.dtype)
        # TODO(synk): nn.LSTM inter-layer dropout (p=0.6) and self.dropout are identity
        # in eval mode; training-mode (random) dropout is not implemented.

    # fc + sigmoid ONLY for the last timestep of the last layer; w_fc is pre-sliced to
    # its last output row (out.view(B, -1)[:, -1] consumes only that element), packed
    # into lane 0 of a lane-dense (HP, HP) slab so the final store is unmasked.
    y = jnp.dot(h.astype(jnp.bfloat16), w_fc_ref[...],
                preferred_element_type=jnp.float32) + b_fc_ref[...]
    out_ref[...] = jax.nn.sigmoid(y).astype(out_ref.dtype)


def _pack_gate_cols(w_t, out_rows):
    """(F, 4H) -> (out_rows, 4*HP): gate g's H columns land at lanes [g*HP, g*HP+H)."""
    f, h4 = w_t.shape
    h = h4 // 4
    out = jnp.zeros((out_rows, 4 * HP), w_t.dtype)
    for g in range(4):
        out = out.at[:f, g * HP:g * HP + h].set(w_t[:, g * h:(g + 1) * h])
    return out


def ltlnet_forward(x, hidden, params, lens=None):
    """Matches LTLNet.forward(x, hidden, lens) in eval mode (lens is unused there)."""
    h0, c0 = hidden
    B, T, E = x.shape
    L, _, H = h0.shape
    assert E <= HP and H <= HP and B <= BP

    # --- trace-time layout plumbing (all outside the serial kernel) -------------------
    # time-major, batch padded to 8 rows, lanes padded to 128, bf16 MXU operand
    x_tm = jnp.transpose(x, (1, 0, 2))                                     # (T, B, E)
    x_p = jnp.zeros((T, BP, HP), jnp.bfloat16).at[:, :B, :E].set(
        x_tm.astype(jnp.bfloat16)).reshape(T * BP, HP)

    h0_p = jnp.zeros((L, BP, HP), jnp.float32).at[:, :B, :H].set(h0)
    c0_p = jnp.zeros((L, BP, HP), jnp.float32).at[:, :B, :H].set(c0)

    # gate-block-packed, pre-transposed weights, all layers in one slab each (L >= 2)
    w_ih0_p = _pack_gate_cols(params["w_ih0"].T, HP)                       # (HP, 512)
    w_ih_rest_p = jnp.stack(
        [_pack_gate_cols(params["w_ih_rest"][i].T, HP) for i in range(L - 1)])
    w_ih_all = jnp.concatenate([w_ih0_p[None], w_ih_rest_p], 0).astype(jnp.bfloat16)
    w_hh_all = jnp.stack(
        [_pack_gate_cols(params["w_hh"][i].T, HP) for i in range(L)]).astype(jnp.bfloat16)

    b_sum = params["b_ih"] + params["b_hh"]                                # (L, 4H)
    b_all = jnp.stack([_pack_gate_cols(b_sum[i][None, :], 1) for i in range(L)])

    # only the last fc output unit is ever consumed -> keep just that row, lane-dense
    w_fc_pad = jnp.zeros((HP, HP), jnp.bfloat16).at[:H, 0].set(
        params["w_fc"][-1].astype(jnp.bfloat16))
    b_fc_pad = jnp.zeros((1, HP), jnp.float32).at[0, 0].set(params["b_fc"][0, -1])

    # --- single ungridded pallas_call: latency-bound, no tiling/pipelining needed -----
    vmem = pl.BlockSpec(memory_space=pltpu.MemorySpace.VMEM)
    sig_last, hn_p, cn_p = pl.pallas_call(
        ltlnet_kernel,
        out_shape=(
            jax.ShapeDtypeStruct((BP, HP), jnp.float32),   # sigmoid(fc(h_T)), lane 0 real
            jax.ShapeDtypeStruct((L, BP, HP), jnp.float32),  # h_n (padded)
            jax.ShapeDtypeStruct((L, BP, HP), jnp.float32),  # c_n (padded)
        ),
        in_specs=[vmem] * 8,
        out_specs=(vmem, vmem, vmem),
        scratch_shapes=[
            pltpu.VMEM((T * BP, 4 * HP), jnp.float32),   # zx: batched input projection
            pltpu.VMEM((T * BP, HP), jnp.float32),       # seq: layer output, time-major
        ],
    )(x_p, h0_p, c0_p, w_ih_all, w_hh_all, b_all, w_fc_pad, b_fc_pad)

    # out = out.view(batch_size, -1)[:, -1]  -> last timestep, last output unit.
    out = sig_last[:B, 0]
    hn = hn_p[:, :B, :H]
    cn = cn_p[:, :B, :H]
    return out, (hn, cn)


def init_params(key, output_size, embedding_dim, hidden_dim, n_layers):
    """Deterministic init mimicking PyTorch's U(-1/sqrt(H), 1/sqrt(H)); PyTorch layouts."""
    bound = 1.0 / float(hidden_dim) ** 0.5
    keys = jax.random.split(key, 8)
    u = lambda k, shape: jax.random.uniform(k, shape, jnp.float32, -bound, bound)
    H4 = 4 * hidden_dim
    return {
        "w_ih0": u(keys[0], (H4, embedding_dim)),                    # layer 0
        "w_ih_rest": u(keys[1], (n_layers - 1, H4, hidden_dim)),     # layers 1..L-1 (L>=2)
        "w_hh": u(keys[2], (n_layers, H4, hidden_dim)),
        "b_ih": u(keys[3], (n_layers, H4)),
        "b_hh": u(keys[4], (n_layers, H4)),
        "w_fc": u(keys[5], (output_size, hidden_dim)),
        "b_fc": u(keys[6], (1, output_size)),
    }


if __name__ == "__main__":
    # Small shapes consistent with the module: hidden_dim=12, n_layers=4.
    B, T = 2, 8
    embedding_dim = 8
    hidden_dim = 12
    n_layers = 4
    output_size = 5

    key = jax.random.PRNGKey(0)
    k_x, k_p = jax.random.split(key)
    x = jax.random.normal(k_x, (B, T, embedding_dim), dtype=jnp.float32)
    params = init_params(k_p, output_size, embedding_dim, hidden_dim, n_layers)

    # init_hidden(batch_size): zeros of shape (n_layers, B, hidden_dim)
    h0 = jnp.zeros((n_layers, B, hidden_dim), jnp.float32)
    c0 = jnp.zeros((n_layers, B, hidden_dim), jnp.float32)

    out, (hn, cn) = ltlnet_forward(x, (h0, c0), params)
    jax.block_until_ready((out, hn, cn))
    assert out.shape == (B,)
    assert hn.shape == (n_layers, B, hidden_dim)
    assert cn.shape == (n_layers, B, hidden_dim)
    print("KERNEL_OK")
</pallas_src>

<mosaic_0001>
module attributes {stable_mosaic.version = 11 : i64} {
  func.func @ltlnet_kernel(%arg0: memref<64x128xbf16, #tpu.memory_space<vmem>>, %arg1: memref<4x8x128xf32, #tpu.memory_space<vmem>>, %arg2: memref<4x8x128xf32, #tpu.memory_space<vmem>>, %arg3: memref<4x128x512xbf16, #tpu.memory_space<vmem>>, %arg4: memref<4x128x512xbf16, #tpu.memory_space<vmem>>, %arg5: memref<4x1x512xf32, #tpu.memory_space<vmem>>, %arg6: memref<128x128xbf16, #tpu.memory_space<vmem>>, %arg7: memref<1x128xf32, #tpu.memory_space<vmem>>, %arg8: memref<8x128xf32, #tpu.memory_space<vmem>>, %arg9: memref<4x8x128xf32, #tpu.memory_space<vmem>>, %arg10: memref<4x8x128xf32, #tpu.memory_space<vmem>>, %arg11: memref<64x512xf32, #tpu.memory_space<vmem>>, %arg12: memref<64x128xf32, #tpu.memory_space<vmem>>) attributes {dimension_semantics = [], scalar_prefetch = 0 : i64, scratch_operands = 2 : i64, tpu.core_type = #tpu.core_type<tc>} {
    %c0 = arith.constant 0 : index
    %c0_0 = arith.constant 0 : index
    %c0_1 = arith.constant 0 : index
    %0 = vector.load %arg3[%c0, %c0_0, %c0_1] : memref<4x128x512xbf16, #tpu.memory_space<vmem>>, vector<1x128x512xbf16>
    %1 = vector.shape_cast %0 : vector<1x128x512xbf16> to vector<128x512xbf16>
    %c0_2 = arith.constant 0 : index
    %c0_3 = arith.constant 0 : index
    %c0_4 = arith.constant 0 : index
    %2 = vector.load %arg4[%c0_2, %c0_3, %c0_4] : memref<4x128x512xbf16, #tpu.memory_space<vmem>>, vector<1x128x512xbf16>
    %3 = vector.shape_cast %2 : vector<1x128x512xbf16> to vector<128x512xbf16>
    %c0_5 = arith.constant 0 : index
    %c0_6 = arith.constant 0 : index
    %c0_7 = arith.constant 0 : index
    %4 = vector.load %arg5[%c0_5, %c0_6, %c0_7] : memref<4x1x512xf32, #tpu.memory_space<vmem>>, vector<1x1x512xf32>
    %5 = vector.shape_cast %4 : vector<1x1x512xf32> to vector<1x512xf32>
    %c0_8 = arith.constant 0 : index
    %c0_9 = arith.constant 0 : index
    %6 = vector.load %arg0[%c0_8, %c0_9] : memref<64x128xbf16, #tpu.memory_space<vmem>>, vector<64x128xbf16>
    %cst = arith.constant dense<0.000000e+00> : vector<64x512xf32>
    %7 = tpu.matmul %6, %1, %cst {dimension_numbers = #tpu.dot_dimension_numbers<[1], [0], [0], [1], [0, 0, 1, 1], [], []>} : vector<64x128xbf16>, vector<128x512xbf16>, vector<64x512xf32> -> vector<64x512xf32>
    %8 = vector.broadcast %5 : vector<1x512xf32> to vector<64x512xf32>
    %9 = arith.addf %7, %8 : vector<64x512xf32>
    %c0_10 = arith.constant 0 : index
    %c0_11 = arith.constant 0 : index
    %10 = vector.load %arg11[%c0_10, %c0_11] : memref<64x512xf32, #tpu.memory_space<vmem>>, vector<64x512xf32>
    tpu.vector_store %arg11[%c0_10, %c0_11], %9 {strides = array<i32>} : memref<64x512xf32, #tpu.memory_space<vmem>>, vector<64x512xf32>,
    %c0_12 = arith.constant 0 : index
    %c0_13 = arith.constant 0 : index
    %c0_14 = arith.constant 0 : index
    %11 = vector.load %arg1[%c0_12, %c0_13, %c0_14] : memref<4x8x128xf32, #tpu.memory_space<vmem>>, vector<1x8x128xf32>
    %12 = vector.shape_cast %11 : vector<1x8x128xf32> to vector<8x128xf32>
    %c0_15 = arith.constant 0 : index
    %c0_16 = arith.constant 0 : index
    %c0_17 = arith.constant 0 : index
    %13 = vector.load %arg2[%c0_15, %c0_16, %c0_17] : memref<4x8x128xf32, #tpu.memory_space<vmem>>, vector<1x8x128xf32>
    %14 = vector.shape_cast %13 : vector<1x8x128xf32> to vector<8x128xf32>
    %c0_i32 = arith.constant 0 : i32
    %c8_i32 = arith.constant 8 : i32
    %15 = arith.muli %c0_i32, %c8_i32 : i32
    %16 = tpu.assume_multiple %15, 8 : i32
    %17 = arith.index_cast %16 : i32 to index
    %c0_18 = arith.constant 0 : index
    %18 = vector.load %arg11[%17, %c0_18] : memref<64x512xf32, #tpu.memory_space<vmem>>, vector<8x512xf32>
    %19 = arith.truncf %12 : vector<8x128xf32> to vector<8x128xbf16>
    %cst_19 = arith.constant dense<0.000000e+00> : vector<8x512xf32>
    %20 = tpu.matmul %19, %3, %cst_19 {dimension_numbers = #tpu.dot_dimension_numbers<[1], [0], [0], [1], [0, 0, 1, 1], [], []>} : vector<8x128xbf16>, vector<128x512xbf16>, vector<8x512xf32> -> vector<8x512xf32>
    %21 = arith.addf %18, %20 : vector<8x512xf32>
    %22 = vector.extract_strided_slice %21 {offsets = [0, 0], sizes = [8, 128], strides = [1, 1]} : vector<8x512xf32> to vector<8x128xf32>
    %23 = arith.negf %22 : vector<8x128xf32>
    %24 = math.exp %23 : vector<8x128xf32>
    %cst_20 = arith.constant 1.000000e+00 : f32
    %25 = vector.broadcast %cst_20 : f32 to vector<8x128xf32>
    %26 = arith.addf %25, %24 : vector<8x128xf32>
    %27 = arith.divf %25, %26 : vector<8x128xf32>
    %28 = vector.extract_strided_slice %21 {offsets = [0, 128], sizes = [8, 128], strides = [1, 1]} : vector<8x512xf32> to vector<8x128xf32>
    %29 = arith.negf %28 : vector<8x128xf32>
    %30 = math.exp %29 : vector<8x128xf32>
    %cst_21 = arith.constant 1.000000e+00 : f32
    %31 = vector.broadcast %cst_21 : f32 to vector<8x128xf32>
    %32 = arith.addf %31, %30 : vector<8x128xf32>
    %33 = arith.divf %31, %32 : vector<8x128xf32>
    %34 = vector.extract_strided_slice %21 {offsets = [0, 256], sizes = [8, 128], strides = [1, 1]} : vector<8x512xf32> to vector<8x128xf32>
    %35 = math.tanh %34 : vector<8x128xf32>
    %36 = vector.extract_strided_slice %21 {offsets = [0, 384], sizes = [8, 128], strides = [1, 1]} : vector<8x512xf32> to vector<8x128xf32>
    %37 = arith.negf %36 : vector<8x128xf32>
    %38 = math.exp %37 : vector<8x128xf32>
    %cst_22 = arith.constant 1.000000e+00 : f32
    %39 = vector.broadcast %cst_22 : f32 to vector<8x128xf32>
    %40 = arith.addf %39, %38 : vector<8x128xf32>
    %41 = arith.divf %39, %40 : vector<8x128xf32>
    %42 = arith.mulf %33, %14 : vector<8x128xf32>
    %43 = arith.mulf %27, %35 : vector<8x128xf32>
    %44 = arith.addf %42, %43 : vector<8x128xf32>
    %45 = math.tanh %44 : vector<8x128xf32>
    %46 = arith.mulf %41, %45 : vector<8x128xf32>
    %47 = arith.index_cast %16 : i32 to index
    %c0_23 = arith.constant 0 : index
    %48 = vector.load %arg12[%47, %c0_23] : memref<64x128xf32, #tpu.memory_space<vmem>>, vector<8x128xf32>
    tpu.vector_store %arg12[%47, %c0_23], %46 {strides = array<i32>} : memref<64x128xf32, #tpu.memory_space<vmem>>, vector<8x128xf32>,
    %c1_i32 = arith.constant 1 : i32
    %c8_i32_24 = arith.constant 8 : i32
    %49 = arith.muli %c1_i32, %c8_i32_24 : i32
    %50 = tpu.assume_multiple %49, 8 : i32
    %51 = arith.index_cast %50 : i32 to index
    %c0_25 = arith.constant 0 : index
    %52 = vector.load %arg11[%51, %c0_25] : memref<64x512xf32, #tpu.memory_space<vmem>>, vector<8x512xf32>
    %53 = arith.truncf %46 : vector<8x128xf32> to vector<8x128xbf16>
    %cst_26 = arith.constant dense<0.000000e+00> : vector<8x512xf32>
    %54 = tpu.matmul %53, %3, %cst_26 {dimension_numbers = #tpu.dot_dimension_numbers<[1], [0], [0], [1], [0, 0, 1, 1], [], []>} : vector<8x128xbf16>, vector<128x512xbf16>, vector<8x512xf32> -> vector<8x512xf32>
    %55 = arith.addf %52, %54 : vector<8x512xf32>
    %56 = vector.extract_strided_slice %55 {offsets = [0, 0], sizes = [8, 128], strides = [1, 1]} : vector<8x512xf32> to vector<8x128xf32>
    %57 = arith.negf %56 : vector<8x128xf32>
    %58 = math.exp %57 : vector<8x128xf32>
    %cst_27 = arith.constant 1.000000e+00 : f32
    %59 = vector.broadcast %cst_27 : f32 to vector<8x128xf32>
    %60 = arith.addf %59, %58 : vector<8x128xf32>
    %61 = arith.divf %59, %60 : vector<8x128xf32>
    %62 = vector.extract_strided_slice %55 {offsets = [0, 128], sizes = [8, 128], strides = [1, 1]} : vector<8x512xf32> to vector<8x128xf32>
    %63 = arith.negf %62 : vector<8x128xf32>
    %64 = math.exp %63 : vector<8x128xf32>
    %cst_28 = arith.constant 1.000000e+00 : f32
    %65 = vector.broadcast %cst_28 : f32 to vector<8x128xf32>
    %66 = arith.addf %65, %64 : vector<8x128xf32>
    %67 = arith.divf %65, %66 : vector<8x128xf32>
    %68 = vector.extract_strided_slice %55 {offsets = [0, 256], sizes = [8, 128], strides = [1, 1]} : vector<8x512xf32> to vector<8x128xf32>
    %69 = math.tanh %68 : vector<8x128xf32>
    %70 = vector.extract_strided_slice %55 {offsets = [0, 384], sizes = [8, 128], strides = [1, 1]} : vector<8x512xf32> to vector<8x128xf32>
    %71 = arith.negf %70 : vector<8x128xf32>
    %72 = math.exp %71 : vector<8x128xf32>
    %cst_29 = arith.constant 1.000000e+00 : f32
    %73 = vector.broadcast %cst_29 : f32 to vector<8x128xf32>
    %74 = arith.addf %73, %72 : vector<8x128xf32>
    %75 = arith.divf %73, %74 : vector<8x128xf32>
    %76 = arith.mulf %67, %44 : vector<8x128xf32>
    %77 = arith.mulf %61, %69 : vector<8x128xf32>
    %78 = arith.addf %76, %77 : vector<8x128xf32>
    %79 = math.tanh %78 : vector<8x128xf32>
    %80 = arith.mulf %75, %79 : vector<8x128xf32>
    %81 = arith.index_cast %50 : i32 to index
    %c0_30 = arith.constant 0 : index
    %82 = vector.load %arg12[%81, %c0_30] : memref<64x128xf32, #tpu.memory_space<vmem>>, vector<8x128xf32>
    tpu.vector_store %arg12[%81, %c0_30], %80 {strides = array<i32>} : memref<64x128xf32, #tpu.memory_space<vmem>>, vector<8x128xf32>,
    %c2_i32 = arith.constant 2 : i32
    %c8_i32_31 = arith.constant 8 : i32
    %83 = arith.muli %c2_i32, %c8_i32_31 : i32
    %84 = tpu.assume_multiple %83, 8 : i32
    %85 = arith.index_cast %84 : i32 to index
    %c0_32 = arith.constant 0 : index
    %86 = vector.load %arg11[%85, %c0_32] : memref<64x512xf32, #tpu.memory_space<vmem>>, vector<8x512xf32>
    %87 = arith.truncf %80 : vector<8x128xf32> to vector<8x128xbf16>
    %cst_33 = arith.constant dense<0.000000e+00> : vector<8x512xf32>
    %88 = tpu.matmul %87, %3, %cst_33 {dimension_numbers = #tpu.dot_dimension_numbers<[1], [0], [0], [1], [0, 0, 1, 1], [], []>} : vector<8x128xbf16>, vector<128x512xbf16>, vector<8x512xf32> -> vector<8x512xf32>
    %89 = arith.addf %86, %88 : vector<8x512xf32>
    %90 = vector.extract_strided_slice %89 {offsets = [0, 0], sizes = [8, 128], strides = [1, 1]} : vector<8x512xf32> to vector<8x128xf32>
    %91 = arith.negf %90 : vector<8x128xf32>
    %92 = math.exp %91 : vector<8x128xf32>
    %cst_34 = arith.constant 1.000000e+00 : f32
    %93 = vector.broadcast %cst_34 : f32 to vector<8x128xf32>
    %94 = arith.addf %93, %92 : vector<8x128xf32>
    %95 = arith.divf %93, %94 : vector<8x128xf32>
    %96 = vector.extract_strided_slice %89 {offsets = [0, 128], sizes = [8, 128], strides = [1, 1]} : vector<8x512xf32> to vector<8x128xf32>
    %97 = arith.negf %96 : vector<8x128xf32>
    %98 = math.exp %97 : vector<8x128xf32>
    %cst_35 = arith.constant 1.000000e+00 : f32
    %99 = vector.broadcast %cst_35 : f32 to vector<8x128xf32>
    %100 = arith.addf %99, %98 : vector<8x128xf32>
    %101 = arith.divf %99, %100 : vector<8x128xf32>
    %102 = vector.extract_strided_slice %89 {offsets = [0, 256], sizes = [8, 128], strides = [1, 1]} : vector<8x512xf32> to vector<8x128xf32>
    %103 = math.tanh %102 : vector<8x128xf32>
    %104 = vector.extract_strided_slice %89 {offsets = [0, 384], sizes = [8, 128], strides = [1, 1]} : vector<8x512xf32> to vector<8x128xf32>
    %105 = arith.negf %104 : vector<8x128xf32>
    %106 = math.exp %105 : vector<8x128xf32>
    %cst_36 = arith.constant 1.000000e+00 : f32
    %107 = vector.broadcast %cst_36 : f32 to vector<8x128xf32>
    %108 = arith.addf %107, %106 : vector<8x128xf32>
    %109 = arith.divf %107, %108 : vector<8x128xf32>
    %110 = arith.mulf %101, %78 : vector<8x128xf32>
    %111 = arith.mulf %95, %103 : vector<8x128xf32>
    %112 = arith.addf %110, %111 : vector<8x128xf32>
    %113 = math.tanh %112 : vector<8x128xf32>
    %114 = arith.mulf %109, %113 : vector<8x128xf32>
    %115 = arith.index_cast %84 : i32 to index
    %c0_37 = arith.constant 0 : index
    %116 = vector.load %arg12[%115, %c0_37] : memref<64x128xf32, #tpu.memory_space<vmem>>, vector<8x128xf32>
    tpu.vector_store %arg12[%115, %c0_37], %114 {strides = array<i32>} : memref<64x128xf32, #tpu.memory_space<vmem>>, vector<8x128xf32>,
    %c3_i32 = arith.constant 3 : i32
    %c8_i32_38 = arith.constant 8 : i32
    %117 = arith.muli %c3_i32, %c8_i32_38 : i32
    %118 = tpu.assume_multiple %117, 8 : i32
    %119 = arith.index_cast %118 : i32 to index
    %c0_39 = arith.constant 0 : index
    %120 = vector.load %arg11[%119, %c0_39] : memref<64x512xf32, #tpu.memory_space<vmem>>, vector<8x512xf32>
    %121 = arith.truncf %114 : vector<8x128xf32> to vector<8x128xbf16>
    %cst_40 = arith.constant dense<0.000000e+00> : vector<8x512xf32>
    %122 = tpu.matmul %121, %3, %cst_40 {dimension_numbers = #tpu.dot_dimension_numbers<[1], [0], [0], [1], [0, 0, 1, 1], [], []>} : vector<8x128xbf16>, vector<128x512xbf16>, vector<8x512xf32> -> vector<8x512xf32>
    %123 = arith.addf %120, %122 : vector<8x512xf32>
    %124 = vector.extract_strided_slice %123 {offsets = [0, 0], sizes = [8, 128], strides = [1, 1]} : vector<8x512xf32> to vector<8x128xf32>
    %125 = arith.negf %124 : vector<8x128xf32>
    %126 = math.exp %125 : vector<8x128xf32>
    %cst_41 = arith.constant 1.000000e+00 : f32
    %127 = vector.broadcast %cst_41 : f32 to vector<8x128xf32>
    %128 = arith.addf %127, %126 : vector<8x128xf32>
    %129 = arith.divf %127, %128 : vector<8x128xf32>
    %130 = vector.extract_strided_slice %123 {offsets = [0, 128], sizes = [8, 128], strides = [1, 1]} : vector<8x512xf32> to vector<8x128xf32>
    %131 = arith.negf %130 : vector<8x128xf32>
    %132 = math.exp %131 : vector<8x128xf32>
    %cst_42 = arith.constant 1.000000e+00 : f32
    %133 = vector.broadcast %cst_42 : f32 to vector<8x128xf32>
    %134 = arith.addf %133, %132 : vector<8x128xf32>
    %135 = arith.divf %133, %134 : vector<8x128xf32>
    %136 = vector.extract_strided_slice %123 {offsets = [0, 256], sizes = [8, 128], strides = [1, 1]} : vector<8x512xf32> to vector<8x128xf32>
    %137 = math.tanh %136 : vector<8x128xf32>
    %138 = vector.extract_strided_slice %123 {offsets = [0, 384], sizes = [8, 128], strides = [1, 1]} : vector<8x512xf32> to vector<8x128xf32>
    %139 = arith.negf %138 : vector<8x128xf32>
    %140 = math.exp %139 : vector<8x128xf32>
    %cst_43 = arith.constant 1.000000e+00 : f32
    %141 = vector.broadcast %cst_43 : f32 to vector<8x128xf32>
    %142 = arith.addf %141, %140 : vector<8x128xf32>
    %143 = arith.divf %141, %142 : vector<8x128xf32>
    %144 = arith.mulf %135, %112 : vector<8x128xf32>
    %145 = arith.mulf %129, %137 : vector<8x128xf32>
    %146 = arith.addf %144, %145 : vector<8x128xf32>
    %147 = math.tanh %146 : vector<8x128xf32>
    %148 = arith.mulf %143, %147 : vector<8x128xf32>
    %149 = arith.index_cast %118 : i32 to index
    %c0_44 = arith.constant 0 : index
    %150 = vector.load %arg12[%149, %c0_44] : memref<64x128xf32, #tpu.memory_space<vmem>>, vector<8x128xf32>
    tpu.vector_store %arg12[%149, %c0_44], %148 {strides = array<i32>} : memref<64x128xf32, #tpu.memory_space<vmem>>, vector<8x128xf32>,
    %c4_i32 = arith.constant 4 : i32
    %c8_i32_45 = arith.constant 8 : i32
    %151 = arith.muli %c4_i32, %c8_i32_45 : i32
    %152 = tpu.assume_multiple %151, 8 : i32
    %153 = arith.index_cast %152 : i32 to index
    %c0_46 = arith.constant 0 : index
    %154 = vector.load %arg11[%153, %c0_46] : memref<64x512xf32, #tpu.memory_space<vmem>>, vector<8x512xf32>
    %155 = arith.truncf %148 : vector<8x128xf32> to vector<8x128xbf16>
    %cst_47 = arith.constant dense<0.000000e+00> : vector<8x512xf32>
    %156 = tpu.matmul %155, %3, %cst_47 {dimension_numbers = #tpu.dot_dimension_numbers<[1], [0], [0], [1], [0, 0, 1, 1], [], []>} : vector<8x128xbf16>, vector<128x512xbf16>, vector<8x512xf32> -> vector<8x512xf32>
    %157 = arith.addf %154, %156 : vector<8x512xf32>
    %158 = vector.extract_strided_slice %157 {offsets = [0, 0], sizes = [8, 128], strides = [1, 1]} : vector<8x512xf32> to vector<8x128xf32>
    %159 = arith.negf %158 : vector<8x128xf32>
    %160 = math.exp %159 : vector<8x128xf32>
    %cst_48 = arith.constant 1.000000e+00 : f32
    %161 = vector.broadcast %cst_48 : f32 to vector<8x128xf32>
    %162 = arith.addf %161, %160 : vector<8x128xf32>
    %163 = arith.divf %161, %162 : vector<8x128xf32>
    %164 = vector.extract_strided_slice %157 {offsets = [0, 128], sizes = [8, 128], strides = [1, 1]} : vector<8x512xf32> to vector<8x128xf32>
    %165 = arith.negf %164 : vector<8x128xf32>
    %166 = math.exp %165 : vector<8x128xf32>
    %cst_49 = arith.constant 1.000000e+00 : f32
    %167 = vector.broadcast %cst_49 : f32 to vector<8x128xf32>
    %168 = arith.addf %167, %166 : vector<8x128xf32>
    %169 = arith.divf %167, %168 : vector<8x128xf32>
    %170 = vector.extract_strided_slice %157 {offsets = [0, 256], sizes = [8, 128], strides = [1, 1]} : vector<8x512xf32> to vector<8x128xf32>
    %171 = math.tanh %170 : vector<8x128xf32>
    %172 = vector.extract_strided_slice %157 {offsets = [0, 384], sizes = [8, 128], strides = [1, 1]} : vector<8x512xf32> to vector<8x128xf32>
    %173 = arith.negf %172 : vector<8x128xf32>
    %174 = math.exp %173 : vector<8x128xf32>
    %cst_50 = arith.constant 1.000000e+00 : f32
    %175 = vector.broadcast %cst_50 : f32 to vector<8x128xf32>
    %176 = arith.addf %175, %174 : vector<8x128xf32>
    %177 = arith.divf %175, %176 : vector<8x128xf32>
    %178 = arith.mulf %169, %146 : vector<8x128xf32>
    %179 = arith.mulf %163, %171 : vector<8x128xf32>
    %180 = arith.addf %178, %179 : vector<8x128xf32>
    %181 = math.tanh %180 : vector<8x128xf32>
    %182 = arith.mulf %177, %181 : vector<8x128xf32>
    %183 = arith.index_cast %152 : i32 to index
    %c0_51 = arith.constant 0 : index
    %184 = vector.load %arg12[%183, %c0_51] : memref<64x128xf32, #tpu.memory_space<vmem>>, vector<8x128xf32>
    tpu.vector_store %arg12[%183, %c0_51], %182 {strides = array<i32>} : memref<64x128xf32, #tpu.memory_space<vmem>>, vector<8x128xf32>,
    %c5_i32 = arith.constant 5 : i32
    %c8_i32_52 = arith.constant 8 : i32
    %185 = arith.muli %c5_i32, %c8_i32_52 : i32
    %186 = tpu.assume_multiple %185, 8 : i32
    %187 = arith.index_cast %186 : i32 to index
    %c0_53 = arith.constant 0 : index
    %188 = vector.load %arg11[%187, %c0_53] : memref<64x512xf32, #tpu.memory_space<vmem>>, vector<8x512xf32>
    %189 = arith.truncf %182 : vector<8x128xf32> to vector<8x128xbf16>
    %cst_54 = arith.constant dense<0.000000e+00> : vector<8x512xf32>
    %190 = tpu.matmul %189, %3, %cst_54 {dimension_numbers = #tpu.dot_dimension_numbers<[1], [0], [0], [1], [0, 0, 1, 1], [], []>} : vector<8x128xbf16>, vector<128x512xbf16>, vector<8x512xf32> -> vector<8x512xf32>
    %191 = arith.addf %188, %190 : vector<8x512xf32>
    %192 = vector.extract_strided_slice %191 {offsets = [0, 0], sizes = [8, 128], strides = [1, 1]} : vector<8x512xf32> to vector<8x128xf32>
    %193 = arith.negf %192 : vector<8x128xf32>
    %194 = math.exp %193 : vector<8x128xf32>
    %cst_55 = arith.constant 1.000000e+00 : f32
    %195 = vector.broadcast %cst_55 : f32 to vector<8x128xf32>
    %196 = arith.addf %195, %194 : vector<8x128xf32>
    %197 = arith.divf %195, %196 : vector<8x128xf32>
    %198 = vector.extract_strided_slice %191 {offsets = [0, 128], sizes = [8, 128], strides = [1, 1]} : vector<8x512xf32> to vector<8x128xf32>
    %199 = arith.negf %198 : vector<8x128xf32>
    %200 = math.exp %199 : vector<8x128xf32>
    %cst_56 = arith.constant 1.000000e+00 : f32
    %201 = vector.broadcast %cst_56 : f32 to vector<8x128xf32>
    %202 = arith.addf %201, %200 : vector<8x128xf32>
    %203 = arith.divf %201, %202 : vector<8x128xf32>
    %204 = vector.extract_strided_slice %191 {offsets = [0, 256], sizes = [8, 128], strides = [1, 1]} : vector<8x512xf32> to vector<8x128xf32>
    %205 = math.tanh %204 : vector<8x128xf32>
    %206 = vector.extract_strided_slice %191 {offsets = [0, 384], sizes = [8, 128], strides = [1, 1]} : vector<8x512xf32> to vector<8x128xf32>
    %207 = arith.negf %206 : vector<8x128xf32>
    %208 = math.exp %207 : vector<8x128xf32>
    %cst_57 = arith.constant 1.000000e+00 : f32
    %209 = vector.broadcast %cst_57 : f32 to vector<8x128xf32>
    %210 = arith.addf %209, %208 : vector<8x128xf32>
    %211 = arith.divf %209, %210 : vector<8x128xf32>
    %212 = arith.mulf %203, %180 : vector<8x128xf32>
    %213 = arith.mulf %197, %205 : vector<8x128xf32>
    %214 = arith.addf %212, %213 : vector<8x128xf32>
    %215 = math.tanh %214 : vector<8x128xf32>
    %216 = arith.mulf %211, %215 : vector<8x128xf32>
    %217 = arith.index_cast %186 : i32 to index
    %c0_58 = arith.constant 0 : index
    %218 = vector.load %arg12[%217, %c0_58] : memref<64x128xf32, #tpu.memory_space<vmem>>, vector<8x128xf32>
    tpu.vector_store %arg12[%217, %c0_58], %216 {strides = array<i32>} : memref<64x128xf32, #tpu.memory_space<vmem>>, vector<8x128xf32>,
    %c6_i32 = arith.constant 6 : i32
    %c8_i32_59 = arith.constant 8 : i32
    %219 = arith.muli %c6_i32, %c8_i32_59 : i32
    %220 = tpu.assume_multiple %219, 8 : i32
    %221 = arith.index_cast %220 : i32 to index
    %c0_60 = arith.constant 0 : index
    %222 = vector.load %arg11[%221, %c0_60] : memref<64x512xf32, #tpu.memory_space<vmem>>, vector<8x512xf32>
    %223 = arith.truncf %216 : vector<8x128xf32> to vector<8x128xbf16>
    %cst_61 = arith.constant dense<0.000000e+00> : vector<8x512xf32>
    %224 = tpu.matmul %223, %3, %cst_61 {dimension_numbers = #tpu.dot_dimension_numbers<[1], [0], [0], [1], [0, 0, 1, 1], [], []>} : vector<8x128xbf16>, vector<128x512xbf16>, vector<8x512xf32> -> vector<8x512xf32>
    %225 = arith.addf %222, %224 : vector<8x512xf32>
    %226 = vector.extract_strided_slice %225 {offsets = [0, 0], sizes = [8, 128], strides = [1, 1]} : vector<8x512xf32> to vector<8x128xf32>
    %227 = arith.negf %226 : vector<8x128xf32>
    %228 = math.exp %227 : vector<8x128xf32>
    %cst_62 = arith.constant 1.000000e+00 : f32
    %229 = vector.broadcast %cst_62 : f32 to vector<8x128xf32>
    %230 = arith.addf %229, %228 : vector<8x128xf32>
    %231 = arith.divf %229, %230 : vector<8x128xf32>
    %232 = vector.extract_strided_slice %225 {offsets = [0, 128], sizes = [8, 128], strides = [1, 1]} : vector<8x512xf32> to vector<8x128xf32>
    %233 = arith.negf %232 : vector<8x128xf32>
    %234 = math.exp %233 : vector<8x128xf32>
    %cst_63 = arith.constant 1.000000e+00 : f32
    %235 = vector.broadcast %cst_63 : f32 to vector<8x128xf32>
    %236 = arith.addf %235, %234 : vector<8x128xf32>
    %237 = arith.divf %235, %236 : vector<8x128xf32>
    %238 = vector.extract_strided_slice %225 {offsets = [0, 256], sizes = [8, 128], strides = [1, 1]} : vector<8x512xf32> to vector<8x128xf32>
    %239 = math.tanh %238 : vector<8x128xf32>
    %240 = vector.extract_strided_slice %225 {offsets = [0, 384], sizes = [8, 128], strides = [1, 1]} : vector<8x512xf32> to vector<8x128xf32>
    %241 = arith.negf %240 : vector<8x128xf32>
    %242 = math.exp %241 : vector<8x128xf32>
    %cst_64 = arith.constant 1.000000e+00 : f32
    %243 = vector.broadcast %cst_64 : f32 to vector<8x128xf32>
    %244 = arith.addf %243, %242 : vector<8x128xf32>
    %245 = arith.divf %243, %244 : vector<8x128xf32>
    %246 = arith.mulf %237, %214 : vector<8x128xf32>
    %247 = arith.mulf %231, %239 : vector<8x128xf32>
    %248 = arith.addf %246, %247 : vector<8x128xf32>
    %249 = math.tanh %248 : vector<8x128xf32>
    %250 = arith.mulf %245, %249 : vector<8x128xf32>
    %251 = arith.index_cast %220 : i32 to index
    %c0_65 = arith.constant 0 : index
    %252 = vector.load %arg12[%251, %c0_65] : memref<64x128xf32, #tpu.memory_space<vmem>>, vector<8x128xf32>
    tpu.vector_store %arg12[%251, %c0_65], %250 {strides = array<i32>} : memref<64x128xf32, #tpu.memory_space<vmem>>, vector<8x128xf32>,
    %c7_i32 = arith.constant 7 : i32
    %c8_i32_66 = arith.constant 8 : i32
    %253 = arith.muli %c7_i32, %c8_i32_66 : i32
    %254 = tpu.assume_multiple %253, 8 : i32
    %255 = arith.index_cast %254 : i32 to index
    %c0_67 = arith.constant 0 : index
    %256 = vector.load %arg11[%255, %c0_67] : memref<64x512xf32, #tpu.memory_space<vmem>>, vector<8x512xf32>
    %257 = arith.truncf %250 : vector<8x128xf32> to vector<8x128xbf16>
    %cst_68 = arith.constant dense<0.000000e+00> : vector<8x512xf32>
    %258 = tpu.matmul %257, %3, %cst_68 {dimension_numbers = #tpu.dot_dimension_numbers<[1], [0], [0], [1], [0, 0, 1, 1], [], []>} : vector<8x128xbf16>, vector<128x512xbf16>, vector<8x512xf32> -> vector<8x512xf32>
    %259 = arith.addf %256, %258 : vector<8x512xf32>
    %260 = vector.extract_strided_slice %259 {offsets = [0, 0], sizes = [8, 128], strides = [1, 1]} : vector<8x512xf32> to vector<8x128xf32>
    %261 = arith.negf %260 : vector<8x128xf32>
    %262 = math.exp %261 : vector<8x128xf32>
    %cst_69 = arith.constant 1.000000e+00 : f32
    %263 = vector.broadcast %cst_69 : f32 to vector<8x128xf32>
    %264 = arith.addf %263, %262 : vector<8x128xf32>
    %265 = arith.divf %263, %264 : vector<8x128xf32>
    %266 = vector.extract_strided_slice %259 {offsets = [0, 128], sizes = [8, 128], strides = [1, 1]} : vector<8x512xf32> to vector<8x128xf32>
    %267 = arith.negf %266 : vector<8x128xf32>
    %268 = math.exp %267 : vector<8x128xf32>
    %cst_70 = arith.constant 1.000000e+00 : f32
    %269 = vector.broadcast %cst_70 : f32 to vector<8x128xf32>
    %270 = arith.addf %269, %268 : vector<8x128xf32>
    %271 = arith.divf %269, %270 : vector<8x128xf32>
    %272 = vector.extract_strided_slice %259 {offsets = [0, 256], sizes = [8, 128], strides = [1, 1]} : vector<8x512xf32> to vector<8x128xf32>
    %273 = math.tanh %272 : vector<8x128xf32>
    %274 = vector.extract_strided_slice %259 {offsets = [0, 384], sizes = [8, 128], strides = [1, 1]} : vector<8x512xf32> to vector<8x128xf32>
    %275 = arith.negf %274 : vector<8x128xf32>
    %276 = math.exp %275 : vector<8x128xf32>
    %cst_71 = arith.constant 1.000000e+00 : f32
    %277 = vector.broadcast %cst_71 : f32 to vector<8x128xf32>
    %278 = arith.addf %277, %276 : vector<8x128xf32>
    %279 = arith.divf %277, %278 : vector<8x128xf32>
    %280 = arith.mulf %271, %248 : vector<8x128xf32>
    %281 = arith.mulf %265, %273 : vector<8x128xf32>
    %282 = arith.addf %280, %281 : vector<8x128xf32>
    %283 = math.tanh %282 : vector<8x128xf32>
    %284 = arith.mulf %279, %283 : vector<8x128xf32>
    %285 = arith.index_cast %254 : i32 to index
    %c0_72 = arith.constant 0 : index
    %286 = vector.load %arg12[%285, %c0_72] : memref<64x128xf32, #tpu.memory_space<vmem>>, vector<8x128xf32>
    tpu.vector_store %arg12[%285, %c0_72], %284 {strides = array<i32>} : memref<64x128xf32, #tpu.memory_space<vmem>>, vector<8x128xf32>,
    %c8_i32_73 = arith.constant 8 : i32
    %c0_74 = arith.constant 0 : index
    %c0_75 = arith.constant 0 : index
    %c0_76 = arith.constant 0 : index
    %287 = vector.load %arg9[%c0_74, %c0_75, %c0_76] : memref<4x8x128xf32, #tpu.memory_space<vmem>>, vector<1x8x128xf32>
    %288 = vector.shape_cast %287 : vector<1x8x128xf32> to vector<8x128xf32>
    %289 = vector.shape_cast %284 : vector<8x128xf32> to vector<1x8x128xf32>
    tpu.vector_store %arg9[%c0_74, %c0_75, %c0_76], %289 {strides = array<i32>} : memref<4x8x128xf32, #tpu.memory_space<vmem>>, vector<1x8x128xf32>,
    %c0_77 = arith.constant 0 : index
    %c0_78 = arith.constant 0 : index
    %c0_79 = arith.constant 0 : index
    %290 = vector.load %arg10[%c0_77, %c0_78, %c0_79] : memref<4x8x128xf32, #tpu.memory_space<vmem>>, vector<1x8x128xf32>
    %291 = vector.shape_cast %290 : vector<1x8x128xf32> to vector<8x128xf32>
    %292 = vector.shape_cast %282 : vector<8x128xf32> to vector<1x8x128xf32>
    tpu.vector_store %arg10[%c0_77, %c0_78, %c0_79], %292 {strides = array<i32>} : memref<4x8x128xf32, #tpu.memory_space<vmem>>, vector<1x8x128xf32>,
    %c1 = arith.constant 1 : index
    %c0_80 = arith.constant 0 : index
    %c0_81 = arith.constant 0 : index
    %293 = vector.load %arg3[%c1, %c0_80, %c0_81] : memref<4x128x512xbf16, #tpu.memory_space<vmem>>, vector<1x128x512xbf16>
    %294 = vector.shape_cast %293 : vector<1x128x512xbf16> to vector<128x512xbf16>
    %c1_82 = arith.constant 1 : index
    %c0_83 = arith.constant 0 : index
    %c0_84 = arith.constant 0 : index
    %295 = vector.load %arg4[%c1_82, %c0_83, %c0_84] : memref<4x128x512xbf16, #tpu.memory_space<vmem>>, vector<1x128x512xbf16>
    %296 = vector.shape_cast %295 : vector<1x128x512xbf16> to vector<128x512xbf16>
    %c1_85 = arith.constant 1 : index
    %c0_86 = arith.constant 0 : index
    %c0_87 = arith.constant 0 : index
    %297 = vector.load %arg5[%c1_85, %c0_86, %c0_87] : memref<4x1x512xf32, #tpu.memory_space<vmem>>, vector<1x1x512xf32>
    %298 = vector.shape_cast %297 : vector<1x1x512xf32> to vector<1x512xf32>
    %c0_88 = arith.constant 0 : index
    %c0_89 = arith.constant 0 : index
    %299 = vector.load %arg12[%c0_88, %c0_89] : memref<64x128xf32, #tpu.memory_space<vmem>>, vector<64x128xf32>
    %300 = arith.truncf %299 : vector<64x128xf32> to vector<64x128xbf16>
    %cst_90 = arith.constant dense<0.000000e+00> : vector<64x512xf32>
    %301 = tpu.matmul %300, %294, %cst_90 {dimension_numbers = #tpu.dot_dimension_numbers<[1], [0], [0], [1], [0, 0, 1, 1], [], []>} : vector<64x128xbf16>, vector<128x512xbf16>, vector<64x512xf32> -> vector<64x512xf32>
    %302 = vector.broadcast %298 : vector<1x512xf32> to vector<64x512xf32>
    %303 = arith.addf %301, %302 : vector<64x512xf32>
    %c0_91 = arith.constant 0 : index
    %c0_92 = arith.constant 0 : index
    %304 = vector.load %arg11[%c0_91, %c0_92] : memref<64x512xf32, #tpu.memory_space<vmem>>, vector<64x512xf32>
    tpu.vector_store %arg11[%c0_91, %c0_92], %303 {strides = array<i32>} : memref<64x512xf32, #tpu.memory_space<vmem>>, vector<64x512xf32>,
    %c1_93 = arith.constant 1 : index
    %c0_94 = arith.constant 0 : index
    %c0_95 = arith.constant 0 : index
    %305 = vector.load %arg1[%c1_93, %c0_94, %c0_95] : memref<4x8x128xf32, #tpu.memory_space<vmem>>, vector<1x8x128xf32>
    %306 = vector.shape_cast %305 : vector<1x8x128xf32> to vector<8x128xf32>
    %c1_96 = arith.constant 1 : index
    %c0_97 = arith.constant 0 : index
    %c0_98 = arith.constant 0 : index
    %307 = vector.load %arg2[%c1_96, %c0_97, %c0_98] : memref<4x8x128xf32, #tpu.memory_space<vmem>>, vector<1x8x128xf32>
    %308 = vector.shape_cast %307 : vector<1x8x128xf32> to vector<8x128xf32>
    %c0_i32_99 = arith.constant 0 : i32
    %c8_i32_100 = arith.constant 8 : i32
    %309 = arith.muli %c0_i32_99, %c8_i32_100 : i32
    %310 = tpu.assume_multiple %309, 8 : i32
    %311 = arith.index_cast %310 : i32 to index
    %c0_101 = arith.constant 0 : index
    %312 = vector.load %arg11[%311, %c0_101] : memref<64x512xf32, #tpu.memory_space<vmem>>, vector<8x512xf32>
    %313 = arith.truncf %306 : vector<8x128xf32> to vector<8x128xbf16>
    %cst_102 = arith.constant dense<0.000000e+00> : vector<8x512xf32>
    %314 = tpu.matmul %313, %296, %cst_102 {dimension_numbers = #tpu.dot_dimension_numbers<[1], [0], [0], [1], [0, 0, 1, 1], [], []>} : vector<8x128xbf16>, vector<128x512xbf16>, vector<8x512xf32> -> vector<8x512xf32>
    %315 = arith.addf %312, %314 : vector<8x512xf32>
    %316 = vector.extract_strided_slice %315 {offsets = [0, 0], sizes = [8, 128], strides = [1, 1]} : vector<8x512xf32> to vector<8x128xf32>
    %317 = arith.negf %316 : vector<8x128xf32>
    %318 = math.exp %317 : vector<8x128xf32>
    %cst_103 = arith.constant 1.000000e+00 : f32
    %319 = vector.broadcast %cst_103 : f32 to vector<8x128xf32>
    %320 = arith.addf %319, %318 : vector<8x128xf32>
    %321 = arith.divf %319, %320 : vector<8x128xf32>
    %322 = vector.extract_strided_slice %315 {offsets = [0, 128], sizes = [8, 128], strides = [1, 1]} : vector<8x512xf32> to vector<8x128xf32>
    %323 = arith.negf %322 : vector<8x128xf32>
    %324 = math.exp %323 : vector<8x128xf32>
    %cst_104 = arith.constant 1.000000e+00 : f32
    %325 = vector.broadcast %cst_104 : f32 to vector<8x128xf32>
    %326 = arith.addf %325, %324 : vector<8x128xf32>
    %327 = arith.divf %325, %326 : vector<8x128xf32>
    %328 = vector.extract_strided_slice %315 {offsets = [0, 256], sizes = [8, 128], strides = [1, 1]} : vector<8x512xf32> to vector<8x128xf32>
    %329 = math.tanh %328 : vector<8x128xf32>
    %330 = vector.extract_strided_slice %315 {offsets = [0, 384], sizes = [8, 128], strides = [1, 1]} : vector<8x512xf32> to vector<8x128xf32>
    %331 = arith.negf %330 : vector<8x128xf32>
    %332 = math.exp %331 : vector<8x128xf32>
    %cst_105 = arith.constant 1.000000e+00 : f32
    %333 = vector.broadcast %cst_105 : f32 to vector<8x128xf32>
    %334 = arith.addf %333, %332 : vector<8x128xf32>
    %335 = arith.divf %333, %334 : vector<8x128xf32>
    %336 = arith.mulf %327, %308 : vector<8x128xf32>
    %337 = arith.mulf %321, %329 : vector<8x128xf32>
    %338 = arith.addf %336, %337 : vector<8x128xf32>
    %339 = math.tanh %338 : vector<8x128xf32>
    %340 = arith.mulf %335, %339 : vector<8x128xf32>
    %341 = arith.index_cast %310 : i32 to index
    %c0_106 = arith.constant 0 : index
    %342 = vector.load %arg12[%341, %c0_106] : memref<64x128xf32, #tpu.memory_space<vmem>>, vector<8x128xf32>
    tpu.vector_store %arg12[%341, %c0_106], %340 {strides = array<i32>} : memref<64x128xf32, #tpu.memory_space<vmem>>, vector<8x128xf32>,
    %c1_i32_107 = arith.constant 1 : i32
    %c8_i32_108 = arith.constant 8 : i32
    %343 = arith.muli %c1_i32_107, %c8_i32_108 : i32
    %344 = tpu.assume_multiple %343, 8 : i32
    %345 = arith.index_cast %344 : i32 to index
    %c0_109 = arith.constant 0 : index
    %346 = vector.load %arg11[%345, %c0_109] : memref<64x512xf32, #tpu.memory_space<vmem>>, vector<8x512xf32>
    %347 = arith.truncf %340 : vector<8x128xf32> to vector<8x128xbf16>
    %cst_110 = arith.constant dense<0.000000e+00> : vector<8x512xf32>
    %348 = tpu.matmul %347, %296, %cst_110 {dimension_numbers = #tpu.dot_dimension_numbers<[1], [0], [0], [1], [0, 0, 1, 1], [], []>} : vector<8x128xbf16>, vector<128x512xbf16>, vector<8x512xf32> -> vector<8x512xf32>
    %349 = arith.addf %346, %348 : vector<8x512xf32>
    %350 = vector.extract_strided_slice %349 {offsets = [0, 0], sizes = [8, 128], strides = [1, 1]} : vector<8x512xf32> to vector<8x128xf32>
    %351 = arith.negf %350 : vector<8x128xf32>
    %352 = math.exp %351 : vector<8x128xf32>
    %cst_111 = arith.constant 1.000000e+00 : f32
    %353 = vector.broadcast %cst_111 : f32 to vector<8x128xf32>
    %354 = arith.addf %353, %352 : vector<8x128xf32>
    %355 = arith.divf %353, %354 : vector<8x128xf32>
    %356 = vector.extract_strided_slice %349 {offsets = [0, 128], sizes = [8, 128], strides = [1, 1]} : vector<8x512xf32> to vector<8x128xf32>
    %357 = arith.negf %356 : vector<8x128xf32>
    %358 = math.exp %357 : vector<8x128xf32>
    %cst_112 = arith.constant 1.000000e+00 : f32
    %359 = vector.broadcast %cst_112 : f32 to vector<8x128xf32>
    %360 = arith.addf %359, %358 : vector<8x128xf32>
    %361 = arith.divf %359, %360 : vector<8x128xf32>
    %362 = vector.extract_strided_slice %349 {offsets = [0, 256], sizes = [8, 128], strides = [1, 1]} : vector<8x512xf32> to vector<8x128xf32>
    %363 = math.tanh %362 : vector<8x128xf32>
    %364 = vector.extract_strided_slice %349 {offsets = [0, 384], sizes = [8, 128], strides = [1, 1]} : vector<8x512xf32> to vector<8x128xf32>
    %365 = arith.negf %364 : vector<8x128xf32>
    %366 = math.exp %365 : vector<8x128xf32>
    %cst_113 = arith.constant 1.000000e+00 : f32
    %367 = vector.broadcast %cst_113 : f32 to vector<8x128xf32>
    %368 = arith.addf %367, %366 : vector<8x128xf32>
    %369 = arith.divf %367, %368 : vector<8x128xf32>
    %370 = arith.mulf %361, %338 : vector<8x128xf32>
    %371 = arith.mulf %355, %363 : vector<8x128xf32>
    %372 = arith.addf %370, %371 : vector<8x128xf32>
    %373 = math.tanh %372 : vector<8x128xf32>
    %374 = arith.mulf %369, %373 : vector<8x128xf32>
    %375 = arith.index_cast %344 : i32 to index
    %c0_114 = arith.constant 0 : index
    %376 = vector.load %arg12[%375, %c0_114] : memref<64x128xf32, #tpu.memory_space<vmem>>, vector<8x128xf32>
    tpu.vector_store %arg12[%375, %c0_114], %374 {strides = array<i32>} : memref<64x128xf32, #tpu.memory_space<vmem>>, vector<8x128xf32>,
    %c2_i32_115 = arith.constant 2 : i32
    %c8_i32_116 = arith.constant 8 : i32
    %377 = arith.muli %c2_i32_115, %c8_i32_116 : i32
    %378 = tpu.assume_multiple %377, 8 : i32
    %379 = arith.index_cast %378 : i32 to index
    %c0_117 = arith.constant 0 : index
    %380 = vector.load %arg11[%379, %c0_117] : memref<64x512xf32, #tpu.memory_space<vmem>>, vector<8x512xf32>
    %381 = arith.truncf %374 : vector<8x128xf32> to vector<8x128xbf16>
    %cst_118 = arith.constant dense<0.000000e+00> : vector<8x512xf32>
    %382 = tpu.matmul %381, %296, %cst_118 {dimension_numbers = #tpu.dot_dimension_numbers<[1], [0], [0], [1], [0, 0, 1, 1], [], []>} : vector<8x128xbf16>, vector<128x512xbf16>, vector<8x512xf32> -> vector<8x512xf32>
    %383 = arith.addf %380, %382 : vector<8x512xf32>
    %384 = vector.extract_strided_slice %383 {offsets = [0, 0], sizes = [8, 128], strides = [1, 1]} : vector<8x512xf32> to vector<8x128xf32>
    %385 = arith.negf %384 : vector<8x128xf32>
    %386 = math.exp %385 : vector<8x128xf32>
    %cst_119 = arith.constant 1.000000e+00 : f32
    %387 = vector.broadcast %cst_119 : f32 to vector<8x128xf32>
    %388 = arith.addf %387, %386 : vector<8x128xf32>
    %389 = arith.divf %387, %388 : vector<8x128xf32>
    %390 = vector.extract_strided_slice %383 {offsets = [0, 128], sizes = [8, 128], strides = [1, 1]} : vector<8x512xf32> to vector<8x128xf32>
    %391 = arith.negf %390 : vector<8x128xf32>
    %392 = math.exp %391 : vector<8x128xf32>
    %cst_120 = arith.constant 1.000000e+00 : f32
    %393 = vector.broadcast %cst_120 : f32 to vector<8x128xf32>
    %394 = arith.addf %393, %392 : vector<8x128xf32>
    %395 = arith.divf %393, %394 : vector<8x128xf32>
    %396 = vector.extract_strided_slice %383 {offsets = [0, 256], sizes = [8, 128], strides = [1, 1]} : vector<8x512xf32> to vector<8x128xf32>
    %397 = math.tanh %396 : vector<8x128xf32>
    %398 = vector.extract_strided_slice %383 {offsets = [0, 384], sizes = [8, 128], strides = [1, 1]} : vector<8x512xf32> to vector<8x128xf32>
    %399 = arith.negf %398 : vector<8x128xf32>
    %400 = math.exp %399 : vector<8x128xf32>
    %cst_121 = arith.constant 1.000000e+00 : f32
    %401 = vector.broadcast %cst_121 : f32 to vector<8x128xf32>
    %402 = arith.addf %401, %400 : vector<8x128xf32>
    %403 = arith.divf %401, %402 : vector<8x128xf32>
    %404 = arith.mulf %395, %372 : vector<8x128xf32>
    %405 = arith.mulf %389, %397 : vector<8x128xf32>
    %406 = arith.addf %404, %405 : vector<8x128xf32>
    %407 = math.tanh %406 : vector<8x128xf32>
    %408 = arith.mulf %403, %407 : vector<8x128xf32>
    %409 = arith.index_cast %378 : i32 to index
    %c0_122 = arith.constant 0 : index
    %410 = vector.load %arg12[%409, %c0_122] : memref<64x128xf32, #tpu.memory_space<vmem>>, vector<8x128xf32>
    tpu.vector_store %arg12[%409, %c0_122], %408 {strides = array<i32>} : memref<64x128xf32, #tpu.memory_space<vmem>>, vector<8x128xf32>,
    %c3_i32_123 = arith.constant 3 : i32
    %c8_i32_124 = arith.constant 8 : i32
    %411 = arith.muli %c3_i32_123, %c8_i32_124 : i32
    %412 = tpu.assume_multiple %411, 8 : i32
    %413 = arith.index_cast %412 : i32 to index
    %c0_125 = arith.constant 0 : index
    %414 = vector.load %arg11[%413, %c0_125] : memref<64x512xf32, #tpu.memory_space<vmem>>, vector<8x512xf32>
    %415 = arith.truncf %408 : vector<8x128xf32> to vector<8x128xbf16>
    %cst_126 = arith.constant dense<0.000000e+00> : vector<8x512xf32>
    %416 = tpu.matmul %415, %296, %cst_126 {dimension_numbers = #tpu.dot_dimension_numbers<[1], [0], [0], [1], [0, 0, 1, 1], [], []>} : vector<8x128xbf16>, vector<128x512xbf16>, vector<8x512xf32> -> vector<8x512xf32>
    %417 = arith.addf %414, %416 : vector<8x512xf32>
    %418 = vector.extract_strided_slice %417 {offsets = [0, 0], sizes = [8, 128], strides = [1, 1]} : vector<8x512xf32> to vector<8x128xf32>
    %419 = arith.negf %418 : vector<8x128xf32>
    %420 = math.exp %419 : vector<8x128xf32>
    %cst_127 = arith.constant 1.000000e+00 : f32
    %421 = vector.broadcast %cst_127 : f32 to vector<8x128xf32>
    %422 = arith.addf %421, %420 : vector<8x128xf32>
    %423 = arith.divf %421, %422 : vector<8x128xf32>
    %424 = vector.extract_strided_slice %417 {offsets = [0, 128], sizes = [8, 128], strides = [1, 1]} : vector<8x512xf32> to vector<8x128xf32>
    %425 = arith.negf %424 : vector<8x128xf32>
    %426 = math.exp %425 : vector<8x128xf32>
    %cst_128 = arith.constant 1.000000e+00 : f32
    %427 = vector.broadcast %cst_128 : f32 to vector<8x128xf32>
    %428 = arith.addf %427, %426 : vector<8x128xf32>
    %429 = arith.divf %427, %428 : vector<8x128xf32>
    %430 = vector.extract_strided_slice %417 {offsets = [0, 256], sizes = [8, 128], strides = [1, 1]} : vector<8x512xf32> to vector<8x128xf32>
    %431 = math.tanh %430 : vector<8x128xf32>
    %432 = vector.extract_strided_slice %417 {offsets = [0, 384], sizes = [8, 128], strides = [1, 1]} : vector<8x512xf32> to vector<8x128xf32>
    %433 = arith.negf %432 : vector<8x128xf32>
    %434 = math.exp %433 : vector<8x128xf32>
    %cst_129 = arith.constant 1.000000e+00 : f32
    %435 = vector.broadcast %cst_129 : f32 to vector<8x128xf32>
    %436 = arith.addf %435, %434 : vector<8x128xf32>
    %437 = arith.divf %435, %436 : vector<8x128xf32>
    %438 = arith.mulf %429, %406 : vector<8x128xf32>
    %439 = arith.mulf %423, %431 : vector<8x128xf32>
    %440 = arith.addf %438, %439 : vector<8x128xf32>
    %441 = math.tanh %440 : vector<8x128xf32>
    %442 = arith.mulf %437, %441 : vector<8x128xf32>
    %443 = arith.index_cast %412 : i32 to index
    %c0_130 = arith.constant 0 : index
    %444 = vector.load %arg12[%443, %c0_130] : memref<64x128xf32, #tpu.memory_space<vmem>>, vector<8x128xf32>
    tpu.vector_store %arg12[%443, %c0_130], %442 {strides = array<i32>} : memref<64x128xf32, #tpu.memory_space<vmem>>, vector<8x128xf32>,
    %c4_i32_131 = arith.constant 4 : i32
    %c8_i32_132 = arith.constant 8 : i32
    %445 = arith.muli %c4_i32_131, %c8_i32_132 : i32
    %446 = tpu.assume_multiple %445, 8 : i32
    %447 = arith.index_cast %446 : i32 to index
    %c0_133 = arith.constant 0 : index
    %448 = vector.load %arg11[%447, %c0_133] : memref<64x512xf32, #tpu.memory_space<vmem>>, vector<8x512xf32>
    %449 = arith.truncf %442 : vector<8x128xf32> to vector<8x128xbf16>
    %cst_134 = arith.constant dense<0.000000e+00> : vector<8x512xf32>
    %450 = tpu.matmul %449, %296, %cst_134 {dimension_numbers = #tpu.dot_dimension_numbers<[1], [0], [0], [1], [0, 0, 1, 1], [], []>} : vector<8x128xbf16>, vector<128x512xbf16>, vector<8x512xf32> -> vector<8x512xf32>
    %451 = arith.addf %448, %450 : vector<8x512xf32>
    %452 = vector.extract_strided_slice %451 {offsets = [0, 0], sizes = [8, 128], strides = [1, 1]} : vector<8x512xf32> to vector<8x128xf32>
    %453 = arith.negf %452 : vector<8x128xf32>
    %454 = math.exp %453 : vector<8x128xf32>
    %cst_135 = arith.constant 1.000000e+00 : f32
    %455 = vector.broadcast %cst_135 : f32 to vector<8x128xf32>
    %456 = arith.addf %455, %454 : vector<8x128xf32>
    %457 = arith.divf %455, %456 : vector<8x128xf32>
    %458 = vector.extract_strided_slice %451 {offsets = [0, 128], sizes = [8, 128], strides = [1, 1]} : vector<8x512xf32> to vector<8x128xf32>
    %459 = arith.negf %458 : vector<8x128xf32>
    %460 = math.exp %459 : vector<8x128xf32>
    %cst_136 = arith.constant 1.000000e+00 : f32
    %461 = vector.broadcast %cst_136 : f32 to vector<8x128xf32>
    %462 = arith.addf %461, %460 : vector<8x128xf32>
    %463 = arith.divf %461, %462 : vector<8x128xf32>
    %464 = vector.extract_strided_slice %451 {offsets = [0, 256], sizes = [8, 128], strides = [1, 1]} : vector<8x512xf32> to vector<8x128xf32>
    %465 = math.tanh %464 : vector<8x128xf32>
    %466 = vector.extract_strided_slice %451 {offsets = [0, 384], sizes = [8, 128], strides = [1, 1]} : vector<8x512xf32> to vector<8x128xf32>
    %467 = arith.negf %466 : vector<8x128xf32>
    %468 = math.exp %467 : vector<8x128xf32>
    %cst_137 = arith.constant 1.000000e+00 : f32
    %469 = vector.broadcast %cst_137 : f32 to vector<8x128xf32>
    %470 = arith.addf %469, %468 : vector<8x128xf32>
    %471 = arith.divf %469, %470 : vector<8x128xf32>
    %472 = arith.mulf %463, %440 : vector<8x128xf32>
    %473 = arith.mulf %457, %465 : vector<8x128xf32>
    %474 = arith.addf %472, %473 : vector<8x128xf32>
    %475 = math.tanh %474 : vector<8x128xf32>
    %476 = arith.mulf %471, %475 : vector<8x128xf32>
    %477 = arith.index_cast %446 : i32 to index
    %c0_138 = arith.constant 0 : index
    %478 = vector.load %arg12[%477, %c0_138] : memref<64x128xf32, #tpu.memory_space<vmem>>, vector<8x128xf32>
    tpu.vector_store %arg12[%477, %c0_138], %476 {strides = array<i32>} : memref<64x128xf32, #tpu.memory_space<vmem>>, vector<8x128xf32>,
    %c5_i32_139 = arith.constant 5 : i32
    %c8_i32_140 = arith.constant 8 : i32
    %479 = arith.muli %c5_i32_139, %c8_i32_140 : i32
    %480 = tpu.assume_multiple %479, 8 : i32
    %481 = arith.index_cast %480 : i32 to index
    %c0_141 = arith.constant 0 : index
    %482 = vector.load %arg11[%481, %c0_141] : memref<64x512xf32, #tpu.memory_space<vmem>>, vector<8x512xf32>
    %483 = arith.truncf %476 : vector<8x128xf32> to vector<8x128xbf16>
    %cst_142 = arith.constant dense<0.000000e+00> : vector<8x512xf32>
    %484 = tpu.matmul %483, %296, %cst_142 {dimension_numbers = #tpu.dot_dimension_numbers<[1], [0], [0], [1], [0, 0, 1, 1], [], []>} : vector<8x128xbf16>, vector<128x512xbf16>, vector<8x512xf32> -> vector<8x512xf32>
    %485 = arith.addf %482, %484 : vector<8x512xf32>
    %486 = vector.extract_strided_slice %485 {offsets = [0, 0], sizes = [8, 128], strides = [1, 1]} : vector<8x512xf32> to vector<8x128xf32>
    %487 = arith.negf %486 : vector<8x128xf32>
    %488 = math.exp %487 : vector<8x128xf32>
    %cst_143 = arith.constant 1.000000e+00 : f32
    %489 = vector.broadcast %cst_143 : f32 to vector<8x128xf32>
    %490 = arith.addf %489, %488 : vector<8x128xf32>
    %491 = arith.divf %489, %490 : vector<8x128xf32>
    %492 = vector.extract_strided_slice %485 {offsets = [0, 128], sizes = [8, 128], strides = [1, 1]} : vector<8x512xf32> to vector<8x128xf32>
    %493 = arith.negf %492 : vector<8x128xf32>
    %494 = math.exp %493 : vector<8x128xf32>
    %cst_144 = arith.constant 1.000000e+00 : f32
    %495 = vector.broadcast %cst_144 : f32 to vector<8x128xf32>
    %496 = arith.addf %495, %494 : vector<8x128xf32>
    %497 = arith.divf %495, %496 : vector<8x128xf32>
    %498 = vector.extract_strided_slice %485 {offsets = [0, 256], sizes = [8, 128], strides = [1, 1]} : vector<8x512xf32> to vector<8x128xf32>
    %499 = math.tanh %498 : vector<8x128xf32>
    %500 = vector.extract_strided_slice %485 {offsets = [0, 384], sizes = [8, 128], strides = [1, 1]} : vector<8x512xf32> to vector<8x128xf32>
    %501 = arith.negf %500 : vector<8x128xf32>
    %502 = math.exp %501 : vector<8x128xf32>
    %cst_145 = arith.constant 1.000000e+00 : f32
    %503 = vector.broadcast %cst_145 : f32 to vector<8x128xf32>
    %504 = arith.addf %503, %502 : vector<8x128xf32>
    %505 = arith.divf %503, %504 : vector<8x128xf32>
    %506 = arith.mulf %497, %474 : vector<8x128xf32>
    %507 = arith.mulf %491, %499 : vector<8x128xf32>
    %508 = arith.addf %506, %507 : vector<8x128xf32>
    %509 = math.tanh %508 : vector<8x128xf32>
    %510 = arith.mulf %505, %509 : vector<8x128xf32>
    %511 = arith.index_cast %480 : i32 to index
    %c0_146 = arith.constant 0 : index
    %512 = vector.load %arg12[%511, %c0_146] : memref<64x128xf32, #tpu.memory_space<vmem>>, vector<8x128xf32>
    tpu.vector_store %arg12[%511, %c0_146], %510 {strides = array<i32>} : memref<64x128xf32, #tpu.memory_space<vmem>>, vector<8x128xf32>,
    %c6_i32_147 = arith.constant 6 : i32
    %c8_i32_148 = arith.constant 8 : i32
    %513 = arith.muli %c6_i32_147, %c8_i32_148 : i32
    %514 = tpu.assume_multiple %513, 8 : i32
    %515 = arith.index_cast %514 : i32 to index
    %c0_149 = arith.constant 0 : index
    %516 = vector.load %arg11[%515, %c0_149] : memref<64x512xf32, #tpu.memory_space<vmem>>, vector<8x512xf32>
    %517 = arith.truncf %510 : vector<8x128xf32> to vector<8x128xbf16>
    %cst_150 = arith.constant dense<0.000000e+00> : vector<8x512xf32>
    %518 = tpu.matmul %517, %296, %cst_150 {dimension_numbers = #tpu.dot_dimension_numbers<[1], [0], [0], [1], [0, 0, 1, 1], [], []>} : vector<8x128xbf16>, vector<128x512xbf16>, vector<8x512xf32> -> vector<8x512xf32>
    %519 = arith.addf %516, %518 : vector<8x512xf32>
    %520 = vector.extract_strided_slice %519 {offsets = [0, 0], sizes = [8, 128], strides = [1, 1]} : vector<8x512xf32> to vector<8x128xf32>
    %521 = arith.negf %520 : vector<8x128xf32>
    %522 = math.exp %521 : vector<8x128xf32>
    %cst_151 = arith.constant 1.000000e+00 : f32
    %523 = vector.broadcast %cst_151 : f32 to vector<8x128xf32>
    %524 = arith.addf %523, %522 : vector<8x128xf32>
    %525 = arith.divf %523, %524 : vector<8x128xf32>
    %526 = vector.extract_strided_slice %519 {offsets = [0, 128], sizes = [8, 128], strides = [1, 1]} : vector<8x512xf32> to vector<8x128xf32>
    %527 = arith.negf %526 : vector<8x128xf32>
    %528 = math.exp %527 : vector<8x128xf32>
    %cst_152 = arith.constant 1.000000e+00 : f32
    %529 = vector.broadcast %cst_152 : f32 to vector<8x128xf32>
    %530 = arith.addf %529, %528 : vector<8x128xf32>
    %531 = arith.divf %529, %530 : vector<8x128xf32>
    %532 = vector.extract_strided_slice %519 {offsets = [0, 256], sizes = [8, 128], strides = [1, 1]} : vector<8x512xf32> to vector<8x128xf32>
    %533 = math.tanh %532 : vector<8x128xf32>
    %534 = vector.extract_strided_slice %519 {offsets = [0, 384], sizes = [8, 128], strides = [1, 1]} : vector<8x512xf32> to vector<8x128xf32>
    %535 = arith.negf %534 : vector<8x128xf32>
    %536 = math.exp %535 : vector<8x128xf32>
    %cst_153 = arith.constant 1.000000e+00 : f32
    %537 = vector.broadcast %cst_153 : f32 to vector<8x128xf32>
    %538 = arith.addf %537, %536 : vector<8x128xf32>
    %539 = arith.divf %537, %538 : vector<8x128xf32>
    %540 = arith.mulf %531, %508 : vector<8x128xf32>
    %541 = arith.mulf %525, %533 : vector<8x128xf32>
    %542 = arith.addf %540, %541 : vector<8x128xf32>
    %543 = math.tanh %542 : vector<8x128xf32>
    %544 = arith.mulf %539, %543 : vector<8x128xf32>
    %545 = arith.index_cast %514 : i32 to index
    %c0_154 = arith.constant 0 : index
    %546 = vector.load %arg12[%545, %c0_154] : memref<64x128xf32, #tpu.memory_space<vmem>>, vector<8x128xf32>
    tpu.vector_store %arg12[%545, %c0_154], %544 {strides = array<i32>} : memref<64x128xf32, #tpu.memory_space<vmem>>, vector<8x128xf32>,
    %c7_i32_155 = arith.constant 7 : i32
    %c8_i32_156 = arith.constant 8 : i32
    %547 = arith.muli %c7_i32_155, %c8_i32_156 : i32
    %548 = tpu.assume_multiple %547, 8 : i32
    %549 = arith.index_cast %548 : i32 to index
    %c0_157 = arith.constant 0 : index
    %550 = vector.load %arg11[%549, %c0_157] : memref<64x512xf32, #tpu.memory_space<vmem>>, vector<8x512xf32>
    %551 = arith.truncf %544 : vector<8x128xf32> to vector<8x128xbf16>
    %cst_158 = arith.constant dense<0.000000e+00> : vector<8x512xf32>
    %552 = tpu.matmul %551, %296, %cst_158 {dimension_numbers = #tpu.dot_dimension_numbers<[1], [0], [0], [1], [0, 0, 1, 1], [], []>} : vector<8x128xbf16>, vector<128x512xbf16>, vector<8x512xf32> -> vector<8x512xf32>
    %553 = arith.addf %550, %552 : vector<8x512xf32>
    %554 = vector.extract_strided_slice %553 {offsets = [0, 0], sizes = [8, 128], strides = [1, 1]} : vector<8x512xf32> to vector<8x128xf32>
    %555 = arith.negf %554 : vector<8x128xf32>
    %556 = math.exp %555 : vector<8x128xf32>
    %cst_159 = arith.constant 1.000000e+00 : f32
    %557 = vector.broadcast %cst_159 : f32 to vector<8x128xf32>
    %558 = arith.addf %557, %556 : vector<8x128xf32>
    %559 = arith.divf %557, %558 : vector<8x128xf32>
    %560 = vector.extract_strided_slice %553 {offsets = [0, 128], sizes = [8, 128], strides = [1, 1]} : vector<8x512xf32> to vector<8x128xf32>
    %561 = arith.negf %560 : vector<8x128xf32>
    %562 = math.exp %561 : vector<8x128xf32>
    %cst_160 = arith.constant 1.000000e+00 : f32
    %563 = vector.broadcast %cst_160 : f32 to vector<8x128xf32>
    %564 = arith.addf %563, %562 : vector<8x128xf32>
    %565 = arith.divf %563, %564 : vector<8x128xf32>
    %566 = vector.extract_strided_slice %553 {offsets = [0, 256], sizes = [8, 128], strides = [1, 1]} : vector<8x512xf32> to vector<8x128xf32>
    %567 = math.tanh %566 : vector<8x128xf32>
    %568 = vector.extract_strided_slice %553 {offsets = [0, 384], sizes = [8, 128], strides = [1, 1]} : vector<8x512xf32> to vector<8x128xf32>
    %569 = arith.negf %568 : vector<8x128xf32>
    %570 = math.exp %569 : vector<8x128xf32>
    %cst_161 = arith.constant 1.000000e+00 : f32
    %571 = vector.broadcast %cst_161 : f32 to vector<8x128xf32>
    %572 = arith.addf %571, %570 : vector<8x128xf32>
    %573 = arith.divf %571, %572 : vector<8x128xf32>
    %574 = arith.mulf %565, %542 : vector<8x128xf32>
    %575 = arith.mulf %559, %567 : vector<8x128xf32>
    %576 = arith.addf %574, %575 : vector<8x128xf32>
    %577 = math.tanh %576 : vector<8x128xf32>
    %578 = arith.mulf %573, %577 : vector<8x128xf32>
    %579 = arith.index_cast %548 : i32 to index
    %c0_162 = arith.constant 0 : index
    %580 = vector.load %arg12[%579, %c0_162] : memref<64x128xf32, #tpu.memory_space<vmem>>, vector<8x128xf32>
    tpu.vector_store %arg12[%579, %c0_162], %578 {strides = array<i32>} : memref<64x128xf32, #tpu.memory_space<vmem>>, vector<8x128xf32>,
    %c8_i32_163 = arith.constant 8 : i32
    %c1_164 = arith.constant 1 : index
    %c0_165 = arith.constant 0 : index
    %c0_166 = arith.constant 0 : index
    %581 = vector.load %arg9[%c1_164, %c0_165, %c0_166] : memref<4x8x128xf32, #tpu.memory_space<vmem>>, vector<1x8x128xf32>
    %582 = vector.shape_cast %581 : vector<1x8x128xf32> to vector<8x128xf32>
    %583 = vector.shape_cast %578 : vector<8x128xf32> to vector<1x8x128xf32>
    tpu.vector_store %arg9[%c1_164, %c0_165, %c0_166], %583 {strides = array<i32>} : memref<4x8x128xf32, #tpu.memory_space<vmem>>, vector<1x8x128xf32>,
    %c1_167 = arith.constant 1 : index
    %c0_168 = arith.constant 0 : index
    %c0_169 = arith.constant 0 : index
    %584 = vector.load %arg10[%c1_167, %c0_168, %c0_169] : memref<4x8x128xf32, #tpu.memory_space<vmem>>, vector<1x8x128xf32>
    %585 = vector.shape_cast %584 : vector<1x8x128xf32> to vector<8x128xf32>
    %586 = vector.shape_cast %576 : vector<8x128xf32> to vector<1x8x128xf32>
    tpu.vector_store %arg10[%c1_167, %c0_168, %c0_169], %586 {strides = array<i32>} : memref<4x8x128xf32, #tpu.memory_space<vmem>>, vector<1x8x128xf32>,
    %c2 = arith.constant 2 : index
    %c0_170 = arith.constant 0 : index
    %c0_171 = arith.constant 0 : index
    %587 = vector.load %arg3[%c2, %c0_170, %c0_171] : memref<4x128x512xbf16, #tpu.memory_space<vmem>>, vector<1x128x512xbf16>
    %588 = vector.shape_cast %587 : vector<1x128x512xbf16> to vector<128x512xbf16>
    %c2_172 = arith.constant 2 : index
    %c0_173 = arith.constant 0 : index
    %c0_174 = arith.constant 0 : index
    %589 = vector.load %arg4[%c2_172, %c0_173, %c0_174] : memref<4x128x512xbf16, #tpu.memory_space<vmem>>, vector<1x128x512xbf16>
    %590 = vector.shape_cast %589 : vector<1x128x512xbf16> to vector<128x512xbf16>
    %c2_175 = arith.constant 2 : index
    %c0_176 = arith.constant 0 : index
    %c0_177 = arith.constant 0 : index
    %591 = vector.load %arg5[%c2_175, %c0_176, %c0_177] : memref<4x1x512xf32, #tpu.memory_space<vmem>>, vector<1x1x512xf32>
    %592 = vector.shape_cast %591 : vector<1x1x512xf32> to vector<1x512xf32>
    %c0_178 = arith.constant 0 : index
    %c0_179 = arith.constant 0 : index
    %593 = vector.load %arg12[%c0_178, %c0_179] : memref<64x128xf32, #tpu.memory_space<vmem>>, vector<64x128xf32>
    %594 = arith.truncf %593 : vector<64x128xf32> to vector<64x128xbf16>
    %cst_180 = arith.constant dense<0.000000e+00> : vector<64x512xf32>
    %595 = tpu.matmul %594, %588, %cst_180 {dimension_numbers = #tpu.dot_dimension_numbers<[1], [0], [0], [1], [0, 0, 1, 1], [], []>} : vector<64x128xbf16>, vector<128x512xbf16>, vector<64x512xf32> -> vector<64x512xf32>
    %596 = vector.broadcast %592 : vector<1x512xf32> to vector<64x512xf32>
    %597 = arith.addf %595, %596 : vector<64x512xf32>
    %c0_181 = arith.constant 0 : index
    %c0_182 = arith.constant 0 : index
    %598 = vector.load %arg11[%c0_181, %c0_182] : memref<64x512xf32, #tpu.memory_space<vmem>>, vector<64x512xf32>
    tpu.vector_store %arg11[%c0_181, %c0_182], %597 {strides = array<i32>} : memref<64x512xf32, #tpu.memory_space<vmem>>, vector<64x512xf32>,
    %c2_183 = arith.constant 2 : index
    %c0_184 = arith.constant 0 : index
    %c0_185 = arith.constant 0 : index
    %599 = vector.load %arg1[%c2_183, %c0_184, %c0_185] : memref<4x8x128xf32, #tpu.memory_space<vmem>>, vector<1x8x128xf32>
    %600 = vector.shape_cast %599 : vector<1x8x128xf32> to vector<8x128xf32>
    %c2_186 = arith.constant 2 : index
    %c0_187 = arith.constant 0 : index
    %c0_188 = arith.constant 0 : index
    %601 = vector.load %arg2[%c2_186, %c0_187, %c0_188] : memref<4x8x128xf32, #tpu.memory_space<vmem>>, vector<1x8x128xf32>
    %602 = vector.shape_cast %601 : vector<1x8x128xf32> to vector<8x128xf32>
    %c0_i32_189 = arith.constant 0 : i32
    %c8_i32_190 = arith.constant 8 : i32
    %603 = arith.muli %c0_i32_189, %c8_i32_190 : i32
    %604 = tpu.assume_multiple %603, 8 : i32
    %605 = arith.index_cast %604 : i32 to index
    %c0_191 = arith.constant 0 : index
    %606 = vector.load %arg11[%605, %c0_191] : memref<64x512xf32, #tpu.memory_space<vmem>>, vector<8x512xf32>
    %607 = arith.truncf %600 : vector<8x128xf32> to vector<8x128xbf16>
    %cst_192 = arith.constant dense<0.000000e+00> : vector<8x512xf32>
    %608 = tpu.matmul %607, %590, %cst_192 {dimension_numbers = #tpu.dot_dimension_numbers<[1], [0], [0], [1], [0, 0, 1, 1], [], []>} : vector<8x128xbf16>, vector<128x512xbf16>, vector<8x512xf32> -> vector<8x512xf32>
    %609 = arith.addf %606, %608 : vector<8x512xf32>
    %610 = vector.extract_strided_slice %609 {offsets = [0, 0], sizes = [8, 128], strides = [1, 1]} : vector<8x512xf32> to vector<8x128xf32>
    %611 = arith.negf %610 : vector<8x128xf32>
    %612 = math.exp %611 : vector<8x128xf32>
    %cst_193 = arith.constant 1.000000e+00 : f32
    %613 = vector.broadcast %cst_193 : f32 to vector<8x128xf32>
    %614 = arith.addf %613, %612 : vector<8x128xf32>
    %615 = arith.divf %613, %614 : vector<8x128xf32>
    %616 = vector.extract_strided_slice %609 {offsets = [0, 128], sizes = [8, 128], strides = [1, 1]} : vector<8x512xf32> to vector<8x128xf32>
    %617 = arith.negf %616 : vector<8x128xf32>
    %618 = math.exp %617 : vector<8x128xf32>
    %cst_194 = arith.constant 1.000000e+00 : f32
    %619 = vector.broadcast %cst_194 : f32 to vector<8x128xf32>
    %620 = arith.addf %619, %618 : vector<8x128xf32>
    %621 = arith.divf %619, %620 : vector<8x128xf32>
    %622 = vector.extract_strided_slice %609 {offsets = [0, 256], sizes = [8, 128], strides = [1, 1]} : vector<8x512xf32> to vector<8x128xf32>
    %623 = math.tanh %622 : vector<8x128xf32>
    %624 = vector.extract_strided_slice %609 {offsets = [0, 384], sizes = [8, 128], strides = [1, 1]} : vector<8x512xf32> to vector<8x128xf32>
    %625 = arith.negf %624 : vector<8x128xf32>
    %626 = math.exp %625 : vector<8x128xf32>
    %cst_195 = arith.constant 1.000000e+00 : f32
    %627 = vector.broadcast %cst_195 : f32 to vector<8x128xf32>
    %628 = arith.addf %627, %626 : vector<8x128xf32>
    %629 = arith.divf %627, %628 : vector<8x128xf32>
    %630 = arith.mulf %621, %602 : vector<8x128xf32>
    %631 = arith.mulf %615, %623 : vector<8x128xf32>
    %632 = arith.addf %630, %631 : vector<8x128xf32>
    %633 = math.tanh %632 : vector<8x128xf32>
    %634 = arith.mulf %629, %633 : vector<8x128xf32>
    %635 = arith.index_cast %604 : i32 to index
    %c0_196 = arith.constant 0 : index
    %636 = vector.load %arg12[%635, %c0_196] : memref<64x128xf32, #tpu.memory_space<vmem>>, vector<8x128xf32>
    tpu.vector_store %arg12[%635, %c0_196], %634 {strides = array<i32>} : memref<64x128xf32, #tpu.memory_space<vmem>>, vector<8x128xf32>,
    %c1_i32_197 = arith.constant 1 : i32
    %c8_i32_198 = arith.constant 8 : i32
    %637 = arith.muli %c1_i32_197, %c8_i32_198 : i32
    %638 = tpu.assume_multiple %637, 8 : i32
    %639 = arith.index_cast %638 : i32 to index
    %c0_199 = arith.constant 0 : index
    %640 = vector.load %arg11[%639, %c0_199] : memref<64x512xf32, #tpu.memory_space<vmem>>, vector<8x512xf32>
    %641 = arith.truncf %634 : vector<8x128xf32> to vector<8x128xbf16>
    %cst_200 = arith.constant dense<0.000000e+00> : vector<8x512xf32>
    %642 = tpu.matmul %641, %590, %cst_200 {dimension_numbers = #tpu.dot_dimension_numbers<[1], [0], [0], [1], [0, 0, 1, 1], [], []>} : vector<8x128xbf16>, vector<128x512xbf16>, vector<8x512xf32> -> vector<8x512xf32>
    %643 = arith.addf %640, %642 : vector<8x512xf32>
    %644 = vector.extract_strided_slice %643 {offsets = [0, 0], sizes = [8, 128], strides = [1, 1]} : vector<8x512xf32> to vector<8x128xf32>
    %645 = arith.negf %644 : vector<8x128xf32>
    %646 = math.exp %645 : vector<8x128xf32>
    %cst_201 = arith.constant 1.000000e+00 : f32
    %647 = vector.broadcast %cst_201 : f32 to vector<8x128xf32>
    %648 = arith.addf %647, %646 : vector<8x128xf32>
    %649 = arith.divf %647, %648 : vector<8x128xf32>
    %650 = vector.extract_strided_slice %643 {offsets = [0, 128], sizes = [8, 128], strides = [1, 1]} : vector<8x512xf32> to vector<8x128xf32>
    %651 = arith.negf %650 : vector<8x128xf32>
    %652 = math.exp %651 : vector<8x128xf32>
    %cst_202 = arith.constant 1.000000e+00 : f32
    %653 = vector.broadcast %cst_202 : f32 to vector<8x128xf32>
    %654 = arith.addf %653, %652 : vector<8x128xf32>
    %655 = arith.divf %653, %654 : vector<8x128xf32>
    %656 = vector.extract_strided_slice %643 {offsets = [0, 256], sizes = [8, 128], strides = [1, 1]} : vector<8x512xf32> to vector<8x128xf32>
    %657 = math.tanh %656 : vector<8x128xf32>
    %658 = vector.extract_strided_slice %643 {offsets = [0, 384], sizes = [8, 128], strides = [1, 1]} : vector<8x512xf32> to vector<8x128xf32>
    %659 = arith.negf %658 : vector<8x128xf32>
    %660 = math.exp %659 : vector<8x128xf32>
    %cst_203 = arith.constant 1.000000e+00 : f32
    %661 = vector.broadcast %cst_203 : f32 to vector<8x128xf32>
    %662 = arith.addf %661, %660 : vector<8x128xf32>
    %663 = arith.divf %661, %662 : vector<8x128xf32>
    %664 = arith.mulf %655, %632 : vector<8x128xf32>
    %665 = arith.mulf %649, %657 : vector<8x128xf32>
    %666 = arith.addf %664, %665 : vector<8x128xf32>
    %667 = math.tanh %666 : vector<8x128xf32>
    %668 = arith.mulf %663, %667 : vector<8x128xf32>
    %669 = arith.index_cast %638 : i32 to index
    %c0_204 = arith.constant 0 : index
    %670 = vector.load %arg12[%669, %c0_204] : memref<64x128xf32, #tpu.memory_space<vmem>>, vector<8x128xf32>
    tpu.vector_store %arg12[%669, %c0_204], %668 {strides = array<i32>} : memref<64x128xf32, #tpu.memory_space<vmem>>, vector<8x128xf32>,
    %c2_i32_205 = arith.constant 2 : i32
    %c8_i32_206 = arith.constant 8 : i32
    %671 = arith.muli %c2_i32_205, %c8_i32_206 : i32
    %672 = tpu.assume_multiple %671, 8 : i32
    %673 = arith.index_cast %672 : i32 to index
    %c0_207 = arith.constant 0 : index
    %674 = vector.load %arg11[%673, %c0_207] : memref<64x512xf32, #tpu.memory_space<vmem>>, vector<8x512xf32>
    %675 = arith.truncf %668 : vector<8x128xf32> to vector<8x128xbf16>
    %cst_208 = arith.constant dense<0.000000e+00> : vector<8x512xf32>
    %676 = tpu.matmul %675, %590, %cst_208 {dimension_numbers = #tpu.dot_dimension_numbers<[1], [0], [0], [1], [0, 0, 1, 1], [], []>} : vector<8x128xbf16>, vector<128x512xbf16>, vector<8x512xf32> -> vector<8x512xf32>
    %677 = arith.addf %674, %676 : vector<8x512xf32>
    %678 = vector.extract_strided_slice %677 {offsets = [0, 0], sizes = [8, 128], strides = [1, 1]} : vector<8x512xf32> to vector<8x128xf32>
    %679 = arith.negf %678 : vector<8x128xf32>
    %680 = math.exp %679 : vector<8x128xf32>
    %cst_209 = arith.constant 1.000000e+00 : f32
    %681 = vector.broadcast %cst_209 : f32 to vector<8x128xf32>
    %682 = arith.addf %681, %680 : vector<8x128xf32>
    %683 = arith.divf %681, %682 : vector<8x128xf32>
    %684 = vector.extract_strided_slice %677 {offsets = [0, 128], sizes = [8, 128], strides = [1, 1]} : vector<8x512xf32> to vector<8x128xf32>
    %685 = arith.negf %684 : vector<8x128xf32>
    %686 = math.exp %685 : vector<8x128xf32>
    %cst_210 = arith.constant 1.000000e+00 : f32
    %687 = vector.broadcast %cst_210 : f32 to vector<8x128xf32>
    %688 = arith.addf %687, %686 : vector<8x128xf32>
    %689 = arith.divf %687, %688 : vector<8x128xf32>
    %690 = vector.extract_strided_slice %677 {offsets = [0, 256], sizes = [8, 128], strides = [1, 1]} : vector<8x512xf32> to vector<8x128xf32>
    %691 = math.tanh %690 : vector<8x128xf32>
    %692 = vector.extract_strided_slice %677 {offsets = [0, 384], sizes = [8, 128], strides = [1, 1]} : vector<8x512xf32> to vector<8x128xf32>
    %693 = arith.negf %692 : vector<8x128xf32>
    %694 = math.exp %693 : vector<8x128xf32>
    %cst_211 = arith.constant 1.000000e+00 : f32
    %695 = vector.broadcast %cst_211 : f32 to vector<8x128xf32>
    %696 = arith.addf %695, %694 : vector<8x128xf32>
    %697 = arith.divf %695, %696 : vector<8x128xf32>
    %698 = arith.mulf %689, %666 : vector<8x128xf32>
    %699 = arith.mulf %683, %691 : vector<8x128xf32>
    %700 = arith.addf %698, %699 : vector<8x128xf32>
    %701 = math.tanh %700 : vector<8x128xf32>
    %702 = arith.mulf %697, %701 : vector<8x128xf32>
    %703 = arith.index_cast %672 : i32 to index
    %c0_212 = arith.constant 0 : index
    %704 = vector.load %arg12[%703, %c0_212] : memref<64x128xf32, #tpu.memory_space<vmem>>, vector<8x128xf32>
    tpu.vector_store %arg12[%703, %c0_212], %702 {strides = array<i32>} : memref<64x128xf32, #tpu.memory_space<vmem>>, vector<8x128xf32>,
    %c3_i32_213 = arith.constant 3 : i32
    %c8_i32_214 = arith.constant 8 : i32
    %705 = arith.muli %c3_i32_213, %c8_i32_214 : i32
    %706 = tpu.assume_multiple %705, 8 : i32
    %707 = arith.index_cast %706 : i32 to index
    %c0_215 = arith.constant 0 : index
    %708 = vector.load %arg11[%707, %c0_215] : memref<64x512xf32, #tpu.memory_space<vmem>>, vector<8x512xf32>
    %709 = arith.truncf %702 : vector<8x128xf32> to vector<8x128xbf16>
    %cst_216 = arith.constant dense<0.000000e+00> : vector<8x512xf32>
    %710 = tpu.matmul %709, %590, %cst_216 {dimension_numbers = #tpu.dot_dimension_numbers<[1], [0], [0], [1], [0, 0, 1, 1], [], []>} : vector<8x128xbf16>, vector<128x512xbf16>, vector<8x512xf32> -> vector<8x512xf32>
    %711 = arith.addf %708, %710 : vector<8x512xf32>
    %712 = vector.extract_strided_slice %711 {offsets = [0, 0], sizes = [8, 128], strides = [1, 1]} : vector<8x512xf32> to vector<8x128xf32>
    %713 = arith.negf %712 : vector<8x128xf32>
    %714 = math.exp %713 : vector<8x128xf32>
    %cst_217 = arith.constant 1.000000e+00 : f32
    %715 = vector.broadcast %cst_217 : f32 to vector<8x128xf32>
    %716 = arith.addf %715, %714 : vector<8x128xf32>
    %717 = arith.divf %715, %716 : vector<8x128xf32>
    %718 = vector.extract_strided_slice %711 {offsets = [0, 128], sizes = [8, 128], strides = [1, 1]} : vector<8x512xf32> to vector<8x128xf32>
    %719 = arith.negf %718 : vector<8x128xf32>
    %720 = math.exp %719 : vector<8x128xf32>
    %cst_218 = arith.constant 1.000000e+00 : f32
    %721 = vector.broadcast %cst_218 : f32 to vector<8x128xf32>
    %722 = arith.addf %721, %720 : vector<8x128xf32>
    %723 = arith.divf %721, %722 : vector<8x128xf32>
    %724 = vector.extract_strided_slice %711 {offsets = [0, 256], sizes = [8, 128], strides = [1, 1]} : vector<8x512xf32> to vector<8x128xf32>
    %725 = math.tanh %724 : vector<8x128xf32>
    %726 = vector.extract_strided_slice %711 {offsets = [0, 384], sizes = [8, 128], strides = [1, 1]} : vector<8x512xf32> to vector<8x128xf32>
    %727 = arith.negf %726 : vector<8x128xf32>
    %728 = math.exp %727 : vector<8x128xf32>
    %cst_219 = arith.constant 1.000000e+00 : f32
    %729 = vector.broadcast %cst_219 : f32 to vector<8x128xf32>
    %730 = arith.addf %729, %728 : vector<8x128xf32>
    %731 = arith.divf %729, %730 : vector<8x128xf32>
    %732 = arith.mulf %723, %700 : vector<8x128xf32>
    %733 = arith.mulf %717, %725 : vector<8x128xf32>
    %734 = arith.addf %732, %733 : vector<8x128xf32>
    %735 = math.tanh %734 : vector<8x128xf32>
    %736 = arith.mulf %731, %735 : vector<8x128xf32>
    %737 = arith.index_cast %706 : i32 to index
    %c0_220 = arith.constant 0 : index
    %738 = vector.load %arg12[%737, %c0_220] : memref<64x128xf32, #tpu.memory_space<vmem>>, vector<8x128xf32>
    tpu.vector_store %arg12[%737, %c0_220], %736 {strides = array<i32>} : memref<64x128xf32, #tpu.memory_space<vmem>>, vector<8x128xf32>,
    %c4_i32_221 = arith.constant 4 : i32
    %c8_i32_222 = arith.constant 8 : i32
    %739 = arith.muli %c4_i32_221, %c8_i32_222 : i32
    %740 = tpu.assume_multiple %739, 8 : i32
    %741 = arith.index_cast %740 : i32 to index
    %c0_223 = arith.constant 0 : index
    %742 = vector.load %arg11[%741, %c0_223] : memref<64x512xf32, #tpu.memory_space<vmem>>, vector<8x512xf32>
    %743 = arith.truncf %736 : vector<8x128xf32> to vector<8x128xbf16>
    %cst_224 = arith.constant dense<0.000000e+00> : vector<8x512xf32>
    %744 = tpu.matmul %743, %590, %cst_224 {dimension_numbers = #tpu.dot_dimension_numbers<[1], [0], [0], [1], [0, 0, 1, 1], [], []>} : vector<8x128xbf16>, vector<128x512xbf16>, vector<8x512xf32> -> vector<8x512xf32>
    %745 = arith.addf %742, %744 : vector<8x512xf32>
    %746 = vector.extract_strided_slice %745 {offsets = [0, 0], sizes = [8, 128], strides = [1, 1]} : vector<8x512xf32> to vector<8x128xf32>
    %747 = arith.negf %746 : vector<8x128xf32>
    %748 = math.exp %747 : vector<8x128xf32>
    %cst_225 = arith.constant 1.000000e+00 : f32
    %749 = vector.broadcast %cst_225 : f32 to vector<8x128xf32>
    %750 = arith.addf %749, %748 : vector<8x128xf32>
    %751 = arith.divf %749, %750 : vector<8x128xf32>
    %752 = vector.extract_strided_slice %745 {offsets = [0, 128], sizes = [8, 128], strides = [1, 1]} : vector<8x512xf32> to vector<8x128xf32>
    %753 = arith.negf %752 : vector<8x128xf32>
    %754 = math.exp %753 : vector<8x128xf32>
    %cst_226 = arith.constant 1.000000e+00 : f32
    %755 = vector.broadcast %cst_226 : f32 to vector<8x128xf32>
    %756 = arith.addf %755, %754 : vector<8x128xf32>
    %757 = arith.divf %755, %756 : vector<8x128xf32>
    %758 = vector.extract_strided_slice %745 {offsets = [0, 256], sizes = [8, 128], strides = [1, 1]} : vector<8x512xf32> to vector<8x128xf32>
    %759 = math.tanh %758 : vector<8x128xf32>
    %760 = vector.extract_strided_slice %745 {offsets = [0, 384], sizes = [8, 128], strides = [1, 1]} : vector<8x512xf32> to vector<8x128xf32>
    %761 = arith.negf %760 : vector<8x128xf32>
    %762 = math.exp %761 : vector<8x128xf32>
    %cst_227 = arith.constant 1.000000e+00 : f32
    %763 = vector.broadcast %cst_227 : f32 to vector<8x128xf32>
    %764 = arith.addf %763, %762 : vector<8x128xf32>
    %765 = arith.divf %763, %764 : vector<8x128xf32>
    %766 = arith.mulf %757, %734 : vector<8x128xf32>
    %767 = arith.mulf %751, %759 : vector<8x128xf32>
    %768 = arith.addf %766, %767 : vector<8x128xf32>
    %769 = math.tanh %768 : vector<8x128xf32>
    %770 = arith.mulf %765, %769 : vector<8x128xf32>
    %771 = arith.index_cast %740 : i32 to index
    %c0_228 = arith.constant 0 : index
    %772 = vector.load %arg12[%771, %c0_228] : memref<64x128xf32, #tpu.memory_space<vmem>>, vector<8x128xf32>
    tpu.vector_store %arg12[%771, %c0_228], %770 {strides = array<i32>} : memref<64x128xf32, #tpu.memory_space<vmem>>, vector<8x128xf32>,
    %c5_i32_229 = arith.constant 5 : i32
    %c8_i32_230 = arith.constant 8 : i32
    %773 = arith.muli %c5_i32_229, %c8_i32_230 : i32
    %774 = tpu.assume_multiple %773, 8 : i32
    %775 = arith.index_cast %774 : i32 to index
    %c0_231 = arith.constant 0 : index
    %776 = vector.load %arg11[%775, %c0_231] : memref<64x512xf32, #tpu.memory_space<vmem>>, vector<8x512xf32>
    %777 = arith.truncf %770 : vector<8x128xf32> to vector<8x128xbf16>
    %cst_232 = arith.constant dense<0.000000e+00> : vector<8x512xf32>
    %778 = tpu.matmul %777, %590, %cst_232 {dimension_numbers = #tpu.dot_dimension_numbers<[1], [0], [0], [1], [0, 0, 1, 1], [], []>} : vector<8x128xbf16>, vector<128x512xbf16>, vector<8x512xf32> -> vector<8x512xf32>
    %779 = arith.addf %776, %778 : vector<8x512xf32>
    %780 = vector.extract_strided_slice %779 {offsets = [0, 0], sizes = [8, 128], strides = [1, 1]} : vector<8x512xf32> to vector<8x128xf32>
    %781 = arith.negf %780 : vector<8x128xf32>
    %782 = math.exp %781 : vector<8x128xf32>
    %cst_233 = arith.constant 1.000000e+00 : f32
    %783 = vector.broadcast %cst_233 : f32 to vector<8x128xf32>
    %784 = arith.addf %783, %782 : vector<8x128xf32>
    %785 = arith.divf %783, %784 : vector<8x128xf32>
    %786 = vector.extract_strided_slice %779 {offsets = [0, 128], sizes = [8, 128], strides = [1, 1]} : vector<8x512xf32> to vector<8x128xf32>
    %787 = arith.negf %786 : vector<8x128xf32>
    %788 = math.exp %787 : vector<8x128xf32>
    %cst_234 = arith.constant 1.000000e+00 : f32
    %789 = vector.broadcast %cst_234 : f32 to vector<8x128xf32>
    %790 = arith.addf %789, %788 : vector<8x128xf32>
    %791 = arith.divf %789, %790 : vector<8x128xf32>
    %792 = vector.extract_strided_slice %779 {offsets = [0, 256], sizes = [8, 128], strides = [1, 1]} : vector<8x512xf32> to vector<8x128xf32>
    %793 = math.tanh %792 : vector<8x128xf32>
    %794 = vector.extract_strided_slice %779 {offsets = [0, 384], sizes = [8, 128], strides = [1, 1]} : vector<8x512xf32> to vector<8x128xf32>
    %795 = arith.negf %794 : vector<8x128xf32>
    %796 = math.exp %795 : vector<8x128xf32>
    %cst_235 = arith.constant 1.000000e+00 : f32
    %797 = vector.broadcast %cst_235 : f32 to vector<8x128xf32>
    %798 = arith.addf %797, %796 : vector<8x128xf32>
    %799 = arith.divf %797, %798 : vector<8x128xf32>
    %800 = arith.mulf %791, %768 : vector<8x128xf32>
    %801 = arith.mulf %785, %793 : vector<8x128xf32>
    %802 = arith.addf %800, %801 : vector<8x128xf32>
    %803 = math.tanh %802 : vector<8x128xf32>
    %804 = arith.mulf %799, %803 : vector<8x128xf32>
    %805 = arith.index_cast %774 : i32 to index
    %c0_236 = arith.constant 0 : index
    %806 = vector.load %arg12[%805, %c0_236] : memref<64x128xf32, #tpu.memory_space<vmem>>, vector<8x128xf32>
    tpu.vector_store %arg12[%805, %c0_236], %804 {strides = array<i32>} : memref<64x128xf32, #tpu.memory_space<vmem>>, vector<8x128xf32>,
    %c6_i32_237 = arith.constant 6 : i32
    %c8_i32_238 = arith.constant 8 : i32
    %807 = arith.muli %c6_i32_237, %c8_i32_238 : i32
    %808 = tpu.assume_multiple %807, 8 : i32
    %809 = arith.index_cast %808 : i32 to index
    %c0_239 = arith.constant 0 : index
    %810 = vector.load %arg11[%809, %c0_239] : memref<64x512xf32, #tpu.memory_space<vmem>>, vector<8x512xf32>
    %811 = arith.truncf %804 : vector<8x128xf32> to vector<8x128xbf16>
    %cst_240 = arith.constant dense<0.000000e+00> : vector<8x512xf32>
    %812 = tpu.matmul %811, %590, %cst_240 {dimension_numbers = #tpu.dot_dimension_numbers<[1], [0], [0], [1], [0, 0, 1, 1], [], []>} : vector<8x128xbf16>, vector<128x512xbf16>, vector<8x512xf32> -> vector<8x512xf32>
    %813 = arith.addf %810, %812 : vector<8x512xf32>
    %814 = vector.extract_strided_slice %813 {offsets = [0, 0], sizes = [8, 128], strides = [1, 1]} : vector<8x512xf32> to vector<8x128xf32>
    %815 = arith.negf %814 : vector<8x128xf32>
    %816 = math.exp %815 : vector<8x128xf32>
    %cst_241 = arith.constant 1.000000e+00 : f32
    %817 = vector.broadcast %cst_241 : f32 to vector<8x128xf32>
    %818 = arith.addf %817, %816 : vector<8x128xf32>
    %819 = arith.divf %817, %818 : vector<8x128xf32>
    %820 = vector.extract_strided_slice %813 {offsets = [0, 128], sizes = [8, 128], strides = [1, 1]} : vector<8x512xf32> to vector<8x128xf32>
    %821 = arith.negf %820 : vector<8x128xf32>
    %822 = math.exp %821 : vector<8x128xf32>
    %cst_242 = arith.constant 1.000000e+00 : f32
    %823 = vector.broadcast %cst_242 : f32 to vector<8x128xf32>
    %824 = arith.addf %823, %822 : vector<8x128xf32>
    %825 = arith.divf %823, %824 : vector<8x128xf32>
    %826 = vector.extract_strided_slice %813 {offsets = [0, 256], sizes = [8, 128], strides = [1, 1]} : vector<8x512xf32> to vector<8x128xf32>
    %827 = math.tanh %826 : vector<8x128xf32>
    %828 = vector.extract_strided_slice %813 {offsets = [0, 384], sizes = [8, 128], strides = [1, 1]} : vector<8x512xf32> to vector<8x128xf32>
    %829 = arith.negf %828 : vector<8x128xf32>
    %830 = math.exp %829 : vector<8x128xf32>
    %cst_243 = arith.constant 1.000000e+00 : f32
    %831 = vector.broadcast %cst_243 : f32 to vector<8x128xf32>
    %832 = arith.addf %831, %830 : vector<8x128xf32>
    %833 = arith.divf %831, %832 : vector<8x128xf32>
    %834 = arith.mulf %825, %802 : vector<8x128xf32>
    %835 = arith.mulf %819, %827 : vector<8x128xf32>
    %836 = arith.addf %834, %835 : vector<8x128xf32>
    %837 = math.tanh %836 : vector<8x128xf32>
    %838 = arith.mulf %833, %837 : vector<8x128xf32>
    %839 = arith.index_cast %808 : i32 to index
    %c0_244 = arith.constant 0 : index
    %840 = vector.load %arg12[%839, %c0_244] : memref<64x128xf32, #tpu.memory_space<vmem>>, vector<8x128xf32>
    tpu.vector_store %arg12[%839, %c0_244], %838 {strides = array<i32>} : memref<64x128xf32, #tpu.memory_space<vmem>>, vector<8x128xf32>,
    %c7_i32_245 = arith.constant 7 : i32
    %c8_i32_246 = arith.constant 8 : i32
    %841 = arith.muli %c7_i32_245, %c8_i32_246 : i32
    %842 = tpu.assume_multiple %841, 8 : i32
    %843 = arith.index_cast %842 : i32 to index
    %c0_247 = arith.constant 0 : index
    %844 = vector.load %arg11[%843, %c0_247] : memref<64x512xf32, #tpu.memory_space<vmem>>, vector<8x512xf32>
    %845 = arith.truncf %838 : vector<8x128xf32> to vector<8x128xbf16>
    %cst_248 = arith.constant dense<0.000000e+00> : vector<8x512xf32>
    %846 = tpu.matmul %845, %590, %cst_248 {dimension_numbers = #tpu.dot_dimension_numbers<[1], [0], [0], [1], [0, 0, 1, 1], [], []>} : vector<8x128xbf16>, vector<128x512xbf16>, vector<8x512xf32> -> vector<8x512xf32>
    %847 = arith.addf %844, %846 : vector<8x512xf32>
    %848 = vector.extract_strided_slice %847 {offsets = [0, 0], sizes = [8, 128], strides = [1, 1]} : vector<8x512xf32> to vector<8x128xf32>
    %849 = arith.negf %848 : vector<8x128xf32>
    %850 = math.exp %849 : vector<8x128xf32>
    %cst_249 = arith.constant 1.000000e+00 : f32
    %851 = vector.broadcast %cst_249 : f32 to vector<8x128xf32>
    %852 = arith.addf %851, %850 : vector<8x128xf32>
    %853 = arith.divf %851, %852 : vector<8x128xf32>
    %854 = vector.extract_strided_slice %847 {offsets = [0, 128], sizes = [8, 128], strides = [1, 1]} : vector<8x512xf32> to vector<8x128xf32>
    %855 = arith.negf %854 : vector<8x128xf32>
    %856 = math.exp %855 : vector<8x128xf32>
    %cst_250 = arith.constant 1.000000e+00 : f32
    %857 = vector.broadcast %cst_250 : f32 to vector<8x128xf32>
    %858 = arith.addf %857, %856 : vector<8x128xf32>
    %859 = arith.divf %857, %858 : vector<8x128xf32>
    %860 = vector.extract_strided_slice %847 {offsets = [0, 256], sizes = [8, 128], strides = [1, 1]} : vector<8x512xf32> to vector<8x128xf32>
    %861 = math.tanh %860 : vector<8x128xf32>
    %862 = vector.extract_strided_slice %847 {offsets = [0, 384], sizes = [8, 128], strides = [1, 1]} : vector<8x512xf32> to vector<8x128xf32>
    %863 = arith.negf %862 : vector<8x128xf32>
    %864 = math.exp %863 : vector<8x128xf32>
    %cst_251 = arith.constant 1.000000e+00 : f32
    %865 = vector.broadcast %cst_251 : f32 to vector<8x128xf32>
    %866 = arith.addf %865, %864 : vector<8x128xf32>
    %867 = arith.divf %865, %866 : vector<8x128xf32>
    %868 = arith.mulf %859, %836 : vector<8x128xf32>
    %869 = arith.mulf %853, %861 : vector<8x128xf32>
    %870 = arith.addf %868, %869 : vector<8x128xf32>
    %871 = math.tanh %870 : vector<8x128xf32>
    %872 = arith.mulf %867, %871 : vector<8x128xf32>
    %873 = arith.index_cast %842 : i32 to index
    %c0_252 = arith.constant 0 : index
    %874 = vector.load %arg12[%873, %c0_252] : memref<64x128xf32, #tpu.memory_space<vmem>>, vector<8x128xf32>
    tpu.vector_store %arg12[%873, %c0_252], %872 {strides = array<i32>} : memref<64x128xf32, #tpu.memory_space<vmem>>, vector<8x128xf32>,
    %c8_i32_253 = arith.constant 8 : i32
    %c2_254 = arith.constant 2 : index
    %c0_255 = arith.constant 0 : index
    %c0_256 = arith.constant 0 : index
    %875 = vector.load %arg9[%c2_254, %c0_255, %c0_256] : memref<4x8x128xf32, #tpu.memory_space<vmem>>, vector<1x8x128xf32>
    %876 = vector.shape_cast %875 : vector<1x8x128xf32> to vector<8x128xf32>
    %877 = vector.shape_cast %872 : vector<8x128xf32> to vector<1x8x128xf32>
    tpu.vector_store %arg9[%c2_254, %c0_255, %c0_256], %877 {strides = array<i32>} : memref<4x8x128xf32, #tpu.memory_space<vmem>>, vector<1x8x128xf32>,
    %c2_257 = arith.constant 2 : index
    %c0_258 = arith.constant 0 : index
    %c0_259 = arith.constant 0 : index
    %878 = vector.load %arg10[%c2_257, %c0_258, %c0_259] : memref<4x8x128xf32, #tpu.memory_space<vmem>>, vector<1x8x128xf32>
    %879 = vector.shape_cast %878 : vector<1x8x128xf32> to vector<8x128xf32>
    %880 = vector.shape_cast %870 : vector<8x128xf32> to vector<1x8x128xf32>
    tpu.vector_store %arg10[%c2_257, %c0_258, %c0_259], %880 {strides = array<i32>} : memref<4x8x128xf32, #tpu.memory_space<vmem>>, vector<1x8x128xf32>,
    %c3 = arith.constant 3 : index
    %c0_260 = arith.constant 0 : index
    %c0_261 = arith.constant 0 : index
    %881 = vector.load %arg3[%c3, %c0_260, %c0_261] : memref<4x128x512xbf16, #tpu.memory_space<vmem>>, vector<1x128x512xbf16>
    %882 = vector.shape_cast %881 : vector<1x128x512xbf16> to vector<128x512xbf16>
    %c3_262 = arith.constant 3 : index
    %c0_263 = arith.constant 0 : index
    %c0_264 = arith.constant 0 : index
    %883 = vector.load %arg4[%c3_262, %c0_263, %c0_264] : memref<4x128x512xbf16, #tpu.memory_space<vmem>>, vector<1x128x512xbf16>
    %884 = vector.shape_cast %883 : vector<1x128x512xbf16> to vector<128x512xbf16>
    %c3_265 = arith.constant 3 : index
    %c0_266 = arith.constant 0 : index
    %c0_267 = arith.constant 0 : index
    %885 = vector.load %arg5[%c3_265, %c0_266, %c0_267] : memref<4x1x512xf32, #tpu.memory_space<vmem>>, vector<1x1x512xf32>
    %886 = vector.shape_cast %885 : vector<1x1x512xf32> to vector<1x512xf32>
    %c0_268 = arith.constant 0 : index
    %c0_269 = arith.constant 0 : index
    %887 = vector.load %arg12[%c0_268, %c0_269] : memref<64x128xf32, #tpu.memory_space<vmem>>, vector<64x128xf32>
    %888 = arith.truncf %887 : vector<64x128xf32> to vector<64x128xbf16>
    %cst_270 = arith.constant dense<0.000000e+00> : vector<64x512xf32>
    %889 = tpu.matmul %888, %882, %cst_270 {dimension_numbers = #tpu.dot_dimension_numbers<[1], [0], [0], [1], [0, 0, 1, 1], [], []>} : vector<64x128xbf16>, vector<128x512xbf16>, vector<64x512xf32> -> vector<64x512xf32>
    %890 = vector.broadcast %886 : vector<1x512xf32> to vector<64x512xf32>
    %891 = arith.addf %889, %890 : vector<64x512xf32>
    %c0_271 = arith.constant 0 : index
    %c0_272 = arith.constant 0 : index
    %892 = vector.load %arg11[%c0_271, %c0_272] : memref<64x512xf32, #tpu.memory_space<vmem>>, vector<64x512xf32>
    tpu.vector_store %arg11[%c0_271, %c0_272], %891 {strides = array<i32>} : memref<64x512xf32, #tpu.memory_space<vmem>>, vector<64x512xf32>,
    %c3_273 = arith.constant 3 : index
    %c0_274 = arith.constant 0 : index
    %c0_275 = arith.constant 0 : index
    %893 = vector.load %arg1[%c3_273, %c0_274, %c0_275] : memref<4x8x128xf32, #tpu.memory_space<vmem>>, vector<1x8x128xf32>
    %894 = vector.shape_cast %893 : vector<1x8x128xf32> to vector<8x128xf32>
    %c3_276 = arith.constant 3 : index
    %c0_277 = arith.constant 0 : index
    %c0_278 = arith.constant 0 : index
    %895 = vector.load %arg2[%c3_276, %c0_277, %c0_278] : memref<4x8x128xf32, #tpu.memory_space<vmem>>, vector<1x8x128xf32>
    %896 = vector.shape_cast %895 : vector<1x8x128xf32> to vector<8x128xf32>
    %c0_i32_279 = arith.constant 0 : i32
    %c8_i32_280 = arith.constant 8 : i32
    %897 = arith.muli %c0_i32_279, %c8_i32_280 : i32
    %898 = tpu.assume_multiple %897, 8 : i32
    %899 = arith.index_cast %898 : i32 to index
    %c0_281 = arith.constant 0 : index
    %900 = vector.load %arg11[%899, %c0_281] : memref<64x512xf32, #tpu.memory_space<vmem>>, vector<8x512xf32>
    %901 = arith.truncf %894 : vector<8x128xf32> to vector<8x128xbf16>
    %cst_282 = arith.constant dense<0.000000e+00> : vector<8x512xf32>
    %902 = tpu.matmul %901, %884, %cst_282 {dimension_numbers = #tpu.dot_dimension_numbers<[1], [0], [0], [1], [0, 0, 1, 1], [], []>} : vector<8x128xbf16>, vector<128x512xbf16>, vector<8x512xf32> -> vector<8x512xf32>
    %903 = arith.addf %900, %902 : vector<8x512xf32>
    %904 = vector.extract_strided_slice %903 {offsets = [0, 0], sizes = [8, 128], strides = [1, 1]} : vector<8x512xf32> to vector<8x128xf32>
    %905 = arith.negf %904 : vector<8x128xf32>
    %906 = math.exp %905 : vector<8x128xf32>
    %cst_283 = arith.constant 1.000000e+00 : f32
    %907 = vector.broadcast %cst_283 : f32 to vector<8x128xf32>
    %908 = arith.addf %907, %906 : vector<8x128xf32>
    %909 = arith.divf %907, %908 : vector<8x128xf32>
    %910 = vector.extract_strided_slice %903 {offsets = [0, 128], sizes = [8, 128], strides = [1, 1]} : vector<8x512xf32> to vector<8x128xf32>
    %911 = arith.negf %910 : vector<8x128xf32>
    %912 = math.exp %911 : vector<8x128xf32>
    %cst_284 = arith.constant 1.000000e+00 : f32
    %913 = vector.broadcast %cst_284 : f32 to vector<8x128xf32>
    %914 = arith.addf %913, %912 : vector<8x128xf32>
    %915 = arith.divf %913, %914 : vector<8x128xf32>
    %916 = vector.extract_strided_slice %903 {offsets = [0, 256], sizes = [8, 128], strides = [1, 1]} : vector<8x512xf32> to vector<8x128xf32>
    %917 = math.tanh %916 : vector<8x128xf32>
    %918 = vector.extract_strided_slice %903 {offsets = [0, 384], sizes = [8, 128], strides = [1, 1]} : vector<8x512xf32> to vector<8x128xf32>
    %919 = arith.negf %918 : vector<8x128xf32>
    %920 = math.exp %919 : vector<8x128xf32>
    %cst_285 = arith.constant 1.000000e+00 : f32
    %921 = vector.broadcast %cst_285 : f32 to vector<8x128xf32>
    %922 = arith.addf %921, %920 : vector<8x128xf32>
    %923 = arith.divf %921, %922 : vector<8x128xf32>
    %924 = arith.mulf %915, %896 : vector<8x128xf32>
    %925 = arith.mulf %909, %917 : vector<8x128xf32>
    %926 = arith.addf %924, %925 : vector<8x128xf32>
    %927 = math.tanh %926 : vector<8x128xf32>
    %928 = arith.mulf %923, %927 : vector<8x128xf32>
    %c1_i32_286 = arith.constant 1 : i32
    %c8_i32_287 = arith.constant 8 : i32
    %929 = arith.muli %c1_i32_286, %c8_i32_287 : i32
    %930 = tpu.assume_multiple %929, 8 : i32
    %931 = arith.index_cast %930 : i32 to index
    %c0_288 = arith.constant 0 : index
    %932 = vector.load %arg11[%931, %c0_288] : memref<64x512xf32, #tpu.memory_space<vmem>>, vector<8x512xf32>
    %933 = arith.truncf %928 : vector<8x128xf32> to vector<8x128xbf16>
    %cst_289 = arith.constant dense<0.000000e+00> : vector<8x512xf32>
    %934 = tpu.matmul %933, %884, %cst_289 {dimension_numbers = #tpu.dot_dimension_numbers<[1], [0], [0], [1], [0, 0, 1, 1], [], []>} : vector<8x128xbf16>, vector<128x512xbf16>, vector<8x512xf32> -> vector<8x512xf32>
    %935 = arith.addf %932, %934 : vector<8x512xf32>
    %936 = vector.extract_strided_slice %935 {offsets = [0, 0], sizes = [8, 128], strides = [1, 1]} : vector<8x512xf32> to vector<8x128xf32>
    %937 = arith.negf %936 : vector<8x128xf32>
    %938 = math.exp %937 : vector<8x128xf32>
    %cst_290 = arith.constant 1.000000e+00 : f32
    %939 = vector.broadcast %cst_290 : f32 to vector<8x128xf32>
    %940 = arith.addf %939, %938 : vector<8x128xf32>
    %941 = arith.divf %939, %940 : vector<8x128xf32>
    %942 = vector.extract_strided_slice %935 {offsets = [0, 128], sizes = [8, 128], strides = [1, 1]} : vector<8x512xf32> to vector<8x128xf32>
    %943 = arith.negf %942 : vector<8x128xf32>
    %944 = math.exp %943 : vector<8x128xf32>
    %cst_291 = arith.constant 1.000000e+00 : f32
    %945 = vector.broadcast %cst_291 : f32 to vector<8x128xf32>
    %946 = arith.addf %945, %944 : vector<8x128xf32>
    %947 = arith.divf %945, %946 : vector<8x128xf32>
    %948 = vector.extract_strided_slice %935 {offsets = [0, 256], sizes = [8, 128], strides = [1, 1]} : vector<8x512xf32> to vector<8x128xf32>
    %949 = math.tanh %948 : vector<8x128xf32>
    %950 = vector.extract_strided_slice %935 {offsets = [0, 384], sizes = [8, 128], strides = [1, 1]} : vector<8x512xf32> to vector<8x128xf32>
    %951 = arith.negf %950 : vector<8x128xf32>
    %952 = math.exp %951 : vector<8x128xf32>
    %cst_292 = arith.constant 1.000000e+00 : f32
    %953 = vector.broadcast %cst_292 : f32 to vector<8x128xf32>
    %954 = arith.addf %953, %952 : vector<8x128xf32>
    %955 = arith.divf %953, %954 : vector<8x128xf32>
    %956 = arith.mulf %947, %926 : vector<8x128xf32>
    %957 = arith.mulf %941, %949 : vector<8x128xf32>
    %958 = arith.addf %956, %957 : vector<8x128xf32>
    %959 = math.tanh %958 : vector<8x128xf32>
    %960 = arith.mulf %955, %959 : vector<8x128xf32>
    %c2_i32_293 = arith.constant 2 : i32
    %c8_i32_294 = arith.constant 8 : i32
    %961 = arith.muli %c2_i32_293, %c8_i32_294 : i32
    %962 = tpu.assume_multiple %961, 8 : i32
    %963 = arith.index_cast %962 : i32 to index
    %c0_295 = arith.constant 0 : index
    %964 = vector.load %arg11[%963, %c0_295] : memref<64x512xf32, #tpu.memory_space<vmem>>, vector<8x512xf32>
    %965 = arith.truncf %960 : vector<8x128xf32> to vector<8x128xbf16>
    %cst_296 = arith.constant dense<0.000000e+00> : vector<8x512xf32>
    %966 = tpu.matmul %965, %884, %cst_296 {dimension_numbers = #tpu.dot_dimension_numbers<[1], [0], [0], [1], [0, 0, 1, 1], [], []>} : vector<8x128xbf16>, vector<128x512xbf16>, vector<8x512xf32> -> vector<8x512xf32>
    %967 = arith.addf %964, %966 : vector<8x512xf32>
    %968 = vector.extract_strided_slice %967 {offsets = [0, 0], sizes = [8, 128], strides = [1, 1]} : vector<8x512xf32> to vector<8x128xf32>
    %969 = arith.negf %968 : vector<8x128xf32>
    %970 = math.exp %969 : vector<8x128xf32>
    %cst_297 = arith.constant 1.000000e+00 : f32
    %971 = vector.broadcast %cst_297 : f32 to vector<8x128xf32>
    %972 = arith.addf %971, %970 : vector<8x128xf32>
    %973 = arith.divf %971, %972 : vector<8x128xf32>
    %974 = vector.extract_strided_slice %967 {offsets = [0, 128], sizes = [8, 128], strides = [1, 1]} : vector<8x512xf32> to vector<8x128xf32>
    %975 = arith.negf %974 : vector<8x128xf32>
    %976 = math.exp %975 : vector<8x128xf32>
    %cst_298 = arith.constant 1.000000e+00 : f32
    %977 = vector.broadcast %cst_298 : f32 to vector<8x128xf32>
    %978 = arith.addf %977, %976 : vector<8x128xf32>
    %979 = arith.divf %977, %978 : vector<8x128xf32>
    %980 = vector.extract_strided_slice %967 {offsets = [0, 256], sizes = [8, 128], strides = [1, 1]} : vector<8x512xf32> to vector<8x128xf32>
    %981 = math.tanh %980 : vector<8x128xf32>
    %982 = vector.extract_strided_slice %967 {offsets = [0, 384], sizes = [8, 128], strides = [1, 1]} : vector<8x512xf32> to vector<8x128xf32>
    %983 = arith.negf %982 : vector<8x128xf32>
    %984 = math.exp %983 : vector<8x128xf32>
    %cst_299 = arith.constant 1.000000e+00 : f32
    %985 = vector.broadcast %cst_299 : f32 to vector<8x128xf32>
    %986 = arith.addf %985, %984 : vector<8x128xf32>
    %987 = arith.divf %985, %986 : vector<8x128xf32>
    %988 = arith.mulf %979, %958 : vector<8x128xf32>
    %989 = arith.mulf %973, %981 : vector<8x128xf32>
    %990 = arith.addf %988, %989 : vector<8x128xf32>
    %991 = math.tanh %990 : vector<8x128xf32>
    %992 = arith.mulf %987, %991 : vector<8x128xf32>
    %c3_i32_300 = arith.constant 3 : i32
    %c8_i32_301 = arith.constant 8 : i32
    %993 = arith.muli %c3_i32_300, %c8_i32_301 : i32
    %994 = tpu.assume_multiple %993, 8 : i32
    %995 = arith.index_cast %994 : i32 to index
    %c0_302 = arith.constant 0 : index
    %996 = vector.load %arg11[%995, %c0_302] : memref<64x512xf32, #tpu.memory_space<vmem>>, vector<8x512xf32>
    %997 = arith.truncf %992 : vector<8x128xf32> to vector<8x128xbf16>
    %cst_303 = arith.constant dense<0.000000e+00> : vector<8x512xf32>
    %998 = tpu.matmul %997, %884, %cst_303 {dimension_numbers = #tpu.dot_dimension_numbers<[1], [0], [0], [1], [0, 0, 1, 1], [], []>} : vector<8x128xbf16>, vector<128x512xbf16>, vector<8x512xf32> -> vector<8x512xf32>
    %999 = arith.addf %996, %998 : vector<8x512xf32>
    %1000 = vector.extract_strided_slice %999 {offsets = [0, 0], sizes = [8, 128], strides = [1, 1]} : vector<8x512xf32> to vector<8x128xf32>
    %1001 = arith.negf %1000 : vector<8x128xf32>
    %1002 = math.exp %1001 : vector<8x128xf32>
    %cst_304 = arith.constant 1.000000e+00 : f32
    %1003 = vector.broadcast %cst_304 : f32 to vector<8x128xf32>
    %1004 = arith.addf %1003, %1002 : vector<8x128xf32>
    %1005 = arith.divf %1003, %1004 : vector<8x128xf32>
    %1006 = vector.extract_strided_slice %999 {offsets = [0, 128], sizes = [8, 128], strides = [1, 1]} : vector<8x512xf32> to vector<8x128xf32>
    %1007 = arith.negf %1006 : vector<8x128xf32>
    %1008 = math.exp %1007 : vector<8x128xf32>
    %cst_305 = arith.constant 1.000000e+00 : f32
    %1009 = vector.broadcast %cst_305 : f32 to vector<8x128xf32>
    %1010 = arith.addf %1009, %1008 : vector<8x128xf32>
    %1011 = arith.divf %1009, %1010 : vector<8x128xf32>
    %1012 = vector.extract_strided_slice %999 {offsets = [0, 256], sizes = [8, 128], strides = [1, 1]} : vector<8x512xf32> to vector<8x128xf32>
    %1013 = math.tanh %1012 : vector<8x128xf32>
    %1014 = vector.extract_strided_slice %999 {offsets = [0, 384], sizes = [8, 128], strides = [1, 1]} : vector<8x512xf32> to vector<8x128xf32>
    %1015 = arith.negf %1014 : vector<8x128xf32>
    %1016 = math.exp %1015 : vector<8x128xf32>
    %cst_306 = arith.constant 1.000000e+00 : f32
    %1017 = vector.broadcast %cst_306 : f32 to vector<8x128xf32>
    %1018 = arith.addf %1017, %1016 : vector<8x128xf32>
    %1019 = arith.divf %1017, %1018 : vector<8x128xf32>
    %1020 = arith.mulf %1011, %990 : vector<8x128xf32>
    %1021 = arith.mulf %1005, %1013 : vector<8x128xf32>
    %1022 = arith.addf %1020, %1021 : vector<8x128xf32>
    %1023 = math.tanh %1022 : vector<8x128xf32>
    %1024 = arith.mulf %1019, %1023 : vector<8x128xf32>
    %c4_i32_307 = arith.constant 4 : i32
    %c8_i32_308 = arith.constant 8 : i32
    %1025 = arith.muli %c4_i32_307, %c8_i32_308 : i32
    %1026 = tpu.assume_multiple %1025, 8 : i32
    %1027 = arith.index_cast %1026 : i32 to index
    %c0_309 = arith.constant 0 : index
    %1028 = vector.load %arg11[%1027, %c0_309] : memref<64x512xf32, #tpu.memory_space<vmem>>, vector<8x512xf32>
    %1029 = arith.truncf %1024 : vector<8x128xf32> to vector<8x128xbf16>
    %cst_310 = arith.constant dense<0.000000e+00> : vector<8x512xf32>
    %1030 = tpu.matmul %1029, %884, %cst_310 {dimension_numbers = #tpu.dot_dimension_numbers<[1], [0], [0], [1], [0, 0, 1, 1], [], []>} : vector<8x128xbf16>, vector<128x512xbf16>, vector<8x512xf32> -> vector<8x512xf32>
    %1031 = arith.addf %1028, %1030 : vector<8x512xf32>
    %1032 = vector.extract_strided_slice %1031 {offsets = [0, 0], sizes = [8, 128], strides = [1, 1]} : vector<8x512xf32> to vector<8x128xf32>
    %1033 = arith.negf %1032 : vector<8x128xf32>
    %1034 = math.exp %1033 : vector<8x128xf32>
    %cst_311 = arith.constant 1.000000e+00 : f32
    %1035 = vector.broadcast %cst_311 : f32 to vector<8x128xf32>
    %1036 = arith.addf %1035, %1034 : vector<8x128xf32>
    %1037 = arith.divf %1035, %1036 : vector<8x128xf32>
    %1038 = vector.extract_strided_slice %1031 {offsets = [0, 128], sizes = [8, 128], strides = [1, 1]} : vector<8x512xf32> to vector<8x128xf32>
    %1039 = arith.negf %1038 : vector<8x128xf32>
    %1040 = math.exp %1039 : vector<8x128xf32>
    %cst_312 = arith.constant 1.000000e+00 : f32
    %1041 = vector.broadcast %cst_312 : f32 to vector<8x128xf32>
    %1042 = arith.addf %1041, %1040 : vector<8x128xf32>
    %1043 = arith.divf %1041, %1042 : vector<8x128xf32>
    %1044 = vector.extract_strided_slice %1031 {offsets = [0, 256], sizes = [8, 128], strides = [1, 1]} : vector<8x512xf32> to vector<8x128xf32>
    %1045 = math.tanh %1044 : vector<8x128xf32>
    %1046 = vector.extract_strided_slice %1031 {offsets = [0, 384], sizes = [8, 128], strides = [1, 1]} : vector<8x512xf32> to vector<8x128xf32>
    %1047 = arith.negf %1046 : vector<8x128xf32>
    %1048 = math.exp %1047 : vector<8x128xf32>
    %cst_313 = arith.constant 1.000000e+00 : f32
    %1049 = vector.broadcast %cst_313 : f32 to vector<8x128xf32>
    %1050 = arith.addf %1049, %1048 : vector<8x128xf32>
    %1051 = arith.divf %1049, %1050 : vector<8x128xf32>
    %1052 = arith.mulf %1043, %1022 : vector<8x128xf32>
    %1053 = arith.mulf %1037, %1045 : vector<8x128xf32>
    %1054 = arith.addf %1052, %1053 : vector<8x128xf32>
    %1055 = math.tanh %1054 : vector<8x128xf32>
    %1056 = arith.mulf %1051, %1055 : vector<8x128xf32>
    %c5_i32_314 = arith.constant 5 : i32
    %c8_i32_315 = arith.constant 8 : i32
    %1057 = arith.muli %c5_i32_314, %c8_i32_315 : i32
    %1058 = tpu.assume_multiple %1057, 8 : i32
    %1059 = arith.index_cast %1058 : i32 to index
    %c0_316 = arith.constant 0 : index
    %1060 = vector.load %arg11[%1059, %c0_316] : memref<64x512xf32, #tpu.memory_space<vmem>>, vector<8x512xf32>
    %1061 = arith.truncf %1056 : vector<8x128xf32> to vector<8x128xbf16>
    %cst_317 = arith.constant dense<0.000000e+00> : vector<8x512xf32>
    %1062 = tpu.matmul %1061, %884, %cst_317 {dimension_numbers = #tpu.dot_dimension_numbers<[1], [0], [0], [1], [0, 0, 1, 1], [], []>} : vector<8x128xbf16>, vector<128x512xbf16>, vector<8x512xf32> -> vector<8x512xf32>
    %1063 = arith.addf %1060, %1062 : vector<8x512xf32>
    %1064 = vector.extract_strided_slice %1063 {offsets = [0, 0], sizes = [8, 128], strides = [1, 1]} : vector<8x512xf32> to vector<8x128xf32>
    %1065 = arith.negf %1064 : vector<8x128xf32>
    %1066 = math.exp %1065 : vector<8x128xf32>
    %cst_318 = arith.constant 1.000000e+00 : f32
    %1067 = vector.broadcast %cst_318 : f32 to vector<8x128xf32>
    %1068 = arith.addf %1067, %1066 : vector<8x128xf32>
    %1069 = arith.divf %1067, %1068 : vector<8x128xf32>
    %1070 = vector.extract_strided_slice %1063 {offsets = [0, 128], sizes = [8, 128], strides = [1, 1]} : vector<8x512xf32> to vector<8x128xf32>
    %1071 = arith.negf %1070 : vector<8x128xf32>
    %1072 = math.exp %1071 : vector<8x128xf32>
    %cst_319 = arith.constant 1.000000e+00 : f32
    %1073 = vector.broadcast %cst_319 : f32 to vector<8x128xf32>
    %1074 = arith.addf %1073, %1072 : vector<8x128xf32>
    %1075 = arith.divf %1073, %1074 : vector<8x128xf32>
    %1076 = vector.extract_strided_slice %1063 {offsets = [0, 256], sizes = [8, 128], strides = [1, 1]} : vector<8x512xf32> to vector<8x128xf32>
    %1077 = math.tanh %1076 : vector<8x128xf32>
    %1078 = vector.extract_strided_slice %1063 {offsets = [0, 384], sizes = [8, 128], strides = [1, 1]} : vector<8x512xf32> to vector<8x128xf32>
    %1079 = arith.negf %1078 : vector<8x128xf32>
    %1080 = math.exp %1079 : vector<8x128xf32>
    %cst_320 = arith.constant 1.000000e+00 : f32
    %1081 = vector.broadcast %cst_320 : f32 to vector<8x128xf32>
    %1082 = arith.addf %1081, %1080 : vector<8x128xf32>
    %1083 = arith.divf %1081, %1082 : vector<8x128xf32>
    %1084 = arith.mulf %1075, %1054 : vector<8x128xf32>
    %1085 = arith.mulf %1069, %1077 : vector<8x128xf32>
    %1086 = arith.addf %1084, %1085 : vector<8x128xf32>
    %1087 = math.tanh %1086 : vector<8x128xf32>
    %1088 = arith.mulf %1083, %1087 : vector<8x128xf32>
    %c6_i32_321 = arith.constant 6 : i32
    %c8_i32_322 = arith.constant 8 : i32
    %1089 = arith.muli %c6_i32_321, %c8_i32_322 : i32
    %1090 = tpu.assume_multiple %1089, 8 : i32
    %1091 = arith.index_cast %1090 : i32 to index
    %c0_323 = arith.constant 0 : index
    %1092 = vector.load %arg11[%1091, %c0_323] : memref<64x512xf32, #tpu.memory_space<vmem>>, vector<8x512xf32>
    %1093 = arith.truncf %1088 : vector<8x128xf32> to vector<8x128xbf16>
    %cst_324 = arith.constant dense<0.000000e+00> : vector<8x512xf32>
    %1094 = tpu.matmul %1093, %884, %cst_324 {dimension_numbers = #tpu.dot_dimension_numbers<[1], [0], [0], [1], [0, 0, 1, 1], [], []>} : vector<8x128xbf16>, vector<128x512xbf16>, vector<8x512xf32> -> vector<8x512xf32>
    %1095 = arith.addf %1092, %1094 : vector<8x512xf32>
    %1096 = vector.extract_strided_slice %1095 {offsets = [0, 0], sizes = [8, 128], strides = [1, 1]} : vector<8x512xf32> to vector<8x128xf32>
    %1097 = arith.negf %1096 : vector<8x128xf32>
    %1098 = math.exp %1097 : vector<8x128xf32>
    %cst_325 = arith.constant 1.000000e+00 : f32
    %1099 = vector.broadcast %cst_325 : f32 to vector<8x128xf32>
    %1100 = arith.addf %1099, %1098 : vector<8x128xf32>
    %1101 = arith.divf %1099, %1100 : vector<8x128xf32>
    %1102 = vector.extract_strided_slice %1095 {offsets = [0, 128], sizes = [8, 128], strides = [1, 1]} : vector<8x512xf32> to vector<8x128xf32>
    %1103 = arith.negf %1102 : vector<8x128xf32>
    %1104 = math.exp %1103 : vector<8x128xf32>
    %cst_326 = arith.constant 1.000000e+00 : f32
    %1105 = vector.broadcast %cst_326 : f32 to vector<8x128xf32>
    %1106 = arith.addf %1105, %1104 : vector<8x128xf32>
    %1107 = arith.divf %1105, %1106 : vector<8x128xf32>
    %1108 = vector.extract_strided_slice %1095 {offsets = [0, 256], sizes = [8, 128], strides = [1, 1]} : vector<8x512xf32> to vector<8x128xf32>
    %1109 = math.tanh %1108 : vector<8x128xf32>
    %1110 = vector.extract_strided_slice %1095 {offsets = [0, 384], sizes = [8, 128], strides = [1, 1]} : vector<8x512xf32> to vector<8x128xf32>
    %1111 = arith.negf %1110 : vector<8x128xf32>
    %1112 = math.exp %1111 : vector<8x128xf32>
    %cst_327 = arith.constant 1.000000e+00 : f32
    %1113 = vector.broadcast %cst_327 : f32 to vector<8x128xf32>
    %1114 = arith.addf %1113, %1112 : vector<8x128xf32>
    %1115 = arith.divf %1113, %1114 : vector<8x128xf32>
    %1116 = arith.mulf %1107, %1086 : vector<8x128xf32>
    %1117 = arith.mulf %1101, %1109 : vector<8x128xf32>
    %1118 = arith.addf %1116, %1117 : vector<8x128xf32>
    %1119 = math.tanh %1118 : vector<8x128xf32>
    %1120 = arith.mulf %1115, %1119 : vector<8x128xf32>
    %c7_i32_328 = arith.constant 7 : i32
    %c8_i32_329 = arith.constant 8 : i32
    %1121 = arith.muli %c7_i32_328, %c8_i32_329 : i32
    %1122 = tpu.assume_multiple %1121, 8 : i32
    %1123 = arith.index_cast %1122 : i32 to index
    %c0_330 = arith.constant 0 : index
    %1124 = vector.load %arg11[%1123, %c0_330] : memref<64x512xf32, #tpu.memory_space<vmem>>, vector<8x512xf32>
    %1125 = arith.truncf %1120 : vector<8x128xf32> to vector<8x128xbf16>
    %cst_331 = arith.constant dense<0.000000e+00> : vector<8x512xf32>
    %1126 = tpu.matmul %1125, %884, %cst_331 {dimension_numbers = #tpu.dot_dimension_numbers<[1], [0], [0], [1], [0, 0, 1, 1], [], []>} : vector<8x128xbf16>, vector<128x512xbf16>, vector<8x512xf32> -> vector<8x512xf32>
    %1127 = arith.addf %1124, %1126 : vector<8x512xf32>
    %1128 = vector.extract_strided_slice %1127 {offsets = [0, 0], sizes = [8, 128], strides = [1, 1]} : vector<8x512xf32> to vector<8x128xf32>
    %1129 = arith.negf %1128 : vector<8x128xf32>
    %1130 = math.exp %1129 : vector<8x128xf32>
    %cst_332 = arith.constant 1.000000e+00 : f32
    %1131 = vector.broadcast %cst_332 : f32 to vector<8x128xf32>
    %1132 = arith.addf %1131, %1130 : vector<8x128xf32>
    %1133 = arith.divf %1131, %1132 : vector<8x128xf32>
    %1134 = vector.extract_strided_slice %1127 {offsets = [0, 128], sizes = [8, 128], strides = [1, 1]} : vector<8x512xf32> to vector<8x128xf32>
    %1135 = arith.negf %1134 : vector<8x128xf32>
    %1136 = math.exp %1135 : vector<8x128xf32>
    %cst_333 = arith.constant 1.000000e+00 : f32
    %1137 = vector.broadcast %cst_333 : f32 to vector<8x128xf32>
    %1138 = arith.addf %1137, %1136 : vector<8x128xf32>
    %1139 = arith.divf %1137, %1138 : vector<8x128xf32>
    %1140 = vector.extract_strided_slice %1127 {offsets = [0, 256], sizes = [8, 128], strides = [1, 1]} : vector<8x512xf32> to vector<8x128xf32>
    %1141 = math.tanh %1140 : vector<8x128xf32>
    %1142 = vector.extract_strided_slice %1127 {offsets = [0, 384], sizes = [8, 128], strides = [1, 1]} : vector<8x512xf32> to vector<8x128xf32>
    %1143 = arith.negf %1142 : vector<8x128xf32>
    %1144 = math.exp %1143 : vector<8x128xf32>
    %cst_334 = arith.constant 1.000000e+00 : f32
    %1145 = vector.broadcast %cst_334 : f32 to vector<8x128xf32>
    %1146 = arith.addf %1145, %1144 : vector<8x128xf32>
    %1147 = arith.divf %1145, %1146 : vector<8x128xf32>
    %1148 = arith.mulf %1139, %1118 : vector<8x128xf32>
    %1149 = arith.mulf %1133, %1141 : vector<8x128xf32>
    %1150 = arith.addf %1148, %1149 : vector<8x128xf32>
    %1151 = math.tanh %1150 : vector<8x128xf32>
    %1152 = arith.mulf %1147, %1151 : vector<8x128xf32>
    %c8_i32_335 = arith.constant 8 : i32
    %c3_336 = arith.constant 3 : index
    %c0_337 = arith.constant 0 : index
    %c0_338 = arith.constant 0 : index
    %1153 = vector.load %arg9[%c3_336, %c0_337, %c0_338] : memref<4x8x128xf32, #tpu.memory_space<vmem>>, vector<1x8x128xf32>
    %1154 = vector.shape_cast %1153 : vector<1x8x128xf32> to vector<8x128xf32>
    %1155 = vector.shape_cast %1152 : vector<8x128xf32> to vector<1x8x128xf32>
    tpu.vector_store %arg9[%c3_336, %c0_337, %c0_338], %1155 {strides = array<i32>} : memref<4x8x128xf32, #tpu.memory_space<vmem>>, vector<1x8x128xf32>,
    %c3_339 = arith.constant 3 : index
    %c0_340 = arith.constant 0 : index
    %c0_341 = arith.constant 0 : index
    %1156 = vector.load %arg10[%c3_339, %c0_340, %c0_341] : memref<4x8x128xf32, #tpu.memory_space<vmem>>, vector<1x8x128xf32>
    %1157 = vector.shape_cast %1156 : vector<1x8x128xf32> to vector<8x128xf32>
    %1158 = vector.shape_cast %1150 : vector<8x128xf32> to vector<1x8x128xf32>
    tpu.vector_store %arg10[%c3_339, %c0_340, %c0_341], %1158 {strides = array<i32>} : memref<4x8x128xf32, #tpu.memory_space<vmem>>, vector<1x8x128xf32>,
    %1159 = arith.truncf %1152 : vector<8x128xf32> to vector<8x128xbf16>
    %c0_342 = arith.constant 0 : index
    %c0_343 = arith.constant 0 : index
    %1160 = vector.load %arg6[%c0_342, %c0_343] : memref<128x128xbf16, #tpu.memory_space<vmem>>, vector<128x128xbf16>
    %cst_344 = arith.constant dense<0.000000e+00> : vector<8x128xf32>
    %1161 = tpu.matmul %1159, %1160, %cst_344 {dimension_numbers = #tpu.dot_dimension_numbers<[1], [0], [0], [1], [0, 0, 1, 1], [], []>} : vector<8x128xbf16>, vector<128x128xbf16>, vector<8x128xf32> -> vector<8x128xf32>
    %c0_345 = arith.constant 0 : index
    %c0_346 = arith.constant 0 : index
    %1162 = vector.load %arg7[%c0_345, %c0_346] : memref<1x128xf32, #tpu.memory_space<vmem>>, vector<1x128xf32>
    %1163 = vector.broadcast %1162 : vector<1x128xf32> to vector<8x128xf32>
    %1164 = arith.addf %1161, %1163 : vector<8x128xf32>
    %1165 = arith.negf %1164 : vector<8x128xf32>
    %1166 = math.exp %1165 : vector<8x128xf32>
    %cst_347 = arith.constant 1.000000e+00 : f32
    %1167 = vector.broadcast %cst_347 : f32 to vector<8x128xf32>
    %1168 = arith.addf %1167, %1166 : vector<8x128xf32>
    %1169 = arith.divf %1167, %1168 : vector<8x128xf32>
    %c0_348 = arith.constant 0 : index
    %c0_349 = arith.constant 0 : index
    %1170 = vector.load %arg8[%c0_348, %c0_349] : memref<8x128xf32, #tpu.memory_space<vmem>>, vector<8x128xf32>
    tpu.vector_store %arg8[%c0_348, %c0_349], %1169 {strides = array<i32>} : memref<8x128xf32, #tpu.memory_space<vmem>>, vector<8x128xf32>,
    return
  }
}

</mosaic_0001>

<bundles_post_ra>
// kernel: tpu_custom_call.1
= control target key start
LH: loop header
LB: loop body
LE: loop exit
PB: predicated region body
PF: predicated region fallthrough
CT: control target
= control target key end

     0   :  { %16 = vsyncpa [#allocation5], 0  ;;  %s11210_s0 = inlined_call_operand.hbm [shape: bf16[64,128], index: 0, kind: input, shape index: {}]   ;;  %s11211_s1 = inlined_call_operand.hbm [shape: f32[4,8,128], index: 1, kind: input, shape index: {}]   ;;  %s11212_s2 = inlined_call_operand.hbm [shape: f32[4,8,128], index: 2, kind: input, shape index: {}]   ;;  %s11213_s3 = inlined_call_operand.hbm [shape: bf16[4,128,512], index: 3, kind: input, shape index: {}]   ;;  %s11214_s4 = inlined_call_operand.hbm [shape: bf16[4,128,512], index: 4, kind: input, shape index: {}]   ;;  %s11215_s5 = inlined_call_operand.hbm [shape: f32[4,1,512], index: 5, kind: input, shape index: {}]   ;;  %s11216_s6 = inlined_call_operand.hbm [shape: bf16[128,128], index: 6, kind: input, shape index: {}]   ;;  %s11217_s7 = inlined_call_operand.vmem [shape: f32[1,128], index: 7, kind: input, shape index: {}]   ;;  %s11218_s8 = inlined_call_operand.hbm [shape: f32[8,128], index: 8, kind: output, shape index: {0}]   ;;  %s11219_s9 = inlined_call_operand.hbm [shape: f32[4,8,128], index: 9, kind: output, shape index: {1}]   ;;  %s11220_s10 = inlined_call_operand.hbm [shape: f32[4,8,128], index: 10, kind: output, shape index: {2}]  }
   0x1   :  { %17 = vsyncpa [#allocation8], 0 }
   0x2   :  { %18 = vsyncpa [#allocation11], 0 }
   0x3   :  { %19 = vsyncpa [#allocation14], 0 }
   0x4   :  { %20 = vsyncpa [#allocation6], 0  ;;  %s39_s15 = sshll.u32 %s11211_s1, 4  ;;  %s40_s15 = int_to_ptr.hbm [resolvable:$true] %s39_s15 }
   0x5   :  { %21 = vsyncpa [#allocation18], 0  ;;  %s8825_s16 = smov [#allocation7]   ;;  %s65_s20 = sshll.u32 %s11213_s3, 4  ;;  %s66_s20 = int_to_ptr.hbm [resolvable:$true] %s65_s20 }
   0x6   :  { %s41_s17 = sshll.u32 %s8825_s16, 4  ;;  %s8826_s21 = smov 128   ;;  %s42_s17 = int_to_ptr.vmem [resolvable:$true] %s41_s17 }
   0x7   :  { %s8827_s22 = smov 8   ;;  %s8828_s23 = smov [#allocation10]  }
   0x8   :  { %47 = dma.hbm_to_vmem [thread:$0]  %s40_s15, 512, %s42_s17, [#allocation8], %s8826_s21, %s8826_s21, %s8827_s22  }
   0x9   :  { %s67_s24 = sshll.u32 %s8828_s23, 4  ;;  %s8829_s1 = smov 256   ;;  %s68_s24 = int_to_ptr.vmem [resolvable:$true] %s67_s24 }
   0xa   :  { %s8830_s25 = smov 16   ;;  %s91_s3 = sshll.u32 %s11215_s5, 4  ;;  %s92_s3 = int_to_ptr.hbm [resolvable:$true] %s91_s3 }
   0xb   :  { %73 = dma.hbm_to_vmem [thread:$0]  %s66_s20, 16384, %s68_s24, [#allocation11], %s8829_s1, %s8829_s1, %s8830_s25  }
   0xc   :  { %s8831_s28 = smov [#allocation13]   ;;  %s26_s12 = sshll.u32 %s11210_s0, 4  ;;  %s27_s12 = int_to_ptr.hbm [resolvable:$true] %s26_s12 }
   0xd   :  { %s93_s29 = sshll.u32 %s8831_s28, 4  ;;  %s8832_s13 = smov 64   ;;  %s94_s29 = int_to_ptr.vmem [resolvable:$true] %s93_s29 }
   0xe   :  { %s8833_s14 = smov 4   ;;  %s8834_s15 = smov [#allocation4]  }
   0xf   :  { %99 = dma.hbm_to_vmem [thread:$0]  %s92_s3, 256, %s94_s29, [#allocation14], %s8832_s13, %s8832_s13, %s8833_s14  }
  0x10   :  { %s28_s16 = sshll.u32 %s8834_s15, 4  ;;  %s52_s19 = sshll.u32 %s11212_s2, 4  ;;  %s29_s16 = int_to_ptr.vmem [resolvable:$true] %s28_s16  ;;  %s53_s19 = int_to_ptr.hbm [resolvable:$true] %s52_s19 }
  0x11   :  { %34 = dma.hbm_to_vmem [thread:$0]  %s27_s12, 512, %s29_s16, [#allocation5], %s8832_s13, %s8832_s13, %s8833_s14  }
  0x12   :  { %s78_s23 = sshll.u32 %s11214_s4, 4  ;;  %s8835_s24 = smov [#allocation9]   ;;  %s79_s23 = int_to_ptr.hbm [resolvable:$true] %s78_s23 }
  0x13   :  { %s54_s26 = sshll.u32 %s8835_s24, 4  ;;  %s8836_s0 = smov [#allocation12]   ;;  %s55_s26 = int_to_ptr.vmem [resolvable:$true] %s54_s26 }
  0x14   :  { %60 = dma.hbm_to_vmem [thread:$0]  %s53_s19, 512, %s55_s26, [#allocation8], %s8826_s21, %s8826_s21, %s8827_s22  }
  0x15   :  { %s80_s27 = sshll.u32 %s8836_s0, 4  ;;  %s104_s2 = sshll.u32 %s11216_s6, 4  ;;  %s81_s27 = int_to_ptr.vmem [resolvable:$true] %s80_s27  ;;  %s105_s2 = int_to_ptr.hbm [resolvable:$true] %s104_s2 }
  0x16   :  { %86 = dma.hbm_to_vmem [thread:$0]  %s79_s23, 16384, %s81_s27, [#allocation11], %s8829_s1, %s8829_s1, %s8830_s25  }
  0x17   :  { %s8837_s4 = smov [#allocation15]  }
  0x18   :  { %s106_s29 = sshll.u32 %s8837_s4, 4  ;;  %s107_s29 = int_to_ptr.vmem [resolvable:$true] %s106_s29 }
  0x19   :  { %112 = dma.hbm_to_vmem [thread:$0]  %s105_s2, 1024, %s107_s29, [#allocation14], %s8832_s13, %s8832_s13, %s8833_s14  }
  0x1a   :  { %8813 = dma.done.wait [#allocation5], 512  }
  0x1b   :  { %8814 = vsyncadd [#allocation5], 4294966784 }
  0x1c   :  { %8815 = dma.done.wait [#allocation8], 1024  }
  0x1d   :  { %8816 = vsyncadd [#allocation8], 4294966272 }
  0x1e   :  { %8817 = dma.done.wait [#allocation11], 32768  }
  0x1f   :  { %8818 = vsyncadd [#allocation11], 4294934528 }
  0x20   :  { %8819 = dma.done.wait [#allocation14], 1280  }
  0x21   :  { %8820 = vsyncadd [#allocation14], 4294966016  ;;  %v6733_v0 = vld [vmem:[#allocation10 + $0xe0] sm:$0xf]  ;;  %v7802_v1 = vld [vmem:[#allocation10 + $0xec] sm:$0xf0] }
  0x22   :  { %v7800_v2 = vld [vmem:[#allocation10 + $0xe4] sm:$0xf]  ;;  %v6734_v3 = vor.u32 %v7802_v1, %v6733_v0  ;;  %v6735_v4 = vld [vmem:[#allocation10 + $0xf0] sm:$0xf0]  ;;  %v6741_v5 = vld [vmem:[#allocation10 + $0xe8] sm:$0xf] }
  0x23   :  { %v7803_v6 = vld [vmem:[#allocation10 + $0xf4] sm:$0xf0]  ;;  %v6738_v7 = vor.u32 %v7800_v2, %v6735_v4  ;;  %v7801_v9 = vld [vmem:[#allocation10 + $0xec] sm:$0xf]  ;;  %v6743_v10 = vld [vmem:[#allocation10 + $0xf8] sm:$0xf0] }
  0x24   :  { %v6742_v8 = vor.u32 %v7803_v6, %v6741_v5  ;;  %v6717_v11 = vld [vmem:[#allocation10 + $0xc0] sm:$0xf]  ;;  %409 = vmatpush.bf16.msra.mxu0 %v6734_v3  ;;  %v6746_v12 = vor.u32 %v7801_v9, %v6743_v10  ;;  %v7798_v13 = vld [vmem:[#allocation10 + $0xcc] sm:$0xf0]  ;;  %v7796_v14 = vld [vmem:[#allocation10 + $0xc4] sm:$0xf] }
  0x25   :  { %v6719_v15 = vld [vmem:[#allocation10 + $0xd0] sm:$0xf0]  ;;  %438 = vmatpush.bf16.msra.mxu1 %v6738_v7  ;;  %v6718_v16 = vor.u32 %v7798_v13, %v6717_v11  ;;  %v6725_v18 = vld [vmem:[#allocation10 + $0xc8] sm:$0xf]  ;;  %v7799_v19 = vld [vmem:[#allocation10 + $0xd4] sm:$0xf0] }
  0x26   :  { %467 = vmatpush.bf16.msra.mxu2 %v6742_v8  ;;  %v6722_v17 = vor.u32 %v7796_v14, %v6719_v15  ;;  %v7797_v20 = vld [vmem:[#allocation10 + $0xcc] sm:$0xf]  ;;  %496 = vmatpush.bf16.msra.mxu3 %v6746_v12  ;;  %v6726_v21 = vor.u32 %v7799_v19, %v6725_v18  ;;  %v6727_v22 = vld [vmem:[#allocation10 + $0xd8] sm:$0xf0]  ;;  %v6701_v23 = vld [vmem:[#allocation10 + $0xa0] sm:$0xf] }
  0x27   :  { %v7794_v24 = vld [vmem:[#allocation10 + $0xac] sm:$0xf0]  ;;  %v6730_v25 = vor.u32 %v7797_v20, %v6727_v22  ;;  %v7792_v26 = vld [vmem:[#allocation10 + $0xa4] sm:$0xf]  ;;  %v6703_v27 = vld [vmem:[#allocation10 + $0xb0] sm:$0xf0] }
  0x28   :  { %v6709_v28 = vld [vmem:[#allocation10 + $0xa8] sm:$0xf]  ;;  %410 = vmatpush.bf16.msra.mxu0 %v6718_v16  ;;  %v6702_v29 = vor.u32 %v7794_v24, %v6701_v23  ;;  %v7795_v30 = vld [vmem:[#allocation10 + $0xb4] sm:$0xf0]  ;;  %v7793_v31 = vld [vmem:[#allocation10 + $0xac] sm:$0xf]  ;;  %v6706_v33 = vor.u32 %v7792_v26, %v6703_v27 }
  0x29   :  { %v6711_v32 = vld [vmem:[#allocation10 + $0xb8] sm:$0xf0]  ;;  %439 = vmatpush.bf16.msra.mxu1 %v6722_v17  ;;  %v6710_v34 = vor.u32 %v7795_v30, %v6709_v28  ;;  %v6685_v35 = vld [vmem:[#allocation10 + $0x80] sm:$0xf]  ;;  %v7790_v36 = vld [vmem:[#allocation10 + $0x8c] sm:$0xf0] }
  0x2a   :  { %468 = vmatpush.bf16.msra.mxu2 %v6726_v21  ;;  %v7788_v37 = vld [vmem:[#allocation10 + $0x84] sm:$0xf]  ;;  %497 = vmatpush.bf16.msra.mxu3 %v6730_v25  ;;  %v6714_v38 = vor.u32 %v7793_v31, %v6711_v32  ;;  %v6687_v39 = vld [vmem:[#allocation10 + $0x90] sm:$0xf0]  ;;  %v6693_v40 = vld [vmem:[#allocation10 + $0x88] sm:$0xf]  ;;  %v6686_v44 = vor.u32 %v7790_v36, %v6685_v35 }
  0x2b   :  { %v7791_v41 = vld [vmem:[#allocation10 + $0x94] sm:$0xf0]  ;;  %v7789_v42 = vld [vmem:[#allocation10 + $0x8c] sm:$0xf]  ;;  %v6695_v43 = vld [vmem:[#allocation10 + $0x98] sm:$0xf0]  ;;  %v6690_v45 = vor.u32 %v7788_v37, %v6687_v39 }
  0x2c   :  { %411 = vmatpush.bf16.msra.mxu0 %v6702_v29  ;;  %v6694_v46 = vor.u32 %v7791_v41, %v6693_v40  ;;  %v6669_v47 = vld [vmem:[#allocation10 + $0x60] sm:$0xf]  ;;  %v7786_v48 = vld [vmem:[#allocation10 + $0x6c] sm:$0xf0]  ;;  %v7784_v49 = vld [vmem:[#allocation10 + $0x64] sm:$0xf]  ;;  %v6698_v50 = vor.u32 %v7789_v42, %v6695_v43 }
  0x2d   :  { %440 = vmatpush.bf16.msra.mxu1 %v6706_v33  ;;  %v6671_v51 = vld [vmem:[#allocation10 + $0x70] sm:$0xf0]  ;;  %v6677_v52 = vld [vmem:[#allocation10 + $0x68] sm:$0xf]  ;;  %v7787_v53 = vld [vmem:[#allocation10 + $0x74] sm:$0xf0]  ;;  %v6670_v56 = vor.u32 %v7786_v48, %v6669_v47 }
  0x2e   :  { %469 = vmatpush.bf16.msra.mxu2 %v6710_v34  ;;  %498 = vmatpush.bf16.msra.mxu3 %v6714_v38  ;;  %v7785_v54 = vld [vmem:[#allocation10 + $0x6c] sm:$0xf]  ;;  %v6679_v55 = vld [vmem:[#allocation10 + $0x78] sm:$0xf0]  ;;  %v6674_v57 = vor.u32 %v7784_v49, %v6671_v51  ;;  %v6678_v58 = vor.u32 %v7787_v53, %v6677_v52  ;;  %v6653_v59 = vld [vmem:[#allocation10 + $0x40] sm:$0xf] }
  0x2f   :  { %v7782_v60 = vld [vmem:[#allocation10 + $0x4c] sm:$0xf0]  ;;  %v7780_v61 = vld [vmem:[#allocation10 + $0x44] sm:$0xf]  ;;  %v6682_v62 = vor.u32 %v7785_v54, %v6679_v55  ;;  %v6655_v63 = vld [vmem:[#allocation10 + $0x50] sm:$0xf0] }
  0x30   :  { %412 = vmatpush.bf16.msra.mxu0 %v6686_v44  ;;  %v6661_v0 = vld [vmem:[#allocation10 + $0x48] sm:$0xf]  ;;  %v7783_v1 = vld [vmem:[#allocation10 + $0x54] sm:$0xf0]  ;;  %v7781_v2 = vld [vmem:[#allocation10 + $0x4c] sm:$0xf]  ;;  %v6654_v4 = vor.u32 %v7782_v60, %v6653_v59  ;;  %v6658_v5 = vor.u32 %v7780_v61, %v6655_v63 }
  0x31   :  { %441 = vmatpush.bf16.msra.mxu1 %v6690_v45  ;;  %v6663_v3 = vld [vmem:[#allocation10 + $0x58] sm:$0xf0]  ;;  %v6662_v6 = vor.u32 %v7783_v1, %v6661_v0  ;;  %v6637_v7 = vld [vmem:[#allocation10 + $0x20] sm:$0xf]  ;;  %v7778_v8 = vld [vmem:[#allocation10 + $0x2c] sm:$0xf0] }
  0x32   :  { %470 = vmatpush.bf16.msra.mxu2 %v6694_v46  ;;  %499 = vmatpush.bf16.msra.mxu3 %v6698_v50  ;;  %v7776_v9 = vld [vmem:[#allocation10 + $0x24] sm:$0xf]  ;;  %v6666_v10 = vor.u32 %v7781_v2, %v6663_v3  ;;  %v6639_v11 = vld [vmem:[#allocation10 + $0x30] sm:$0xf0]  ;;  %v6645_v12 = vld [vmem:[#allocation10 + $0x28] sm:$0xf]  ;;  %v6638_v16 = vor.u32 %v7778_v8, %v6637_v7 }
  0x33   :  { %v7779_v13 = vld [vmem:[#allocation10 + $0x34] sm:$0xf0]  ;;  %v7777_v14 = vld [vmem:[#allocation10 + $0x2c] sm:$0xf]  ;;  %v6647_v15 = vld [vmem:[#allocation10 + $0x38] sm:$0xf0]  ;;  %v6642_v18 = vor.u32 %v7776_v9, %v6639_v11 }
  0x34   :  { %413 = vmatpush.bf16.msra.mxu0 %v6670_v56  ;;  %v6621_v17 = vld [vmem:[#allocation10] sm:$0xf]  ;;  %v6646_v19 = vor.u32 %v7779_v13, %v6645_v12  ;;  %v7774_v20 = vld [vmem:[#allocation10 + $0xc] sm:$0xf0]  ;;  %v7772_v21 = vld [vmem:[#allocation10 + $0x4] sm:$0xf]  ;;  %v6650_v23 = vor.u32 %v7777_v14, %v6647_v15 }
  0x35   :  { %442 = vmatpush.bf16.msra.mxu1 %v6674_v57  ;;  %v6623_v22 = vld [vmem:[#allocation10 + $0x10] sm:$0xf0]  ;;  %v6629_v24 = vld [vmem:[#allocation10 + $0x8] sm:$0xf]  ;;  %v7775_v25 = vld [vmem:[#allocation10 + $0x14] sm:$0xf0]  ;;  %v6622_v30 = vor.u32 %v7774_v20, %v6621_v17 }
  0x36   :  { %471 = vmatpush.bf16.msra.mxu2 %v6678_v58  ;;  %500 = vmatpush.bf16.msra.mxu3 %v6682_v62  ;;  %v7773_v26 = vld [vmem:[#allocation10 + $0xc] sm:$0xf]  ;;  %v6631_v27 = vld [vmem:[#allocation10 + $0x18] sm:$0xf0]  ;;  %v6861_v28 = vld [vmem:[#allocation12 + $0xe0] sm:$0xf]  ;;  %v6626_v33 = vor.u32 %v7772_v21, %v6623_v22  ;;  %v6630_v34 = vor.u32 %v7775_v25, %v6629_v24 }
  0x37   :  { %v7834_v29 = vld [vmem:[#allocation12 + $0xec] sm:$0xf0]  ;;  %v7832_v31 = vld [vmem:[#allocation12 + $0xe4] sm:$0xf]  ;;  %v6863_v32 = vld [vmem:[#allocation12 + $0xf0] sm:$0xf0]  ;;  %v6634_v36 = vor.u32 %v7773_v26, %v6631_v27 }
  0x38   :  { %414 = vmatpush.bf16.msra.mxu0 %v6654_v4  ;;  %v7836_v35 = vld [vmem:[#allocation4] sm:$0xff]  ;;  %v8929_v37 = vor.u32 %v7834_v29, %v6861_v28  ;;  %v7833_v38 = vld [vmem:[#allocation12 + $0xec] sm:$0xf]  ;;  %v6869_v39 = vld [vmem:[#allocation12 + $0xe8] sm:$0xf]  ;;  %v8931_v41 = vor.u32 %v7832_v31, %v6863_v32  ;;  %s6558_s25 = sshll.u32 %s11219_s9, 4  ;;  %s6559_s25 = int_to_ptr.hbm [resolvable:$true] %s6558_s25 }
  0x39   :  { %443 = vmatpush.bf16.msra.mxu1 %v6658_v5  ;;  %v7835_v40 = vld [vmem:[#allocation12 + $0xf4] sm:$0xf0]  ;;  %v6871_v42 = vld [vmem:[#allocation12 + $0xf8] sm:$0xf0]  ;;  %v6845_v43 = vld [vmem:[#allocation12 + $0xc0] sm:$0xf] }
  0x3a   :  { %472 = vmatpush.bf16.msra.mxu2 %v6662_v6  ;;  %501 = vmatpush.bf16.msra.mxu3 %v6666_v10  ;;  %v7830_v44 = vld [vmem:[#allocation12 + $0xcc] sm:$0xf0]  ;;  %v7828_v45 = vld [vmem:[#allocation12 + $0xc4] sm:$0xf]  ;;  %v6847_v46 = vld [vmem:[#allocation12 + $0xd0] sm:$0xf0]  ;;  %v8933_v47 = vor.u32 %v7835_v40, %v6869_v39  ;;  %v8936_v48 = vor.u32 %v7833_v38, %v6871_v42 }
  0x3b   :  { %v8938_v49 = vor.u32 %v7830_v44, %v6845_v43  ;;  %v7829_v50 = vld [vmem:[#allocation12 + $0xcc] sm:$0xf]  ;;  %v6853_v51 = vld [vmem:[#allocation12 + $0xc8] sm:$0xf]  ;;  %v7831_v52 = vld [vmem:[#allocation12 + $0xd4] sm:$0xf0]  ;;  %v8941_v53 = vor.u32 %v7828_v45, %v6847_v46 }
  0x3c   :  { %415 = vmatpush.bf16.msra.mxu0 %v6638_v16  ;;  %v6855_v54 = vld [vmem:[#allocation12 + $0xd8] sm:$0xf0]  ;;  %v6829_v55 = vld [vmem:[#allocation12 + $0xa0] sm:$0xf]  ;;  %v7826_v56 = vld [vmem:[#allocation12 + $0xac] sm:$0xf0]  ;;  %v8944_v59 = vor.u32 %v7831_v52, %v6853_v51 }
  0x3d   :  { %444 = vmatpush.bf16.msra.mxu1 %v6642_v18  ;;  %v7824_v57 = vld [vmem:[#allocation12 + $0xa4] sm:$0xf]  ;;  %v6831_v58 = vld [vmem:[#allocation12 + $0xb0] sm:$0xf0]  ;;  %v8948_v60 = vor.u32 %v7829_v50, %v6855_v54  ;;  %v8950_v61 = vor.u32 %v7826_v56, %v6829_v55  ;;  %v7825_v62 = vld [vmem:[#allocation12 + $0xac] sm:$0xf] }
  0x3e   :  { %473 = vmatpush.bf16.msra.mxu2 %v6646_v19  ;;  %502 = vmatpush.bf16.msra.mxu3 %v6650_v23  ;;  %v6837_v63 = vld [vmem:[#allocation12 + $0xa8] sm:$0xf]  ;;  %v7827_v0 = vld [vmem:[#allocation12 + $0xb4] sm:$0xf0]  ;;  %v8953_v1 = vor.u32 %v7824_v57, %v6831_v58  ;;  %v6839_v2 = vld [vmem:[#allocation12 + $0xb8] sm:$0xf0] }
  0x3f   :  { %v6813_v3 = vld [vmem:[#allocation12 + $0x80] sm:$0xf]  ;;  %v7822_v4 = vld [vmem:[#allocation12 + $0x8c] sm:$0xf0]  ;;  %v7820_v5 = vld [vmem:[#allocation12 + $0x84] sm:$0xf]  ;;  %v8956_v7 = vor.u32 %v7827_v0, %v6837_v63  ;;  %v8960_v8 = vor.u32 %v7825_v62, %v6839_v2 }
  0x40   :  { %416 = vmatpush.bf16.msra.mxu0 %v6622_v30  ;;  %v6815_v6 = vld [vmem:[#allocation12 + $0x90] sm:$0xf0]  ;;  %v8962_v9 = vor.u32 %v7822_v4, %v6813_v3  ;;  %v7821_v10 = vld [vmem:[#allocation12 + $0x8c] sm:$0xf]  ;;  %v6821_v11 = vld [vmem:[#allocation12 + $0x88] sm:$0xf] }
  0x41   :  { %445 = vmatpush.bf16.msra.mxu1 %v6626_v33  ;;  %v7823_v12 = vld [vmem:[#allocation12 + $0x94] sm:$0xf0]  ;;  %v8965_v13 = vor.u32 %v7820_v5, %v6815_v6  ;;  %v6823_v14 = vld [vmem:[#allocation12 + $0x98] sm:$0xf0]  ;;  %v6797_v15 = vld [vmem:[#allocation12 + $0x60] sm:$0xf] }
  0x42   :  { %474 = vmatpush.bf16.msra.mxu2 %v6630_v34  ;;  %503 = vmatpush.bf16.msra.mxu3 %v6634_v36  ;;  %v7818_v16 = vld [vmem:[#allocation12 + $0x6c] sm:$0xf0]  ;;  %v7816_v17 = vld [vmem:[#allocation12 + $0x64] sm:$0xf]  ;;  %v6799_v18 = vld [vmem:[#allocation12 + $0x70] sm:$0xf0]  ;;  %v8968_v20 = vor.u32 %v7823_v12, %v6821_v11  ;;  %v8972_v21 = vor.u32 %v7821_v10, %v6823_v14 }
  0x43   :  { %417 = vmatmul.bf16.vlgmr.msra.gmra.mxu0 %v7836_v35  ;;  %v7837_v19 = vld [vmem:[#allocation4 + $0x8] sm:$0xff]  ;;  %v8974_v22 = vor.u32 %v7818_v16, %v6797_v15  ;;  %v7819_v25 = vld [vmem:[#allocation12 + $0x74] sm:$0xf0]  ;;  %v8977_v26 = vor.u32 %v7816_v17, %v6799_v18  ;;  %v6807_v27 = vld [vmem:[#allocation12 + $0x78] sm:$0xf0]  ;;  %s8838_s30 = smov [#allocation17]  }
  0x44   :  { %727 = vmatpush.bf16.msrb.mxu0 %v8929_v37  ;;  %446 = vmatmul.bf16.vlgmr.msra.gmra.mxu1 %v7836_v35  ;;  %v7817_v23 = vld [vmem:[#allocation12 + $0x6c] sm:$0xf]  ;;  %v6805_v24 = vld [vmem:[#allocation12 + $0x68] sm:$0xf]  ;;  %v6781_v28 = vld [vmem:[#allocation12 + $0x40] sm:$0xf] }
  0x45   :  { %740 = vmatpush.bf16.msrb.mxu1 %v8931_v41  ;;  %475 = vmatmul.bf16.vlgmr.msra.gmra.mxu2 %v7836_v35  ;;  %v7814_v29 = vld [vmem:[#allocation12 + $0x4c] sm:$0xf0]  ;;  %v7812_v30 = vld [vmem:[#allocation12 + $0x44] sm:$0xf]  ;;  %v6783_v31 = vld [vmem:[#allocation12 + $0x50] sm:$0xf0]  ;;  %v8980_v32 = vor.u32 %v7819_v25, %v6805_v24  ;;  %v8984_v33 = vor.u32 %v7817_v23, %v6807_v27 }
  0x46   :  { %504 = vmatmul.bf16.vlgmr.msra.gmra.mxu3 %v7836_v35  ;;  %753 = vmatpush.bf16.msrb.mxu2 %v8933_v47  ;;  %v8986_v34 = vor.u32 %v7814_v29, %v6781_v28  ;;  %v8989_v35 = vor.u32 %v7812_v30, %v6783_v31  ;;  %v7813_v36 = vld [vmem:[#allocation12 + $0x4c] sm:$0xf]  ;;  %v6791_v38 = vld [vmem:[#allocation12 + $0x58] sm:$0xf0]  ;;  %v6765_v39 = vld [vmem:[#allocation12 + $0x20] sm:$0xf] }
  0x47   :  { %766 = vmatpush.bf16.msrb.mxu3 %v8936_v48  ;;  %v7810_v40 = vld [vmem:[#allocation12 + $0x2c] sm:$0xf0]  ;;  %v7808_v42 = vld [vmem:[#allocation12 + $0x24] sm:$0xf]  ;;  %v8994_v43 = vor.u32 %v7813_v36, %v6791_v38  ;;  %v6767_v45 = vld [vmem:[#allocation12 + $0x30] sm:$0xf0] }
  0x48   :  { %728 = vmatpush.bf16.msrb.mxu0 %v8938_v49  ;;  %v8996_v44 = vor.u32 %v7810_v40, %v6765_v39  ;;  %v6789_v46 = vld [vmem:[#allocation12 + $0x48] sm:$0xf]  ;;  %v7815_v50 = vld [vmem:[#allocation12 + $0x54] sm:$0xf0]  ;;  %v8999_v51 = vor.u32 %v7808_v42, %v6767_v45  ;;  %v7809_v54 = vld [vmem:[#allocation12 + $0x2c] sm:$0xf] }
  0x49   :  { %741 = vmatpush.bf16.msrb.mxu1 %v8941_v53  ;;  %v9001_v52 = vor.u32 %v7815_v50, %v6789_v46  ;;  %v6775_v55 = vld [vmem:[#allocation12 + $0x38] sm:$0xf0]  ;;  %v6749_v56 = vld [vmem:[#allocation12] sm:$0xf]  ;;  %v7806_v57 = vld [vmem:[#allocation12 + $0xc] sm:$0xf0] }
  0x4a   :  { %754 = vmatpush.bf16.msrb.mxu2 %v8944_v59  ;;  %v7804_v58 = vld [vmem:[#allocation12 + $0x4] sm:$0xf]  ;;  %v6751_v62 = vld [vmem:[#allocation12 + $0x10] sm:$0xf0]  ;;  %v6773_v63 = vld [vmem:[#allocation12 + $0x28] sm:$0xf]  ;;  %v9006_v2 = vor.u32 %v7809_v54, %v6775_v55  ;;  %v9008_v3 = vor.u32 %v7806_v57, %v6749_v56 }
  0x4b   :  { %767 = vmatpush.bf16.msrb.mxu3 %v8948_v60  ;;  %v7811_v0 = vld [vmem:[#allocation12 + $0x34] sm:$0xf0]  ;;  %v6757_v5 = vld [vmem:[#allocation12 + $0x8] sm:$0xf]  ;;  %v9013_v10 = vor.u32 %v7804_v58, %v6751_v62  ;;  %v7805_v11 = vld [vmem:[#allocation12 + $0xc] sm:$0xf] }
  0x4c   :  { %729 = vmatpush.bf16.msrb.mxu0 %v8950_v61  ;;  %v9010_v4 = vor.u32 %v7811_v0, %v6773_v63  ;;  %v7807_v6 = vld [vmem:[#allocation12 + $0x14] sm:$0xf0]  ;;  %v6759_v12 = vld [vmem:[#allocation12 + $0x18] sm:$0xf0]  ;;  %v7838_v16 = vld [vmem:[#allocation4 + $0x10] sm:$0xff]  ;;  %s6556_s11 = sshll.u32 %s8838_s30, 4  ;;  %s6557_s11 = int_to_ptr.vmem [resolvable:$true] %s6556_s11 }
  0x4d   :  { %742 = vmatpush.bf16.msrb.mxu1 %v8953_v1  ;;  %v9016_v14 = vor.u32 %v7807_v6, %v6757_v5  ;;  %v9020_v15 = vor.u32 %v7805_v11, %v6759_v12  ;;  %v7839_v17 = vld [vmem:[#allocation4 + $0x18] sm:$0xff]  ;;  %v557_v18 = vld [vmem:[#allocation7] sm:$0xff]  ;;  %s8839_s12 = smov [#allocation19]   ;;  %s6571_s16 = sshll.u32 %s11220_s10, 4  ;;  %s6572_s16 = int_to_ptr.hbm [resolvable:$true] %s6571_s16 }
  0x4e   :  { %755 = vmatpush.bf16.msrb.mxu2 %v8956_v7  ;;  %v207_v30 = vld [vmem:[#allocation13] sm:$0xf]  ;;  %s6569_s13 = sshll.u32 %s8839_s12, 4  ;;  %s8840_s10 = smov [#allocation16]   ;;  %s6570_s13 = int_to_ptr.vmem [resolvable:$true] %s6569_s13 }
  0x4f   :  { %768 = vmatpush.bf16.msrb.mxu3 %v8960_v8  ;;  %v9095_v31 = vperm.slane %v207_v30, 0  ;;  %v9099_v38 = vperm.slane %v207_v30, 1  ;;  %v9109_v50 = vperm.slane %v207_v30, 2  ;;  %v9111_v54 = vperm.slane %v207_v30, 3 }
  0x50   :  { %730 = vmatpush.bf16.msrb.mxu0 %v8962_v9 }
  0x51   :  { %743 = vmatpush.bf16.msrb.mxu1 %v8965_v13  ;;  %11238 = vst [vmem:[#allocation29_spill] sm:$0xff] %v9109_v50 }
  0x52   :  { %756 = vmatpush.bf16.msrb.mxu2 %v8968_v20 }
  0x53   :  { %769 = vmatpush.bf16.msrb.mxu3 %v8972_v21  ;;  %422 = vmatmul.bf16.gmra.mxu0 %v7837_v19 }
  0x54   :  { %731 = vmatpush.bf16.msrb.mxu0 %v8974_v22  ;;  %451 = vmatmul.bf16.gmra.mxu1 %v7837_v19 }
  0x55   :  { %744 = vmatpush.bf16.msrb.mxu1 %v8977_v26  ;;  %480 = vmatmul.bf16.gmra.mxu2 %v7837_v19 }
  0x56   :  { %509 = vmatmul.bf16.gmra.mxu3 %v7837_v19  ;;  %757 = vmatpush.bf16.msrb.mxu2 %v8980_v32  ;;  %v566_v19 = vpack.c.bf16 %v557_v18, %v557_v18 }
  0x57   :  { %770 = vmatpush.bf16.msrb.mxu3 %v8984_v33 }
  0x58   :  { %732 = vmatpush.bf16.msrb.mxu0 %v8986_v34 }
  0x59   :  { %745 = vmatpush.bf16.msrb.mxu1 %v8989_v35 }
  0x5a   :  { %758 = vmatpush.bf16.msrb.mxu2 %v9001_v52 }
  0x5b   :  { %771 = vmatpush.bf16.msrb.mxu3 %v8994_v43 }
  0x5c   :  { %733 = vmatpush.bf16.msrb.mxu0 %v8996_v44 }
  0x5d   :  { %746 = vmatpush.bf16.msrb.mxu1 %v8999_v51 }
  0x5e   :  { %759 = vmatpush.bf16.msrb.mxu2 %v9010_v4 }
  0x5f   :  { %772 = vmatpush.bf16.msrb.mxu3 %v9006_v2 }
  0x60   :  { %734 = vmatpush.bf16.msrb.mxu0 %v9008_v3 }
  0x61   :  { %747 = vmatpush.bf16.msrb.mxu1 %v9013_v10 }
  0x62   :  { %760 = vmatpush.bf16.msrb.mxu2 %v9016_v14 }
  0x63   :  { %773 = vmatpush.bf16.msrb.mxu3 %v9020_v15  ;;  %427 = vmatmul.bf16.gmra.mxu0 %v7838_v16 }
  0x64   :  { %855 = vmatpush.bf16.msra.mxu0 %v8929_v37  ;;  %456 = vmatmul.bf16.gmra.mxu1 %v7838_v16 }
  0x65   :  { %868 = vmatpush.bf16.msra.mxu1 %v8931_v41  ;;  %485 = vmatmul.bf16.gmra.mxu2 %v7838_v16 }
  0x66   :  { %881 = vmatpush.bf16.msra.mxu2 %v8933_v47  ;;  %514 = vmatmul.bf16.gmra.mxu3 %v7838_v16 }
  0x67   :  { %894 = vmatpush.bf16.msra.mxu3 %v8936_v48 }
  0x68   :  { %856 = vmatpush.bf16.msra.mxu0 %v8938_v49 }
  0x69   :  { %869 = vmatpush.bf16.msra.mxu1 %v8941_v53 }
  0x6a   :  { %882 = vmatpush.bf16.msra.mxu2 %v8944_v59 }
  0x6b   :  { %895 = vmatpush.bf16.msra.mxu3 %v8948_v60 }
  0x6c   :  { %857 = vmatpush.bf16.msra.mxu0 %v8950_v61 }
  0x6d   :  { %870 = vmatpush.bf16.msra.mxu1 %v8953_v1 }
  0x6e   :  { %883 = vmatpush.bf16.msra.mxu2 %v8956_v7 }
  0x6f   :  { %896 = vmatpush.bf16.msra.mxu3 %v8960_v8 }
  0x70   :  { %858 = vmatpush.bf16.msra.mxu0 %v8962_v9 }
  0x71   :  { %871 = vmatpush.bf16.msra.mxu1 %v8965_v13 }
  0x72   :  { %884 = vmatpush.bf16.msra.mxu2 %v8968_v20 }
  0x73   :  { %897 = vmatpush.bf16.msra.mxu3 %v8972_v21  ;;  %432 = vmatmul.bf16.gmra.mxu0 %v7839_v17 }
  0x74   :  { %859 = vmatpush.bf16.msra.mxu0 %v8974_v22  ;;  %461 = vmatmul.bf16.gmra.mxu1 %v7839_v17 }
  0x75   :  { %872 = vmatpush.bf16.msra.mxu1 %v8977_v26  ;;  %490 = vmatmul.bf16.gmra.mxu2 %v7839_v17 }
  0x76   :  { %885 = vmatpush.bf16.msra.mxu2 %v8980_v32  ;;  %519 = vmatmul.bf16.gmra.mxu3 %v7839_v17 }
  0x77   :  { %898 = vmatpush.bf16.msra.mxu3 %v8984_v33 }
  0x78   :  { %860 = vmatpush.bf16.msra.mxu0 %v8986_v34 }
  0x79   :  { %873 = vmatpush.bf16.msra.mxu1 %v8989_v35 }
  0x7a   :  { %886 = vmatpush.bf16.msra.mxu2 %v9001_v52 }
  0x7b   :  { %899 = vmatpush.bf16.msra.mxu3 %v8994_v43 }
  0x7c   :  { %861 = vmatpush.bf16.msra.mxu0 %v8996_v44 }
  0x7d   :  { %874 = vmatpush.bf16.msra.mxu1 %v8999_v51 }
  0x7e   :  { %887 = vmatpush.bf16.msra.mxu2 %v9010_v4 }
  0x7f   :  { %900 = vmatpush.bf16.msra.mxu3 %v9006_v2 }
  0x80   :  { %862 = vmatpush.bf16.msra.mxu0 %v9008_v3 }
  0x81   :  { %875 = vmatpush.bf16.msra.mxu1 %v9013_v10 }
  0x82   :  { %888 = vmatpush.bf16.msra.mxu2 %v9016_v14 }
  0x83   :  { %901 = vmatpush.bf16.msra.mxu3 %v9020_v15  ;;  %735 = vmatmul.bf16.vlgmr.msrb.gmra.mxu0 %v566_v19 }
  0x84   :  { %748 = vmatmul.bf16.vlgmr.msrb.gmra.mxu1 %v566_v19  ;;  %984 = vmatpush.bf16.msrb.mxu0 %v8929_v37 }
  0x85   :  { %761 = vmatmul.bf16.vlgmr.msrb.gmra.mxu2 %v566_v19  ;;  %997 = vmatpush.bf16.msrb.mxu1 %v8931_v41 }
  0x86   :  { %774 = vmatmul.bf16.vlgmr.msrb.gmra.mxu3 %v566_v19  ;;  %1010 = vmatpush.bf16.msrb.mxu2 %v8933_v47 }
  0x87   :  { %1023 = vmatpush.bf16.msrb.mxu3 %v8936_v48 }
  0x88   :  { %985 = vmatpush.bf16.msrb.mxu0 %v8938_v49 }
  0x89   :  { %998 = vmatpush.bf16.msrb.mxu1 %v8941_v53 }
  0x8a   :  { %1011 = vmatpush.bf16.msrb.mxu2 %v8944_v59 }
  0x8b   :  { %1024 = vmatpush.bf16.msrb.mxu3 %v8948_v60 }
  0x8c   :  { %986 = vmatpush.bf16.msrb.mxu0 %v8950_v61 }
  0x8d   :  { %999 = vmatpush.bf16.msrb.mxu1 %v8953_v1 }
  0x8e   :  { %1012 = vmatpush.bf16.msrb.mxu2 %v8956_v7 }
  0x8f   :  { %1025 = vmatpush.bf16.msrb.mxu3 %v8960_v8 }
  0x90   :  { %987 = vmatpush.bf16.msrb.mxu0 %v8962_v9 }
  0x91   :  { %1000 = vmatpush.bf16.msrb.mxu1 %v8965_v13 }
  0x92   :  { %1013 = vmatpush.bf16.msrb.mxu2 %v8968_v20 }
  0x93   :  { %1026 = vmatpush.bf16.msrb.mxu3 %v8972_v21 }
  0x94   :  { %988 = vmatpush.bf16.msrb.mxu0 %v8974_v22 }
  0x95   :  { %1001 = vmatpush.bf16.msrb.mxu1 %v8977_v26 }
  0x96   :  { %1014 = vmatpush.bf16.msrb.mxu2 %v8980_v32 }
  0x97   :  { %1027 = vmatpush.bf16.msrb.mxu3 %v8984_v33 }
  0x98   :  { %989 = vmatpush.bf16.msrb.mxu0 %v8986_v34 }
  0x99   :  { %1002 = vmatpush.bf16.msrb.mxu1 %v8989_v35 }
  0x9a   :  { %1015 = vmatpush.bf16.msrb.mxu2 %v9001_v52 }
  0x9b   :  { %1028 = vmatpush.bf16.msrb.mxu3 %v8994_v43 }
  0x9c   :  { %990 = vmatpush.bf16.msrb.mxu0 %v8996_v44 }
  0x9d   :  { %1003 = vmatpush.bf16.msrb.mxu1 %v8999_v51 }
  0x9e   :  { %1016 = vmatpush.bf16.msrb.mxu2 %v9010_v4 }
  0x9f   :  { %1029 = vmatpush.bf16.msrb.mxu3 %v9006_v2 }
  0xa0   :  { %991 = vmatpush.bf16.msrb.mxu0 %v9008_v3 }
  0xa1   :  { %1004 = vmatpush.bf16.msrb.mxu1 %v9013_v10 }
  0xa2   :  { %1017 = vmatpush.bf16.msrb.mxu2 %v9016_v14 }
  0xa3   :  { %1030 = vmatpush.bf16.msrb.mxu3 %v9020_v15 }
  0xc0   :  { %v418_v23 = vpop.f32.mrf.mxu0 }
  0xc1   :  { %v447_v24 = vpop.f32.mrf.mxu1 }
  0xc8   :  { %v9089_v25 = vpop.f32.mrf.mxu2  ;;  %v9091_v28 = vpop.f32.mrf.mxu0 }
  0xc9   :  { %v505_v27 = vpop.f32.mrf.mxu3  ;;  %v9093_v29 = vpop.f32.mrf.mxu1 }
  0xd0   :  { %v9097_v36 = vpop.f32.mrf.mxu2  ;;  %v423_v40 = vpop.f32.mrf.mxu0 }
  0xd1   :  { %11235 = vst [vmem:[#allocation26_spill] sm:$0xff] %v9097_v36  ;;  %v9101_v39 = vpop.f32.mrf.mxu3  ;;  %v9104_v42 = vadd.f32 %v423_v40, %v9095_v31  ;;  %v452_v45 = vpop.f32.mrf.mxu1 }
  0xd2   :  { %v9107_v46 = vadd.f32 %v452_v45, %v9099_v38 }
  0xd3   :  { %11236 = vst [vmem:[#allocation27_spill] sm:$0xff] %v9104_v42 }
  0xd4   :  { %11237 = vst [vmem:[#allocation28_spill] sm:$0xff] %v9107_v46 }
  0xd8   :  { %v481_v55 = vpop.f32.mrf.mxu2  ;;  %v9116_v58 = vpop.f32.mrf.mxu0 }
  0xd9   :  { %v9114_v56 = vadd.f32 %v481_v55, %v9109_v50  ;;  %v510_v57 = vpop.f32.mrf.mxu3  ;;  %11240 = vst [vmem:[#allocation31_spill] sm:$0xff] %v9116_v58  ;;  %v9121_v63 = vpop.f32.mrf.mxu1 }
  0xda   :  { %v9119_v62 = vadd.f32 %v510_v57, %v9111_v54  ;;  %11242 = vst [vmem:[#allocation33_spill] sm:$0xff] %v9121_v63 }
  0xdb   :  { %11239 = vst [vmem:[#allocation30_spill] sm:$0xff] %v9114_v56 }
  0xdc   :  { %11241 = vst [vmem:[#allocation32_spill] sm:$0xff] %v9119_v62 }
  0xe0   :  { %v9123_v0 = vpop.f32.mrf.mxu2  ;;  %v428_v6 = vpop.f32.mrf.mxu0 }
  0xe1   :  { %11243 = vst [vmem:[#allocation34_spill] sm:$0xff] %v9123_v0  ;;  %v9125_v5 = vpop.f32.mrf.mxu3  ;;  %v9128_v11 = vadd.f32 %v428_v6, %v9095_v31  ;;  %v457_v12 = vpop.f32.mrf.mxu1 }
  0xe2   :  { %11244 = vst [vmem:[#allocation35_spill] sm:$0xff] %v9125_v5  ;;  %v9131_v16 = vadd.f32 %v457_v12, %v9099_v38 }
  0xe3   :  { %11245 = vst [vmem:[#allocation36_spill] sm:$0xff] %v9128_v11 }
  0xe4   :  { %11246 = vst [vmem:[#allocation37_spill] sm:$0xff] %v9131_v16 }
  0xe8   :  { %v486_v17 = vpop.f32.mrf.mxu2  ;;  %v9136_v30 = vpop.f32.mrf.mxu0 }
  0xe9   :  { %v9134_v18 = vadd.f32 %v486_v17, %v9109_v50  ;;  %v515_v19 = vpop.f32.mrf.mxu3  ;;  %11248 = vst [vmem:[#allocation39_spill] sm:$0xff] %v9136_v30  ;;  %v9141_v45 = vpop.f32.mrf.mxu1 }
  0xea   :  { %v9139_v40 = vadd.f32 %v515_v19, %v9111_v54  ;;  %11250 = vst [vmem:[#allocation41_spill] sm:$0xff] %v9141_v45 }
  0xeb   :  { %11247 = vst [vmem:[#allocation38_spill] sm:$0xff] %v9134_v18 }
  0xec   :  { %11249 = vst [vmem:[#allocation40_spill] sm:$0xff] %v9139_v40 }
  0xf0   :  { %v9143_v55 = vpop.f32.mrf.mxu2  ;;  %v433_v6 = vpop.f32.mrf.mxu0 }
  0xf1   :  { %11251 = vst [vmem:[#allocation42_spill] sm:$0xff] %v9143_v55  ;;  %v9145_v57 = vpop.f32.mrf.mxu3  ;;  %v9148_v12 = vadd.f32 %v433_v6, %v9095_v31  ;;  %v462_v16 = vpop.f32.mrf.mxu1 }
  0xf2   :  { %11252 = vst [vmem:[#allocation43_spill] sm:$0xff] %v9145_v57  ;;  %v9151_v17 = vadd.f32 %v462_v16, %v9099_v38  ;;  %v419_v57 = vadd.f32 %v418_v23, %v9095_v31 }
  0xf3   :  { %11253 = vst [vmem:[#allocation44_spill] sm:$0xff] %v9148_v12  ;;  %v448_v12 = vadd.f32 %v447_v24, %v9099_v38 }
  0xf4   :  { %11254 = vst [vmem:[#allocation45_spill] sm:$0xff] %v9151_v17 }
  0xf8   :  { %v491_v18 = vpop.f32.mrf.mxu2  ;;  %v9156_v40 = vpop.f32.mrf.mxu0 }
  0xf9   :  { %v9154_v30 = vadd.f32 %v491_v18, %v9109_v50  ;;  %v520_v19 = vpop.f32.mrf.mxu3  ;;  %11256 = vst [vmem:[#allocation47_spill] sm:$0xff] %v9156_v40  ;;  %v9161_v55 = vpop.f32.mrf.mxu1 }
  0xfa   :  { %v9159_v45 = vadd.f32 %v520_v19, %v9111_v54  ;;  %11258 = vst [vmem:[#allocation49_spill] sm:$0xff] %v9161_v55  ;;  %v506_v19 = vadd.f32 %v505_v27, %v9111_v54 }
  0xfb   :  { %11255 = vst [vmem:[#allocation46_spill] sm:$0xff] %v9154_v30 }
  0xfc   :  { %11257 = vst [vmem:[#allocation48_spill] sm:$0xff] %v9159_v45 }
 0x100   :  { %v9164_v6 = vpop.f32.mrf.mxu2  ;;  %v736_v17 = vpop.f32.mrf.mxu0 }
 0x101   :  { %11259 = vst [vmem:[#allocation50_spill] sm:$0xff] %v9164_v6  ;;  %v9167_v16 = vpop.f32.mrf.mxu3  ;;  %v779_v11 = vadd.f32 %v736_v17, %v419_v57  ;;  %v749_v18 = vpop.f32.mrf.mxu1 }
 0x102   :  { %11260 = vst [vmem:[#allocation51_spill] sm:$0xff] %v9167_v16  ;;  %v780_v30 = vadd.f32 %v749_v18, %v448_v12 }
 0x103   :  { %v6875_v0 = vmul.f32 -1.442695, %v779_v11 }
 0x104   :  { %v6876_v5 = vmul.f32 -1.442695, %v780_v30 }
 0x105   :  { %8057 = vpow2.f32 %v6875_v0  ;;  %v477_v0 = vadd.f32 %v9089_v25, %v9109_v50 }
 0x106   :  { %8059 = vpow2.f32 %v6876_v5 }
 0x108   :  { %v762_v40 = vpop.f32.mrf.mxu2  ;;  %v738_v45 = vpop.f32.mrf.mxu0 }
 0x109   :  { %v775_v55 = vpop.f32.mrf.mxu3  ;;  %v751_v63 = vpop.f32.mrf.mxu1  ;;  %v781_v30 = vadd.f32 %v762_v40, %v477_v0 }
 0x10a   :  { %v782_v23 = vadd.f32 %v775_v55, %v506_v19 }
 0x10b   :  { %v8058_v6 = vpop.eup %8057 }
 0x10c   :  { %v6877_v58 = vmul.f32 -1.442695, %v782_v23  ;;  %v8060_v24 = vpop.eup %8059  ;;  %v786_v56 = vadd.f32 1.0, %v8058_v6 }
 0x10d   :  { %v805_v16 = vadd.f32 1.0, %v8060_v24 }
 0x10e   :  { %8061 = vpow2.f32 %v6877_v58  ;;  %v798_v6 = vand.u32 2147483648, %v786_v56  ;;  %v796_v23 = vand.u32 2147483647, %v786_v56  ;;  %vm792_vm2 = vweird.f32 %v786_v56 }
 0x10f   :  { %8063 = vrcp.f32 %v786_v56  ;;  %v817_v58 = vand.u32 2147483648, %v805_v16  ;;  %vm811_vm3 = vweird.f32 %v805_v16 }
 0x110   :  { %8065 = vrcp.f32 %v805_v16  ;;  %v764_v57 = vpop.f32.mrf.mxu2  ;;  %v799_v40 = vor.u32 1.1754944e-38, %v798_v6  ;;  %vm797_vm6 = vcmp.eq.f32.partialorder %v796_v23, 8.507059e+37 }
 0x111   :  { %v777_v11 = vpop.f32.mrf.mxu3  ;;  %v815_v57 = vand.u32 2147483647, %v805_v16 }
 0x113   :  { %vm816_vm7 = vcmp.eq.f32.partialorder %v815_v57, 8.507059e+37 }
 0x114   :  { %v8062_v5 = vpop.eup %8061 }
 0x115   :  { %v8064_v27 = vpop.eup %8063  ;;  %v825_v12 = vadd.f32 1.0, %v8062_v5  ;;  %v818_v5 = vor.u32 1.1754944e-38, %v817_v58 }
 0x116   :  { %v8066_v45 = vpop.eup %8065  ;;  %v788_v55 = vmul.f32 %v8064_v27, %v786_v56  ;;  %vm793_vm0 = vweird.f32 %v8064_v27 }
 0x117   :  { %v807_v63 = vmul.f32 %v8066_v45, %v805_v16  ;;  %8067 = vrcp.f32 %v825_v12  ;;  %vm812_vm1 = vweird.f32 %v8066_v45  ;;  %vm794_vm4 = vmor %vm792_vm2, %vm793_vm0  ;;  %v837_v6 = vand.u32 2147483648, %v825_v12 }
 0x118   :  { %v789_v17 = vsub.f32 1.0, %v788_v55  ;;  %8069 = vtanh.f32 %v781_v30  ;;  %vm813_vm5 = vmor %vm811_vm3, %vm812_vm1  ;;  %v558_v55 = vld [vmem:[#allocation9] sm:$0xff]  ;;  %vm831_vm9 = vweird.f32 %v825_v12 }
 0x119   :  { %v808_v18 = vsub.f32 1.0, %v807_v63  ;;  %v838_v23 = vor.u32 1.1754944e-38, %v837_v6 }
 0x11a   :  { %v790_v19 = vmul.f32 %v8064_v27, %v789_v17 }
 0x11b   :  { %v809_v24 = vmul.f32 %v8066_v45, %v808_v18 }
 0x11c   :  { %v791_v25 = vadd.f32 %v8064_v27, %v790_v19 }
 0x11d   :  { %v8068_v11 = vpop.eup %8067  ;;  %v810_v0 = vadd.f32 %v8066_v45, %v809_v24 }
 0x11e   :  { %v795_v63 = vsel %vm794_vm4, %v8064_v27, %v791_v25  ;;  %v827_v30 = vmul.f32 %v8068_v11, %v825_v12  ;;  %v8070_v62 = vpop.eup %8069  ;;  %vm832_vm8 = vweird.f32 %v8068_v11  ;;  %v835_v27 = vand.u32 2147483647, %v825_v12 }
 0x11f   :  { %v800_v17 = vsel %vm797_vm6, %v799_v40, %v795_v63  ;;  %v814_v46 = vsel %vm813_vm5, %v8066_v45, %v810_v0  ;;  %vm833_vm10 = vmor %vm831_vm9, %vm832_vm8 }
 0x120   :  { %v819_v18 = vsel %vm816_vm7, %v818_v5, %v814_v46  ;;  %v842_v42 = vmul.f32 %v8070_v62, %v800_v17  ;;  %v828_v36 = vsub.f32 1.0, %v827_v30  ;;  %vm836_vm11 = vcmp.eq.f32.partialorder %v835_v27, 8.507059e+37 }
 0x121   :  { %v841_v19 = vmul.f32 %v819_v18, %v558_v55  ;;  %v450_v62 = vadd.f32 %v9093_v29, %v9099_v38  ;;  %v508_v5 = vadd.f32 %v9101_v39, %v9111_v54 }
 0x122   :  { %v829_v56 = vmul.f32 %v8068_v11, %v828_v36 }
 0x123   :  { %v9172_v50 = vadd.f32 %v842_v42, %v841_v19  ;;  %v421_v42 = vadd.f32 %v9091_v28, %v9095_v31 }
 0x124   :  { %v830_v16 = vadd.f32 %v8068_v11, %v829_v56 }
 0x125   :  { %8071 = vtanh.f32 %v9172_v50 }
 0x126   :  { %v834_v58 = vsel %vm833_vm10, %v8068_v11, %v830_v16 }
 0x127   :  { %v839_v24 = vsel %vm836_vm11, %v838_v23, %v834_v58  ;;  %v11261_v23 = vld [vmem:[#allocation29_spill] sm:$0xff] }
 0x12b   :  { %v8072_v45 = vpop.eup %8071 }
 0x12c   :  { %v9175_v46 = vmul.f32 %v8072_v45, %v839_v24  ;;  %v11262_v45 = vld [vmem:[#allocation26_spill] sm:$0xff] }
 0x12d   :  { %v479_v39 = vadd.f32 %v11262_v45, %v11261_v23 }
 0x12e   :  { %v854_v36 = vpack.c.bf16 %v9175_v46, %v9175_v46 }
 0x130   :  { %863 = vmatmul.bf16.vlgmr.msra.gmra.mxu0 %v854_v36  ;;  %876 = vmatmul.bf16.vlgmr.msra.gmra.mxu1 %v854_v36 }
 0x131   :  { %889 = vmatmul.bf16.vlgmr.msra.gmra.mxu2 %v854_v36  ;;  %902 = vmatmul.bf16.vlgmr.msra.gmra.mxu3 %v854_v36 }
 0x132   :  { %1113 = vmatpush.bf16.msra.mxu0 %v8929_v37  ;;  %1126 = vmatpush.bf16.msra.mxu1 %v8931_v41 }
 0x133   :  { %1139 = vmatpush.bf16.msra.mxu2 %v8933_v47  ;;  %1152 = vmatpush.bf16.msra.mxu3 %v8936_v48 }
 0x136   :  { %1114 = vmatpush.bf16.msra.mxu0 %v8938_v49  ;;  %1127 = vmatpush.bf16.msra.mxu1 %v8941_v53 }
 0x137   :  { %1140 = vmatpush.bf16.msra.mxu2 %v8944_v59  ;;  %1153 = vmatpush.bf16.msra.mxu3 %v8948_v60 }
 0x13a   :  { %1115 = vmatpush.bf16.msra.mxu0 %v8950_v61  ;;  %1128 = vmatpush.bf16.msra.mxu1 %v8953_v1 }
 0x13b   :  { %1141 = vmatpush.bf16.msra.mxu2 %v8956_v7  ;;  %1154 = vmatpush.bf16.msra.mxu3 %v8960_v8 }
 0x13e   :  { %1116 = vmatpush.bf16.msra.mxu0 %v8962_v9  ;;  %1129 = vmatpush.bf16.msra.mxu1 %v8965_v13 }
 0x13f   :  { %1142 = vmatpush.bf16.msra.mxu2 %v8968_v20  ;;  %1155 = vmatpush.bf16.msra.mxu3 %v8972_v21 }
 0x142   :  { %1117 = vmatpush.bf16.msra.mxu0 %v8974_v22  ;;  %1130 = vmatpush.bf16.msra.mxu1 %v8977_v26 }
 0x143   :  { %1143 = vmatpush.bf16.msra.mxu2 %v8980_v32  ;;  %1156 = vmatpush.bf16.msra.mxu3 %v8984_v33 }
 0x146   :  { %1118 = vmatpush.bf16.msra.mxu0 %v8986_v34  ;;  %1131 = vmatpush.bf16.msra.mxu1 %v8989_v35 }
 0x147   :  { %1144 = vmatpush.bf16.msra.mxu2 %v9001_v52  ;;  %1157 = vmatpush.bf16.msra.mxu3 %v8994_v43 }
 0x14a   :  { %1119 = vmatpush.bf16.msra.mxu0 %v8996_v44  ;;  %1132 = vmatpush.bf16.msra.mxu1 %v8999_v51 }
 0x14b   :  { %1145 = vmatpush.bf16.msra.mxu2 %v9010_v4  ;;  %1158 = vmatpush.bf16.msra.mxu3 %v9006_v2 }
 0x14e   :  { %1120 = vmatpush.bf16.msra.mxu0 %v9008_v3  ;;  %1133 = vmatpush.bf16.msra.mxu1 %v9013_v10 }
 0x14f   :  { %1146 = vmatpush.bf16.msra.mxu2 %v9016_v14  ;;  %1159 = vmatpush.bf16.msra.mxu3 %v9020_v15 }
 0x1ad   :  { %v864_v12 = vpop.f32.mrf.mxu0  ;;  %v877_v57 = vpop.f32.mrf.mxu1 }
 0x1ae   :  { %v907_v25 = vadd.f32 %v864_v12, %v421_v42  ;;  %v908_v11 = vadd.f32 %v877_v57, %v450_v62 }
 0x1b0   :  { %v6878_v40 = vmul.f32 -1.442695, %v907_v25  ;;  %v6879_v0 = vmul.f32 -1.442695, %v908_v11 }
 0x1b2   :  { %8073 = vpow2.f32 %v6878_v40 }
 0x1b3   :  { %8075 = vpow2.f32 %v6879_v0 }
 0x1b4   :  { %v890_v55 = vpop.f32.mrf.mxu2  ;;  %v903_v63 = vpop.f32.mrf.mxu3 }
 0x1b5   :  { %v910_v30 = vadd.f32 %v903_v63, %v508_v5  ;;  %v866_v17 = vpop.f32.mrf.mxu0  ;;  %v879_v18 = vpop.f32.mrf.mxu1  ;;  %v909_v42 = vadd.f32 %v890_v55, %v479_v39 }
 0x1b7   :  { %v6880_v28 = vmul.f32 -1.442695, %v910_v30 }
 0x1b8   :  { %v8074_v19 = vpop.eup %8073 }
 0x1b9   :  { %v8076_v56 = vpop.eup %8075  ;;  %v914_v29 = vadd.f32 1.0, %v8074_v19  ;;  %8077 = vpow2.f32 %v6880_v28 }
 0x1ba   :  { %v933_v16 = vadd.f32 1.0, %v8076_v56 }
 0x1bb   :  { %8079 = vrcp.f32 %v914_v29  ;;  %v926_v40 = vand.u32 2147483648, %v914_v29  ;;  %v924_v63 = vand.u32 2147483647, %v914_v29  ;;  %vm920_vm14 = vweird.f32 %v914_v29 }
 0x1bc   :  { %8081 = vrcp.f32 %v933_v16  ;;  %v892_v6 = vpop.f32.mrf.mxu2  ;;  %v905_v27 = vpop.f32.mrf.mxu3  ;;  %v945_v0 = vand.u32 2147483648, %v933_v16  ;;  %v943_v17 = vand.u32 2147483647, %v933_v16  ;;  %vm939_vm15 = vweird.f32 %v933_v16 }
 0x1bd   :  { %v927_v55 = vor.u32 1.1754944e-38, %v926_v40  ;;  %vm925_vm2 = vcmp.eq.f32.partialorder %v924_v63, 8.507059e+37 }
 0x1be   :  { %v946_v6 = vor.u32 1.1754944e-38, %v945_v0  ;;  %vm944_vm3 = vcmp.eq.f32.partialorder %v943_v17, 8.507059e+37 }
 0x1bf   :  { %v8078_v58 = vpop.eup %8077 }
 0x1c0   :  { %v953_v24 = vadd.f32 1.0, %v8078_v58 }
 0x1c1   :  { %v8080_v36 = vpop.eup %8079 }
 0x1c2   :  { %v8082_v62 = vpop.eup %8081  ;;  %v916_v12 = vmul.f32 %v8080_v36, %v914_v29  ;;  %8083 = vrcp.f32 %v953_v24  ;;  %vm921_vm12 = vweird.f32 %v8080_v36  ;;  %v965_v40 = vand.u32 2147483648, %v953_v24 }
 0x1c3   :  { %v935_v57 = vmul.f32 %v8082_v62, %v933_v16  ;;  %8085 = vtanh.f32 %v909_v42  ;;  %vm940_vm13 = vweird.f32 %v8082_v62  ;;  %vm922_vm0 = vmor %vm920_vm14, %vm921_vm12  ;;  %vm959_vm5 = vweird.f32 %v953_v24 }
 0x1c4   :  { %v917_v25 = vsub.f32 1.0, %v916_v12  ;;  %vm941_vm1 = vmor %vm939_vm15, %vm940_vm13 }
 0x1c5   :  { %v936_v11 = vsub.f32 1.0, %v935_v57 }
 0x1c6   :  { %v918_v5 = vmul.f32 %v8080_v36, %v917_v25 }
 0x1c7   :  { %v937_v30 = vmul.f32 %v8082_v62, %v936_v11 }
 0x1c8   :  { %v8084_v18 = vpop.eup %8083  ;;  %v919_v28 = vadd.f32 %v8080_v36, %v918_v5  ;;  %v966_v5 = vor.u32 1.1754944e-38, %v965_v40 }
 0x1c9   :  { %v938_v19 = vadd.f32 %v8082_v62, %v937_v30  ;;  %v955_v56 = vmul.f32 %v8084_v18, %v953_v24  ;;  %v8086_v58 = vpop.eup %8085  ;;  %vm960_vm4 = vweird.f32 %v8084_v18 }
 0x1ca   :  { %v923_v27 = vsel %vm922_vm0, %v8080_v36, %v919_v28  ;;  %v963_v36 = vand.u32 2147483647, %v953_v24  ;;  %vm961_vm6 = vmor %vm959_vm5, %vm960_vm4 }
 0x1cb   :  { %v928_v45 = vsel %vm925_vm2, %v927_v55, %v923_v27  ;;  %v942_v39 = vsel %vm941_vm1, %v8082_v62, %v938_v19  ;;  %v956_v42 = vsub.f32 1.0, %v955_v56  ;;  %v11264_v55 = vld [vmem:[#allocation28_spill] sm:$0xff] }
 0x1cc   :  { %v947_v12 = vsel %vm944_vm3, %v946_v6, %v942_v39  ;;  %v970_v57 = vmul.f32 %v8086_v58, %v928_v45  ;;  %vm964_vm7 = vcmp.eq.f32.partialorder %v963_v36, 8.507059e+37  ;;  %v11265_v45 = vld [vmem:[#allocation32_spill] sm:$0xff] }
 0x1cd   :  { %v969_v25 = vmul.f32 %v947_v12, %v9172_v50  ;;  %v957_v11 = vmul.f32 %v8084_v18, %v956_v42 }
 0x1cf   :  { %v9220_v29 = vadd.f32 %v970_v57, %v969_v25  ;;  %v958_v16 = vadd.f32 %v8084_v18, %v957_v11 }
 0x1d1   :  { %8087 = vtanh.f32 %v9220_v29  ;;  %v962_v0 = vsel %vm961_vm6, %v8084_v18, %v958_v16  ;;  %v11263_v18 = vld [vmem:[#allocation27_spill] sm:$0xff] }
 0x1d2   :  { %v967_v63 = vsel %vm964_vm7, %v966_v5, %v962_v0 }
 0x1d7   :  { %v8088_v62 = vpop.eup %8087 }
 0x1d8   :  { %v9223_v30 = vmul.f32 %v8088_v62, %v967_v63 }
 0x1da   :  { %v983_v50 = vpack.c.bf16 %v9223_v30, %v9223_v30 }
 0x1dc   :  { %992 = vmatmul.bf16.vlgmr.msrb.gmra.mxu0 %v983_v50  ;;  %1005 = vmatmul.bf16.vlgmr.msrb.gmra.mxu1 %v983_v50 }
 0x1dd   :  { %1018 = vmatmul.bf16.vlgmr.msrb.gmra.mxu2 %v983_v50  ;;  %1031 = vmatmul.bf16.vlgmr.msrb.gmra.mxu3 %v983_v50  ;;  %v11266_v50 = vld [vmem:[#allocation30_spill] sm:$0xff] }
 0x1de   :  { %1242 = vmatpush.bf16.msrb.mxu0 %v8929_v37  ;;  %1255 = vmatpush.bf16.msrb.mxu1 %v8931_v41 }
 0x1df   :  { %1268 = vmatpush.bf16.msrb.mxu2 %v8933_v47  ;;  %1281 = vmatpush.bf16.msrb.mxu3 %v8936_v48 }
 0x1e2   :  { %1243 = vmatpush.bf16.msrb.mxu0 %v8938_v49  ;;  %1256 = vmatpush.bf16.msrb.mxu1 %v8941_v53 }
 0x1e3   :  { %1269 = vmatpush.bf16.msrb.mxu2 %v8944_v59  ;;  %1282 = vmatpush.bf16.msrb.mxu3 %v8948_v60 }
 0x1e6   :  { %1244 = vmatpush.bf16.msrb.mxu0 %v8950_v61  ;;  %1257 = vmatpush.bf16.msrb.mxu1 %v8953_v1 }
 0x1e7   :  { %1270 = vmatpush.bf16.msrb.mxu2 %v8956_v7  ;;  %1283 = vmatpush.bf16.msrb.mxu3 %v8960_v8 }
 0x1ea   :  { %1245 = vmatpush.bf16.msrb.mxu0 %v8962_v9  ;;  %1258 = vmatpush.bf16.msrb.mxu1 %v8965_v13 }
 0x1eb   :  { %1271 = vmatpush.bf16.msrb.mxu2 %v8968_v20  ;;  %1284 = vmatpush.bf16.msrb.mxu3 %v8972_v21 }
 0x1ee   :  { %1246 = vmatpush.bf16.msrb.mxu0 %v8974_v22  ;;  %1259 = vmatpush.bf16.msrb.mxu1 %v8977_v26 }
 0x1ef   :  { %1272 = vmatpush.bf16.msrb.mxu2 %v8980_v32  ;;  %1285 = vmatpush.bf16.msrb.mxu3 %v8984_v33 }
 0x1f2   :  { %1247 = vmatpush.bf16.msrb.mxu0 %v8986_v34  ;;  %1260 = vmatpush.bf16.msrb.mxu1 %v8989_v35 }
 0x1f3   :  { %1273 = vmatpush.bf16.msrb.mxu2 %v9001_v52  ;;  %1286 = vmatpush.bf16.msrb.mxu3 %v8994_v43 }
 0x1f6   :  { %1248 = vmatpush.bf16.msrb.mxu0 %v8996_v44  ;;  %1261 = vmatpush.bf16.msrb.mxu1 %v8999_v51 }
 0x1f7   :  { %1274 = vmatpush.bf16.msrb.mxu2 %v9010_v4  ;;  %1287 = vmatpush.bf16.msrb.mxu3 %v9006_v2 }
 0x1fa   :  { %1249 = vmatpush.bf16.msrb.mxu0 %v9008_v3  ;;  %1262 = vmatpush.bf16.msrb.mxu1 %v9013_v10 }
 0x1fb   :  { %1275 = vmatpush.bf16.msrb.mxu2 %v9016_v14  ;;  %1288 = vmatpush.bf16.msrb.mxu3 %v9020_v15 }
 0x259   :  { %v993_v24 = vpop.f32.mrf.mxu0  ;;  %v1006_v17 = vpop.f32.mrf.mxu1 }
 0x25a   :  { %v1036_v28 = vadd.f32 %v993_v24, %v11263_v18  ;;  %v1037_v19 = vadd.f32 %v1006_v17, %v11264_v55 }
 0x25c   :  { %v6881_v56 = vmul.f32 -1.442695, %v1036_v28  ;;  %v6882_v6 = vmul.f32 -1.442695, %v1037_v19 }
 0x25e   :  { %8089 = vpow2.f32 %v6881_v56 }
 0x25f   :  { %8091 = vpow2.f32 %v6882_v6 }
 0x260   :  { %v1019_v27 = vpop.f32.mrf.mxu2  ;;  %v1032_v58 = vpop.f32.mrf.mxu3 }
 0x261   :  { %v1039_v39 = vadd.f32 %v1032_v58, %v11265_v45  ;;  %v995_v42 = vpop.f32.mrf.mxu0  ;;  %v1008_v12 = vpop.f32.mrf.mxu1  ;;  %v1038_v24 = vadd.f32 %v1019_v27, %v11266_v50 }
 0x263   :  { %v6883_v57 = vmul.f32 -1.442695, %v1039_v39 }
 0x264   :  { %v8090_v25 = vpop.eup %8089 }
 0x265   :  { %v8092_v11 = vpop.eup %8091  ;;  %v1043_v16 = vadd.f32 1.0, %v8090_v25  ;;  %8093 = vpow2.f32 %v6883_v57 }
 0x266   :  { %v1062_v40 = vadd.f32 1.0, %v8092_v11 }
 0x267   :  { %8095 = vrcp.f32 %v1043_v16  ;;  %v1055_v56 = vand.u32 2147483648, %v1043_v16  ;;  %v1053_v45 = vand.u32 2147483647, %v1043_v16  ;;  %vm1049_vm10 = vweird.f32 %v1043_v16 }
 0x268   :  { %8097 = vrcp.f32 %v1062_v40  ;;  %v1021_v36 = vpop.f32.mrf.mxu2  ;;  %v1034_v0 = vpop.f32.mrf.mxu3  ;;  %v1074_v6 = vand.u32 2147483648, %v1062_v40  ;;  %v1072_v42 = vand.u32 2147483647, %v1062_v40  ;;  %vm1068_vm11 = vweird.f32 %v1062_v40 }
 0x269   :  { %v1056_v27 = vor.u32 1.1754944e-38, %v1055_v56  ;;  %vm1054_vm14 = vcmp.eq.f32.partialorder %v1053_v45, 8.507059e+37 }
 0x26a   :  { %v1075_v36 = vor.u32 1.1754944e-38, %v1074_v6  ;;  %vm1073_vm15 = vcmp.eq.f32.partialorder %v1072_v42, 8.507059e+37 }
 0x26b   :  { %v8094_v5 = vpop.eup %8093 }
 0x26c   :  { %v1082_v62 = vadd.f32 1.0, %v8094_v5 }
 0x26d   :  { %v8096_v63 = vpop.eup %8095 }
 0x26e   :  { %v8098_v17 = vpop.eup %8097  ;;  %v1045_v18 = vmul.f32 %v8096_v63, %v1043_v16  ;;  %8099 = vrcp.f32 %v1082_v62  ;;  %vm1050_vm8 = vweird.f32 %v8096_v63  ;;  %v1094_v56 = vand.u32 2147483648, %v1082_v62 }
 0x26f   :  { %v1064_v28 = vmul.f32 %v8098_v17, %v1062_v40  ;;  %8101 = vtanh.f32 %v1038_v24  ;;  %vm1069_vm9 = vweird.f32 %v8098_v17  ;;  %vm1051_vm12 = vmor %vm1049_vm10, %vm1050_vm8  ;;  %vm1088_vm1 = vweird.f32 %v1082_v62 }
 0x270   :  { %v1046_v55 = vsub.f32 1.0, %v1045_v18  ;;  %vm1070_vm13 = vmor %vm1068_vm11, %vm1069_vm9  ;;  %v1095_v45 = vor.u32 1.1754944e-38, %v1094_v56 }
 0x271   :  { %v1065_v19 = vsub.f32 1.0, %v1064_v28 }
 0x272   :  { %v1047_v58 = vmul.f32 %v8096_v63, %v1046_v55 }
 0x273   :  { %v1066_v39 = vmul.f32 %v8098_v17, %v1065_v19 }
 0x274   :  { %v8100_v12 = vpop.eup %8099  ;;  %v1048_v57 = vadd.f32 %v8096_v63, %v1047_v58 }
 0x275   :  { %v1067_v25 = vadd.f32 %v8098_v17, %v1066_v39  ;;  %v1084_v11 = vmul.f32 %v8100_v12, %v1082_v62  ;;  %v8102_v5 = vpop.eup %8101  ;;  %vm1089_vm0 = vweird.f32 %v8100_v12 }
 0x276   :  { %v1052_v0 = vsel %vm1051_vm12, %v8096_v63, %v1048_v57  ;;  %v1092_v63 = vand.u32 2147483647, %v1082_v62  ;;  %vm1090_vm2 = vmor %vm1088_vm1, %vm1089_vm0  ;;  %v11268_v62 = vld [vmem:[#allocation31_spill] sm:$0xff]  ;;  %v11269_v57 = vld [vmem:[#allocation33_spill] sm:$0xff] }
 0x277   :  { %v1057_v50 = vsel %vm1054_vm14, %v1056_v27, %v1052_v0  ;;  %v1071_v24 = vsel %vm1070_vm13, %v8098_v17, %v1067_v25  ;;  %v1085_v18 = vsub.f32 1.0, %v1084_v11  ;;  %v455_v27 = vadd.f32 %v11269_v57, %v9099_v38 }
 0x278   :  { %v1076_v28 = vsel %vm1073_vm15, %v1075_v36, %v1071_v24  ;;  %v1099_v55 = vmul.f32 %v8102_v5, %v1057_v50  ;;  %vm1093_vm3 = vcmp.eq.f32.partialorder %v1092_v63, 8.507059e+37  ;;  %v11270_v24 = vld [vmem:[#allocation35_spill] sm:$0xff] }
 0x279   :  { %v1098_v19 = vmul.f32 %v1076_v28, %v9220_v29  ;;  %v1086_v58 = vmul.f32 %v8100_v12, %v1085_v18  ;;  %v513_v18 = vadd.f32 %v11270_v24, %v9111_v54 }
 0x27b   :  { %v9264_v16 = vadd.f32 %v1099_v55, %v1098_v19  ;;  %v1087_v40 = vadd.f32 %v8100_v12, %v1086_v58 }
 0x27d   :  { %8103 = vtanh.f32 %v9264_v16  ;;  %v1091_v6 = vsel %vm1090_vm2, %v8100_v12, %v1087_v40  ;;  %v426_v12 = vadd.f32 %v11268_v62, %v9095_v31 }
 0x27e   :  { %v1096_v39 = vsel %vm1093_vm3, %v1095_v45, %v1091_v6 }
 0x283   :  { %v8104_v17 = vpop.eup %8103 }
 0x284   :  { %v9267_v42 = vmul.f32 %v8104_v17, %v1096_v39 }
 0x286   :  { %11267 = vst [vmem:[#allocation29_spill] sm:$0xff] %v9267_v42  ;;  %v1112_v29 = vpack.c.bf16 %v9267_v42, %v9267_v42 }
 0x288   :  { %1121 = vmatmul.bf16.vlgmr.msra.gmra.mxu0 %v1112_v29  ;;  %1134 = vmatmul.bf16.vlgmr.msra.gmra.mxu1 %v1112_v29 }
 0x289   :  { %1147 = vmatmul.bf16.vlgmr.msra.gmra.mxu2 %v1112_v29  ;;  %1160 = vmatmul.bf16.vlgmr.msra.gmra.mxu3 %v1112_v29 }
 0x28a   :  { %1371 = vmatpush.bf16.msra.mxu0 %v8929_v37  ;;  %1384 = vmatpush.bf16.msra.mxu1 %v8931_v41 }
 0x28b   :  { %1397 = vmatpush.bf16.msra.mxu2 %v8933_v47  ;;  %1410 = vmatpush.bf16.msra.mxu3 %v8936_v48 }
 0x28e   :  { %1372 = vmatpush.bf16.msra.mxu0 %v8938_v49  ;;  %1385 = vmatpush.bf16.msra.mxu1 %v8941_v53 }
 0x28f   :  { %1398 = vmatpush.bf16.msra.mxu2 %v8944_v59  ;;  %1411 = vmatpush.bf16.msra.mxu3 %v8948_v60 }
 0x292   :  { %1373 = vmatpush.bf16.msra.mxu0 %v8950_v61  ;;  %1386 = vmatpush.bf16.msra.mxu1 %v8953_v1 }
 0x293   :  { %1399 = vmatpush.bf16.msra.mxu2 %v8956_v7  ;;  %1412 = vmatpush.bf16.msra.mxu3 %v8960_v8 }
 0x296   :  { %1374 = vmatpush.bf16.msra.mxu0 %v8962_v9  ;;  %1387 = vmatpush.bf16.msra.mxu1 %v8965_v13 }
 0x297   :  { %1400 = vmatpush.bf16.msra.mxu2 %v8968_v20  ;;  %1413 = vmatpush.bf16.msra.mxu3 %v8972_v21 }
 0x29a   :  { %1375 = vmatpush.bf16.msra.mxu0 %v8974_v22  ;;  %1388 = vmatpush.bf16.msra.mxu1 %v8977_v26 }
 0x29b   :  { %1401 = vmatpush.bf16.msra.mxu2 %v8980_v32  ;;  %1414 = vmatpush.bf16.msra.mxu3 %v8984_v33 }
 0x29e   :  { %1376 = vmatpush.bf16.msra.mxu0 %v8986_v34  ;;  %1389 = vmatpush.bf16.msra.mxu1 %v8989_v35 }
 0x29f   :  { %1402 = vmatpush.bf16.msra.mxu2 %v9001_v52  ;;  %1415 = vmatpush.bf16.msra.mxu3 %v8994_v43 }
 0x2a2   :  { %1377 = vmatpush.bf16.msra.mxu0 %v8996_v44  ;;  %1390 = vmatpush.bf16.msra.mxu1 %v8999_v51 }
 0x2a3   :  { %1403 = vmatpush.bf16.msra.mxu2 %v9010_v4  ;;  %1416 = vmatpush.bf16.msra.mxu3 %v9006_v2 }
 0x2a6   :  { %1378 = vmatpush.bf16.msra.mxu0 %v9008_v3  ;;  %1391 = vmatpush.bf16.msra.mxu1 %v9013_v10 }
 0x2a7   :  { %1404 = vmatpush.bf16.msra.mxu2 %v9016_v14  ;;  %1417 = vmatpush.bf16.msra.mxu3 %v9020_v15 }
 0x305   :  { %v1122_v25 = vpop.f32.mrf.mxu0  ;;  %v1135_v11 = vpop.f32.mrf.mxu1 }
 0x306   :  { %v1165_v36 = vadd.f32 %v1122_v25, %v426_v12  ;;  %v1166_v0 = vadd.f32 %v1135_v11, %v455_v27  ;;  %v11271_v12 = vld [vmem:[#allocation34_spill] sm:$0xff] }
 0x307   :  { %v484_v57 = vadd.f32 %v11271_v12, %v11261_v23 }
 0x308   :  { %v6884_v5 = vmul.f32 -1.442695, %v1165_v36  ;;  %v6885_v50 = vmul.f32 -1.442695, %v1166_v0 }
 0x30a   :  { %8105 = vpow2.f32 %v6884_v5 }
 0x30b   :  { %8107 = vpow2.f32 %v6885_v50 }
 0x30c   :  { %v1148_v28 = vpop.f32.mrf.mxu2  ;;  %v1161_v55 = vpop.f32.mrf.mxu3 }
 0x30d   :  { %v1168_v19 = vadd.f32 %v1161_v55, %v513_v18  ;;  %v1124_v58 = vpop.f32.mrf.mxu0  ;;  %v1137_v40 = vpop.f32.mrf.mxu1  ;;  %v1167_v11 = vadd.f32 %v1148_v28, %v484_v57 }
 0x30f   :  { %v6886_v56 = vmul.f32 -1.442695, %v1168_v19 }
 0x310   :  { %v8106_v63 = vpop.eup %8105 }
 0x311   :  { %v8108_v6 = vpop.eup %8107  ;;  %v1172_v45 = vadd.f32 1.0, %v8106_v63  ;;  %8109 = vpow2.f32 %v6886_v56 }
 0x312   :  { %v1191_v17 = vadd.f32 1.0, %v8108_v6 }
 0x313   :  { %8111 = vrcp.f32 %v1172_v45  ;;  %v1184_v18 = vand.u32 2147483648, %v1172_v45  ;;  %v1182_v58 = vand.u32 2147483647, %v1172_v45  ;;  %vm1178_vm6 = vweird.f32 %v1172_v45 }
 0x314   :  { %8113 = vrcp.f32 %v1191_v17  ;;  %v1150_v39 = vpop.f32.mrf.mxu2  ;;  %v1163_v29 = vpop.f32.mrf.mxu3  ;;  %v1203_v55 = vand.u32 2147483648, %v1191_v17  ;;  %v1201_v56 = vand.u32 2147483647, %v1191_v17  ;;  %vm1197_vm7 = vweird.f32 %v1191_v17 }
 0x315   :  { %v1185_v28 = vor.u32 1.1754944e-38, %v1184_v18  ;;  %vm1183_vm10 = vcmp.eq.f32.partialorder %v1182_v58, 8.507059e+37 }
 0x316   :  { %vm1202_vm11 = vcmp.eq.f32.partialorder %v1201_v56, 8.507059e+37 }
 0x317   :  { %v8110_v62 = vpop.eup %8109 }
 0x318   :  { %v1211_v27 = vadd.f32 1.0, %v8110_v62  ;;  %v1204_v62 = vor.u32 1.1754944e-38, %v1203_v55 }
 0x319   :  { %v8112_v25 = vpop.eup %8111 }
 0x31a   :  { %v8114_v36 = vpop.eup %8113  ;;  %v1174_v0 = vmul.f32 %v8112_v25, %v1172_v45  ;;  %8115 = vrcp.f32 %v1211_v27  ;;  %vm1179_vm4 = vweird.f32 %v8112_v25  ;;  %v1223_v18 = vand.u32 2147483648, %v1211_v27 }
 0x31b   :  { %v1193_v5 = vmul.f32 %v8114_v36, %v1191_v17  ;;  %8117 = vtanh.f32 %v1167_v11  ;;  %vm1198_vm5 = vweird.f32 %v8114_v36  ;;  %vm1180_vm8 = vmor %vm1178_vm6, %vm1179_vm4  ;;  %vm1217_vm13 = vweird.f32 %v1211_v27 }
 0x31c   :  { %v1175_v50 = vsub.f32 1.0, %v1174_v0  ;;  %vm1199_vm9 = vmor %vm1197_vm7, %vm1198_vm5  ;;  %v1224_v58 = vor.u32 1.1754944e-38, %v1223_v18 }
 0x31d   :  { %v1194_v24 = vsub.f32 1.0, %v1193_v5 }
 0x31e   :  { %v1176_v19 = vmul.f32 %v8112_v25, %v1175_v50 }
 0x31f   :  { %v1195_v40 = vmul.f32 %v8114_v36, %v1194_v24 }
 0x320   :  { %v8116_v63 = vpop.eup %8115  ;;  %v1177_v6 = vadd.f32 %v8112_v25, %v1176_v19 }
 0x321   :  { %v1196_v39 = vadd.f32 %v8114_v36, %v1195_v40  ;;  %v1213_v29 = vmul.f32 %v8116_v63, %v1211_v27  ;;  %v8118_v57 = vpop.eup %8117  ;;  %vm1218_vm12 = vweird.f32 %v8116_v63 }
 0x322   :  { %v1181_v12 = vsel %vm1180_vm8, %v8112_v25, %v1177_v6  ;;  %v1221_v25 = vand.u32 2147483647, %v1211_v27  ;;  %vm1219_vm14 = vmor %vm1217_vm13, %vm1218_vm12 }
 0x323   :  { %v1186_v11 = vsel %vm1183_vm10, %v1185_v28, %v1181_v12  ;;  %v1200_v0 = vsel %vm1199_vm9, %v8114_v36, %v1196_v39  ;;  %v1214_v5 = vsub.f32 1.0, %v1213_v29  ;;  %v11274_v28 = vld [vmem:[#allocation37_spill] sm:$0xff] }
 0x324   :  { %v1205_v50 = vsel %vm1202_vm11, %v1204_v62, %v1200_v0  ;;  %v1228_v24 = vmul.f32 %v8118_v57, %v1186_v11  ;;  %vm1222_vm15 = vcmp.eq.f32.partialorder %v1221_v25, 8.507059e+37  ;;  %v11275_v11 = vld [vmem:[#allocation40_spill] sm:$0xff] }
 0x325   :  { %v1227_v42 = vmul.f32 %v1205_v50, %v9264_v16  ;;  %v1215_v19 = vmul.f32 %v8116_v63, %v1214_v5 }
 0x327   :  { %v9312_v45 = vadd.f32 %v1228_v24, %v1227_v42  ;;  %v1216_v17 = vadd.f32 %v8116_v63, %v1215_v19 }
 0x329   :  { %8119 = vtanh.f32 %v9312_v45  ;;  %v1220_v55 = vsel %vm1219_vm14, %v8116_v63, %v1216_v17  ;;  %v11273_v63 = vld [vmem:[#allocation36_spill] sm:$0xff] }
 0x32a   :  { %v1225_v40 = vsel %vm1222_vm15, %v1224_v58, %v1220_v55 }
 0x32f   :  { %v8120_v36 = vpop.eup %8119 }
 0x330   :  { %v9315_v56 = vmul.f32 %v8120_v36, %v1225_v40 }
 0x332   :  { %11272 = vst [vmem:[#allocation26_spill] sm:$0xff] %v9315_v56  ;;  %v1241_v16 = vpack.c.bf16 %v9315_v56, %v9315_v56 }
 0x334   :  { %1250 = vmatmul.bf16.vlgmr.msrb.gmra.mxu0 %v1241_v16  ;;  %1263 = vmatmul.bf16.vlgmr.msrb.gmra.mxu1 %v1241_v16 }
 0x335   :  { %1276 = vmatmul.bf16.vlgmr.msrb.gmra.mxu2 %v1241_v16  ;;  %1289 = vmatmul.bf16.vlgmr.msrb.gmra.mxu3 %v1241_v16 }
 0x336   :  { %1500 = vmatpush.bf16.msrb.mxu0 %v8929_v37  ;;  %1513 = vmatpush.bf16.msrb.mxu1 %v8931_v41 }
 0x337   :  { %1526 = vmatpush.bf16.msrb.mxu2 %v8933_v47  ;;  %1539 = vmatpush.bf16.msrb.mxu3 %v8936_v48 }
 0x33a   :  { %1501 = vmatpush.bf16.msrb.mxu0 %v8938_v49  ;;  %1514 = vmatpush.bf16.msrb.mxu1 %v8941_v53 }
 0x33b   :  { %1527 = vmatpush.bf16.msrb.mxu2 %v8944_v59  ;;  %1540 = vmatpush.bf16.msrb.mxu3 %v8948_v60 }
 0x33e   :  { %1502 = vmatpush.bf16.msrb.mxu0 %v8950_v61  ;;  %1515 = vmatpush.bf16.msrb.mxu1 %v8953_v1 }
 0x33f   :  { %1528 = vmatpush.bf16.msrb.mxu2 %v8956_v7  ;;  %1541 = vmatpush.bf16.msrb.mxu3 %v8960_v8 }
 0x342   :  { %1503 = vmatpush.bf16.msrb.mxu0 %v8962_v9  ;;  %1516 = vmatpush.bf16.msrb.mxu1 %v8965_v13 }
 0x343   :  { %1529 = vmatpush.bf16.msrb.mxu2 %v8968_v20  ;;  %1542 = vmatpush.bf16.msrb.mxu3 %v8972_v21 }
 0x346   :  { %1504 = vmatpush.bf16.msrb.mxu0 %v8974_v22  ;;  %1517 = vmatpush.bf16.msrb.mxu1 %v8977_v26 }
 0x347   :  { %1530 = vmatpush.bf16.msrb.mxu2 %v8980_v32  ;;  %1543 = vmatpush.bf16.msrb.mxu3 %v8984_v33 }
 0x34a   :  { %1505 = vmatpush.bf16.msrb.mxu0 %v8986_v34  ;;  %1518 = vmatpush.bf16.msrb.mxu1 %v8989_v35 }
 0x34b   :  { %1531 = vmatpush.bf16.msrb.mxu2 %v9001_v52  ;;  %1544 = vmatpush.bf16.msrb.mxu3 %v8994_v43 }
 0x34e   :  { %1506 = vmatpush.bf16.msrb.mxu0 %v8996_v44  ;;  %1519 = vmatpush.bf16.msrb.mxu1 %v8999_v51 }
 0x34f   :  { %1532 = vmatpush.bf16.msrb.mxu2 %v9010_v4  ;;  %1545 = vmatpush.bf16.msrb.mxu3 %v9006_v2 }
 0x352   :  { %1507 = vmatpush.bf16.msrb.mxu0 %v9008_v3  ;;  %1520 = vmatpush.bf16.msrb.mxu1 %v9013_v10 }
 0x353   :  { %1533 = vmatpush.bf16.msrb.mxu2 %v9016_v14  ;;  %1546 = vmatpush.bf16.msrb.mxu3 %v9020_v15 }
 0x3b1   :  { %v1251_v42 = vpop.f32.mrf.mxu0  ;;  %v1264_v27 = vpop.f32.mrf.mxu1 }
 0x3b2   :  { %v1294_v6 = vadd.f32 %v1251_v42, %v11273_v63  ;;  %v1295_v39 = vadd.f32 %v1264_v27, %v11274_v28  ;;  %v11276_v42 = vld [vmem:[#allocation38_spill] sm:$0xff] }
 0x3b4   :  { %v6887_v29 = vmul.f32 -1.442695, %v1294_v6  ;;  %v6888_v62 = vmul.f32 -1.442695, %v1295_v39 }
 0x3b6   :  { %8121 = vpow2.f32 %v6887_v29 }
 0x3b7   :  { %8123 = vpow2.f32 %v6888_v62 }
 0x3b8   :  { %v1277_v12 = vpop.f32.mrf.mxu2  ;;  %v1290_v57 = vpop.f32.mrf.mxu3 }
 0x3b9   :  { %v1297_v0 = vadd.f32 %v1290_v57, %v11275_v11  ;;  %v1253_v5 = vpop.f32.mrf.mxu0  ;;  %v1266_v50 = vpop.f32.mrf.mxu1  ;;  %v1296_v27 = vadd.f32 %v1277_v12, %v11276_v42 }
 0x3bb   :  { %v6889_v24 = vmul.f32 -1.442695, %v1297_v0 }
 0x3bc   :  { %v8122_v19 = vpop.eup %8121 }
 0x3bd   :  { %v8124_v17 = vpop.eup %8123  ;;  %v1301_v18 = vadd.f32 1.0, %v8122_v19  ;;  %8125 = vpow2.f32 %v6889_v24 }
 0x3be   :  { %v1320_v25 = vadd.f32 1.0, %v8124_v17 }
 0x3bf   :  { %8127 = vrcp.f32 %v1301_v18  ;;  %v1313_v62 = vand.u32 2147483648, %v1301_v18  ;;  %v1311_v0 = vand.u32 2147483647, %v1301_v18  ;;  %vm1307_vm2 = vweird.f32 %v1301_v18 }
 0x3c0   :  { %8129 = vrcp.f32 %v1320_v25  ;;  %v1279_v55 = vpop.f32.mrf.mxu2  ;;  %v1292_v58 = vpop.f32.mrf.mxu3  ;;  %v1332_v57 = vand.u32 2147483648, %v1320_v25  ;;  %v1330_v50 = vand.u32 2147483647, %v1320_v25  ;;  %vm1326_vm3 = vweird.f32 %v1320_v25 }
 0x3c1   :  { %v1314_v12 = vor.u32 1.1754944e-38, %v1313_v62  ;;  %vm1312_vm6 = vcmp.eq.f32.partialorder %v1311_v0, 8.507059e+37 }
 0x3c2   :  { %v1333_v58 = vor.u32 1.1754944e-38, %v1332_v57  ;;  %vm1331_vm7 = vcmp.eq.f32.partialorder %v1330_v50, 8.507059e+37 }
 0x3c3   :  { %v8126_v36 = vpop.eup %8125 }
 0x3c4   :  { %v1340_v40 = vadd.f32 1.0, %v8126_v36 }
 0x3c5   :  { %v8128_v16 = vpop.eup %8127 }
 0x3c6   :  { %v8130_v63 = vpop.eup %8129  ;;  %v1303_v6 = vmul.f32 %v8128_v16, %v1301_v18  ;;  %8131 = vrcp.f32 %v1340_v40  ;;  %vm1308_vm0 = vweird.f32 %v8128_v16  ;;  %v1352_v62 = vand.u32 2147483648, %v1340_v40 }
 0x3c7   :  { %v1322_v28 = vmul.f32 %v8130_v63, %v1320_v25  ;;  %8133 = vtanh.f32 %v1296_v27  ;;  %vm1327_vm1 = vweird.f32 %v8130_v63  ;;  %vm1309_vm4 = vmor %vm1307_vm2, %vm1308_vm0  ;;  %vm1346_vm9 = vweird.f32 %v1340_v40 }
 0x3c8   :  { %v1304_v39 = vsub.f32 1.0, %v1303_v6  ;;  %vm1328_vm5 = vmor %vm1326_vm3, %vm1327_vm1  ;;  %v1353_v0 = vor.u32 1.1754944e-38, %v1352_v62 }
 0x3c9   :  { %v1323_v29 = vsub.f32 1.0, %v1322_v28 }
 0x3ca   :  { %v1305_v11 = vmul.f32 %v8128_v16, %v1304_v39 }
 0x3cb   :  { %v1324_v5 = vmul.f32 %v8130_v63, %v1323_v29 }
 0x3cc   :  { %v8132_v24 = vpop.eup %8131  ;;  %v1306_v19 = vadd.f32 %v8128_v16, %v1305_v11 }
 0x3cd   :  { %v1325_v17 = vadd.f32 %v8130_v63, %v1324_v5  ;;  %v1342_v55 = vmul.f32 %v8132_v24, %v1340_v40  ;;  %v8134_v42 = vpop.eup %8133  ;;  %vm1347_vm8 = vweird.f32 %v8132_v24 }
 0x3ce   :  { %v1310_v36 = vsel %vm1309_vm4, %v8128_v16, %v1306_v19  ;;  %v1350_v16 = vand.u32 2147483647, %v1340_v40  ;;  %vm1348_vm10 = vmor %vm1346_vm9, %vm1347_vm8 }
 0x3cf   :  { %v1315_v27 = vsel %vm1312_vm6, %v1314_v12, %v1310_v36  ;;  %v1329_v6 = vsel %vm1328_vm5, %v8130_v63, %v1325_v17  ;;  %v1343_v28 = vsub.f32 1.0, %v1342_v55 }
 0x3d0   :  { %v1334_v39 = vsel %vm1331_vm7, %v1333_v58, %v1329_v6  ;;  %v1357_v29 = vmul.f32 %v8134_v42, %v1315_v27  ;;  %vm1351_vm11 = vcmp.eq.f32.partialorder %v1350_v16, 8.507059e+37 }
 0x3d1   :  { %v1356_v56 = vmul.f32 %v1334_v39, %v9312_v45  ;;  %v1344_v11 = vmul.f32 %v8132_v24, %v1343_v28 }
 0x3d3   :  { %v9356_v18 = vadd.f32 %v1357_v29, %v1356_v56  ;;  %v1345_v25 = vadd.f32 %v8132_v24, %v1344_v11 }
 0x3d5   :  { %8135 = vtanh.f32 %v9356_v18  ;;  %v1349_v57 = vsel %vm1348_vm10, %v8132_v24, %v1345_v25 }
 0x3d6   :  { %v1354_v5 = vsel %vm1351_vm11, %v1353_v0, %v1349_v57 }
 0x3db   :  { %v8136_v63 = vpop.eup %8135 }
 0x3dc   :  { %v9359_v50 = vmul.f32 %v8136_v63, %v1354_v5 }
 0x3de   :  { %v1370_v45 = vpack.c.bf16 %v9359_v50, %v9359_v50 }
 0x3e0   :  { %1379 = vmatmul.bf16.vlgmr.msra.gmra.mxu0 %v1370_v45  ;;  %1392 = vmatmul.bf16.vlgmr.msra.gmra.mxu1 %v1370_v45 }
 0x3e1   :  { %1405 = vmatmul.bf16.vlgmr.msra.gmra.mxu2 %v1370_v45  ;;  %1418 = vmatmul.bf16.vlgmr.msra.gmra.mxu3 %v1370_v45 }
 0x3e2   :  { %1629 = vmatpush.bf16.msra.mxu0 %v8929_v37  ;;  %1642 = vmatpush.bf16.msra.mxu1 %v8931_v41  ;;  %v11277_v37 = vld [vmem:[#allocation39_spill] sm:$0xff] }
 0x3e3   :  { %1655 = vmatpush.bf16.msra.mxu2 %v8933_v47  ;;  %1668 = vmatpush.bf16.msra.mxu3 %v8936_v48  ;;  %v431_v41 = vadd.f32 %v11277_v37, %v9095_v31  ;;  %v11278_v47 = vld [vmem:[#allocation41_spill] sm:$0xff] }
 0x3e4   :  { %v460_v48 = vadd.f32 %v11278_v47, %v9099_v38 }
 0x3e6   :  { %1630 = vmatpush.bf16.msra.mxu0 %v8938_v49  ;;  %1643 = vmatpush.bf16.msra.mxu1 %v8941_v53 }
 0x3e7   :  { %1656 = vmatpush.bf16.msra.mxu2 %v8944_v59  ;;  %1669 = vmatpush.bf16.msra.mxu3 %v8948_v60 }
 0x3ea   :  { %1631 = vmatpush.bf16.msra.mxu0 %v8950_v61  ;;  %1644 = vmatpush.bf16.msra.mxu1 %v8953_v1 }
 0x3eb   :  { %1657 = vmatpush.bf16.msra.mxu2 %v8956_v7  ;;  %1670 = vmatpush.bf16.msra.mxu3 %v8960_v8  ;;  %v11279_v7 = vld [vmem:[#allocation43_spill] sm:$0xff] }
 0x3ec   :  { %v518_v8 = vadd.f32 %v11279_v7, %v9111_v54  ;;  %v7870_v7 = vld [vmem:[#allocation10 + $0x1ec] sm:$0xf0] }
 0x3ee   :  { %1632 = vmatpush.bf16.msra.mxu0 %v8962_v9  ;;  %1645 = vmatpush.bf16.msra.mxu1 %v8965_v13 }
 0x3ef   :  { %1658 = vmatpush.bf16.msra.mxu2 %v8968_v20  ;;  %1671 = vmatpush.bf16.msra.mxu3 %v8972_v21 }
 0x3f2   :  { %1633 = vmatpush.bf16.msra.mxu0 %v8974_v22  ;;  %1646 = vmatpush.bf16.msra.mxu1 %v8977_v26 }
 0x3f3   :  { %1659 = vmatpush.bf16.msra.mxu2 %v8980_v32  ;;  %1672 = vmatpush.bf16.msra.mxu3 %v8984_v33 }
 0x3f6   :  { %1634 = vmatpush.bf16.msra.mxu0 %v8986_v34  ;;  %1647 = vmatpush.bf16.msra.mxu1 %v8989_v35 }
 0x3f7   :  { %1660 = vmatpush.bf16.msra.mxu2 %v9001_v52  ;;  %1673 = vmatpush.bf16.msra.mxu3 %v8994_v43  ;;  %v11280_v52 = vld [vmem:[#allocation42_spill] sm:$0xff] }
 0x3fa   :  { %1635 = vmatpush.bf16.msra.mxu0 %v8996_v44  ;;  %1648 = vmatpush.bf16.msra.mxu1 %v8999_v51 }
 0x3fb   :  { %1661 = vmatpush.bf16.msra.mxu2 %v9010_v4  ;;  %1674 = vmatpush.bf16.msra.mxu3 %v9006_v2  ;;  %v489_v2 = vadd.f32 %v11280_v52, %v11261_v23  ;;  %v11282_v52 = vld [vmem:[#allocation45_spill] sm:$0xff] }
 0x3fe   :  { %1636 = vmatpush.bf16.msra.mxu0 %v9008_v3  ;;  %1649 = vmatpush.bf16.msra.mxu1 %v9013_v10 }
 0x3ff   :  { %1662 = vmatpush.bf16.msra.mxu2 %v9016_v14  ;;  %1675 = vmatpush.bf16.msra.mxu3 %v9020_v15 }
 0x45d   :  { %v1380_v49 = vpop.f32.mrf.mxu0  ;;  %v1393_v53 = vpop.f32.mrf.mxu1 }
 0x45e   :  { %v1423_v59 = vadd.f32 %v1380_v49, %v431_v41  ;;  %v1424_v60 = vadd.f32 %v1393_v53, %v460_v48 }
 0x460   :  { %v6890_v61 = vmul.f32 -1.442695, %v1423_v59  ;;  %v6891_v1 = vmul.f32 -1.442695, %v1424_v60 }
 0x462   :  { %8137 = vpow2.f32 %v6890_v61 }
 0x463   :  { %8139 = vpow2.f32 %v6891_v1  ;;  %v7013_v1 = vld [vmem:[#allocation10 + $0x1e0] sm:$0xf] }
 0x464   :  { %v1406_v9 = vpop.f32.mrf.mxu2  ;;  %v1419_v13 = vpop.f32.mrf.mxu3 }
 0x465   :  { %v1426_v20 = vadd.f32 %v1419_v13, %v518_v8  ;;  %v1382_v21 = vpop.f32.mrf.mxu0  ;;  %v1395_v22 = vpop.f32.mrf.mxu1  ;;  %v1425_v10 = vadd.f32 %v1406_v9, %v489_v2  ;;  %v7868_v8 = vld [vmem:[#allocation10 + $0x1e4] sm:$0xf]  ;;  %v7014_v9 = vor.u32 %v7870_v7, %v7013_v1  ;;  %v7015_v13 = vld [vmem:[#allocation10 + $0x1f0] sm:$0xf0]  ;;  %v6973_v1 = vld [vmem:[#allocation10 + $0x188] sm:$0xf] }
 0x466   :  { %v7871_v21 = vld [vmem:[#allocation10 + $0x1f4] sm:$0xf0]  ;;  %v7018_v22 = vor.u32 %v7868_v8, %v7015_v13  ;;  %v7857_v13 = vld [vmem:[#allocation10 + $0x18c] sm:$0xf] }
 0x467   :  { %v6892_v26 = vmul.f32 -1.442695, %v1426_v20  ;;  %v7021_v20 = vld [vmem:[#allocation10 + $0x1e8] sm:$0xf]  ;;  %v7859_v7 = vld [vmem:[#allocation10 + $0x194] sm:$0xf0] }
 0x468   :  { %v8138_v32 = vpop.eup %8137 }
 0x469   :  { %v8140_v33 = vpop.eup %8139  ;;  %v1430_v34 = vadd.f32 1.0, %v8138_v32  ;;  %8141 = vpow2.f32 %v6892_v26  ;;  %v7022_v26 = vor.u32 %v7871_v21, %v7021_v20  ;;  %v7869_v32 = vld [vmem:[#allocation10 + $0x1ec] sm:$0xf]  ;;  %v6975_v20 = vld [vmem:[#allocation10 + $0x198] sm:$0xf0] }
 0x46a   :  { %v1449_v35 = vadd.f32 1.0, %v8140_v33  ;;  %v7023_v33 = vld [vmem:[#allocation10 + $0x1f8] sm:$0xf0] }
 0x46b   :  { %8143 = vrcp.f32 %v1430_v34  ;;  %v1442_v19 = vand.u32 2147483648, %v1430_v34  ;;  %v1440_v55 = vand.u32 2147483647, %v1430_v34  ;;  %vm1436_vm14 = vweird.f32 %v1430_v34 }
 0x46c   :  { %8145 = vrcp.f32 %v1449_v35  ;;  %v1408_v43 = vpop.f32.mrf.mxu2  ;;  %v1421_v44 = vpop.f32.mrf.mxu3  ;;  %v1461_v12 = vand.u32 2147483648, %v1449_v35  ;;  %v1459_v36 = vand.u32 2147483647, %v1449_v35  ;;  %vm1455_vm15 = vweird.f32 %v1449_v35 }
 0x46d   :  { %v1443_v6 = vor.u32 1.1754944e-38, %v1442_v19  ;;  %vm1441_vm2 = vcmp.eq.f32.partialorder %v1440_v55, 8.507059e+37  ;;  %v7026_v43 = vor.u32 %v7869_v32, %v7023_v33  ;;  %v11281_v44 = vld [vmem:[#allocation44_spill] sm:$0xff] }
 0x46e   :  { %v1462_v29 = vor.u32 1.1754944e-38, %v1461_v12  ;;  %vm1460_vm3 = vcmp.eq.f32.partialorder %v1459_v36, 8.507059e+37  ;;  %v7865_v55 = vld [vmem:[#allocation10 + $0x1cc] sm:$0xf]  ;;  %v6981_v36 = vld [vmem:[#allocation10 + $0x1a0] sm:$0xf] }
 0x46f   :  { %v8142_v51 = vpop.eup %8141 }
 0x470   :  { %v1469_v3 = vadd.f32 1.0, %v8142_v51 }
 0x471   :  { %v8144_v4 = vpop.eup %8143 }
 0x472   :  { %v8146_v14 = vpop.eup %8145  ;;  %v1432_v15 = vmul.f32 %v8144_v4, %v1430_v34  ;;  %8147 = vrcp.f32 %v1469_v3  ;;  %vm1437_vm12 = vweird.f32 %v8144_v4  ;;  %v1481_v47 = vand.u32 2147483648, %v1469_v3 }
 0x473   :  { %v1451_v56 = vmul.f32 %v8146_v14, %v1449_v35  ;;  %8149 = vtanh.f32 %v1425_v10  ;;  %vm1456_vm13 = vweird.f32 %v8146_v14  ;;  %vm1438_vm0 = vmor %vm1436_vm14, %vm1437_vm12  ;;  %vm1475_vm5 = vweird.f32 %v1469_v3  ;;  %v7864_v10 = vld [vmem:[#allocation10 + $0x1c4] sm:$0xf] }
 0x474   :  { %v1433_v40 = vsub.f32 1.0, %v1432_v15  ;;  %vm1457_vm1 = vmor %vm1455_vm15, %vm1456_vm13  ;;  %v1479_v48 = vand.u32 2147483647, %v1469_v3  ;;  %v1482_v53 = vor.u32 1.1754944e-38, %v1481_v47  ;;  %v6999_v15 = vld [vmem:[#allocation10 + $0x1d0] sm:$0xf0] }
 0x475   :  { %v1452_v24 = vsub.f32 1.0, %v1451_v56  ;;  %v7005_v56 = vld [vmem:[#allocation10 + $0x1c8] sm:$0xf]  ;;  %v7002_v12 = vor.u32 %v7864_v10, %v6999_v15  ;;  %v7856_v47 = vld [vmem:[#allocation10 + $0x184] sm:$0xf] }
 0x476   :  { %v1434_v17 = vmul.f32 %v8144_v4, %v1433_v40  ;;  %vm1480_vm7 = vcmp.eq.f32.partialorder %v1479_v48, 8.507059e+37  ;;  %v7867_v40 = vld [vmem:[#allocation10 + $0x1d4] sm:$0xf0]  ;;  %v11283_v48 = vld [vmem:[#allocation48_spill] sm:$0xff] }
 0x477   :  { %v1453_v58 = vmul.f32 %v8146_v14, %v1452_v24  ;;  %v7855_v15 = vld [vmem:[#allocation10 + $0x174] sm:$0xf0] }
 0x478   :  { %v8148_v42 = vpop.eup %8147  ;;  %v1435_v27 = vadd.f32 %v8144_v4, %v1434_v17  ;;  %v7006_v17 = vor.u32 %v7867_v40, %v7005_v56  ;;  %v11284_v40 = vld [vmem:[#allocation46_spill] sm:$0xff] }
 0x479   :  { %v1454_v28 = vadd.f32 %v8146_v14, %v1453_v58  ;;  %v1471_v39 = vmul.f32 %v8148_v42, %v1469_v3  ;;  %v8150_v25 = vpop.eup %8149  ;;  %vm1476_vm4 = vweird.f32 %v8148_v42  ;;  %v6997_v3 = vld [vmem:[#allocation10 + $0x1c0] sm:$0xf]  ;;  %v7007_v58 = vld [vmem:[#allocation10 + $0x1d8] sm:$0xf0] }
 0x47a   :  { %v1439_v11 = vsel %vm1438_vm0, %v8144_v4, %v1435_v27  ;;  %vm1477_vm6 = vmor %vm1475_vm5, %vm1476_vm4  ;;  %v7866_v4 = vld [vmem:[#allocation10 + $0x1cc] sm:$0xf0]  ;;  %v7010_v27 = vor.u32 %v7865_v55, %v7007_v58  ;;  %v6933_v55 = vld [vmem:[#allocation10 + $0x140] sm:$0xf] }
 0x47b   :  { %v1444_v62 = vsel %vm1441_vm2, %v1443_v6, %v1439_v11  ;;  %v1458_v16 = vsel %vm1457_vm1, %v8146_v14, %v1454_v28  ;;  %v1472_v57 = vsub.f32 1.0, %v1471_v39  ;;  %v6998_v14 = vor.u32 %v7866_v4, %v6997_v3  ;;  %v7860_v28 = vld [vmem:[#allocation10 + $0x1a4] sm:$0xf]  ;;  %v6983_v39 = vld [vmem:[#allocation10 + $0x1b0] sm:$0xf0] }
 0x47c   :  { %v1463_v0 = vsel %vm1460_vm3, %v1462_v29, %v1458_v16  ;;  %v1486_v63 = vmul.f32 %v8150_v25, %v1444_v62  ;;  %v6989_v29 = vld [vmem:[#allocation10 + $0x1a8] sm:$0xf]  ;;  %v6986_v11 = vor.u32 %v7860_v28, %v6983_v39  ;;  %v7863_v25 = vld [vmem:[#allocation10 + $0x1b4] sm:$0xf0]  ;;  %v7861_v62 = vld [vmem:[#allocation10 + $0x1ac] sm:$0xf] }
 0x47d   :  { %v1485_v5 = vmul.f32 %v1463_v0, %v9356_v18  ;;  %v1473_v45 = vmul.f32 %v8148_v42, %v1472_v57  ;;  %v6991_v16 = vld [vmem:[#allocation10 + $0x1b8] sm:$0xf0]  ;;  %v6951_v3 = vld [vmem:[#allocation10 + $0x170] sm:$0xf0] }
 0x47e   :  { %v6935_v39 = vld [vmem:[#allocation10 + $0x150] sm:$0xf0] }
 0x47f   :  { %v9404_v37 = vadd.f32 %v1486_v63, %v1485_v5  ;;  %v1474_v41 = vadd.f32 %v8148_v42, %v1473_v45  ;;  %v6990_v63 = vor.u32 %v7863_v25, %v6989_v29  ;;  %v6994_v5 = vor.u32 %v7861_v62, %v6991_v16  ;;  %v6965_v45 = vld [vmem:[#allocation10 + $0x180] sm:$0xf]  ;;  %v6941_v29 = vld [vmem:[#allocation10 + $0x148] sm:$0xf]  ;;  %v7849_v16 = vld [vmem:[#allocation10 + $0x14c] sm:$0xf] }
 0x481   :  { %8151 = vtanh.f32 %v9404_v37  ;;  %v1478_v49 = vsel %vm1477_vm6, %v8148_v42, %v1474_v41  ;;  %v7862_v42 = vld [vmem:[#allocation10 + $0x1ac] sm:$0xf0] }
 0x482   :  { %v1483_v60 = vsel %vm1480_vm7, %v1482_v53, %v1478_v49  ;;  %v6982_v6 = vor.u32 %v7862_v42, %v6981_v36  ;;  %v7858_v41 = vld [vmem:[#allocation10 + $0x18c] sm:$0xf0] }
 0x483   :  { %v7850_v42 = vld [vmem:[#allocation10 + $0x14c] sm:$0xf0] }
 0x484   :  { %v6934_v28 = vor.u32 %v7850_v42, %v6933_v55  ;;  %v6911_v55 = vld [vmem:[#allocation10 + $0x118] sm:$0xf0] }
 0x487   :  { %v8152_v59 = vpop.eup %8151 }
 0x488   :  { %v9407_v61 = vmul.f32 %v8152_v59, %v1483_v60  ;;  %v6966_v60 = vor.u32 %v7858_v41, %v6965_v45  ;;  %v7846_v41 = vld [vmem:[#allocation10 + $0x12c] sm:$0xf0] }
 0x48a   :  { %v1499_v18 = vpack.c.bf16 %v9407_v61, %v9407_v61 }
 0x48c   :  { %1508 = vmatmul.bf16.vlgmr.msrb.gmra.mxu0 %v1499_v18  ;;  %1521 = vmatmul.bf16.vlgmr.msrb.gmra.mxu1 %v1499_v18 }
 0x48d   :  { %1534 = vmatmul.bf16.vlgmr.msrb.gmra.mxu2 %v1499_v18  ;;  %1547 = vmatmul.bf16.vlgmr.msrb.gmra.mxu3 %v1499_v18  ;;  %v6967_v18 = vld [vmem:[#allocation10 + $0x190] sm:$0xf0] }
 0x48e   :  { %2001 = vmatpush.bf16.msrb.mxu0 %v7014_v9  ;;  %2030 = vmatpush.bf16.msrb.mxu1 %v7018_v22  ;;  %v6970_v8 = vor.u32 %v7856_v47, %v6967_v18  ;;  %v6974_v9 = vor.u32 %v7859_v7, %v6973_v1  ;;  %v11287_v1 = vld [vmem:[#allocation29_spill] sm:$0xff] }
 0x48f   :  { %2059 = vmatpush.bf16.msrb.mxu2 %v7022_v26  ;;  %2088 = vmatpush.bf16.msrb.mxu3 %v7026_v43  ;;  %v6978_v26 = vor.u32 %v7857_v13, %v6975_v20 }
 0x492   :  { %2002 = vmatpush.bf16.msrb.mxu0 %v6998_v14  ;;  %2031 = vmatpush.bf16.msrb.mxu1 %v7002_v12  ;;  %v6957_v14 = vld [vmem:[#allocation10 + $0x168] sm:$0xf]  ;;  %v7853_v12 = vld [vmem:[#allocation10 + $0x16c] sm:$0xf] }
 0x493   :  { %2060 = vmatpush.bf16.msrb.mxu2 %v7006_v17  ;;  %2089 = vmatpush.bf16.msrb.mxu3 %v7010_v27  ;;  %v6959_v17 = vld [vmem:[#allocation10 + $0x178] sm:$0xf0]  ;;  %v7848_v27 = vld [vmem:[#allocation10 + $0x144] sm:$0xf] }
 0x494   :  { %v6962_v36 = vor.u32 %v7853_v12, %v6959_v17  ;;  %v7841_v17 = vld [vmem:[#allocation10 + $0x10c] sm:$0xf] }
 0x496   :  { %2003 = vmatpush.bf16.msrb.mxu0 %v6982_v6  ;;  %2032 = vmatpush.bf16.msrb.mxu1 %v6986_v11  ;;  %v7851_v11 = vld [vmem:[#allocation10 + $0x154] sm:$0xf0] }
 0x497   :  { %2061 = vmatpush.bf16.msrb.mxu2 %v6990_v63  ;;  %2090 = vmatpush.bf16.msrb.mxu3 %v6994_v5 }
 0x49a   :  { %2004 = vmatpush.bf16.msrb.mxu0 %v6966_v60  ;;  %2033 = vmatpush.bf16.msrb.mxu1 %v6970_v8  ;;  %v6919_v60 = vld [vmem:[#allocation10 + $0x130] sm:$0xf0] }
 0x49b   :  { %2062 = vmatpush.bf16.msrb.mxu2 %v6974_v9  ;;  %2091 = vmatpush.bf16.msrb.mxu3 %v6978_v26  ;;  %v6925_v9 = vld [vmem:[#allocation10 + $0x128] sm:$0xf]  ;;  %v6927_v26 = vld [vmem:[#allocation10 + $0x138] sm:$0xf0] }
 0x49f   :  { %2092 = vmatpush.bf16.msrb.mxu3 %v6962_v36 }
 0x509   :  { %v1509_v34 = vpop.f32.mrf.mxu0  ;;  %v1522_v35 = vpop.f32.mrf.mxu1 }
 0x50a   :  { %v1552_v51 = vadd.f32 %v1509_v34, %v11281_v44  ;;  %v1553_v2 = vadd.f32 %v1522_v35, %v11282_v52  ;;  %v6949_v35 = vld [vmem:[#allocation10 + $0x160] sm:$0xf] }
 0x50c   :  { %v6893_v24 = vmul.f32 -1.442695, %v1552_v51  ;;  %v6894_v19 = vmul.f32 -1.442695, %v1553_v2  ;;  %v7854_v51 = vld [vmem:[#allocation10 + $0x16c] sm:$0xf0] }
 0x50d   :  { %v6950_v52 = vor.u32 %v7854_v51, %v6949_v35  ;;  %v7852_v2 = vld [vmem:[#allocation10 + $0x164] sm:$0xf]  ;;  %v7842_v51 = vld [vmem:[#allocation10 + $0x10c] sm:$0xf0] }
 0x50e   :  { %8153 = vpow2.f32 %v6893_v24  ;;  %v6954_v10 = vor.u32 %v7852_v2, %v6951_v3 }
 0x50f   :  { %8155 = vpow2.f32 %v6894_v19  ;;  %2005 = vmatpush.bf16.msrb.mxu0 %v6950_v52  ;;  %v6958_v19 = vor.u32 %v7855_v15, %v6957_v14  ;;  %v7840_v52 = vld [vmem:[#allocation10 + $0x104] sm:$0xf]  ;;  %v6909_v14 = vld [vmem:[#allocation10 + $0x108] sm:$0xf]  ;;  %v7843_v15 = vld [vmem:[#allocation10 + $0x114] sm:$0xf0] }
 0x510   :  { %v1535_v57 = vpop.f32.mrf.mxu2  ;;  %v1548_v0 = vpop.f32.mrf.mxu3  ;;  %2034 = vmatpush.bf16.msrb.mxu1 %v6954_v10  ;;  %v6903_v10 = vld [vmem:[#allocation10 + $0x110] sm:$0xf0]  ;;  %v6910_v42 = vor.u32 %v7843_v15, %v6909_v14  ;;  %v7897_v14 = vld [vmem:[#allocation12 + $0x1cc] sm:$0xf]  ;;  %v7135_v15 = vld [vmem:[#allocation12 + $0x1d8] sm:$0xf0] }
 0x511   :  { %v1555_v49 = vadd.f32 %v1548_v0, %v11283_v48  ;;  %v1511_v53 = vpop.f32.mrf.mxu0  ;;  %v1524_v59 = vpop.f32.mrf.mxu1  ;;  %v1554_v24 = vadd.f32 %v1535_v57, %v11284_v40  ;;  %2063 = vmatpush.bf16.msrb.mxu2 %v6958_v19  ;;  %v6943_v57 = vld [vmem:[#allocation10 + $0x158] sm:$0xf0]  ;;  %v6917_v0 = vld [vmem:[#allocation10 + $0x120] sm:$0xf]  ;;  %v6938_v48 = vor.u32 %v7848_v27, %v6935_v39  ;;  %v6906_v36 = vor.u32 %v7840_v52, %v6903_v10  ;;  %v7127_v10 = vld [vmem:[#allocation12 + $0x1d0] sm:$0xf0] }
 0x512   :  { %v6946_v53 = vor.u32 %v7849_v16, %v6943_v57  ;;  %v7844_v59 = vld [vmem:[#allocation10 + $0x124] sm:$0xf]  ;;  %v6918_v8 = vor.u32 %v7846_v41, %v6917_v0  ;;  %v7125_v52 = vld [vmem:[#allocation12 + $0x1c0] sm:$0xf] }
 0x513   :  { %v6895_v21 = vmul.f32 -1.442695, %v1555_v49  ;;  %2006 = vmatpush.bf16.msrb.mxu0 %v6934_v28  ;;  %v6942_v49 = vor.u32 %v7851_v11, %v6941_v29  ;;  %v6922_v20 = vor.u32 %v7844_v59, %v6919_v60  ;;  %v6914_v29 = vor.u32 %v7841_v17, %v6911_v55  ;;  %v7143_v60 = vld [vmem:[#allocation12 + $0x1f0] sm:$0xf0]  ;;  %v7892_v17 = vld [vmem:[#allocation12 + $0x1a4] sm:$0xf] }
 0x514   :  { %v8154_v22 = vpop.eup %8153  ;;  %2035 = vmatpush.bf16.msrb.mxu1 %v6938_v48  ;;  %2093 = vmatpush.bf16.msrb.mxu3 %v6946_v53  ;;  %v1828_v48 = vpack.c.bf16 %v9223_v30, %v9175_v46  ;;  %v7900_v53 = vld [vmem:[#allocation12 + $0x1e4] sm:$0xf]  ;;  %v1830_v46 = vpack.c.bf16 %v9407_v61, %v9359_v50  ;;  %v7901_v30 = vld [vmem:[#allocation12 + $0x1ec] sm:$0xf] }
 0x515   :  { %v8156_v32 = vpop.eup %8155  ;;  %v9414_v33 = vadd.f32 1.0, %v8154_v22  ;;  %8157 = vpow2.f32 %v6895_v21  ;;  %2064 = vmatpush.bf16.msrb.mxu2 %v6942_v49  ;;  %v7847_v21 = vld [vmem:[#allocation10 + $0x134] sm:$0xf0]  ;;  %v7845_v22 = vld [vmem:[#allocation10 + $0x12c] sm:$0xf] }
 0x516   :  { %v9416_v34 = vadd.f32 1.0, %v8156_v32  ;;  %v6926_v35 = vor.u32 %v7847_v21, %v6925_v9  ;;  %v7902_v49 = vld [vmem:[#allocation12 + $0x1ec] sm:$0xf0]  ;;  %v7151_v9 = vld [vmem:[#allocation12 + $0x1f8] sm:$0xf0] }
 0x517   :  { %8159 = vrcp.f32 %v9414_v33  ;;  %v1569_v4 = vand.u32 2147483647, %v9414_v33  ;;  %v1571_v45 = vand.u32 2147483648, %v9414_v33  ;;  %2007 = vmatpush.bf16.msrb.mxu0 %v6918_v8  ;;  %vm1565_vm12 = vweird.f32 %v9414_v33  ;;  %v7903_v21 = vld [vmem:[#allocation12 + $0x1f4] sm:$0xf0] }
 0x518   :  { %8161 = vrcp.f32 %v9416_v34  ;;  %v1537_v43 = vpop.f32.mrf.mxu2  ;;  %v1550_v44 = vpop.f32.mrf.mxu3  ;;  %v1590_v5 = vand.u32 2147483648, %v9416_v34  ;;  %v1588_v7 = vand.u32 2147483647, %v9416_v34  ;;  %vm1584_vm11 = vweird.f32 %v9416_v34  ;;  %2036 = vmatpush.bf16.msrb.mxu1 %v6922_v20  ;;  %v7149_v20 = vld [vmem:[#allocation12 + $0x1e8] sm:$0xf] }
 0x519   :  { %vm9435_vm8 = vcmp.eq.f32.partialorder %v1569_v4, 8.507059e+37  ;;  %v6930_v43 = vor.u32 %v7845_v22, %v6927_v26  ;;  %v6901_v44 = vld [vmem:[#allocation10 + $0x100] sm:$0xf]  ;;  %2065 = vmatpush.bf16.msrb.mxu2 %v6926_v35  ;;  %v9485_v22 = vor.u32 %v7903_v21, %v7149_v20  ;;  %v11290_v35 = vld [vmem:[#allocation49_spill] sm:$0xff]  ;;  %v7885_v20 = vld [vmem:[#allocation12 + $0x16c] sm:$0xf] }
 0x51a   :  { %v6902_v4 = vor.u32 %v7842_v51, %v6901_v44  ;;  %v1591_v40 = vor.u32 1.1754944e-38, %v1590_v5  ;;  %vm1589_vm15 = vcmp.eq.f32.partialorder %v1588_v7, 8.507059e+37  ;;  %v11288_v7 = vld [vmem:[#allocation26_spill] sm:$0xff]  ;;  %v11289_v26 = vld [vmem:[#allocation47_spill] sm:$0xff]  ;;  %v465_v50 = vadd.f32 %v11290_v35, %v9099_v38  ;;  %v7133_v38 = vld [vmem:[#allocation12 + $0x1c8] sm:$0xf] }
 0x51b   :  { %v8158_v56 = vpop.eup %8157  ;;  %2094 = vmatpush.bf16.msrb.mxu3 %v6930_v43  ;;  %v1829_v8 = vpack.c.bf16 %v11288_v7, %v11287_v1  ;;  %v7077_v1 = vld [vmem:[#allocation12 + $0x160] sm:$0xf]  ;;  %v7886_v7 = vld [vmem:[#allocation12 + $0x16c] sm:$0xf0]  ;;  %v7891_v35 = vld [vmem:[#allocation12 + $0x194] sm:$0xf0] }
 0x51c   :  { %v9422_v58 = vadd.f32 1.0, %v8158_v56  ;;  %2008 = vmatpush.bf16.msrb.mxu0 %v6902_v4  ;;  %2037 = vmatpush.bf16.msrb.mxu1 %v6906_v36  ;;  %v7893_v36 = vld [vmem:[#allocation12 + $0x1ac] sm:$0xf] }
 0x51d   :  { %v9424_v6 = vpop.eup %8159  ;;  %2066 = vmatpush.bf16.msrb.mxu2 %v6910_v42  ;;  %v7119_v42 = vld [vmem:[#allocation12 + $0x1b8] sm:$0xf0] }
 0x51e   :  { %v9426_v25 = vpop.eup %8161  ;;  %v1561_v62 = vmul.f32 %v9424_v6, %v9414_v33  ;;  %8163 = vrcp.f32 %v9422_v58  ;;  %vm1566_vm9 = vweird.f32 %v9424_v6  ;;  %vm1604_vm1 = vweird.f32 %v9422_v58 }
 0x51f   :  { %v1580_v63 = vmul.f32 %v9426_v25, %v9416_v34  ;;  %8165 = vtanh.f32 %v1554_v24  ;;  %vm1585_vm10 = vweird.f32 %v9426_v25  ;;  %vm1567_vm13 = vmor %vm1565_vm12, %vm1566_vm9  ;;  %v1572_v24 = vor.u32 1.1754944e-38, %v1571_v45  ;;  %2095 = vmatpush.bf16.msrb.mxu3 %v6914_v29 }
 0x520   :  { %v1562_v47 = vsub.f32 1.0, %v1561_v62  ;;  %vm1586_vm14 = vmor %vm1584_vm11, %vm1585_vm10  ;;  %v1608_v0 = vand.u32 2147483647, %v9422_v58  ;;  %v9507_v29 = vor.u32 %v7893_v36, %v7119_v42 }
 0x521   :  { %v1581_v18 = vsub.f32 1.0, %v1580_v63 }
 0x522   :  { %v1563_v13 = vmul.f32 %v9424_v6, %v1562_v47  ;;  %vm1609_vm3 = vcmp.eq.f32.partialorder %v1608_v0, 8.507059e+37  ;;  %v7888_v0 = vld [vmem:[#allocation12 + $0x184] sm:$0xf] }
 0x523   :  { %v1582_v32 = vmul.f32 %v9426_v25, %v1581_v18  ;;  %v9474_v18 = vor.u32 %v7900_v53, %v7143_v60 }
 0x524   :  { %v8164_v2 = vpop.eup %8163  ;;  %v1564_v3 = vadd.f32 %v9424_v6, %v1563_v13  ;;  %v9482_v13 = vor.u32 %v7901_v30, %v7151_v9  ;;  %v7079_v9 = vld [vmem:[#allocation12 + $0x170] sm:$0xf0] }
 0x525   :  { %v8166_v56 = vpop.eup %8165  ;;  %v1583_v19 = vadd.f32 %v9426_v25, %v1582_v32  ;;  %v1600_v12 = vmul.f32 %v8164_v2, %v9422_v58  ;;  %vm1605_vm0 = vweird.f32 %v8164_v2  ;;  %v436_v32 = vadd.f32 %v11289_v26, %v9095_v31  ;;  %v7087_v26 = vld [vmem:[#allocation12 + $0x178] sm:$0xf0] }
 0x526   :  { %v1568_v33 = vsel %vm1567_vm13, %v9424_v6, %v1564_v3  ;;  %vm1606_vm2 = vmor %vm1604_vm1, %vm1605_vm0  ;;  %v7896_v3 = vld [vmem:[#allocation12 + $0x1c4] sm:$0xf] }
 0x527   :  { %v1573_v27 = vsel %vm9435_vm8, %v1572_v24, %v1568_v33  ;;  %v1587_v28 = vsel %vm1586_vm14, %v9426_v25, %v1583_v19  ;;  %v1601_v39 = vsub.f32 1.0, %v1600_v12  ;;  %v1610_v25 = vand.u32 2147483648, %v9422_v58  ;;  %v7141_v58 = vld [vmem:[#allocation12 + $0x1e0] sm:$0xf]  ;;  %v7894_v12 = vld [vmem:[#allocation12 + $0x1ac] sm:$0xf0] }
 0x528   :  { %v1592_v11 = vsel %vm1589_vm15, %v1591_v40, %v1587_v28  ;;  %v1615_v62 = vmul.f32 %v8166_v56, %v1573_v27  ;;  %v9472_v59 = vor.u32 %v7902_v49, %v7141_v58  ;;  %v9494_v31 = vor.u32 %v7896_v3, %v7127_v10  ;;  %v7109_v19 = vld [vmem:[#allocation12 + $0x1a0] sm:$0xf]  ;;  %v7111_v33 = vld [vmem:[#allocation12 + $0x1b0] sm:$0xf0]  ;;  %v7117_v58 = vld [vmem:[#allocation12 + $0x1a8] sm:$0xf] }
 0x529   :  { %v1614_v34 = vmul.f32 %v1592_v11, %v9404_v37  ;;  %v1602_v16 = vmul.f32 %v8164_v2, %v1601_v39  ;;  %v1611_v5 = vor.u32 1.1754944e-38, %v1610_v25  ;;  %v9496_v24 = vor.u32 %v7897_v14, %v7135_v15  ;;  %v11291_v27 = vld [vmem:[#allocation51_spill] sm:$0xff]  ;;  %v7899_v11 = vld [vmem:[#allocation12 + $0x1d4] sm:$0xf0]  ;;  %v7882_v3 = vld [vmem:[#allocation12 + $0x14c] sm:$0xf0] }
 0x52a   :  { %v9501_v55 = vor.u32 %v7894_v12, %v7109_v19  ;;  %v523_v28 = vadd.f32 %v11291_v27, %v9111_v54  ;;  %v9505_v39 = vor.u32 %v7892_v17, %v7111_v33  ;;  %v9511_v25 = vor.u32 %v7899_v11, %v7133_v38  ;;  %v7895_v49 = vld [vmem:[#allocation12 + $0x1b4] sm:$0xf0]  ;;  %v7880_v14 = vld [vmem:[#allocation12 + $0x144] sm:$0xf]  ;;  %v7063_v15 = vld [vmem:[#allocation12 + $0x150] sm:$0xf0] }
 0x52b   :  { %v9460_v6 = vadd.f32 %v1615_v62, %v1614_v34  ;;  %v1603_v57 = vadd.f32 %v8164_v2, %v1602_v16  ;;  %v7093_v62 = vld [vmem:[#allocation12 + $0x180] sm:$0xf]  ;;  %v7890_v34 = vld [vmem:[#allocation12 + $0x18c] sm:$0xf0]  ;;  %v9523_v30 = vor.u32 %v7895_v49, %v7117_v58  ;;  %v7071_v19 = vld [vmem:[#allocation12 + $0x158] sm:$0xf0]  ;;  %v9548_v36 = vor.u32 %v7880_v14, %v7063_v15 }
 0x52c   :  { %v9514_v54 = vor.u32 %v7890_v34, %v7093_v62  ;;  %v7085_v17 = vld [vmem:[#allocation12 + $0x168] sm:$0xf]  ;;  %v7887_v33 = vld [vmem:[#allocation12 + $0x174] sm:$0xf0]  ;;  %v7045_v27 = vld [vmem:[#allocation12 + $0x120] sm:$0xf] }
 0x52d   :  { %8167 = vtanh.f32 %v9460_v6  ;;  %v1607_v63 = vsel %vm1606_vm2, %v8164_v2, %v1603_v57  ;;  %v7898_v2 = vld [vmem:[#allocation12 + $0x1cc] sm:$0xf0]  ;;  %v11292_v62 = vld [vmem:[#allocation50_spill] sm:$0xff]  ;;  %v7877_v49 = vld [vmem:[#allocation12 + $0x12c] sm:$0xf] }
 0x52e   :  { %v1612_v45 = vsel %vm1609_vm3, %v1611_v5, %v1607_v63  ;;  %v9492_v4 = vor.u32 %v7898_v2, %v7125_v52  ;;  %v7095_v63 = vld [vmem:[#allocation12 + $0x190] sm:$0xf0]  ;;  %v7889_v5 = vld [vmem:[#allocation12 + $0x18c] sm:$0xf]  ;;  %v9536_v52 = vor.u32 %v7885_v20, %v7087_v26  ;;  %v7061_v2 = vld [vmem:[#allocation12 + $0x140] sm:$0xf]  ;;  %v494_v34 = vadd.f32 %v11292_v62, %v11261_v23 }
 0x52f   :  { %v9518_v53 = vor.u32 %v7888_v0, %v7095_v63  ;;  %v9544_v12 = vor.u32 %v7882_v3, %v7061_v2  ;;  %v7876_v0 = vld [vmem:[#allocation12 + $0x124] sm:$0xf]  ;;  %v7047_v63 = vld [vmem:[#allocation12 + $0x130] sm:$0xf0]  ;;  %v7055_v23 = vld [vmem:[#allocation12 + $0x138] sm:$0xf0] }
 0x530   :  { %v9581_v26 = vor.u32 %v7877_v49, %v7055_v23  ;;  %v7029_v3 = vld [vmem:[#allocation12 + $0x100] sm:$0xf]  ;;  %v7874_v14 = vld [vmem:[#allocation12 + $0x10c] sm:$0xf0] }
 0x533   :  { %v8168_v37 = vpop.eup %8167 }
 0x534   :  { %v9466_v41 = vmul.f32 %v8168_v37, %v1612_v45 }
 0x536   :  { %v1628_v47 = vpack.c.bf16 %v9466_v41, %v9466_v41 }
 0x538   :  { %1637 = vmatmul.bf16.vlgmr.msra.gmra.mxu0 %v1628_v47  ;;  %1650 = vmatmul.bf16.vlgmr.msra.gmra.mxu1 %v1628_v47 }
 0x539   :  { %1663 = vmatmul.bf16.vlgmr.msra.gmra.mxu2 %v1628_v47  ;;  %1676 = vmatmul.bf16.vlgmr.msra.gmra.mxu3 %v1628_v47 }
 0x53a   :  { %2318 = vmatpush.bf16.msra.mxu0 %v9472_v59  ;;  %2331 = vmatpush.bf16.msra.mxu1 %v9474_v18 }
 0x53b   :  { %2357 = vmatpush.bf16.msra.mxu3 %v9482_v13  ;;  %2344 = vmatpush.bf16.msra.mxu2 %v9485_v22 }
 0x53e   :  { %2319 = vmatpush.bf16.msra.mxu0 %v9492_v4  ;;  %2332 = vmatpush.bf16.msra.mxu1 %v9494_v31 }
 0x53f   :  { %2358 = vmatpush.bf16.msra.mxu3 %v9496_v24  ;;  %2345 = vmatpush.bf16.msra.mxu2 %v9511_v25 }
 0x542   :  { %2320 = vmatpush.bf16.msra.mxu0 %v9501_v55  ;;  %2333 = vmatpush.bf16.msra.mxu1 %v9505_v39 }
 0x543   :  { %2359 = vmatpush.bf16.msra.mxu3 %v9507_v29  ;;  %2346 = vmatpush.bf16.msra.mxu2 %v9523_v30 }
 0x546   :  { %2321 = vmatpush.bf16.msra.mxu0 %v9514_v54  ;;  %2334 = vmatpush.bf16.msra.mxu1 %v9518_v53 }
 0x548   :  { %2009 = vmatmul.bf16.vlgmr.msrb.gmra.mxu0 %v1828_v48  ;;  %2038 = vmatmul.bf16.vlgmr.msrb.gmra.mxu1 %v1828_v48 }
 0x549   :  { %2067 = vmatmul.bf16.vlgmr.msrb.gmra.mxu2 %v1828_v48  ;;  %2096 = vmatmul.bf16.vlgmr.msrb.gmra.mxu3 %v1828_v48  ;;  %v7103_v48 = vld [vmem:[#allocation12 + $0x198] sm:$0xf0] }
 0x54a   :  { %v9520_v60 = vor.u32 %v7889_v5, %v7103_v48 }
 0x54c   :  { %2360 = vmatpush.bf16.msra.mxu3 %v9520_v60 }
 0x550   :  { %2361 = vmatpush.bf16.msra.mxu3 %v9536_v52 }
 0x558   :  { %2014 = vmatmul.bf16.gmra.mxu0 %v1829_v8  ;;  %2043 = vmatmul.bf16.gmra.mxu1 %v1829_v8 }
 0x559   :  { %2072 = vmatmul.bf16.gmra.mxu2 %v1829_v8  ;;  %2101 = vmatmul.bf16.gmra.mxu3 %v1829_v8  ;;  %v7884_v8 = vld [vmem:[#allocation12 + $0x164] sm:$0xf] }
 0x568   :  { %2019 = vmatmul.bf16.gmra.mxu0 %v1830_v46  ;;  %2048 = vmatmul.bf16.gmra.mxu1 %v1830_v46 }
 0x569   :  { %2077 = vmatmul.bf16.gmra.mxu2 %v1830_v46  ;;  %2106 = vmatmul.bf16.gmra.mxu3 %v1830_v46 }
 0x5b5   :  { %v1638_v61 = vpop.f32.mrf.mxu0  ;;  %v1651_v43 = vpop.f32.mrf.mxu1 }
 0x5b6   :  { %v1681_v44 = vadd.f32 %v1638_v61, %v436_v32  ;;  %v1682_v51 = vadd.f32 %v1651_v43, %v465_v50  ;;  %v7101_v32 = vld [vmem:[#allocation12 + $0x188] sm:$0xf]  ;;  %v9528_v43 = vor.u32 %v7886_v7, %v7077_v1 }
 0x5b7   :  { %v9540_v10 = vor.u32 %v7891_v35, %v7101_v32  ;;  %v7053_v32 = vld [vmem:[#allocation12 + $0x128] sm:$0xf]  ;;  %v7879_v35 = vld [vmem:[#allocation12 + $0x134] sm:$0xf0] }
 0x5b8   :  { %v6896_v56 = vmul.f32 -1.442695, %v1681_v44  ;;  %v6897_v40 = vmul.f32 -1.442695, %v1682_v51  ;;  %v9534_v51 = vor.u32 %v7884_v8, %v7079_v9  ;;  %2322 = vmatpush.bf16.msra.mxu0 %v9528_v43  ;;  %v9572_v8 = vor.u32 %v7876_v0, %v7047_v63  ;;  %v7875_v0 = vld [vmem:[#allocation12 + $0x114] sm:$0xf0] }
 0x5b9   :  { %2347 = vmatpush.bf16.msra.mxu2 %v9540_v10  ;;  %v7039_v63 = vld [vmem:[#allocation12 + $0x118] sm:$0xf0] }
 0x5ba   :  { %8169 = vpow2.f32 %v6896_v56  ;;  %v7881_v56 = vld [vmem:[#allocation12 + $0x14c] sm:$0xf]  ;;  %2335 = vmatpush.bf16.msra.mxu1 %v9534_v51 }
 0x5bb   :  { %8171 = vpow2.f32 %v6897_v40  ;;  %v9550_v42 = vor.u32 %v7881_v56, %v7071_v19 }
 0x5bc   :  { %v9509_v16 = vpop.f32.mrf.mxu2  ;;  %v1677_v57 = vpop.f32.mrf.mxu3  ;;  %2323 = vmatpush.bf16.msra.mxu0 %v9544_v12 }
 0x5bd   :  { %v1684_v37 = vadd.f32 %v1677_v57, %v523_v28  ;;  %v1640_v45 = vpop.f32.mrf.mxu0  ;;  %v1653_v47 = vpop.f32.mrf.mxu1  ;;  %v7878_v28 = vld [vmem:[#allocation12 + $0x12c] sm:$0xf0]  ;;  %v9555_v57 = vor.u32 %v7887_v33, %v7085_v17  ;;  %v1683_v48 = vadd.f32 %v9509_v16, %v494_v34  ;;  %2362 = vmatpush.bf16.msra.mxu3 %v9550_v42  ;;  %v9593_v17 = vor.u32 %v7874_v14, %v7029_v3  ;;  %v7037_v34 = vld [vmem:[#allocation12 + $0x108] sm:$0xf] }
 0x5be   :  { %v7883_v45 = vld [vmem:[#allocation12 + $0x154] sm:$0xf0]  ;;  %v9563_v58 = vor.u32 %v7878_v28, %v7045_v27  ;;  %2336 = vmatpush.bf16.msra.mxu1 %v9548_v36  ;;  %v9597_v27 = vor.u32 %v7879_v35, %v7053_v32  ;;  %v7873_v28 = vld [vmem:[#allocation12 + $0x10c] sm:$0xf] }
 0x5bf   :  { %v6898_v46 = vmul.f32 -1.442695, %v1684_v37  ;;  %v7069_v37 = vld [vmem:[#allocation12 + $0x148] sm:$0xf]  ;;  %2348 = vmatpush.bf16.msra.mxu2 %v9555_v57  ;;  %v9607_v49 = vor.u32 %v7873_v28, %v7039_v63 }
 0x5c0   :  { %v8170_v21 = vpop.eup %8169  ;;  %v9578_v9 = vor.u32 %v7883_v45, %v7069_v37  ;;  %2324 = vmatpush.bf16.msra.mxu0 %v9563_v58 }
 0x5c1   :  { %v8172_v50 = vpop.eup %8171  ;;  %v9525_v61 = vadd.f32 1.0, %v8170_v21  ;;  %8173 = vpow2.f32 %v6898_v46  ;;  %2363 = vmatpush.bf16.msra.mxu3 %v9581_v26 }
 0x5c2   :  { %v9530_v44 = vadd.f32 1.0, %v8172_v50  ;;  %2337 = vmatpush.bf16.msra.mxu1 %v9572_v8 }
 0x5c3   :  { %8175 = vrcp.f32 %v9525_v61  ;;  %v1698_v46 = vand.u32 2147483647, %v9525_v61  ;;  %v1700_v21 = vand.u32 2147483648, %v9525_v61  ;;  %2349 = vmatpush.bf16.msra.mxu2 %v9578_v9  ;;  %vm1694_vm7 = vweird.f32 %v9525_v61 }
 0x5c4   :  { %8177 = vrcp.f32 %v9530_v44  ;;  %v1666_v40 = vpop.f32.mrf.mxu2  ;;  %v1679_v38 = vpop.f32.mrf.mxu3  ;;  %v1719_v2 = vand.u32 2147483648, %v9530_v44  ;;  %v1717_v56 = vand.u32 2147483647, %v9530_v44  ;;  %vm1713_vm6 = vweird.f32 %v9530_v44  ;;  %2325 = vmatpush.bf16.msra.mxu0 %v9593_v17 }
 0x5c5   :  { %v7872_v40 = vld [vmem:[#allocation12 + $0x104] sm:$0xf]  ;;  %v7031_v38 = vld [vmem:[#allocation12 + $0x110] sm:$0xf0]  ;;  %v1701_v37 = vor.u32 1.1754944e-38, %v1700_v21  ;;  %vm1699_vm10 = vcmp.eq.f32.partialorder %v1698_v46, 8.507059e+37  ;;  %v9616_v21 = vor.u32 %v7875_v0, %v7037_v34  ;;  %2364 = vmatpush.bf16.msra.mxu3 %v9607_v49  ;;  %v2039_v28 = vpop.f32.mrf.mxu1 }
 0x5c6   :  { %v9595_v33 = vor.u32 %v7872_v40, %v7031_v38  ;;  %vm1718_vm11 = vcmp.eq.f32.partialorder %v1717_v56, 8.507059e+37 }
 0x5c7   :  { %v8174_v11 = vpop.eup %8173  ;;  %2350 = vmatpush.bf16.msra.mxu2 %v9597_v27 }
 0x5c8   :  { %v9557_v5 = vadd.f32 1.0, %v8174_v11  ;;  %2338 = vmatpush.bf16.msra.mxu1 %v9595_v33  ;;  %2443 = vmatpush.bf16.msrb.mxu0 %v9472_v59 }
 0x5c9   :  { %v9559_v47 = vpop.eup %8175  ;;  %2482 = vmatpush.bf16.msrb.mxu3 %v9482_v13 }
 0x5ca   :  { %v9565_v1 = vpop.eup %8177  ;;  %v1690_v7 = vmul.f32 %v9559_v47, %v9525_v61  ;;  %8179 = vrcp.f32 %v9557_v5  ;;  %vm1695_vm5 = vweird.f32 %v9559_v47  ;;  %vm1733_vm13 = vweird.f32 %v9557_v5 }
 0x5cb   :  { %v1709_v16 = vmul.f32 %v9565_v1, %v9530_v44  ;;  %8181 = vtanh.f32 %v1683_v48  ;;  %vm1714_vm4 = vweird.f32 %v9565_v1  ;;  %vm1696_vm8 = vmor %vm1694_vm7, %vm1695_vm5  ;;  %v1720_v44 = vor.u32 1.1754944e-38, %v1719_v2  ;;  %2351 = vmatpush.bf16.msra.mxu2 %v9616_v21 }
 0x5cc   :  { %v1691_v20 = vsub.f32 1.0, %v1690_v7  ;;  %vm1715_vm9 = vmor %vm1713_vm6, %vm1714_vm4  ;;  %2456 = vmatpush.bf16.msrb.mxu1 %v9474_v18  ;;  %2444 = vmatpush.bf16.msrb.mxu0 %v9492_v4  ;;  %v1739_v2 = vand.u32 2147483648, %v9557_v5 }
 0x5cd   :  { %v1710_v50 = vsub.f32 1.0, %v1709_v16  ;;  %2483 = vmatpush.bf16.msrb.mxu3 %v9496_v24  ;;  %v9690_v0 = vpop.f32.mrf.mxu1 }
 0x5ce   :  { %v1692_v15 = vmul.f32 %v9559_v47, %v1691_v20  ;;  %v1740_v14 = vor.u32 1.1754944e-38, %v1739_v2 }
 0x5cf   :  { %v1711_v19 = vmul.f32 %v9565_v1, %v1710_v50  ;;  %2469 = vmatpush.bf16.msrb.mxu2 %v9485_v22 }
 0x5d0   :  { %v8180_v11 = vpop.eup %8179  ;;  %v1693_v62 = vadd.f32 %v9559_v47, %v1692_v15  ;;  %2457 = vmatpush.bf16.msrb.mxu1 %v9494_v31  ;;  %2445 = vmatpush.bf16.msrb.mxu0 %v9501_v55 }
 0x5d1   :  { %v1712_v45 = vadd.f32 %v9565_v1, %v1711_v19  ;;  %v1729_v48 = vmul.f32 %v8180_v11, %v9557_v5  ;;  %v8182_v23 = vpop.eup %8181  ;;  %vm1734_vm12 = vweird.f32 %v8180_v11  ;;  %2484 = vmatpush.bf16.msrb.mxu3 %v9507_v29  ;;  %v2010_v19 = vpop.f32.mrf.mxu0 }
 0x5d2   :  { %v1697_v61 = vsel %vm1696_vm8, %v9559_v47, %v1693_v62  ;;  %vm1735_vm14 = vmor %vm1733_vm13, %vm1734_vm12  ;;  %v2097_v62 = vpop.f32.mrf.mxu3 }
 0x5d3   :  { %v1702_v7 = vsel %vm1699_vm10, %v1701_v37, %v1697_v61  ;;  %v1716_v16 = vsel %vm1715_vm9, %v9565_v1, %v1712_v45  ;;  %v1730_v20 = vsub.f32 1.0, %v1729_v48  ;;  %2470 = vmatpush.bf16.msrb.mxu2 %v9511_v25 }
 0x5d4   :  { %v1721_v32 = vsel %vm1718_vm11, %v1720_v44, %v1716_v16  ;;  %v1744_v35 = vmul.f32 %v8182_v23, %v1702_v7  ;;  %2458 = vmatpush.bf16.msrb.mxu1 %v9505_v39  ;;  %2446 = vmatpush.bf16.msrb.mxu0 %v9514_v54 }
 0x5d5   :  { %v1743_v47 = vmul.f32 %v1721_v32, %v9460_v6  ;;  %v1731_v46 = vmul.f32 %v8180_v11, %v1730_v20  ;;  %v1737_v6 = vand.u32 2147483647, %v9557_v5  ;;  %2485 = vmatpush.bf16.msrb.mxu3 %v9520_v60  ;;  %v9698_v48 = vpop.f32.mrf.mxu1 }
 0x5d6   :  { %11295 = vst [vmem:[#allocation32_spill] sm:$0xff] %v9698_v48 }
 0x5d7   :  { %v1745_v50 = vadd.f32 %v1744_v35, %v1743_v47  ;;  %v1732_v1 = vadd.f32 %v8180_v11, %v1731_v46  ;;  %vm1738_vm15 = vcmp.eq.f32.partialorder %v1737_v6, 8.507059e+37  ;;  %2471 = vmatpush.bf16.msrb.mxu2 %v9523_v30 }
 0x5d8   :  { %2459 = vmatpush.bf16.msrb.mxu1 %v9518_v53  ;;  %2447 = vmatpush.bf16.msrb.mxu0 %v9528_v43 }
 0x5d9   :  { %8183 = vtanh.f32 %v1745_v50  ;;  %1751 = vst [vmem:[#allocation19] sm:$0xff] %v1745_v50  ;;  %v1736_v3 = vsel %vm1735_vm14, %v8180_v11, %v1732_v1  ;;  %2486 = vmatpush.bf16.msrb.mxu3 %v9536_v52  ;;  %v2068_v11 = vpop.f32.mrf.mxu2  ;;  %v9688_v34 = vpop.f32.mrf.mxu0 }
 0x5da   :  { %v1741_v56 = vsel %vm1738_vm15, %v1740_v14, %v1736_v3  ;;  %v9694_v37 = vpop.f32.mrf.mxu3 }
 0x5db   :  { %2472 = vmatpush.bf16.msrb.mxu2 %v9540_v10 }
 0x5dc   :  { %2460 = vmatpush.bf16.msrb.mxu1 %v9534_v51  ;;  %2448 = vmatpush.bf16.msrb.mxu0 %v9544_v12 }
 0x5dd   :  { %2487 = vmatpush.bf16.msrb.mxu3 %v9550_v42  ;;  %v9706_v7 = vpop.f32.mrf.mxu1 }
 0x5de   :  { %11299 = vst [vmem:[#allocation35_spill] sm:$0xff] %v9706_v7 }
 0x5df   :  { %v8184_v15 = vpop.eup %8183  ;;  %2473 = vmatpush.bf16.msrb.mxu2 %v9555_v57 }
 0x5e0   :  { %v1747_v40 = vmul.f32 %v8184_v15, %v1741_v56  ;;  %2461 = vmatpush.bf16.msrb.mxu1 %v9548_v36  ;;  %2449 = vmatpush.bf16.msrb.mxu0 %v9563_v58 }
 0x5e1   :  { %2488 = vmatpush.bf16.msrb.mxu3 %v9581_v26  ;;  %v9692_v63 = vpop.f32.mrf.mxu2  ;;  %v9696_v45 = vpop.f32.mrf.mxu0 }
 0x5e2   :  { %1750 = vst [vmem:[#allocation17] sm:$0xff] %v1747_v40  ;;  %v1831_v5 = vpack.c.bf16 %v1747_v40, %v9466_v41  ;;  %v2150_v41 = vld [vmem:[#allocation7 + $0x8] sm:$0xff]  ;;  %v9702_v61 = vpop.f32.mrf.mxu3  ;;  %v1819_v40 = vld [vmem:[#allocation13 + $0x4] sm:$0xf] }
 0x5e3   :  { %2474 = vmatpush.bf16.msrb.mxu2 %v9578_v9  ;;  %v2157_v38 = vpack.c.bf16 %v2150_v41, %v2150_v41  ;;  %11293 = vst [vmem:[#allocation27_spill] sm:$0xff] %v9692_v63 }
 0x5e4   :  { %2024 = vmatmul.bf16.gmra.mxu0 %v1831_v5  ;;  %2053 = vmatmul.bf16.gmra.mxu1 %v1831_v5  ;;  %11294 = vst [vmem:[#allocation28_spill] sm:$0xff] %v9696_v45 }
 0x5e5   :  { %2082 = vmatmul.bf16.gmra.mxu2 %v1831_v5  ;;  %2111 = vmatmul.bf16.gmra.mxu3 %v1831_v5  ;;  %11297 = vst [vmem:[#allocation31_spill] sm:$0xff] %v9702_v61  ;;  %v9714_v35 = vpop.f32.mrf.mxu1 }
 0x5e6   :  { %2462 = vmatpush.bf16.msrb.mxu1 %v9572_v8  ;;  %2450 = vmatpush.bf16.msrb.mxu0 %v9593_v17  ;;  %11303 = vst [vmem:[#allocation40_spill] sm:$0xff] %v9714_v35 }
 0x5e7   :  { %2475 = vmatpush.bf16.msrb.mxu2 %v9597_v27  ;;  %2489 = vmatpush.bf16.msrb.mxu3 %v9607_v49 }
 0x5e9   :  { %v9700_v44 = vpop.f32.mrf.mxu2  ;;  %v9704_v23 = vpop.f32.mrf.mxu0 }
 0x5ea   :  { %2463 = vmatpush.bf16.msrb.mxu1 %v9595_v33  ;;  %11296 = vst [vmem:[#allocation30_spill] sm:$0xff] %v9700_v44  ;;  %v9710_v20 = vpop.f32.mrf.mxu3 }
 0x5eb   :  { %2476 = vmatpush.bf16.msrb.mxu2 %v9616_v21  ;;  %11298 = vst [vmem:[#allocation33_spill] sm:$0xff] %v9704_v23 }
 0x5ec   :  { %11301 = vst [vmem:[#allocation36_spill] sm:$0xff] %v9710_v20 }
 0x5ed   :  { %v9722_v1 = vpop.f32.mrf.mxu1 }
 0x5ee   :  { %11307 = vst [vmem:[#allocation43_spill] sm:$0xff] %v9722_v1  ;;  %v9742_v1 = vperm.slane %v1819_v40, 1 }
 0x5f1   :  { %v9708_v16 = vpop.f32.mrf.mxu2  ;;  %v9712_v32 = vpop.f32.mrf.mxu0 }
 0x5f2   :  { %11300 = vst [vmem:[#allocation34_spill] sm:$0xff] %v9708_v16  ;;  %v9718_v46 = vpop.f32.mrf.mxu3 }
 0x5f3   :  { %11302 = vst [vmem:[#allocation37_spill] sm:$0xff] %v9712_v32 }
 0x5f4   :  { %2326 = vmatmul.bf16.vlgmr.msra.gmra.mxu0 %v2157_v38  ;;  %2339 = vmatmul.bf16.vlgmr.msra.gmra.mxu1 %v2157_v38  ;;  %11305 = vst [vmem:[#allocation39_spill] sm:$0xff] %v9718_v46  ;;  %v9750_v46 = vperm.slane %v1819_v40, 3 }
 0x5f5   :  { %2352 = vmatmul.bf16.vlgmr.msra.gmra.mxu2 %v2157_v38  ;;  %2365 = vmatmul.bf16.vlgmr.msra.gmra.mxu3 %v2157_v38  ;;  %v9740_v38 = vperm.slane %v1819_v40, 0 }
 0x5f6   :  { %2568 = vmatpush.bf16.msra.mxu0 %v9472_v59  ;;  %2581 = vmatpush.bf16.msra.mxu1 %v9474_v18  ;;  %v2098_v35 = vadd.f32 %v2097_v62, %v9750_v46 }
 0x5f7   :  { %2594 = vmatpush.bf16.msra.mxu2 %v9485_v22  ;;  %2607 = vmatpush.bf16.msra.mxu3 %v9482_v13 }
 0x5f9   :  { %v9716_v47 = vpop.f32.mrf.mxu2  ;;  %v9720_v50 = vpop.f32.mrf.mxu0 }
 0x5fa   :  { %2569 = vmatpush.bf16.msra.mxu0 %v9492_v4  ;;  %2582 = vmatpush.bf16.msra.mxu1 %v9494_v31  ;;  %11304 = vst [vmem:[#allocation38_spill] sm:$0xff] %v9716_v47  ;;  %v9726_v6 = vpop.f32.mrf.mxu3 }
 0x5fb   :  { %2595 = vmatpush.bf16.msra.mxu2 %v9511_v25  ;;  %2608 = vmatpush.bf16.msra.mxu3 %v9496_v24  ;;  %11306 = vst [vmem:[#allocation41_spill] sm:$0xff] %v9720_v50 }
 0x5fc   :  { %11309 = vst [vmem:[#allocation44_spill] sm:$0xff] %v9726_v6  ;;  %v2040_v6 = vadd.f32 %v2039_v28, %v9742_v1 }
 0x5fe   :  { %2570 = vmatpush.bf16.msra.mxu0 %v9501_v55  ;;  %2583 = vmatpush.bf16.msra.mxu1 %v9505_v39 }
 0x5ff   :  { %2596 = vmatpush.bf16.msra.mxu2 %v9523_v30  ;;  %2609 = vmatpush.bf16.msra.mxu3 %v9507_v29 }
 0x601   :  { %v9724_v2 = vpop.f32.mrf.mxu2 }
 0x602   :  { %2571 = vmatpush.bf16.msra.mxu0 %v9514_v54  ;;  %2584 = vmatpush.bf16.msra.mxu1 %v9518_v53  ;;  %11308 = vst [vmem:[#allocation42_spill] sm:$0xff] %v9724_v2  ;;  %v2011_v2 = vadd.f32 %v2010_v19, %v9740_v38 }
 0x603   :  { %2597 = vmatpush.bf16.msra.mxu2 %v9540_v10  ;;  %2610 = vmatpush.bf16.msra.mxu3 %v9520_v60 }
 0x606   :  { %2572 = vmatpush.bf16.msra.mxu0 %v9528_v43  ;;  %2585 = vmatpush.bf16.msra.mxu1 %v9534_v51 }
 0x607   :  { %2598 = vmatpush.bf16.msra.mxu2 %v9555_v57  ;;  %2611 = vmatpush.bf16.msra.mxu3 %v9536_v52 }
 0x60a   :  { %2573 = vmatpush.bf16.msra.mxu0 %v9544_v12  ;;  %2586 = vmatpush.bf16.msra.mxu1 %v9548_v36 }
 0x60b   :  { %2599 = vmatpush.bf16.msra.mxu2 %v9578_v9  ;;  %2612 = vmatpush.bf16.msra.mxu3 %v9550_v42 }
 0x60e   :  { %2574 = vmatpush.bf16.msra.mxu0 %v9563_v58  ;;  %2587 = vmatpush.bf16.msra.mxu1 %v9572_v8 }
 0x60f   :  { %2600 = vmatpush.bf16.msra.mxu2 %v9597_v27  ;;  %2613 = vmatpush.bf16.msra.mxu3 %v9581_v26 }
 0x612   :  { %2575 = vmatpush.bf16.msra.mxu0 %v9593_v17  ;;  %2588 = vmatpush.bf16.msra.mxu1 %v9595_v33 }
 0x613   :  { %2601 = vmatpush.bf16.msra.mxu2 %v9616_v21  ;;  %2614 = vmatpush.bf16.msra.mxu3 %v9607_v49 }
 0x661   :  { %v9728_v3 = vpop.f32.mrf.mxu0  ;;  %v9730_v14 = vpop.f32.mrf.mxu1 }
 0x662   :  { %11310 = vst [vmem:[#allocation45_spill] sm:$0xff] %v9728_v3 }
 0x663   :  { %11311 = vst [vmem:[#allocation48_spill] sm:$0xff] %v9730_v14 }
 0x668   :  { %v9732_v15 = vpop.f32.mrf.mxu2  ;;  %v9734_v56 = vpop.f32.mrf.mxu3 }
 0x669   :  { %11312 = vst [vmem:[#allocation46_spill] sm:$0xff] %v9732_v15  ;;  %v9736_v5 = vpop.f32.mrf.mxu0  ;;  %v9738_v41 = vpop.f32.mrf.mxu1 }
 0x66a   :  { %11313 = vst [vmem:[#allocation29_spill] sm:$0xff] %v9734_v56 }
 0x66b   :  { %11314 = vst [vmem:[#allocation26_spill] sm:$0xff] %v9736_v5 }
 0x66c   :  { %11315 = vst [vmem:[#allocation47_spill] sm:$0xff] %v9738_v41 }
 0x670   :  { %v9746_v3 = vpop.f32.mrf.mxu2  ;;  %v9748_v14 = vpop.f32.mrf.mxu3 }
 0x671   :  { %11316 = vst [vmem:[#allocation49_spill] sm:$0xff] %v9746_v3  ;;  %v2327_v15 = vpop.f32.mrf.mxu0  ;;  %v2340_v50 = vpop.f32.mrf.mxu1 }
 0x672   :  { %11317 = vst [vmem:[#allocation51_spill] sm:$0xff] %v9748_v14  ;;  %v2370_v56 = vadd.f32 %v2327_v15, %v2011_v2  ;;  %v2371_v47 = vadd.f32 %v2340_v50, %v2040_v6  ;;  %v9753_v50 = vperm.slane %v1819_v40, 2 }
 0x674   :  { %v7155_v5 = vmul.f32 -1.442695, %v2370_v56  ;;  %v7156_v41 = vmul.f32 -1.442695, %v2371_v47  ;;  %11318 = vst [vmem:[#allocation50_spill] sm:$0xff] %v9753_v50  ;;  %v2069_v62 = vadd.f32 %v2068_v11, %v9753_v50 }
 0x676   :  { %8185 = vpow2.f32 %v7155_v5 }
 0x677   :  { %8187 = vpow2.f32 %v7156_v41 }
 0x678   :  { %v2353_v32 = vpop.f32.mrf.mxu2  ;;  %v2366_v19 = vpop.f32.mrf.mxu3 }
 0x679   :  { %v2373_v16 = vadd.f32 %v2366_v19, %v2098_v35  ;;  %v2329_v28 = vpop.f32.mrf.mxu0  ;;  %v2342_v20 = vpop.f32.mrf.mxu1  ;;  %v2372_v35 = vadd.f32 %v2353_v32, %v2069_v62 }
 0x67b   :  { %v7157_v3 = vmul.f32 -1.442695, %v2373_v16 }
 0x67c   :  { %v8186_v7 = vpop.eup %8185 }
 0x67d   :  { %v8188_v14 = vpop.eup %8187  ;;  %v2377_v23 = vadd.f32 1.0, %v8186_v7  ;;  %8189 = vpow2.f32 %v7157_v3 }
 0x67e   :  { %v2396_v2 = vadd.f32 1.0, %v8188_v14 }
 0x67f   :  { %8191 = vrcp.f32 %v2377_v23  ;;  %v2389_v3 = vand.u32 2147483648, %v2377_v23  ;;  %v2387_v28 = vand.u32 2147483647, %v2377_v23  ;;  %vm2383_vm2 = vweird.f32 %v2377_v23 }
 0x680   :  { %8193 = vrcp.f32 %v2396_v2  ;;  %v2368_v47 = vpop.f32.mrf.mxu3  ;;  %v2355_v6 = vpop.f32.mrf.mxu2  ;;  %v2408_v14 = vand.u32 2147483648, %v2396_v2  ;;  %vm2402_vm3 = vweird.f32 %v2396_v2 }
 0x681   :  { %v2406_v6 = vand.u32 2147483647, %v2396_v2  ;;  %v2390_v32 = vor.u32 1.1754944e-38, %v2389_v3  ;;  %vm2388_vm6 = vcmp.eq.f32.partialorder %v2387_v28, 8.507059e+37 }
 0x683   :  { %v8190_v15 = vpop.eup %8189  ;;  %vm2407_vm7 = vcmp.eq.f32.partialorder %v2406_v6, 8.507059e+37 }
 0x684   :  { %v2416_v56 = vadd.f32 1.0, %v8190_v15 }
 0x685   :  { %v8192_v5 = vpop.eup %8191 }
 0x686   :  { %v8194_v41 = vpop.eup %8193  ;;  %v2379_v20 = vmul.f32 %v8192_v5, %v2377_v23  ;;  %8195 = vrcp.f32 %v2416_v56  ;;  %vm2384_vm0 = vweird.f32 %v8192_v5  ;;  %v2428_v3 = vand.u32 2147483648, %v2416_v56 }
 0x687   :  { %v2398_v16 = vmul.f32 %v8194_v41, %v2396_v2  ;;  %8197 = vtanh.f32 %v2372_v35  ;;  %vm2403_vm1 = vweird.f32 %v8194_v41  ;;  %vm2385_vm4 = vmor %vm2383_vm2, %vm2384_vm0  ;;  %vm2422_vm9 = vweird.f32 %v2416_v56 }
 0x688   :  { %v2380_v19 = vsub.f32 1.0, %v2379_v20  ;;  %vm2404_vm5 = vmor %vm2402_vm3, %vm2403_vm1  ;;  %v2409_v20 = vor.u32 1.1754944e-38, %v2408_v14  ;;  %v2426_v14 = vand.u32 2147483647, %v2416_v56  ;;  %v2429_v28 = vor.u32 1.1754944e-38, %v2428_v3 }
 0x689   :  { %v2399_v7 = vsub.f32 1.0, %v2398_v16  ;;  %v2152_v16 = vld [vmem:[#allocation9 + $0x8] sm:$0xff] }
 0x68a   :  { %v2381_v40 = vmul.f32 %v8192_v5, %v2380_v19  ;;  %vm2427_vm11 = vcmp.eq.f32.partialorder %v2426_v14, 8.507059e+37 }
 0x68b   :  { %v2400_v47 = vmul.f32 %v8194_v41, %v2399_v7 }
 0x68c   :  { %v8196_v44 = vpop.eup %8195  ;;  %v2382_v11 = vadd.f32 %v8192_v5, %v2381_v40 }
 0x68d   :  { %v2401_v15 = vadd.f32 %v8194_v41, %v2400_v47  ;;  %v2418_v62 = vmul.f32 %v8196_v44, %v2416_v56  ;;  %v8198_v35 = vpop.eup %8197  ;;  %vm2423_vm8 = vweird.f32 %v8196_v44 }
 0x68e   :  { %v2386_v61 = vsel %vm2385_vm4, %v8192_v5, %v2382_v11  ;;  %vm2424_vm10 = vmor %vm2422_vm9, %vm2423_vm8 }
 0x68f   :  { %v2391_v19 = vsel %vm2388_vm6, %v2390_v32, %v2386_v61  ;;  %v2405_v48 = vsel %vm2404_vm5, %v8194_v41, %v2401_v15  ;;  %v2419_v7 = vsub.f32 1.0, %v2418_v62  ;;  %v2100_v15 = vadd.f32 %v9694_v37, %v9750_v46 }
 0x690   :  { %v2410_v45 = vsel %vm2407_vm7, %v2409_v20, %v2405_v48  ;;  %v2433_v63 = vmul.f32 %v8198_v35, %v2391_v19  ;;  %v2042_v48 = vadd.f32 %v9690_v0, %v9742_v1 }
 0x691   :  { %v2432_v50 = vmul.f32 %v2410_v45, %v2152_v16  ;;  %v2420_v40 = vmul.f32 %v8196_v44, %v2419_v7 }
 0x693   :  { %v9756_v23 = vadd.f32 %v2433_v63, %v2432_v50  ;;  %v2421_v2 = vadd.f32 %v8196_v44, %v2420_v40  ;;  %v2013_v63 = vadd.f32 %v9688_v34, %v9740_v38 }
 0x695   :  { %8199 = vtanh.f32 %v9756_v23  ;;  %v2425_v5 = vsel %vm2424_vm10, %v8196_v44, %v2421_v2 }
 0x696   :  { %v2430_v41 = vsel %vm2427_vm11, %v2429_v28, %v2425_v5  ;;  %v11319_v28 = vld [vmem:[#allocation50_spill] sm:$0xff] }
 0x69b   :  { %v8200_v61 = vpop.eup %8199 }
 0x69c   :  { %v9759_v47 = vmul.f32 %v8200_v61, %v2430_v41  ;;  %v11320_v61 = vld [vmem:[#allocation27_spill] sm:$0xff] }
 0x69d   :  { %v2071_v37 = vadd.f32 %v11320_v61, %v11319_v28 }
 0x69e   :  { %v2442_v45 = vpack.c.bf16 %v9759_v47, %v9759_v47 }
 0x6a0   :  { %2451 = vmatmul.bf16.vlgmr.msrb.gmra.mxu0 %v2442_v45  ;;  %2464 = vmatmul.bf16.vlgmr.msrb.gmra.mxu1 %v2442_v45 }
 0x6a1   :  { %2477 = vmatmul.bf16.vlgmr.msrb.gmra.mxu2 %v2442_v45  ;;  %2490 = vmatmul.bf16.vlgmr.msrb.gmra.mxu3 %v2442_v45 }
 0x6a2   :  { %2693 = vmatpush.bf16.msrb.mxu0 %v9472_v59  ;;  %2706 = vmatpush.bf16.msrb.mxu1 %v9474_v18 }
 0x6a3   :  { %2719 = vmatpush.bf16.msrb.mxu2 %v9485_v22  ;;  %2732 = vmatpush.bf16.msrb.mxu3 %v9482_v13 }
 0x6a6   :  { %2694 = vmatpush.bf16.msrb.mxu0 %v9492_v4  ;;  %2707 = vmatpush.bf16.msrb.mxu1 %v9494_v31 }
 0x6a7   :  { %2720 = vmatpush.bf16.msrb.mxu2 %v9511_v25  ;;  %2733 = vmatpush.bf16.msrb.mxu3 %v9496_v24 }
 0x6aa   :  { %2695 = vmatpush.bf16.msrb.mxu0 %v9501_v55  ;;  %2708 = vmatpush.bf16.msrb.mxu1 %v9505_v39 }
 0x6ab   :  { %2721 = vmatpush.bf16.msrb.mxu2 %v9523_v30  ;;  %2734 = vmatpush.bf16.msrb.mxu3 %v9507_v29 }
 0x6ae   :  { %2696 = vmatpush.bf16.msrb.mxu0 %v9514_v54  ;;  %2709 = vmatpush.bf16.msrb.mxu1 %v9518_v53 }
 0x6af   :  { %2722 = vmatpush.bf16.msrb.mxu2 %v9540_v10  ;;  %2735 = vmatpush.bf16.msrb.mxu3 %v9520_v60 }
 0x6b2   :  { %2697 = vmatpush.bf16.msrb.mxu0 %v9528_v43  ;;  %2710 = vmatpush.bf16.msrb.mxu1 %v9534_v51 }
 0x6b3   :  { %2723 = vmatpush.bf16.msrb.mxu2 %v9555_v57  ;;  %2736 = vmatpush.bf16.msrb.mxu3 %v9536_v52 }
 0x6b6   :  { %2698 = vmatpush.bf16.msrb.mxu0 %v9544_v12  ;;  %2711 = vmatpush.bf16.msrb.mxu1 %v9548_v36 }
 0x6b7   :  { %2724 = vmatpush.bf16.msrb.mxu2 %v9578_v9  ;;  %2737 = vmatpush.bf16.msrb.mxu3 %v9550_v42 }
 0x6ba   :  { %2699 = vmatpush.bf16.msrb.mxu0 %v9563_v58  ;;  %2712 = vmatpush.bf16.msrb.mxu1 %v9572_v8 }
 0x6bb   :  { %2725 = vmatpush.bf16.msrb.mxu2 %v9597_v27  ;;  %2738 = vmatpush.bf16.msrb.mxu3 %v9581_v26 }
 0x6be   :  { %2700 = vmatpush.bf16.msrb.mxu0 %v9593_v17  ;;  %2713 = vmatpush.bf16.msrb.mxu1 %v9595_v33 }
 0x6bf   :  { %2726 = vmatpush.bf16.msrb.mxu2 %v9616_v21  ;;  %2739 = vmatpush.bf16.msrb.mxu3 %v9607_v49 }
 0x71d   :  { %v2452_v44 = vpop.f32.mrf.mxu0  ;;  %v2465_v50 = vpop.f32.mrf.mxu1 }
 0x71e   :  { %v2495_v56 = vadd.f32 %v2452_v44, %v2013_v63  ;;  %v2496_v6 = vadd.f32 %v2465_v50, %v2042_v48 }
 0x720   :  { %v7158_v11 = vmul.f32 -1.442695, %v2495_v56  ;;  %v7159_v32 = vmul.f32 -1.442695, %v2496_v6 }
 0x722   :  { %8201 = vpow2.f32 %v7158_v11 }
 0x723   :  { %8203 = vpow2.f32 %v7159_v32 }
 0x724   :  { %v2478_v62 = vpop.f32.mrf.mxu2  ;;  %v2491_v20 = vpop.f32.mrf.mxu3 }
 0x725   :  { %v2498_v16 = vadd.f32 %v2491_v20, %v2100_v15  ;;  %v2454_v35 = vpop.f32.mrf.mxu0  ;;  %v2467_v19 = vpop.f32.mrf.mxu1  ;;  %v2497_v63 = vadd.f32 %v2478_v62, %v2071_v37 }
 0x727   :  { %v7160_v34 = vmul.f32 -1.442695, %v2498_v16 }
 0x728   :  { %v8202_v7 = vpop.eup %8201 }
 0x729   :  { %v8204_v40 = vpop.eup %8203  ;;  %v2502_v0 = vadd.f32 1.0, %v8202_v7  ;;  %8205 = vpow2.f32 %v7160_v34 }
 0x72a   :  { %v2521_v2 = vadd.f32 1.0, %v8204_v40 }
 0x72b   :  { %8207 = vrcp.f32 %v2502_v0  ;;  %v2514_v11 = vand.u32 2147483648, %v2502_v0  ;;  %v2512_v20 = vand.u32 2147483647, %v2502_v0  ;;  %vm2508_vm14 = vweird.f32 %v2502_v0 }
 0x72c   :  { %8209 = vrcp.f32 %v2521_v2  ;;  %v2480_v3 = vpop.f32.mrf.mxu2  ;;  %v2493_v14 = vpop.f32.mrf.mxu3  ;;  %v2533_v32 = vand.u32 2147483648, %v2521_v2  ;;  %v2531_v35 = vand.u32 2147483647, %v2521_v2  ;;  %vm2527_vm15 = vweird.f32 %v2521_v2 }
 0x72d   :  { %v2515_v62 = vor.u32 1.1754944e-38, %v2514_v11  ;;  %vm2513_vm2 = vcmp.eq.f32.partialorder %v2512_v20, 8.507059e+37 }
 0x72e   :  { %v2534_v3 = vor.u32 1.1754944e-38, %v2533_v32  ;;  %vm2532_vm3 = vcmp.eq.f32.partialorder %v2531_v35, 8.507059e+37 }
 0x72f   :  { %v8206_v5 = vpop.eup %8205 }
 0x730   :  { %v2541_v41 = vadd.f32 1.0, %v8206_v5 }
 0x731   :  { %v8208_v45 = vpop.eup %8207 }
 0x732   :  { %v8210_v48 = vpop.eup %8209  ;;  %v2504_v44 = vmul.f32 %v8208_v45, %v2502_v0  ;;  %8211 = vrcp.f32 %v2541_v41  ;;  %vm2509_vm12 = vweird.f32 %v8208_v45  ;;  %v2553_v11 = vand.u32 2147483648, %v2541_v41 }
 0x733   :  { %v2523_v50 = vmul.f32 %v8210_v48, %v2521_v2  ;;  %8213 = vtanh.f32 %v2497_v63  ;;  %vm2528_vm13 = vweird.f32 %v8210_v48  ;;  %vm2510_vm0 = vmor %vm2508_vm14, %vm2509_vm12  ;;  %vm2547_vm5 = vweird.f32 %v2541_v41 }
 0x734   :  { %v2505_v56 = vsub.f32 1.0, %v2504_v44  ;;  %vm2529_vm1 = vmor %vm2527_vm15, %vm2528_vm13 }
 0x735   :  { %v2524_v6 = vsub.f32 1.0, %v2523_v50 }
 0x736   :  { %v2506_v15 = vmul.f32 %v8208_v45, %v2505_v56 }
 0x737   :  { %v2525_v16 = vmul.f32 %v8210_v48, %v2524_v6 }
 0x738   :  { %v8212_v19 = vpop.eup %8211  ;;  %v2507_v34 = vadd.f32 %v8208_v45, %v2506_v15  ;;  %v2554_v15 = vor.u32 1.1754944e-38, %v2553_v11 }
 0x739   :  { %v2526_v7 = vadd.f32 %v8210_v48, %v2525_v16  ;;  %v2543_v40 = vmul.f32 %v8212_v19, %v2541_v41  ;;  %v8214_v5 = vpop.eup %8213  ;;  %vm2548_vm4 = vweird.f32 %v8212_v19 }
 0x73a   :  { %v2511_v14 = vsel %vm2510_vm0, %v8208_v45, %v2507_v34  ;;  %v2551_v45 = vand.u32 2147483647, %v2541_v41  ;;  %vm2549_vm6 = vmor %vm2547_vm5, %vm2548_vm4  ;;  %v11321_v41 = vld [vmem:[#allocation28_spill] sm:$0xff] }
 0x73b   :  { %v2516_v61 = vsel %vm2513_vm2, %v2515_v62, %v2511_v14  ;;  %v2530_v37 = vsel %vm2529_vm1, %v8210_v48, %v2526_v7  ;;  %v2544_v63 = vsub.f32 1.0, %v2543_v40  ;;  %v2016_v35 = vadd.f32 %v11321_v41, %v9740_v38  ;;  %v11324_v41 = vld [vmem:[#allocation30_spill] sm:$0xff] }
 0x73c   :  { %v2535_v44 = vsel %vm2532_vm3, %v2534_v3, %v2530_v37  ;;  %v2558_v50 = vmul.f32 %v8214_v5, %v2516_v61  ;;  %vm2552_vm7 = vcmp.eq.f32.partialorder %v2551_v45, 8.507059e+37  ;;  %v11323_v61 = vld [vmem:[#allocation31_spill] sm:$0xff] }
 0x73d   :  { %v2557_v56 = vmul.f32 %v2535_v44, %v9756_v23  ;;  %v2545_v6 = vmul.f32 %v8212_v19, %v2544_v63  ;;  %v2103_v37 = vadd.f32 %v11323_v61, %v9750_v46 }
 0x73f   :  { %v9804_v0 = vadd.f32 %v2558_v50, %v2557_v56  ;;  %v2546_v2 = vadd.f32 %v8212_v19, %v2545_v6 }
 0x741   :  { %8215 = vtanh.f32 %v9804_v0  ;;  %v2550_v32 = vsel %vm2549_vm6, %v8212_v19, %v2546_v2  ;;  %v11322_v19 = vld [vmem:[#allocation32_spill] sm:$0xff] }
 0x742   :  { %v2555_v20 = vsel %vm2552_vm7, %v2554_v15, %v2550_v32  ;;  %v2045_v34 = vadd.f32 %v11322_v19, %v9742_v1 }
 0x747   :  { %v8216_v48 = vpop.eup %8215 }
 0x748   :  { %v9807_v16 = vmul.f32 %v8216_v48, %v2555_v20 }
 0x74a   :  { %v2567_v23 = vpack.c.bf16 %v9807_v16, %v9807_v16 }
 0x74c   :  { %2576 = vmatmul.bf16.vlgmr.msra.gmra.mxu0 %v2567_v23  ;;  %2589 = vmatmul.bf16.vlgmr.msra.gmra.mxu1 %v2567_v23 }
 0x74d   :  { %2602 = vmatmul.bf16.vlgmr.msra.gmra.mxu2 %v2567_v23  ;;  %2615 = vmatmul.bf16.vlgmr.msra.gmra.mxu3 %v2567_v23 }
 0x74e   :  { %2818 = vmatpush.bf16.msra.mxu0 %v9472_v59  ;;  %2831 = vmatpush.bf16.msra.mxu1 %v9474_v18 }
 0x74f   :  { %2844 = vmatpush.bf16.msra.mxu2 %v9485_v22  ;;  %2857 = vmatpush.bf16.msra.mxu3 %v9482_v13 }
 0x752   :  { %2819 = vmatpush.bf16.msra.mxu0 %v9492_v4  ;;  %2832 = vmatpush.bf16.msra.mxu1 %v9494_v31 }
 0x753   :  { %2845 = vmatpush.bf16.msra.mxu2 %v9511_v25  ;;  %2858 = vmatpush.bf16.msra.mxu3 %v9496_v24 }
 0x756   :  { %2820 = vmatpush.bf16.msra.mxu0 %v9501_v55  ;;  %2833 = vmatpush.bf16.msra.mxu1 %v9505_v39 }
 0x757   :  { %2846 = vmatpush.bf16.msra.mxu2 %v9523_v30  ;;  %2859 = vmatpush.bf16.msra.mxu3 %v9507_v29 }
 0x75a   :  { %2821 = vmatpush.bf16.msra.mxu0 %v9514_v54  ;;  %2834 = vmatpush.bf16.msra.mxu1 %v9518_v53 }
 0x75b   :  { %2847 = vmatpush.bf16.msra.mxu2 %v9540_v10  ;;  %2860 = vmatpush.bf16.msra.mxu3 %v9520_v60 }
 0x75e   :  { %2822 = vmatpush.bf16.msra.mxu0 %v9528_v43  ;;  %2835 = vmatpush.bf16.msra.mxu1 %v9534_v51 }
 0x75f   :  { %2848 = vmatpush.bf16.msra.mxu2 %v9555_v57  ;;  %2861 = vmatpush.bf16.msra.mxu3 %v9536_v52 }
 0x762   :  { %2823 = vmatpush.bf16.msra.mxu0 %v9544_v12  ;;  %2836 = vmatpush.bf16.msra.mxu1 %v9548_v36 }
 0x763   :  { %2849 = vmatpush.bf16.msra.mxu2 %v9578_v9  ;;  %2862 = vmatpush.bf16.msra.mxu3 %v9550_v42 }
 0x766   :  { %2824 = vmatpush.bf16.msra.mxu0 %v9563_v58  ;;  %2837 = vmatpush.bf16.msra.mxu1 %v9572_v8 }
 0x767   :  { %2850 = vmatpush.bf16.msra.mxu2 %v9597_v27  ;;  %2863 = vmatpush.bf16.msra.mxu3 %v9581_v26 }
 0x76a   :  { %2825 = vmatpush.bf16.msra.mxu0 %v9593_v17  ;;  %2838 = vmatpush.bf16.msra.mxu1 %v9595_v33 }
 0x76b   :  { %2851 = vmatpush.bf16.msra.mxu2 %v9616_v21  ;;  %2864 = vmatpush.bf16.msra.mxu3 %v9607_v49 }
 0x7c9   :  { %v2577_v62 = vpop.f32.mrf.mxu0  ;;  %v2590_v7 = vpop.f32.mrf.mxu1 }
 0x7ca   :  { %v2620_v40 = vadd.f32 %v2577_v62, %v2016_v35  ;;  %v2621_v3 = vadd.f32 %v2590_v7, %v2045_v34  ;;  %v2074_v35 = vadd.f32 %v11324_v41, %v11319_v28 }
 0x7cc   :  { %v7161_v14 = vmul.f32 -1.442695, %v2620_v40  ;;  %v7162_v5 = vmul.f32 -1.442695, %v2621_v3 }
 0x7ce   :  { %8217 = vpow2.f32 %v7161_v14 }
 0x7cf   :  { %8219 = vpow2.f32 %v7162_v5 }
 0x7d0   :  { %v2603_v63 = vpop.f32.mrf.mxu2  ;;  %v2616_v44 = vpop.f32.mrf.mxu3 }
 0x7d1   :  { %v2623_v50 = vadd.f32 %v2616_v44, %v2103_v37  ;;  %v2579_v56 = vpop.f32.mrf.mxu0  ;;  %v2592_v6 = vpop.f32.mrf.mxu1  ;;  %v2622_v62 = vadd.f32 %v2603_v63, %v2074_v35 }
 0x7d3   :  { %v7163_v2 = vmul.f32 -1.442695, %v2623_v50 }
 0x7d4   :  { %v8218_v11 = vpop.eup %8217 }
 0x7d5   :  { %v8220_v45 = vpop.eup %8219  ;;  %v2627_v32 = vadd.f32 1.0, %v8218_v11  ;;  %8221 = vpow2.f32 %v7163_v2 }
 0x7d6   :  { %v2646_v15 = vadd.f32 1.0, %v8220_v45 }
 0x7d7   :  { %8223 = vrcp.f32 %v2627_v32  ;;  %v2639_v61 = vand.u32 2147483648, %v2627_v32  ;;  %v2637_v50 = vand.u32 2147483647, %v2627_v32  ;;  %vm2633_vm10 = vweird.f32 %v2627_v32 }
 0x7d8   :  { %8225 = vrcp.f32 %v2646_v15  ;;  %v2605_v48 = vpop.f32.mrf.mxu2  ;;  %v2618_v20 = vpop.f32.mrf.mxu3  ;;  %v2658_v37 = vand.u32 2147483648, %v2646_v15  ;;  %v2656_v6 = vand.u32 2147483647, %v2646_v15  ;;  %vm2652_vm11 = vweird.f32 %v2646_v15 }
 0x7d9   :  { %v2640_v63 = vor.u32 1.1754944e-38, %v2639_v61  ;;  %vm2638_vm14 = vcmp.eq.f32.partialorder %v2637_v50, 8.507059e+37 }
 0x7da   :  { %v2659_v20 = vor.u32 1.1754944e-38, %v2658_v37  ;;  %vm2657_vm15 = vcmp.eq.f32.partialorder %v2656_v6, 8.507059e+37 }
 0x7db   :  { %v8222_v23 = vpop.eup %8221 }
 0x7dc   :  { %v2666_v19 = vadd.f32 1.0, %v8222_v23 }
 0x7dd   :  { %v8224_v34 = vpop.eup %8223 }
 0x7de   :  { %v8226_v7 = vpop.eup %8225  ;;  %v2629_v40 = vmul.f32 %v8224_v34, %v2627_v32  ;;  %8227 = vrcp.f32 %v2666_v19  ;;  %vm2634_vm8 = vweird.f32 %v8224_v34  ;;  %v2678_v61 = vand.u32 2147483648, %v2666_v19 }
 0x7df   :  { %v2648_v3 = vmul.f32 %v8226_v7, %v2646_v15  ;;  %8229 = vtanh.f32 %v2622_v62  ;;  %vm2653_vm9 = vweird.f32 %v8226_v7  ;;  %vm2635_vm12 = vmor %vm2633_vm10, %vm2634_vm8  ;;  %vm2672_vm1 = vweird.f32 %v2666_v19 }
 0x7e0   :  { %v2630_v14 = vsub.f32 1.0, %v2629_v40  ;;  %vm2654_vm13 = vmor %vm2652_vm11, %vm2653_vm9  ;;  %v2679_v50 = vor.u32 1.1754944e-38, %v2678_v61 }
 0x7e1   :  { %v2649_v5 = vsub.f32 1.0, %v2648_v3 }
 0x7e2   :  { %v2631_v44 = vmul.f32 %v8224_v34, %v2630_v14 }
 0x7e3   :  { %v2650_v56 = vmul.f32 %v8226_v7, %v2649_v5 }
 0x7e4   :  { %v8228_v2 = vpop.eup %8227  ;;  %v2632_v11 = vadd.f32 %v8224_v34, %v2631_v44 }
 0x7e5   :  { %v2651_v45 = vadd.f32 %v8226_v7, %v2650_v56  ;;  %v2668_v48 = vmul.f32 %v8228_v2, %v2666_v19  ;;  %v8230_v41 = vpop.eup %8229  ;;  %vm2673_vm0 = vweird.f32 %v8228_v2 }
 0x7e6   :  { %v2636_v23 = vsel %vm2635_vm12, %v8224_v34, %v2632_v11  ;;  %v2676_v34 = vand.u32 2147483647, %v2666_v19  ;;  %vm2674_vm2 = vmor %vm2672_vm1, %vm2673_vm0  ;;  %v11326_v19 = vld [vmem:[#allocation33_spill] sm:$0xff]  ;;  %v11327_v11 = vld [vmem:[#allocation35_spill] sm:$0xff] }
 0x7e7   :  { %v2641_v35 = vsel %vm2638_vm14, %v2640_v63, %v2636_v23  ;;  %v2655_v62 = vsel %vm2654_vm13, %v8226_v7, %v2651_v45  ;;  %v2669_v40 = vsub.f32 1.0, %v2668_v48  ;;  %v2047_v63 = vadd.f32 %v11327_v11, %v9742_v1 }
 0x7e8   :  { %v2660_v3 = vsel %vm2657_vm15, %v2659_v20, %v2655_v62  ;;  %v2683_v14 = vmul.f32 %v8230_v41, %v2641_v35  ;;  %vm2677_vm3 = vcmp.eq.f32.partialorder %v2676_v34, 8.507059e+37  ;;  %v11328_v62 = vld [vmem:[#allocation36_spill] sm:$0xff] }
 0x7e9   :  { %v2682_v5 = vmul.f32 %v2660_v3, %v9804_v0  ;;  %v2670_v44 = vmul.f32 %v8228_v2, %v2669_v40  ;;  %v2105_v40 = vadd.f32 %v11328_v62, %v9750_v46 }
 0x7eb   :  { %v9852_v32 = vadd.f32 %v2683_v14, %v2682_v5  ;;  %v2671_v15 = vadd.f32 %v8228_v2, %v2670_v44 }
 0x7ed   :  { %8231 = vtanh.f32 %v9852_v32  ;;  %v2675_v37 = vsel %vm2674_vm2, %v8228_v2, %v2671_v15  ;;  %v2018_v2 = vadd.f32 %v11326_v19, %v9740_v38 }
 0x7ee   :  { %v2680_v56 = vsel %vm2677_vm3, %v2679_v50, %v2675_v37 }
 0x7f3   :  { %v8232_v7 = vpop.eup %8231 }
 0x7f4   :  { %v9855_v6 = vmul.f32 %v8232_v7, %v2680_v56 }
 0x7f6   :  { %11325 = vst [vmem:[#allocation50_spill] sm:$0xff] %v9855_v6  ;;  %v2692_v0 = vpack.c.bf16 %v9855_v6, %v9855_v6 }
 0x7f8   :  { %2701 = vmatmul.bf16.vlgmr.msrb.gmra.mxu0 %v2692_v0  ;;  %2714 = vmatmul.bf16.vlgmr.msrb.gmra.mxu1 %v2692_v0 }
 0x7f9   :  { %2727 = vmatmul.bf16.vlgmr.msrb.gmra.mxu2 %v2692_v0  ;;  %2740 = vmatmul.bf16.vlgmr.msrb.gmra.mxu3 %v2692_v0 }
 0x7fa   :  { %2943 = vmatpush.bf16.msrb.mxu0 %v9472_v59  ;;  %2956 = vmatpush.bf16.msrb.mxu1 %v9474_v18 }
 0x7fb   :  { %2969 = vmatpush.bf16.msrb.mxu2 %v9485_v22  ;;  %2982 = vmatpush.bf16.msrb.mxu3 %v9482_v13 }
 0x7fe   :  { %2944 = vmatpush.bf16.msrb.mxu0 %v9492_v4  ;;  %2957 = vmatpush.bf16.msrb.mxu1 %v9494_v31 }
 0x7ff   :  { %2970 = vmatpush.bf16.msrb.mxu2 %v9511_v25  ;;  %2983 = vmatpush.bf16.msrb.mxu3 %v9496_v24 }
 0x802   :  { %2945 = vmatpush.bf16.msrb.mxu0 %v9501_v55  ;;  %2958 = vmatpush.bf16.msrb.mxu1 %v9505_v39 }
 0x803   :  { %2971 = vmatpush.bf16.msrb.mxu2 %v9523_v30  ;;  %2984 = vmatpush.bf16.msrb.mxu3 %v9507_v29 }
 0x806   :  { %2946 = vmatpush.bf16.msrb.mxu0 %v9514_v54  ;;  %2959 = vmatpush.bf16.msrb.mxu1 %v9518_v53 }
 0x807   :  { %2972 = vmatpush.bf16.msrb.mxu2 %v9540_v10  ;;  %2985 = vmatpush.bf16.msrb.mxu3 %v9520_v60 }
 0x80a   :  { %2947 = vmatpush.bf16.msrb.mxu0 %v9528_v43  ;;  %2960 = vmatpush.bf16.msrb.mxu1 %v9534_v51 }
 0x80b   :  { %2973 = vmatpush.bf16.msrb.mxu2 %v9555_v57  ;;  %2986 = vmatpush.bf16.msrb.mxu3 %v9536_v52 }
 0x80e   :  { %2948 = vmatpush.bf16.msrb.mxu0 %v9544_v12  ;;  %2961 = vmatpush.bf16.msrb.mxu1 %v9548_v36 }
 0x80f   :  { %2974 = vmatpush.bf16.msrb.mxu2 %v9578_v9  ;;  %2987 = vmatpush.bf16.msrb.mxu3 %v9550_v42 }
 0x812   :  { %2949 = vmatpush.bf16.msrb.mxu0 %v9563_v58  ;;  %2962 = vmatpush.bf16.msrb.mxu1 %v9572_v8 }
 0x813   :  { %2975 = vmatpush.bf16.msrb.mxu2 %v9597_v27  ;;  %2988 = vmatpush.bf16.msrb.mxu3 %v9581_v26 }
 0x816   :  { %2950 = vmatpush.bf16.msrb.mxu0 %v9593_v17  ;;  %2963 = vmatpush.bf16.msrb.mxu1 %v9595_v33 }
 0x817   :  { %2976 = vmatpush.bf16.msrb.mxu2 %v9616_v21  ;;  %2989 = vmatpush.bf16.msrb.mxu3 %v9607_v49 }
 0x875   :  { %v2702_v45 = vpop.f32.mrf.mxu0  ;;  %v2715_v48 = vpop.f32.mrf.mxu1 }
 0x876   :  { %v2745_v20 = vadd.f32 %v2702_v45, %v2018_v2  ;;  %v2746_v23 = vadd.f32 %v2715_v48, %v2047_v63  ;;  %v11329_v2 = vld [vmem:[#allocation34_spill] sm:$0xff] }
 0x877   :  { %v2076_v11 = vadd.f32 %v11329_v2, %v11319_v28 }
 0x878   :  { %v7164_v41 = vmul.f32 -1.442695, %v2745_v20  ;;  %v7165_v35 = vmul.f32 -1.442695, %v2746_v23 }
 0x87a   :  { %8233 = vpow2.f32 %v7164_v41 }
 0x87b   :  { %8235 = vpow2.f32 %v7165_v35 }
 0x87c   :  { %v2728_v3 = vpop.f32.mrf.mxu2  ;;  %v2741_v14 = vpop.f32.mrf.mxu3 }
 0x87d   :  { %v2748_v5 = vadd.f32 %v2741_v14, %v2105_v40  ;;  %v2704_v44 = vpop.f32.mrf.mxu0  ;;  %v2717_v15 = vpop.f32.mrf.mxu1  ;;  %v2747_v48 = vadd.f32 %v2728_v3, %v2076_v11 }
 0x87f   :  { %v7166_v61 = vmul.f32 -1.442695, %v2748_v5 }
 0x880   :  { %v8234_v34 = vpop.eup %8233 }
 0x881   :  { %v8236_v37 = vpop.eup %8235  ;;  %v2752_v50 = vadd.f32 1.0, %v8234_v34  ;;  %8237 = vpow2.f32 %v7166_v61 }
 0x882   :  { %v2771_v7 = vadd.f32 1.0, %v8236_v37 }
 0x883   :  { %8239 = vrcp.f32 %v2752_v50  ;;  %v2764_v40 = vand.u32 2147483648, %v2752_v50  ;;  %v2762_v44 = vand.u32 2147483647, %v2752_v50  ;;  %vm2758_vm6 = vweird.f32 %v2752_v50 }
 0x884   :  { %8241 = vrcp.f32 %v2771_v7  ;;  %v2730_v56 = vpop.f32.mrf.mxu2  ;;  %v2743_v0 = vpop.f32.mrf.mxu3  ;;  %v2783_v14 = vand.u32 2147483648, %v2771_v7  ;;  %v2781_v61 = vand.u32 2147483647, %v2771_v7  ;;  %vm2777_vm7 = vweird.f32 %v2771_v7 }
 0x885   :  { %v2765_v3 = vor.u32 1.1754944e-38, %v2764_v40  ;;  %vm2763_vm10 = vcmp.eq.f32.partialorder %v2762_v44, 8.507059e+37 }
 0x886   :  { %vm2782_vm11 = vcmp.eq.f32.partialorder %v2781_v61, 8.507059e+37 }
 0x887   :  { %v8238_v19 = vpop.eup %8237 }
 0x888   :  { %v2791_v63 = vadd.f32 1.0, %v8238_v19  ;;  %v2784_v19 = vor.u32 1.1754944e-38, %v2783_v14 }
 0x889   :  { %v8240_v45 = vpop.eup %8239 }
 0x88a   :  { %v8242_v20 = vpop.eup %8241  ;;  %v2754_v23 = vmul.f32 %v8240_v45, %v2752_v50  ;;  %8243 = vrcp.f32 %v2791_v63  ;;  %vm2759_vm4 = vweird.f32 %v8240_v45  ;;  %v2803_v40 = vand.u32 2147483648, %v2791_v63 }
 0x88b   :  { %v2773_v41 = vmul.f32 %v8242_v20, %v2771_v7  ;;  %8245 = vtanh.f32 %v2747_v48  ;;  %vm2778_vm5 = vweird.f32 %v8242_v20  ;;  %vm2760_vm8 = vmor %vm2758_vm6, %vm2759_vm4  ;;  %vm2797_vm13 = vweird.f32 %v2791_v63 }
 0x88c   :  { %v2755_v35 = vsub.f32 1.0, %v2754_v23  ;;  %vm2779_vm9 = vmor %vm2777_vm7, %vm2778_vm5  ;;  %v2804_v44 = vor.u32 1.1754944e-38, %v2803_v40 }
 0x88d   :  { %v2774_v62 = vsub.f32 1.0, %v2773_v41 }
 0x88e   :  { %v2756_v5 = vmul.f32 %v8240_v45, %v2755_v35 }
 0x88f   :  { %v2775_v15 = vmul.f32 %v8242_v20, %v2774_v62 }
 0x890   :  { %v8244_v34 = vpop.eup %8243  ;;  %v2757_v37 = vadd.f32 %v8240_v45, %v2756_v5 }
 0x891   :  { %v2776_v56 = vadd.f32 %v8242_v20, %v2775_v15  ;;  %v2793_v0 = vmul.f32 %v8244_v34, %v2791_v63  ;;  %v8246_v11 = vpop.eup %8245  ;;  %vm2798_vm12 = vweird.f32 %v8244_v34 }
 0x892   :  { %v2761_v2 = vsel %vm2760_vm8, %v8240_v45, %v2757_v37  ;;  %v2801_v45 = vand.u32 2147483647, %v2791_v63  ;;  %vm2799_vm14 = vmor %vm2797_vm13, %vm2798_vm12 }
 0x893   :  { %v2766_v48 = vsel %vm2763_vm10, %v2765_v3, %v2761_v2  ;;  %v2780_v23 = vsel %vm2779_vm9, %v8242_v20, %v2776_v56  ;;  %v2794_v41 = vsub.f32 1.0, %v2793_v0 }
 0x894   :  { %v2785_v35 = vsel %vm2782_vm11, %v2784_v19, %v2780_v23  ;;  %v2808_v62 = vmul.f32 %v8246_v11, %v2766_v48  ;;  %vm2802_vm15 = vcmp.eq.f32.partialorder %v2801_v45, 8.507059e+37  ;;  %v11333_v48 = vld [vmem:[#allocation39_spill] sm:$0xff] }
 0x895   :  { %v2807_v6 = vmul.f32 %v2785_v35, %v9852_v32  ;;  %v2795_v5 = vmul.f32 %v8244_v34, %v2794_v41  ;;  %v2108_v23 = vadd.f32 %v11333_v48, %v9750_v46 }
 0x897   :  { %v9900_v50 = vadd.f32 %v2808_v62, %v2807_v6  ;;  %v2796_v7 = vadd.f32 %v8244_v34, %v2795_v5  ;;  %v11331_v6 = vld [vmem:[#allocation37_spill] sm:$0xff] }
 0x898   :  { %v2021_v63 = vadd.f32 %v11331_v6, %v9740_v38 }
 0x899   :  { %8247 = vtanh.f32 %v9900_v50  ;;  %v2800_v14 = vsel %vm2799_vm14, %v8244_v34, %v2796_v7  ;;  %v11332_v34 = vld [vmem:[#allocation40_spill] sm:$0xff] }
 0x89a   :  { %v2805_v15 = vsel %vm2802_vm15, %v2804_v44, %v2800_v14  ;;  %v2050_v37 = vadd.f32 %v11332_v34, %v9742_v1 }
 0x89f   :  { %v8248_v20 = vpop.eup %8247 }
 0x8a0   :  { %v9903_v61 = vmul.f32 %v8248_v20, %v2805_v15 }
 0x8a2   :  { %11330 = vst [vmem:[#allocation27_spill] sm:$0xff] %v9903_v61  ;;  %v2817_v32 = vpack.c.bf16 %v9903_v61, %v9903_v61 }
 0x8a4   :  { %2826 = vmatmul.bf16.vlgmr.msra.gmra.mxu0 %v2817_v32  ;;  %2839 = vmatmul.bf16.vlgmr.msra.gmra.mxu1 %v2817_v32 }
 0x8a5   :  { %2852 = vmatmul.bf16.vlgmr.msra.gmra.mxu2 %v2817_v32  ;;  %2865 = vmatmul.bf16.vlgmr.msra.gmra.mxu3 %v2817_v32 }
 0x8a6   :  { %3068 = vmatpush.bf16.msra.mxu0 %v9472_v59  ;;  %3081 = vmatpush.bf16.msra.mxu1 %v9474_v18 }
 0x8a7   :  { %3094 = vmatpush.bf16.msra.mxu2 %v9485_v22  ;;  %3107 = vmatpush.bf16.msra.mxu3 %v9482_v13 }
 0x8aa   :  { %3069 = vmatpush.bf16.msra.mxu0 %v9492_v4  ;;  %3082 = vmatpush.bf16.msra.mxu1 %v9494_v31 }
 0x8ab   :  { %3095 = vmatpush.bf16.msra.mxu2 %v9511_v25  ;;  %3108 = vmatpush.bf16.msra.mxu3 %v9496_v24 }
 0x8ae   :  { %3070 = vmatpush.bf16.msra.mxu0 %v9501_v55  ;;  %3083 = vmatpush.bf16.msra.mxu1 %v9505_v39 }
 0x8af   :  { %3096 = vmatpush.bf16.msra.mxu2 %v9523_v30  ;;  %3109 = vmatpush.bf16.msra.mxu3 %v9507_v29 }
 0x8b2   :  { %3071 = vmatpush.bf16.msra.mxu0 %v9514_v54  ;;  %3084 = vmatpush.bf16.msra.mxu1 %v9518_v53 }
 0x8b3   :  { %3097 = vmatpush.bf16.msra.mxu2 %v9540_v10  ;;  %3110 = vmatpush.bf16.msra.mxu3 %v9520_v60 }
 0x8b6   :  { %3072 = vmatpush.bf16.msra.mxu0 %v9528_v43  ;;  %3085 = vmatpush.bf16.msra.mxu1 %v9534_v51 }
 0x8b7   :  { %3098 = vmatpush.bf16.msra.mxu2 %v9555_v57  ;;  %3111 = vmatpush.bf16.msra.mxu3 %v9536_v52 }
 0x8ba   :  { %3073 = vmatpush.bf16.msra.mxu0 %v9544_v12  ;;  %3086 = vmatpush.bf16.msra.mxu1 %v9548_v36 }
 0x8bb   :  { %3099 = vmatpush.bf16.msra.mxu2 %v9578_v9  ;;  %3112 = vmatpush.bf16.msra.mxu3 %v9550_v42 }
 0x8be   :  { %3074 = vmatpush.bf16.msra.mxu0 %v9563_v58  ;;  %3087 = vmatpush.bf16.msra.mxu1 %v9572_v8 }
 0x8bf   :  { %3100 = vmatpush.bf16.msra.mxu2 %v9597_v27  ;;  %3113 = vmatpush.bf16.msra.mxu3 %v9581_v26 }
 0x8c2   :  { %3075 = vmatpush.bf16.msra.mxu0 %v9593_v17  ;;  %3088 = vmatpush.bf16.msra.mxu1 %v9595_v33 }
 0x8c3   :  { %3101 = vmatpush.bf16.msra.mxu2 %v9616_v21  ;;  %3114 = vmatpush.bf16.msra.mxu3 %v9607_v49 }
 0x921   :  { %v2827_v3 = vpop.f32.mrf.mxu0  ;;  %v2840_v56 = vpop.f32.mrf.mxu1 }
 0x922   :  { %v2870_v0 = vadd.f32 %v2827_v3, %v2021_v63  ;;  %v2871_v19 = vadd.f32 %v2840_v56, %v2050_v37  ;;  %v11334_v63 = vld [vmem:[#allocation38_spill] sm:$0xff] }
 0x923   :  { %v2079_v34 = vadd.f32 %v11334_v63, %v11319_v28 }
 0x924   :  { %v7167_v2 = vmul.f32 -1.442695, %v2870_v0  ;;  %v7168_v11 = vmul.f32 -1.442695, %v2871_v19 }
 0x926   :  { %8249 = vpow2.f32 %v7167_v2 }
 0x927   :  { %8251 = vpow2.f32 %v7168_v11 }
 0x928   :  { %v2853_v41 = vpop.f32.mrf.mxu2  ;;  %v2866_v35 = vpop.f32.mrf.mxu3 }
 0x929   :  { %v2873_v62 = vadd.f32 %v2866_v35, %v2108_v23  ;;  %v2829_v5 = vpop.f32.mrf.mxu0  ;;  %v2842_v7 = vpop.f32.mrf.mxu1  ;;  %v2872_v56 = vadd.f32 %v2853_v41, %v2079_v34 }
 0x92b   :  { %v7169_v40 = vmul.f32 -1.442695, %v2873_v62 }
 0x92c   :  { %v8250_v45 = vpop.eup %8249 }
 0x92d   :  { %v8252_v14 = vpop.eup %8251  ;;  %v2877_v44 = vadd.f32 1.0, %v8250_v45  ;;  %8253 = vpow2.f32 %v7169_v40 }
 0x92e   :  { %v2896_v20 = vadd.f32 1.0, %v8252_v14 }
 0x92f   :  { %8255 = vrcp.f32 %v2877_v44  ;;  %v2889_v23 = vand.u32 2147483648, %v2877_v44  ;;  %v2887_v5 = vand.u32 2147483647, %v2877_v44  ;;  %vm2883_vm2 = vweird.f32 %v2877_v44 }
 0x930   :  { %8257 = vrcp.f32 %v2896_v20  ;;  %v2855_v15 = vpop.f32.mrf.mxu2  ;;  %v2868_v32 = vpop.f32.mrf.mxu3  ;;  %v2908_v35 = vand.u32 2147483648, %v2896_v20  ;;  %v2906_v40 = vand.u32 2147483647, %v2896_v20  ;;  %vm2902_vm3 = vweird.f32 %v2896_v20 }
 0x931   :  { %v2890_v41 = vor.u32 1.1754944e-38, %v2889_v23  ;;  %vm2888_vm6 = vcmp.eq.f32.partialorder %v2887_v5, 8.507059e+37 }
 0x932   :  { %vm2907_vm7 = vcmp.eq.f32.partialorder %v2906_v40, 8.507059e+37 }
 0x933   :  { %v8254_v6 = vpop.eup %8253 }
 0x934   :  { %v2916_v37 = vadd.f32 1.0, %v8254_v6  ;;  %v2909_v6 = vor.u32 1.1754944e-38, %v2908_v35 }
 0x935   :  { %v8256_v3 = vpop.eup %8255 }
 0x936   :  { %v8258_v0 = vpop.eup %8257  ;;  %v2879_v19 = vmul.f32 %v8256_v3, %v2877_v44  ;;  %8259 = vrcp.f32 %v2916_v37  ;;  %vm2884_vm0 = vweird.f32 %v8256_v3  ;;  %v2928_v23 = vand.u32 2147483648, %v2916_v37 }
 0x937   :  { %v2898_v2 = vmul.f32 %v8258_v0, %v2896_v20  ;;  %8261 = vtanh.f32 %v2872_v56  ;;  %vm2903_vm1 = vweird.f32 %v8258_v0  ;;  %vm2885_vm4 = vmor %vm2883_vm2, %vm2884_vm0  ;;  %vm2922_vm9 = vweird.f32 %v2916_v37 }
 0x938   :  { %v2880_v11 = vsub.f32 1.0, %v2879_v19  ;;  %vm2904_vm5 = vmor %vm2902_vm3, %vm2903_vm1  ;;  %v2929_v5 = vor.u32 1.1754944e-38, %v2928_v23 }
 0x939   :  { %v2899_v48 = vsub.f32 1.0, %v2898_v2 }
 0x93a   :  { %v2881_v62 = vmul.f32 %v8256_v3, %v2880_v11 }
 0x93b   :  { %v2900_v7 = vmul.f32 %v8258_v0, %v2899_v48 }
 0x93c   :  { %v8260_v45 = vpop.eup %8259  ;;  %v2882_v14 = vadd.f32 %v8256_v3, %v2881_v62 }
 0x93d   :  { %v2901_v15 = vadd.f32 %v8258_v0, %v2900_v7  ;;  %v2918_v32 = vmul.f32 %v8260_v45, %v2916_v37  ;;  %v8262_v34 = vpop.eup %8261  ;;  %vm2923_vm8 = vweird.f32 %v8260_v45 }
 0x93e   :  { %v2886_v63 = vsel %vm2885_vm4, %v8256_v3, %v2882_v14  ;;  %v2926_v3 = vand.u32 2147483647, %v2916_v37  ;;  %vm2924_vm10 = vmor %vm2922_vm9, %vm2923_vm8 }
 0x93f   :  { %v2891_v56 = vsel %vm2888_vm6, %v2890_v41, %v2886_v63  ;;  %v2905_v19 = vsel %vm2904_vm5, %v8258_v0, %v2901_v15  ;;  %v2919_v2 = vsub.f32 1.0, %v2918_v32 }
 0x940   :  { %v2910_v11 = vsel %vm2907_vm7, %v2909_v6, %v2905_v19  ;;  %v2933_v48 = vmul.f32 %v8262_v34, %v2891_v56  ;;  %vm2927_vm11 = vcmp.eq.f32.partialorder %v2926_v3, 8.507059e+37 }
 0x941   :  { %v2932_v61 = vmul.f32 %v2910_v11, %v9900_v50  ;;  %v2920_v62 = vmul.f32 %v8260_v45, %v2919_v2 }
 0x943   :  { %v9948_v44 = vadd.f32 %v2933_v48, %v2932_v61  ;;  %v2921_v20 = vadd.f32 %v8260_v45, %v2920_v62 }
 0x945   :  { %8263 = vtanh.f32 %v9948_v44  ;;  %v2925_v35 = vsel %vm2924_vm10, %v8260_v45, %v2921_v20 }
 0x946   :  { %v2930_v7 = vsel %vm2927_vm11, %v2929_v5, %v2925_v35 }
 0x94b   :  { %v8264_v0 = vpop.eup %8263 }
 0x94c   :  { %v9951_v40 = vmul.f32 %v8264_v0, %v2930_v7 }
 0x94e   :  { %v2942_v50 = vpack.c.bf16 %v9951_v40, %v9951_v40 }
 0x950   :  { %2951 = vmatmul.bf16.vlgmr.msrb.gmra.mxu0 %v2942_v50  ;;  %2964 = vmatmul.bf16.vlgmr.msrb.gmra.mxu1 %v2942_v50 }
 0x951   :  { %2977 = vmatmul.bf16.vlgmr.msrb.gmra.mxu2 %v2942_v50  ;;  %2990 = vmatmul.bf16.vlgmr.msrb.gmra.mxu3 %v2942_v50 }
 0x952   :  { %3193 = vmatpush.bf16.msrb.mxu0 %v9472_v59  ;;  %3206 = vmatpush.bf16.msrb.mxu1 %v9474_v18  ;;  %v11335_v59 = vld [vmem:[#allocation41_spill] sm:$0xff] }
 0x953   :  { %3219 = vmatpush.bf16.msrb.mxu2 %v9485_v22  ;;  %3232 = vmatpush.bf16.msrb.mxu3 %v9482_v13  ;;  %v2023_v18 = vadd.f32 %v11335_v59, %v9740_v38  ;;  %v11336_v13 = vld [vmem:[#allocation43_spill] sm:$0xff] }
 0x954   :  { %v2052_v22 = vadd.f32 %v11336_v13, %v9742_v1 }
 0x956   :  { %3194 = vmatpush.bf16.msrb.mxu0 %v9492_v4  ;;  %3207 = vmatpush.bf16.msrb.mxu1 %v9494_v31 }
 0x957   :  { %3220 = vmatpush.bf16.msrb.mxu2 %v9511_v25  ;;  %3233 = vmatpush.bf16.msrb.mxu3 %v9496_v24  ;;  %v11337_v25 = vld [vmem:[#allocation44_spill] sm:$0xff] }
 0x95a   :  { %3195 = vmatpush.bf16.msrb.mxu0 %v9501_v55  ;;  %3208 = vmatpush.bf16.msrb.mxu1 %v9505_v39 }
 0x95b   :  { %3221 = vmatpush.bf16.msrb.mxu2 %v9523_v30  ;;  %3234 = vmatpush.bf16.msrb.mxu3 %v9507_v29 }
 0x95e   :  { %3196 = vmatpush.bf16.msrb.mxu0 %v9514_v54  ;;  %3209 = vmatpush.bf16.msrb.mxu1 %v9518_v53  ;;  %v2110_v54 = vadd.f32 %v11337_v25, %v9750_v46  ;;  %v7934_v25 = vld [vmem:[#allocation10 + $0x2ec] sm:$0xf0] }
 0x95f   :  { %3222 = vmatpush.bf16.msrb.mxu2 %v9540_v10  ;;  %3235 = vmatpush.bf16.msrb.mxu3 %v9520_v60 }
 0x962   :  { %3197 = vmatpush.bf16.msrb.mxu0 %v9528_v43  ;;  %3210 = vmatpush.bf16.msrb.mxu1 %v9534_v51 }
 0x963   :  { %3223 = vmatpush.bf16.msrb.mxu2 %v9555_v57  ;;  %3236 = vmatpush.bf16.msrb.mxu3 %v9536_v52 }
 0x966   :  { %3198 = vmatpush.bf16.msrb.mxu0 %v9544_v12  ;;  %3211 = vmatpush.bf16.msrb.mxu1 %v9548_v36 }
 0x967   :  { %3224 = vmatpush.bf16.msrb.mxu2 %v9578_v9  ;;  %3237 = vmatpush.bf16.msrb.mxu3 %v9550_v42  ;;  %v11338_v9 = vld [vmem:[#allocation42_spill] sm:$0xff] }
 0x96a   :  { %3199 = vmatpush.bf16.msrb.mxu0 %v9563_v58  ;;  %3212 = vmatpush.bf16.msrb.mxu1 %v9572_v8 }
 0x96b   :  { %3225 = vmatpush.bf16.msrb.mxu2 %v9597_v27  ;;  %3238 = vmatpush.bf16.msrb.mxu3 %v9581_v26  ;;  %v2081_v26 = vadd.f32 %v11338_v9, %v11319_v28  ;;  %v7303_v9 = vld [vmem:[#allocation10 + $0x2f8] sm:$0xf0] }
 0x96e   :  { %3200 = vmatpush.bf16.msrb.mxu0 %v9593_v17  ;;  %3213 = vmatpush.bf16.msrb.mxu1 %v9595_v33 }
 0x96f   :  { %3226 = vmatpush.bf16.msrb.mxu2 %v9616_v21  ;;  %3239 = vmatpush.bf16.msrb.mxu3 %v9607_v49 }
 0x9cd   :  { %v2952_v4 = vpop.f32.mrf.mxu0  ;;  %v2965_v31 = vpop.f32.mrf.mxu1 }
 0x9ce   :  { %v2995_v24 = vadd.f32 %v2952_v4, %v2023_v18  ;;  %v2996_v55 = vadd.f32 %v2965_v31, %v2052_v22 }
 0x9d0   :  { %v7170_v39 = vmul.f32 -1.442695, %v2995_v24  ;;  %v7171_v29 = vmul.f32 -1.442695, %v2996_v55 }
 0x9d2   :  { %8265 = vpow2.f32 %v7170_v39 }
 0x9d3   :  { %8267 = vpow2.f32 %v7171_v29  ;;  %v7293_v29 = vld [vmem:[#allocation10 + $0x2e0] sm:$0xf] }
 0x9d4   :  { %v2978_v53 = vpop.f32.mrf.mxu2  ;;  %v2991_v60 = vpop.f32.mrf.mxu3 }
 0x9d5   :  { %v2998_v30 = vadd.f32 %v2991_v60, %v2110_v54  ;;  %v2954_v43 = vpop.f32.mrf.mxu0  ;;  %v2967_v51 = vpop.f32.mrf.mxu1  ;;  %v2997_v27 = vadd.f32 %v2978_v53, %v2081_v26  ;;  %v7932_v54 = vld [vmem:[#allocation10 + $0x2e4] sm:$0xf]  ;;  %v11339_v53 = vld [vmem:[#allocation45_spill] sm:$0xff] }
 0x9d6   :  { %v2026_v60 = vadd.f32 %v11339_v53, %v9740_v38  ;;  %v7294_v51 = vor.u32 %v7934_v25, %v7293_v29  ;;  %v7920_v29 = vld [vmem:[#allocation10 + $0x284] sm:$0xf]  ;;  %v7253_v53 = vld [vmem:[#allocation10 + $0x288] sm:$0xf] }
 0x9d7   :  { %v7172_v52 = vmul.f32 -1.442695, %v2998_v30  ;;  %v11340_v30 = vld [vmem:[#allocation48_spill] sm:$0xff] }
 0x9d8   :  { %v8266_v10 = vpop.eup %8265  ;;  %v2055_v43 = vadd.f32 %v11340_v30, %v9742_v1 }
 0x9d9   :  { %v8268_v12 = vpop.eup %8267  ;;  %v3002_v36 = vadd.f32 1.0, %v8266_v10  ;;  %8269 = vpow2.f32 %v7172_v52  ;;  %v7295_v52 = vld [vmem:[#allocation10 + $0x2f0] sm:$0xf0]  ;;  %v7301_v10 = vld [vmem:[#allocation10 + $0x2e8] sm:$0xf] }
 0x9da   :  { %v3021_v42 = vadd.f32 1.0, %v8268_v12  ;;  %v7935_v12 = vld [vmem:[#allocation10 + $0x2f4] sm:$0xf0] }
 0x9db   :  { %8271 = vrcp.f32 %v3002_v36  ;;  %v3014_v14 = vand.u32 2147483648, %v3002_v36  ;;  %v3012_v32 = vand.u32 2147483647, %v3002_v36  ;;  %vm3008_vm14 = vweird.f32 %v3002_v36 }
 0x9dc   :  { %8273 = vrcp.f32 %v3021_v42  ;;  %v2980_v57 = vpop.f32.mrf.mxu2  ;;  %v2993_v58 = vpop.f32.mrf.mxu3  ;;  %v3033_v41 = vand.u32 2147483648, %v3021_v42  ;;  %v3031_v63 = vand.u32 2147483647, %v3021_v42  ;;  %vm3027_vm15 = vweird.f32 %v3021_v42 }
 0x9dd   :  { %v3015_v19 = vor.u32 1.1754944e-38, %v3014_v14  ;;  %vm3013_vm2 = vcmp.eq.f32.partialorder %v3012_v32, 8.507059e+37  ;;  %v7298_v57 = vor.u32 %v7932_v54, %v7295_v52  ;;  %v7302_v58 = vor.u32 %v7935_v12, %v7301_v10  ;;  %v7279_v14 = vld [vmem:[#allocation10 + $0x2d0] sm:$0xf0]  ;;  %v7931_v32 = vld [vmem:[#allocation10 + $0x2d4] sm:$0xf0] }
 0x9de   :  { %v3034_v48 = vor.u32 1.1754944e-38, %v3033_v41  ;;  %vm3032_vm3 = vcmp.eq.f32.partialorder %v3031_v63, 8.507059e+37  ;;  %v7247_v54 = vld [vmem:[#allocation10 + $0x290] sm:$0xf0]  ;;  %v7255_v52 = vld [vmem:[#allocation10 + $0x298] sm:$0xf0] }
 0x9df   :  { %v8270_v8 = vpop.eup %8269 }
 0x9e0   :  { %v3041_v17 = vadd.f32 1.0, %v8270_v8  ;;  %v7933_v8 = vld [vmem:[#allocation10 + $0x2ec] sm:$0xf] }
 0x9e1   :  { %v8272_v33 = vpop.eup %8271 }
 0x9e2   :  { %v8274_v49 = vpop.eup %8273  ;;  %v3004_v21 = vmul.f32 %v8272_v33, %v3002_v36  ;;  %8275 = vrcp.f32 %v3041_v17  ;;  %vm3009_vm12 = vweird.f32 %v8272_v33  ;;  %v3053_v13 = vand.u32 2147483648, %v3041_v17 }
 0x9e3   :  { %v3023_v61 = vmul.f32 %v8274_v49, %v3021_v42  ;;  %8277 = vtanh.f32 %v2997_v27  ;;  %vm3028_vm13 = vweird.f32 %v8274_v49  ;;  %vm3010_vm0 = vmor %vm3008_vm14, %vm3009_vm12  ;;  %vm3047_vm5 = vweird.f32 %v3041_v17  ;;  %v7277_v27 = vld [vmem:[#allocation10 + $0x2c0] sm:$0xf] }
 0x9e4   :  { %v3005_v37 = vsub.f32 1.0, %v3004_v21  ;;  %vm3029_vm1 = vmor %vm3027_vm15, %vm3028_vm13  ;;  %v3051_v22 = vand.u32 2147483647, %v3041_v17  ;;  %v3054_v31 = vor.u32 1.1754944e-38, %v3053_v13  ;;  %v7928_v21 = vld [vmem:[#allocation10 + $0x2c4] sm:$0xf] }
 0x9e5   :  { %v3024_v45 = vsub.f32 1.0, %v3023_v61  ;;  %v7282_v41 = vor.u32 %v7928_v21, %v7279_v14  ;;  %v7916_v21 = vld [vmem:[#allocation10 + $0x264] sm:$0xf]  ;;  %v7237_v14 = vld [vmem:[#allocation10 + $0x268] sm:$0xf] }
 0x9e6   :  { %v3006_v15 = vmul.f32 %v8272_v33, %v3005_v37  ;;  %vm3052_vm7 = vcmp.eq.f32.partialorder %v3051_v22, 8.507059e+37 }
 0x9e7   :  { %v3025_v6 = vmul.f32 %v8274_v49, %v3024_v45 }
 0x9e8   :  { %v8276_v34 = vpop.eup %8275  ;;  %v3007_v56 = vadd.f32 %v8272_v33, %v3006_v15  ;;  %v7285_v15 = vld [vmem:[#allocation10 + $0x2c8] sm:$0xf] }
 0x9e9   :  { %v3026_v2 = vadd.f32 %v8274_v49, %v3025_v6  ;;  %v3043_v11 = vmul.f32 %v8276_v34, %v3041_v17  ;;  %v8278_v20 = vpop.eup %8277  ;;  %vm3048_vm4 = vweird.f32 %v8276_v34  ;;  %v7929_v6 = vld [vmem:[#allocation10 + $0x2cc] sm:$0xf]  ;;  %v7286_v63 = vor.u32 %v7931_v32, %v7285_v15 }
 0x9ea   :  { %v3011_v62 = vsel %vm3010_vm0, %v8272_v33, %v3007_v56  ;;  %vm3049_vm6 = vmor %vm3047_vm5, %vm3048_vm4  ;;  %v7306_v33 = vor.u32 %v7933_v8, %v7303_v9  ;;  %v7261_v56 = vld [vmem:[#allocation10 + $0x2a0] sm:$0xf] }
 0x9eb   :  { %v3016_v23 = vsel %vm3013_vm2, %v3015_v19, %v3011_v62  ;;  %v3030_v3 = vsel %vm3029_vm1, %v8274_v49, %v3026_v2  ;;  %v3044_v35 = vsub.f32 1.0, %v3043_v11  ;;  %v7930_v49 = vld [vmem:[#allocation10 + $0x2cc] sm:$0xf0]  ;;  %v7229_v8 = vld [vmem:[#allocation10 + $0x260] sm:$0xf] }
 0x9ec   :  { %v3035_v5 = vsel %vm3032_vm3, %v3034_v48, %v3030_v3  ;;  %v3058_v0 = vmul.f32 %v8278_v20, %v3016_v23  ;;  %v7278_v45 = vor.u32 %v7930_v49, %v7277_v27  ;;  %v7926_v19 = vld [vmem:[#allocation10 + $0x2ac] sm:$0xf0]  ;;  %v7924_v20 = vld [vmem:[#allocation10 + $0x2a4] sm:$0xf]  ;;  %v7263_v23 = vld [vmem:[#allocation10 + $0x2b0] sm:$0xf0] }
 0x9ed   :  { %v3057_v7 = vmul.f32 %v3035_v5, %v9948_v44  ;;  %v3045_v50 = vmul.f32 %v8276_v34, %v3044_v35  ;;  %v11341_v2 = vld [vmem:[#allocation29_spill] sm:$0xff]  ;;  %v7262_v62 = vor.u32 %v7926_v19, %v7261_v56  ;;  %v7269_v3 = vld [vmem:[#allocation10 + $0x2a8] sm:$0xf]  ;;  %v7213_v56 = vld [vmem:[#allocation10 + $0x240] sm:$0xf] }
 0x9ee   :  { %v2113_v11 = vadd.f32 %v11341_v2, %v9750_v46 }
 0x9ef   :  { %v9996_v59 = vadd.f32 %v3058_v0, %v3057_v7  ;;  %v3046_v18 = vadd.f32 %v8276_v34, %v3045_v50  ;;  %v7266_v0 = vor.u32 %v7924_v20, %v7263_v23  ;;  %v7927_v7 = vld [vmem:[#allocation10 + $0x2b4] sm:$0xf0]  ;;  %v7925_v50 = vld [vmem:[#allocation10 + $0x2ac] sm:$0xf]  ;;  %v7215_v23 = vld [vmem:[#allocation10 + $0x250] sm:$0xf0] }
 0x9f1   :  { %8279 = vtanh.f32 %v9996_v59  ;;  %v3050_v4 = vsel %vm3049_vm6, %v8276_v34, %v3046_v18  ;;  %v7287_v34 = vld [vmem:[#allocation10 + $0x2d8] sm:$0xf0] }
 0x9f2   :  { %v3055_v55 = vsel %vm3052_vm7, %v3054_v31, %v3050_v4  ;;  %v7290_v48 = vor.u32 %v7929_v6, %v7287_v34  ;;  %v7271_v18 = vld [vmem:[#allocation10 + $0x2b8] sm:$0xf0]  ;;  %v7270_v31 = vor.u32 %v7927_v7, %v7269_v3  ;;  %v7221_v3 = vld [vmem:[#allocation10 + $0x248] sm:$0xf]  ;;  %v7913_v7 = vld [vmem:[#allocation10 + $0x24c] sm:$0xf] }
 0x9f3   :  { %v7239_v34 = vld [vmem:[#allocation10 + $0x278] sm:$0xf0] }
 0x9f7   :  { %v8280_v24 = vpop.eup %8279 }
 0x9f8   :  { %v9999_v39 = vmul.f32 %v8280_v24, %v3055_v55  ;;  %v7274_v24 = vor.u32 %v7925_v50, %v7271_v18  ;;  %v7245_v55 = vld [vmem:[#allocation10 + $0x280] sm:$0xf]  ;;  %v7223_v50 = vld [vmem:[#allocation10 + $0x258] sm:$0xf0] }
 0x9f9   :  { %v7197_v18 = vld [vmem:[#allocation10 + $0x220] sm:$0xf] }
 0x9fa   :  { %v3067_v44 = vpack.c.bf16 %v9999_v39, %v9999_v39 }
 0x9fc   :  { %3076 = vmatmul.bf16.vlgmr.msra.gmra.mxu0 %v3067_v44  ;;  %3089 = vmatmul.bf16.vlgmr.msra.gmra.mxu1 %v3067_v44 }
 0x9fd   :  { %3102 = vmatmul.bf16.vlgmr.msra.gmra.mxu2 %v3067_v44  ;;  %3115 = vmatmul.bf16.vlgmr.msra.gmra.mxu3 %v3067_v44  ;;  %v7922_v44 = vld [vmem:[#allocation10 + $0x28c] sm:$0xf0] }
 0x9fe   :  { %3566 = vmatpush.bf16.msra.mxu0 %v7294_v51  ;;  %3595 = vmatpush.bf16.msra.mxu1 %v7298_v57  ;;  %v7246_v25 = vor.u32 %v7922_v44, %v7245_v55  ;;  %v7921_v51 = vld [vmem:[#allocation10 + $0x28c] sm:$0xf] }
 0x9ff   :  { %3624 = vmatpush.bf16.msra.mxu2 %v7302_v58  ;;  %3653 = vmatpush.bf16.msra.mxu3 %v7306_v33  ;;  %v7258_v57 = vor.u32 %v7921_v51, %v7255_v52  ;;  %v11342_v33 = vld [vmem:[#allocation46_spill] sm:$0xff]  ;;  %v7205_v51 = vld [vmem:[#allocation10 + $0x228] sm:$0xf] }
 0xa00   :  { %v2084_v27 = vadd.f32 %v11342_v33, %v11319_v28  ;;  %v7906_v33 = vld [vmem:[#allocation10 + $0x20c] sm:$0xf0] }
 0xa02   :  { %3567 = vmatpush.bf16.msra.mxu0 %v7278_v45  ;;  %3596 = vmatpush.bf16.msra.mxu1 %v7282_v41  ;;  %v7919_v41 = vld [vmem:[#allocation10 + $0x274] sm:$0xf0] }
 0xa03   :  { %3625 = vmatpush.bf16.msra.mxu2 %v7286_v63  ;;  %3654 = vmatpush.bf16.msra.mxu3 %v7290_v48  ;;  %v7238_v6 = vor.u32 %v7919_v41, %v7237_v14  ;;  %v7917_v63 = vld [vmem:[#allocation10 + $0x26c] sm:$0xf]  ;;  %v7912_v48 = vld [vmem:[#allocation10 + $0x244] sm:$0xf]  ;;  %v7907_v14 = vld [vmem:[#allocation10 + $0x214] sm:$0xf0] }
 0xa04   :  { %v7242_v2 = vor.u32 %v7917_v63, %v7239_v34  ;;  %v7218_v55 = vor.u32 %v7912_v48, %v7215_v23  ;;  %v7905_v34 = vld [vmem:[#allocation10 + $0x20c] sm:$0xf] }
 0xa06   :  { %3568 = vmatpush.bf16.msra.mxu0 %v7262_v62  ;;  %3597 = vmatpush.bf16.msra.mxu1 %v7266_v0 }
 0xa07   :  { %3626 = vmatpush.bf16.msra.mxu2 %v7270_v31  ;;  %3655 = vmatpush.bf16.msra.mxu3 %v7274_v24  ;;  %v7910_v31 = vld [vmem:[#allocation10 + $0x22c] sm:$0xf0] }
 0xa0a   :  { %3569 = vmatpush.bf16.msra.mxu0 %v7246_v25  ;;  %v7908_v25 = vld [vmem:[#allocation10 + $0x224] sm:$0xf] }
 0xa0b   :  { %3656 = vmatpush.bf16.msra.mxu3 %v7258_v57  ;;  %v7207_v57 = vld [vmem:[#allocation10 + $0x238] sm:$0xf0] }
 0xa0f   :  { %3657 = vmatpush.bf16.msra.mxu3 %v7242_v2 }
 0xa79   :  { %v3077_v36 = vpop.f32.mrf.mxu0  ;;  %v3090_v42 = vpop.f32.mrf.mxu1 }
 0xa7a   :  { %v3120_v26 = vadd.f32 %v3077_v36, %v2026_v60  ;;  %v3121_v17 = vadd.f32 %v3090_v42, %v2055_v43  ;;  %v7923_v60 = vld [vmem:[#allocation10 + $0x294] sm:$0xf0]  ;;  %v7250_v43 = vor.u32 %v7920_v29, %v7247_v54  ;;  %v7226_v29 = vor.u32 %v7913_v7, %v7223_v50  ;;  %v7199_v54 = vld [vmem:[#allocation10 + $0x230] sm:$0xf0] }
 0xa7b   :  { %v7254_v12 = vor.u32 %v7923_v60, %v7253_v53  ;;  %v11345_v60 = vld [vmem:[#allocation50_spill] sm:$0xff] }
 0xa7c   :  { %v7173_v61 = vmul.f32 -1.442695, %v3120_v26  ;;  %v7174_v37 = vmul.f32 -1.442695, %v3121_v17  ;;  %3598 = vmatpush.bf16.msra.mxu1 %v7250_v43  ;;  %v7918_v17 = vld [vmem:[#allocation10 + $0x26c] sm:$0xf0]  ;;  %v7198_v43 = vor.u32 %v7910_v31, %v7197_v18  ;;  %3658 = vmatpush.bf16.msra.mxu3 %v7226_v29 }
 0xa7d   :  { %3627 = vmatpush.bf16.msra.mxu2 %v7254_v12  ;;  %v7230_v49 = vor.u32 %v7918_v17, %v7229_v8  ;;  %v7911_v12 = vld [vmem:[#allocation10 + $0x234] sm:$0xf0]  ;;  %v7181_v17 = vld [vmem:[#allocation10 + $0x200] sm:$0xf]  ;;  %v7964_v29 = vld [vmem:[#allocation12 + $0x2e4] sm:$0xf] }
 0xa7e   :  { %8281 = vpow2.f32 %v7173_v61  ;;  %v7231_v61 = vld [vmem:[#allocation10 + $0x270] sm:$0xf0] }
 0xa7f   :  { %8283 = vpow2.f32 %v7174_v37  ;;  %v7234_v45 = vor.u32 %v7916_v21, %v7231_v61  ;;  %3570 = vmatpush.bf16.msra.mxu0 %v7230_v49  ;;  %v7182_v61 = vor.u32 %v7906_v33, %v7181_v17 }
 0xa80   :  { %v3103_v35 = vpop.f32.mrf.mxu2  ;;  %v3116_v5 = vpop.f32.mrf.mxu3 }
 0xa81   :  { %v3123_v13 = vadd.f32 %v3116_v5, %v2113_v11  ;;  %v3079_v22 = vpop.f32.mrf.mxu0  ;;  %v3092_v4 = vpop.f32.mrf.mxu1  ;;  %v3122_v32 = vadd.f32 %v3103_v35, %v2084_v27  ;;  %3599 = vmatpush.bf16.msra.mxu1 %v7234_v45  ;;  %v7914_v11 = vld [vmem:[#allocation10 + $0x24c] sm:$0xf0]  ;;  %3628 = vmatpush.bf16.msra.mxu2 %v7238_v6  ;;  %v7915_v5 = vld [vmem:[#allocation10 + $0x254] sm:$0xf0]  ;;  %v7904_v27 = vld [vmem:[#allocation10 + $0x204] sm:$0xf] }
 0xa82   :  { %v7214_v20 = vor.u32 %v7914_v11, %v7213_v56  ;;  %v7222_v44 = vor.u32 %v7915_v5, %v7221_v3  ;;  %v7189_v45 = vld [vmem:[#allocation10 + $0x208] sm:$0xf]  ;;  %v7191_v56 = vld [vmem:[#allocation10 + $0x218] sm:$0xf0] }
 0xa83   :  { %v7175_v30 = vmul.f32 -1.442695, %v3123_v13  ;;  %v7190_v11 = vor.u32 %v7907_v14, %v7189_v45  ;;  %v7194_v3 = vor.u32 %v7905_v34, %v7191_v56  ;;  %v7961_v45 = vld [vmem:[#allocation12 + $0x2cc] sm:$0xf]  ;;  %v7415_v14 = vld [vmem:[#allocation12 + $0x2d8] sm:$0xf0] }
 0xa84   :  { %v8282_v10 = vpop.eup %8281  ;;  %3571 = vmatpush.bf16.msra.mxu0 %v7214_v20  ;;  %v7956_v34 = vld [vmem:[#allocation12 + $0x2a4] sm:$0xf] }
 0xa85   :  { %v8284_v36 = vpop.eup %8283  ;;  %v10009_v42 = vadd.f32 1.0, %v8282_v10  ;;  %8285 = vpow2.f32 %v7175_v30  ;;  %3600 = vmatpush.bf16.msra.mxu1 %v7218_v55  ;;  %3629 = vmatpush.bf16.msra.mxu2 %v7222_v44  ;;  %v7202_v10 = vor.u32 %v7908_v25, %v7199_v54  ;;  %v3393_v55 = vpack.c.bf16 %v9807_v16, %v9759_v47  ;;  %v7966_v44 = vld [vmem:[#allocation12 + $0x2ec] sm:$0xf0]  ;;  %v7423_v54 = vld [vmem:[#allocation12 + $0x2f0] sm:$0xf0] }
 0xa86   :  { %v10011_v58 = vadd.f32 1.0, %v8284_v36  ;;  %v7909_v36 = vld [vmem:[#allocation10 + $0x22c] sm:$0xf]  ;;  %v3395_v47 = vpack.c.bf16 %v9999_v39, %v9951_v40 }
 0xa87   :  { %8287 = vrcp.f32 %v10009_v42  ;;  %v3137_v37 = vand.u32 2147483647, %v10009_v42  ;;  %v3139_v4 = vand.u32 2147483648, %v10009_v42  ;;  %vm3133_vm12 = vweird.f32 %v10009_v42  ;;  %v7965_v16 = vld [vmem:[#allocation12 + $0x2ec] sm:$0xf] }
 0xa88   :  { %8289 = vrcp.f32 %v10011_v58  ;;  %v3105_v9 = vpop.f32.mrf.mxu2  ;;  %v3118_v26 = vpop.f32.mrf.mxu3  ;;  %v3158_v22 = vand.u32 2147483648, %v10011_v58  ;;  %v3156_v30 = vand.u32 2147483647, %v10011_v58  ;;  %3572 = vmatpush.bf16.msra.mxu0 %v7198_v43  ;;  %vm3152_vm11 = vweird.f32 %v10011_v58 }
 0xa89   :  { %vm10031_vm8 = vcmp.eq.f32.partialorder %v3137_v37, 8.507059e+37  ;;  %v7206_v9 = vor.u32 %v7911_v12, %v7205_v51  ;;  %v7210_v26 = vor.u32 %v7909_v36, %v7207_v57  ;;  %v7183_v37 = vld [vmem:[#allocation10 + $0x210] sm:$0xf0]  ;;  %3601 = vmatpush.bf16.msra.mxu1 %v7202_v10  ;;  %v7431_v51 = vld [vmem:[#allocation12 + $0x2f8] sm:$0xf0] }
 0xa8a   :  { %vm3157_vm15 = vcmp.eq.f32.partialorder %v3156_v30, 8.507059e+37  ;;  %v7186_v2 = vor.u32 %v7904_v27, %v7183_v37  ;;  %v11346_v30 = vld [vmem:[#allocation27_spill] sm:$0xff]  ;;  %v7429_v10 = vld [vmem:[#allocation12 + $0x2e8] sm:$0xf]  ;;  %v7967_v12 = vld [vmem:[#allocation12 + $0x2f4] sm:$0xf0] }
 0xa8b   :  { %v8286_v15 = vpop.eup %8285  ;;  %3630 = vmatpush.bf16.msra.mxu2 %v7206_v9  ;;  %3659 = vmatpush.bf16.msra.mxu3 %v7210_v26  ;;  %v3394_v43 = vpack.c.bf16 %v11346_v30, %v11345_v60  ;;  %v10081_v36 = vor.u32 %v7967_v12, %v7429_v10  ;;  %v11347_v57 = vld [vmem:[#allocation26_spill] sm:$0xff]  ;;  %v11348_v9 = vld [vmem:[#allocation47_spill] sm:$0xff]  ;;  %v7407_v37 = vld [vmem:[#allocation12 + $0x2d0] sm:$0xf0] }
 0xa8c   :  { %v10018_v19 = vadd.f32 1.0, %v8286_v15  ;;  %v3159_v15 = vor.u32 1.1754944e-38, %v3158_v22  ;;  %3573 = vmatpush.bf16.msra.mxu0 %v7182_v61  ;;  %v2057_v40 = vadd.f32 %v11348_v9, %v9742_v1  ;;  %v7405_v27 = vld [vmem:[#allocation12 + $0x2c0] sm:$0xf]  ;;  %v7413_v1 = vld [vmem:[#allocation12 + $0x2c8] sm:$0xf] }
 0xa8d   :  { %v10020_v62 = vpop.eup %8287  ;;  %3602 = vmatpush.bf16.msra.mxu1 %v7186_v2  ;;  %v7957_v2 = vld [vmem:[#allocation12 + $0x2ac] sm:$0xf]  ;;  %v7357_v60 = vld [vmem:[#allocation12 + $0x260] sm:$0xf]  ;;  %v7950_v30 = vld [vmem:[#allocation12 + $0x26c] sm:$0xf0] }
 0xa8e   :  { %v10022_v0 = vpop.eup %8289  ;;  %v3129_v35 = vmul.f32 %v10020_v62, %v10009_v42  ;;  %8291 = vrcp.f32 %v10018_v19  ;;  %vm3134_vm9 = vweird.f32 %v10020_v62  ;;  %vm3172_vm1 = vweird.f32 %v10018_v19  ;;  %v7949_v10 = vld [vmem:[#allocation12 + $0x26c] sm:$0xf]  ;;  %v7955_v9 = vld [vmem:[#allocation12 + $0x294] sm:$0xf0] }
 0xa8f   :  { %v3148_v13 = vmul.f32 %v10022_v0, %v10011_v58  ;;  %8293 = vtanh.f32 %v3122_v32  ;;  %vm3153_vm10 = vweird.f32 %v10022_v0  ;;  %vm3135_vm13 = vmor %vm3133_vm12, %vm3134_vm9  ;;  %v3140_v32 = vor.u32 1.1754944e-38, %v3139_v4  ;;  %3631 = vmatpush.bf16.msra.mxu2 %v7190_v11  ;;  %3660 = vmatpush.bf16.msra.mxu3 %v7194_v3  ;;  %v7399_v11 = vld [vmem:[#allocation12 + $0x2b8] sm:$0xf0] }
 0xa90   :  { %v3130_v24 = vsub.f32 1.0, %v3129_v35  ;;  %vm3154_vm14 = vmor %vm3152_vm11, %vm3153_vm10  ;;  %v3176_v18 = vand.u32 2147483647, %v10018_v19  ;;  %v10103_v3 = vor.u32 %v7957_v2, %v7399_v11 }
 0xa91   :  { %v3149_v53 = vsub.f32 1.0, %v3148_v13 }
 0xa92   :  { %v3131_v52 = vmul.f32 %v10020_v62, %v3130_v24  ;;  %vm3177_vm3 = vcmp.eq.f32.partialorder %v3176_v18, 8.507059e+37  ;;  %v7952_v18 = vld [vmem:[#allocation12 + $0x284] sm:$0xf] }
 0xa93   :  { %v3150_v8 = vmul.f32 %v10022_v0, %v3149_v53  ;;  %v10070_v53 = vor.u32 %v7964_v29, %v7423_v54 }
 0xa94   :  { %v8292_v49 = vpop.eup %8291  ;;  %v3132_v21 = vadd.f32 %v10020_v62, %v3131_v52  ;;  %v10078_v52 = vor.u32 %v7965_v16, %v7431_v51  ;;  %v7359_v51 = vld [vmem:[#allocation12 + $0x270] sm:$0xf0] }
 0xa95   :  { %v8294_v41 = vpop.eup %8293  ;;  %v3151_v6 = vadd.f32 %v10022_v0, %v3150_v8  ;;  %v3168_v63 = vmul.f32 %v8292_v49, %v10018_v19  ;;  %vm3173_vm0 = vweird.f32 %v8292_v49  ;;  %v2028_v8 = vadd.f32 %v11347_v57, %v9740_v38  ;;  %v7367_v57 = vld [vmem:[#allocation12 + $0x278] sm:$0xf0] }
 0xa96   :  { %v3136_v42 = vsel %vm3135_vm13, %v10020_v62, %v3132_v21  ;;  %vm3174_vm2 = vmor %vm3172_vm1, %vm3173_vm0  ;;  %v7960_v21 = vld [vmem:[#allocation12 + $0x2c4] sm:$0xf] }
 0xa97   :  { %v3141_v48 = vsel %vm10031_vm8, %v3140_v32, %v3136_v42  ;;  %v3155_v20 = vsel %vm3154_vm14, %v10022_v0, %v3151_v6  ;;  %v3169_v23 = vsub.f32 1.0, %v3168_v63  ;;  %v3178_v0 = vand.u32 2147483648, %v10018_v19  ;;  %v7421_v19 = vld [vmem:[#allocation12 + $0x2e0] sm:$0xf]  ;;  %v7958_v63 = vld [vmem:[#allocation12 + $0x2ac] sm:$0xf0] }
 0xa98   :  { %v3160_v5 = vsel %vm3157_vm15, %v3159_v15, %v3155_v20  ;;  %v3183_v35 = vmul.f32 %v8294_v41, %v3141_v48  ;;  %v10068_v25 = vor.u32 %v7966_v44, %v7421_v19  ;;  %v10090_v38 = vor.u32 %v7960_v21, %v7407_v37  ;;  %v7389_v6 = vld [vmem:[#allocation12 + $0x2a0] sm:$0xf]  ;;  %v7391_v42 = vld [vmem:[#allocation12 + $0x2b0] sm:$0xf0]  ;;  %v7397_v19 = vld [vmem:[#allocation12 + $0x2a8] sm:$0xf] }
 0xa99   :  { %v3182_v58 = vmul.f32 %v3160_v5, %v9996_v59  ;;  %v3170_v7 = vmul.f32 %v8292_v49, %v3169_v23  ;;  %v3179_v22 = vor.u32 1.1754944e-38, %v3178_v0  ;;  %v10092_v32 = vor.u32 %v7961_v45, %v7415_v14  ;;  %v11349_v48 = vld [vmem:[#allocation51_spill] sm:$0xff]  ;;  %v7963_v5 = vld [vmem:[#allocation12 + $0x2d4] sm:$0xf0]  ;;  %v7946_v21 = vld [vmem:[#allocation12 + $0x24c] sm:$0xf0] }
 0xa9a   :  { %v10097_v56 = vor.u32 %v7958_v63, %v7389_v6  ;;  %v2115_v20 = vadd.f32 %v11349_v48, %v9750_v46  ;;  %v10101_v23 = vor.u32 %v7956_v34, %v7391_v42  ;;  %v10107_v0 = vor.u32 %v7963_v5, %v7413_v1  ;;  %v7959_v44 = vld [vmem:[#allocation12 + $0x2b4] sm:$0xf0]  ;;  %v7944_v45 = vld [vmem:[#allocation12 + $0x244] sm:$0xf]  ;;  %v7343_v14 = vld [vmem:[#allocation12 + $0x250] sm:$0xf0] }
 0xa9b   :  { %v10056_v62 = vadd.f32 %v3183_v35, %v3182_v58  ;;  %v3171_v50 = vadd.f32 %v8292_v49, %v3170_v7  ;;  %v7373_v35 = vld [vmem:[#allocation12 + $0x280] sm:$0xf]  ;;  %v7954_v58 = vld [vmem:[#allocation12 + $0x28c] sm:$0xf0]  ;;  %v10119_v16 = vor.u32 %v7959_v44, %v7397_v19  ;;  %v7351_v6 = vld [vmem:[#allocation12 + $0x258] sm:$0xf0]  ;;  %v10144_v2 = vor.u32 %v7944_v45, %v7343_v14 }
 0xa9c   :  { %v10110_v46 = vor.u32 %v7954_v58, %v7373_v35  ;;  %v7365_v34 = vld [vmem:[#allocation12 + $0x268] sm:$0xf]  ;;  %v7951_v42 = vld [vmem:[#allocation12 + $0x274] sm:$0xf0]  ;;  %v7325_v48 = vld [vmem:[#allocation12 + $0x220] sm:$0xf] }
 0xa9d   :  { %8295 = vtanh.f32 %v10056_v62  ;;  %v3175_v13 = vsel %vm3174_vm2, %v8292_v49, %v3171_v50  ;;  %v7962_v49 = vld [vmem:[#allocation12 + $0x2cc] sm:$0xf0]  ;;  %v7941_v44 = vld [vmem:[#allocation12 + $0x22c] sm:$0xf] }
 0xa9e   :  { %v3180_v4 = vsel %vm3177_vm3, %v3179_v22, %v3175_v13  ;;  %v10088_v61 = vor.u32 %v7962_v49, %v7405_v27  ;;  %v7375_v13 = vld [vmem:[#allocation12 + $0x290] sm:$0xf0]  ;;  %v7953_v22 = vld [vmem:[#allocation12 + $0x28c] sm:$0xf]  ;;  %v10132_v27 = vor.u32 %v7949_v10, %v7367_v57  ;;  %v7341_v49 = vld [vmem:[#allocation12 + $0x240] sm:$0xf] }
 0xa9f   :  { %v10114_v29 = vor.u32 %v7952_v18, %v7375_v13  ;;  %v10140_v63 = vor.u32 %v7946_v21, %v7341_v49  ;;  %v11350_v35 = vld [vmem:[#allocation49_spill] sm:$0xff]  ;;  %v7940_v18 = vld [vmem:[#allocation12 + $0x224] sm:$0xf]  ;;  %v7309_v21 = vld [vmem:[#allocation12 + $0x200] sm:$0xf] }
 0xaa0   :  { %v2086_v58 = vadd.f32 %v11350_v35, %v11319_v28  ;;  %v7327_v13 = vld [vmem:[#allocation12 + $0x230] sm:$0xf0]  ;;  %v7335_v28 = vld [vmem:[#allocation12 + $0x238] sm:$0xf0]  ;;  %v7938_v45 = vld [vmem:[#allocation12 + $0x20c] sm:$0xf0] }
 0xaa1   :  { %v10177_v57 = vor.u32 %v7941_v44, %v7335_v28 }
 0xaa3   :  { %v8296_v59 = vpop.eup %8295 }
 0xaa4   :  { %v10062_v31 = vmul.f32 %v8296_v59, %v3180_v4 }
 0xaa6   :  { %v3192_v24 = vpack.c.bf16 %v10062_v31, %v10062_v31 }
 0xaa8   :  { %3201 = vmatmul.bf16.vlgmr.msrb.gmra.mxu0 %v3192_v24  ;;  %3214 = vmatmul.bf16.vlgmr.msrb.gmra.mxu1 %v3192_v24 }
 0xaa9   :  { %3227 = vmatmul.bf16.vlgmr.msrb.gmra.mxu2 %v3192_v24  ;;  %3240 = vmatmul.bf16.vlgmr.msrb.gmra.mxu3 %v3192_v24 }
 0xaaa   :  { %3883 = vmatpush.bf16.msrb.mxu0 %v10068_v25  ;;  %3896 = vmatpush.bf16.msrb.mxu1 %v10070_v53 }
 0xaab   :  { %3922 = vmatpush.bf16.msrb.mxu3 %v10078_v52  ;;  %3909 = vmatpush.bf16.msrb.mxu2 %v10081_v36 }
 0xaae   :  { %3884 = vmatpush.bf16.msrb.mxu0 %v10088_v61  ;;  %3897 = vmatpush.bf16.msrb.mxu1 %v10090_v38 }
 0xaaf   :  { %3923 = vmatpush.bf16.msrb.mxu3 %v10092_v32  ;;  %3910 = vmatpush.bf16.msrb.mxu2 %v10107_v0 }
 0xab2   :  { %3885 = vmatpush.bf16.msrb.mxu0 %v10097_v56  ;;  %3898 = vmatpush.bf16.msrb.mxu1 %v10101_v23 }
 0xab3   :  { %3924 = vmatpush.bf16.msrb.mxu3 %v10103_v3  ;;  %3911 = vmatpush.bf16.msrb.mxu2 %v10119_v16 }
 0xab6   :  { %3886 = vmatpush.bf16.msrb.mxu0 %v10110_v46  ;;  %3899 = vmatpush.bf16.msrb.mxu1 %v10114_v29 }
 0xab8   :  { %3574 = vmatmul.bf16.vlgmr.msra.gmra.mxu0 %v3393_v55  ;;  %3603 = vmatmul.bf16.vlgmr.msra.gmra.mxu1 %v3393_v55 }
 0xab9   :  { %3632 = vmatmul.bf16.vlgmr.msra.gmra.mxu2 %v3393_v55  ;;  %3661 = vmatmul.bf16.vlgmr.msra.gmra.mxu3 %v3393_v55  ;;  %v7383_v55 = vld [vmem:[#allocation12 + $0x298] sm:$0xf0] }
 0xaba   :  { %v10116_v54 = vor.u32 %v7953_v22, %v7383_v55 }
 0xabc   :  { %3925 = vmatpush.bf16.msrb.mxu3 %v10116_v54 }
 0xac0   :  { %3926 = vmatpush.bf16.msrb.mxu3 %v10132_v27 }
 0xac8   :  { %3579 = vmatmul.bf16.gmra.mxu0 %v3394_v43  ;;  %3608 = vmatmul.bf16.gmra.mxu1 %v3394_v43 }
 0xac9   :  { %3637 = vmatmul.bf16.gmra.mxu2 %v3394_v43  ;;  %3666 = vmatmul.bf16.gmra.mxu3 %v3394_v43  ;;  %v7948_v43 = vld [vmem:[#allocation12 + $0x264] sm:$0xf] }
 0xad8   :  { %3584 = vmatmul.bf16.gmra.mxu0 %v3395_v47  ;;  %3613 = vmatmul.bf16.gmra.mxu1 %v3395_v47 }
 0xad9   :  { %3642 = vmatmul.bf16.gmra.mxu2 %v3395_v47  ;;  %3671 = vmatmul.bf16.gmra.mxu3 %v3395_v47 }
 0xb25   :  { %v3202_v39 = vpop.f32.mrf.mxu0  ;;  %v3215_v26 = vpop.f32.mrf.mxu1 }
 0xb26   :  { %v3245_v17 = vadd.f32 %v3202_v39, %v2028_v8  ;;  %v3246_v33 = vadd.f32 %v3215_v26, %v2057_v40  ;;  %v7381_v8 = vld [vmem:[#allocation12 + $0x288] sm:$0xf]  ;;  %v10124_v26 = vor.u32 %v7950_v30, %v7357_v60 }
 0xb27   :  { %v10136_v37 = vor.u32 %v7955_v9, %v7381_v8  ;;  %v7333_v8 = vld [vmem:[#allocation12 + $0x228] sm:$0xf]  ;;  %v7943_v9 = vld [vmem:[#allocation12 + $0x234] sm:$0xf0] }
 0xb28   :  { %v7176_v41 = vmul.f32 -1.442695, %v3245_v17  ;;  %v7177_v15 = vmul.f32 -1.442695, %v3246_v33  ;;  %v10130_v33 = vor.u32 %v7948_v43, %v7359_v51  ;;  %3887 = vmatpush.bf16.msrb.mxu0 %v10124_v26  ;;  %v10168_v43 = vor.u32 %v7940_v18, %v7327_v13  ;;  %v7939_v18 = vld [vmem:[#allocation12 + $0x214] sm:$0xf0] }
 0xb29   :  { %3912 = vmatpush.bf16.msrb.mxu2 %v10136_v37  ;;  %v7319_v13 = vld [vmem:[#allocation12 + $0x218] sm:$0xf0] }
 0xb2a   :  { %8297 = vpow2.f32 %v7176_v41  ;;  %v7945_v41 = vld [vmem:[#allocation12 + $0x24c] sm:$0xf]  ;;  %3900 = vmatpush.bf16.msrb.mxu1 %v10130_v33 }
 0xb2b   :  { %8299 = vpow2.f32 %v7177_v15  ;;  %v10146_v11 = vor.u32 %v7945_v41, %v7351_v6 }
 0xb2c   :  { %v10105_v7 = vpop.f32.mrf.mxu2  ;;  %v3241_v50 = vpop.f32.mrf.mxu3  ;;  %3888 = vmatpush.bf16.msrb.mxu0 %v10140_v63 }
 0xb2d   :  { %v3248_v59 = vadd.f32 %v3241_v50, %v2115_v20  ;;  %v3204_v4 = vpop.f32.mrf.mxu0  ;;  %v3217_v24 = vpop.f32.mrf.mxu1  ;;  %v7942_v20 = vld [vmem:[#allocation12 + $0x22c] sm:$0xf0]  ;;  %v10151_v50 = vor.u32 %v7951_v42, %v7365_v34  ;;  %v3247_v55 = vadd.f32 %v10105_v7, %v2086_v58  ;;  %3927 = vmatpush.bf16.msrb.mxu3 %v10146_v11  ;;  %v10189_v34 = vor.u32 %v7938_v45, %v7309_v21  ;;  %v7317_v58 = vld [vmem:[#allocation12 + $0x208] sm:$0xf] }
 0xb2e   :  { %v7947_v4 = vld [vmem:[#allocation12 + $0x254] sm:$0xf0]  ;;  %v10159_v19 = vor.u32 %v7942_v20, %v7325_v48  ;;  %3901 = vmatpush.bf16.msrb.mxu1 %v10144_v2  ;;  %v10193_v48 = vor.u32 %v7943_v9, %v7333_v8  ;;  %v7937_v20 = vld [vmem:[#allocation12 + $0x20c] sm:$0xf] }
 0xb2f   :  { %v7178_v47 = vmul.f32 -1.442695, %v3248_v59  ;;  %v7349_v59 = vld [vmem:[#allocation12 + $0x248] sm:$0xf]  ;;  %3913 = vmatpush.bf16.msrb.mxu2 %v10151_v50  ;;  %v10203_v44 = vor.u32 %v7937_v20, %v7319_v13 }
 0xb30   :  { %v8298_v12 = vpop.eup %8297  ;;  %v10174_v51 = vor.u32 %v7947_v4, %v7349_v59  ;;  %3889 = vmatpush.bf16.msrb.mxu0 %v10159_v19 }
 0xb31   :  { %v8300_v40 = vpop.eup %8299  ;;  %v10121_v39 = vadd.f32 1.0, %v8298_v12  ;;  %8301 = vpow2.f32 %v7178_v47  ;;  %3928 = vmatpush.bf16.msrb.mxu3 %v10177_v57 }
 0xb32   :  { %v10126_v17 = vadd.f32 1.0, %v8300_v40  ;;  %3902 = vmatpush.bf16.msrb.mxu1 %v10168_v43 }
 0xb33   :  { %8303 = vrcp.f32 %v10121_v39  ;;  %v3262_v47 = vand.u32 2147483647, %v10121_v39  ;;  %v3264_v12 = vand.u32 2147483648, %v10121_v39  ;;  %3914 = vmatpush.bf16.msrb.mxu2 %v10174_v51  ;;  %vm3258_vm7 = vweird.f32 %v10121_v39 }
 0xb34   :  { %8305 = vrcp.f32 %v10126_v17  ;;  %v3230_v15 = vpop.f32.mrf.mxu2  ;;  %v3243_v1 = vpop.f32.mrf.mxu3  ;;  %v3283_v49 = vand.u32 2147483648, %v10126_v17  ;;  %v3281_v41 = vand.u32 2147483647, %v10126_v17  ;;  %vm3277_vm6 = vweird.f32 %v10126_v17  ;;  %3890 = vmatpush.bf16.msrb.mxu0 %v10189_v34 }
 0xb35   :  { %v7936_v15 = vld [vmem:[#allocation12 + $0x204] sm:$0xf]  ;;  %v7311_v1 = vld [vmem:[#allocation12 + $0x210] sm:$0xf0]  ;;  %v3265_v59 = vor.u32 1.1754944e-38, %v3264_v12  ;;  %vm3263_vm10 = vcmp.eq.f32.partialorder %v3262_v47, 8.507059e+37  ;;  %v10212_v12 = vor.u32 %v7939_v18, %v7317_v58  ;;  %3929 = vmatpush.bf16.msrb.mxu3 %v10203_v44  ;;  %v3604_v20 = vpop.f32.mrf.mxu1 }
 0xb36   :  { %v10191_v42 = vor.u32 %v7936_v15, %v7311_v1  ;;  %vm3282_vm11 = vcmp.eq.f32.partialorder %v3281_v41, 8.507059e+37 }
 0xb37   :  { %v8302_v5 = vpop.eup %8301  ;;  %3915 = vmatpush.bf16.msrb.mxu2 %v10193_v48 }
 0xb38   :  { %v10153_v22 = vadd.f32 1.0, %v8302_v5  ;;  %3903 = vmatpush.bf16.msrb.mxu1 %v10191_v42  ;;  %4008 = vmatpush.bf16.msra.mxu0 %v10068_v25 }
 0xb39   :  { %v10155_v24 = vpop.eup %8303  ;;  %4047 = vmatpush.bf16.msra.mxu3 %v10078_v52 }
 0xb3a   :  { %v10161_v60 = vpop.eup %8305  ;;  %v3254_v30 = vmul.f32 %v10155_v24, %v10121_v39  ;;  %8307 = vrcp.f32 %v10153_v22  ;;  %vm3259_vm5 = vweird.f32 %v10155_v24  ;;  %vm3297_vm13 = vweird.f32 %v10153_v22 }
 0xb3b   :  { %v3273_v7 = vmul.f32 %v10161_v60, %v10126_v17  ;;  %8309 = vtanh.f32 %v3247_v55  ;;  %vm3278_vm4 = vweird.f32 %v10161_v60  ;;  %vm3260_vm8 = vmor %vm3258_vm7, %vm3259_vm5  ;;  %v3284_v17 = vor.u32 1.1754944e-38, %v3283_v49  ;;  %3916 = vmatpush.bf16.msrb.mxu2 %v10212_v12 }
 0xb3c   :  { %v3255_v10 = vsub.f32 1.0, %v3254_v30  ;;  %vm3279_vm9 = vmor %vm3277_vm6, %vm3278_vm4  ;;  %4021 = vmatpush.bf16.msra.mxu1 %v10070_v53  ;;  %4009 = vmatpush.bf16.msra.mxu0 %v10088_v61  ;;  %v3303_v49 = vand.u32 2147483648, %v10153_v22 }
 0xb3d   :  { %v3274_v40 = vsub.f32 1.0, %v3273_v7  ;;  %4048 = vmatpush.bf16.msra.mxu3 %v10092_v32  ;;  %v10286_v18 = vpop.f32.mrf.mxu1 }
 0xb3e   :  { %v3256_v14 = vmul.f32 %v10155_v24, %v3255_v10  ;;  %v3304_v45 = vor.u32 1.1754944e-38, %v3303_v49 }
 0xb3f   :  { %v3275_v6 = vmul.f32 %v10161_v60, %v3274_v40  ;;  %4034 = vmatpush.bf16.msra.mxu2 %v10081_v36 }
 0xb40   :  { %v8308_v5 = vpop.eup %8307  ;;  %v3257_v35 = vadd.f32 %v10155_v24, %v3256_v14  ;;  %4022 = vmatpush.bf16.msra.mxu1 %v10090_v38  ;;  %4010 = vmatpush.bf16.msra.mxu0 %v10097_v56 }
 0xb41   :  { %v3276_v4 = vadd.f32 %v10161_v60, %v3275_v6  ;;  %v3293_v55 = vmul.f32 %v8308_v5, %v10153_v22  ;;  %v8310_v28 = vpop.eup %8309  ;;  %vm3298_vm12 = vweird.f32 %v8308_v5  ;;  %4049 = vmatpush.bf16.msra.mxu3 %v10103_v3  ;;  %v3575_v6 = vpop.f32.mrf.mxu0 }
 0xb42   :  { %v3261_v39 = vsel %vm3260_vm8, %v10155_v24, %v3257_v35  ;;  %vm3299_vm14 = vmor %vm3297_vm13, %vm3298_vm12  ;;  %v3662_v35 = vpop.f32.mrf.mxu3 }
 0xb43   :  { %v3266_v30 = vsel %vm3263_vm10, %v3265_v59, %v3261_v39  ;;  %v3280_v7 = vsel %vm3279_vm9, %v10161_v60, %v3276_v4  ;;  %v3294_v10 = vsub.f32 1.0, %v3293_v55  ;;  %4035 = vmatpush.bf16.msra.mxu2 %v10107_v0 }
 0xb44   :  { %v3285_v8 = vsel %vm3282_vm11, %v3284_v17, %v3280_v7  ;;  %v3308_v9 = vmul.f32 %v8310_v28, %v3266_v30  ;;  %4023 = vmatpush.bf16.msra.mxu1 %v10101_v23  ;;  %4011 = vmatpush.bf16.msra.mxu0 %v10110_v46 }
 0xb45   :  { %v3307_v24 = vmul.f32 %v3285_v8, %v10056_v62  ;;  %v3295_v47 = vmul.f32 %v8308_v5, %v3294_v10  ;;  %v3301_v62 = vand.u32 2147483647, %v10153_v22  ;;  %4050 = vmatpush.bf16.msra.mxu3 %v10116_v54  ;;  %v10294_v55 = vpop.f32.mrf.mxu1 }
 0xb46   :  { %11353 = vst [vmem:[#allocation31_spill] sm:$0xff] %v10294_v55 }
 0xb47   :  { %v3309_v40 = vadd.f32 %v3308_v9, %v3307_v24  ;;  %v3296_v60 = vadd.f32 %v8308_v5, %v3295_v47  ;;  %vm3302_vm15 = vcmp.eq.f32.partialorder %v3301_v62, 8.507059e+37  ;;  %4036 = vmatpush.bf16.msra.mxu2 %v10119_v16 }
 0xb48   :  { %4024 = vmatpush.bf16.msra.mxu1 %v10114_v29  ;;  %4012 = vmatpush.bf16.msra.mxu0 %v10124_v26 }
 0xb49   :  { %8311 = vtanh.f32 %v3309_v40  ;;  %3316 = vst [vmem:[#allocation19 + $0x8] sm:$0xff] %v3309_v40  ;;  %v3300_v21 = vsel %vm3299_vm14, %v8308_v5, %v3296_v60  ;;  %4051 = vmatpush.bf16.msra.mxu3 %v10132_v27  ;;  %v3633_v5 = vpop.f32.mrf.mxu2  ;;  %v10284_v58 = vpop.f32.mrf.mxu0 }
 0xb4a   :  { %v3305_v41 = vsel %vm3302_vm15, %v3304_v45, %v3300_v21  ;;  %v10290_v59 = vpop.f32.mrf.mxu3 }
 0xb4b   :  { %4037 = vmatpush.bf16.msra.mxu2 %v10136_v37 }
 0xb4c   :  { %4025 = vmatpush.bf16.msra.mxu1 %v10130_v33  ;;  %4013 = vmatpush.bf16.msra.mxu0 %v10140_v63 }
 0xb4d   :  { %4052 = vmatpush.bf16.msra.mxu3 %v10146_v11  ;;  %v10302_v30 = vpop.f32.mrf.mxu1 }
 0xb4e   :  { %11357 = vst [vmem:[#allocation36_spill] sm:$0xff] %v10302_v30 }
 0xb4f   :  { %v8312_v14 = vpop.eup %8311  ;;  %4038 = vmatpush.bf16.msra.mxu2 %v10151_v50 }
 0xb50   :  { %v3311_v15 = vmul.f32 %v8312_v14, %v3305_v41  ;;  %4026 = vmatpush.bf16.msra.mxu1 %v10144_v2  ;;  %4014 = vmatpush.bf16.msra.mxu0 %v10159_v19 }
 0xb51   :  { %4053 = vmatpush.bf16.msra.mxu3 %v10177_v57  ;;  %v10288_v13 = vpop.f32.mrf.mxu2  ;;  %v10292_v4 = vpop.f32.mrf.mxu0 }
 0xb52   :  { %3314 = vst [vmem:[#allocation17 + $0x8] sm:$0xff] %v3311_v15  ;;  %v3396_v22 = vpack.c.bf16 %v3311_v15, %v10062_v31  ;;  %v3715_v31 = vld [vmem:[#allocation7 + $0x10] sm:$0xff]  ;;  %v10298_v39 = vpop.f32.mrf.mxu3  ;;  %v3384_v15 = vld [vmem:[#allocation13 + $0x8] sm:$0xf] }
 0xb53   :  { %4039 = vmatpush.bf16.msra.mxu2 %v10174_v51  ;;  %v3722_v1 = vpack.c.bf16 %v3715_v31, %v3715_v31  ;;  %11351 = vst [vmem:[#allocation28_spill] sm:$0xff] %v10288_v13 }
 0xb54   :  { %3589 = vmatmul.bf16.gmra.mxu0 %v3396_v22  ;;  %3618 = vmatmul.bf16.gmra.mxu1 %v3396_v22  ;;  %11352 = vst [vmem:[#allocation32_spill] sm:$0xff] %v10292_v4 }
 0xb55   :  { %3647 = vmatmul.bf16.gmra.mxu2 %v3396_v22  ;;  %3676 = vmatmul.bf16.gmra.mxu3 %v3396_v22  ;;  %11355 = vst [vmem:[#allocation33_spill] sm:$0xff] %v10298_v39  ;;  %v10310_v9 = vpop.f32.mrf.mxu1 }
 0xb56   :  { %4027 = vmatpush.bf16.msra.mxu1 %v10168_v43  ;;  %4015 = vmatpush.bf16.msra.mxu0 %v10189_v34  ;;  %11361 = vst [vmem:[#allocation39_spill] sm:$0xff] %v10310_v9 }
 0xb57   :  { %4040 = vmatpush.bf16.msra.mxu2 %v10193_v48  ;;  %4054 = vmatpush.bf16.msra.mxu3 %v10203_v44 }
 0xb59   :  { %v10296_v17 = vpop.f32.mrf.mxu2  ;;  %v10300_v28 = vpop.f32.mrf.mxu0 }
 0xb5a   :  { %4028 = vmatpush.bf16.msra.mxu1 %v10191_v42  ;;  %11354 = vst [vmem:[#allocation30_spill] sm:$0xff] %v10296_v17  ;;  %v10306_v10 = vpop.f32.mrf.mxu3 }
 0xb5b   :  { %4041 = vmatpush.bf16.msra.mxu2 %v10212_v12  ;;  %11356 = vst [vmem:[#allocation35_spill] sm:$0xff] %v10300_v28 }
 0xb5c   :  { %11359 = vst [vmem:[#allocation37_spill] sm:$0xff] %v10306_v10 }
 0xb5d   :  { %v10318_v60 = vpop.f32.mrf.mxu1 }
 0xb5e   :  { %11365 = vst [vmem:[#allocation44_spill] sm:$0xff] %v10318_v60  ;;  %v10338_v60 = vperm.slane %v3384_v15, 1 }
 0xb61   :  { %v10304_v7 = vpop.f32.mrf.mxu2  ;;  %v10308_v8 = vpop.f32.mrf.mxu0 }
 0xb62   :  { %11358 = vst [vmem:[#allocation34_spill] sm:$0xff] %v10304_v7  ;;  %v10314_v47 = vpop.f32.mrf.mxu3 }
 0xb63   :  { %11360 = vst [vmem:[#allocation40_spill] sm:$0xff] %v10308_v8 }
 0xb64   :  { %3891 = vmatmul.bf16.vlgmr.msrb.gmra.mxu0 %v3722_v1  ;;  %3904 = vmatmul.bf16.vlgmr.msrb.gmra.mxu1 %v3722_v1  ;;  %11363 = vst [vmem:[#allocation41_spill] sm:$0xff] %v10314_v47  ;;  %v10346_v47 = vperm.slane %v3384_v15, 3 }
 0xb65   :  { %3917 = vmatmul.bf16.vlgmr.msrb.gmra.mxu2 %v3722_v1  ;;  %3930 = vmatmul.bf16.vlgmr.msrb.gmra.mxu3 %v3722_v1  ;;  %v10336_v1 = vperm.slane %v3384_v15, 0 }
 0xb66   :  { %4133 = vmatpush.bf16.msrb.mxu0 %v10068_v25  ;;  %4146 = vmatpush.bf16.msrb.mxu1 %v10070_v53  ;;  %v3663_v9 = vadd.f32 %v3662_v35, %v10346_v47 }
 0xb67   :  { %4159 = vmatpush.bf16.msrb.mxu2 %v10081_v36  ;;  %4172 = vmatpush.bf16.msrb.mxu3 %v10078_v52 }
 0xb69   :  { %v10312_v24 = vpop.f32.mrf.mxu2  ;;  %v10316_v40 = vpop.f32.mrf.mxu0 }
 0xb6a   :  { %4134 = vmatpush.bf16.msrb.mxu0 %v10088_v61  ;;  %4147 = vmatpush.bf16.msrb.mxu1 %v10090_v38  ;;  %11362 = vst [vmem:[#allocation38_spill] sm:$0xff] %v10312_v24  ;;  %v10322_v62 = vpop.f32.mrf.mxu3 }
 0xb6b   :  { %4160 = vmatpush.bf16.msrb.mxu2 %v10107_v0  ;;  %4173 = vmatpush.bf16.msrb.mxu3 %v10092_v32  ;;  %11364 = vst [vmem:[#allocation43_spill] sm:$0xff] %v10316_v40 }
 0xb6c   :  { %11367 = vst [vmem:[#allocation45_spill] sm:$0xff] %v10322_v62  ;;  %v3605_v62 = vadd.f32 %v3604_v20, %v10338_v60 }
 0xb6e   :  { %4135 = vmatpush.bf16.msrb.mxu0 %v10097_v56  ;;  %4148 = vmatpush.bf16.msrb.mxu1 %v10101_v23 }
 0xb6f   :  { %4161 = vmatpush.bf16.msrb.mxu2 %v10119_v16  ;;  %4174 = vmatpush.bf16.msrb.mxu3 %v10103_v3 }
 0xb71   :  { %v10320_v49 = vpop.f32.mrf.mxu2 }
 0xb72   :  { %4136 = vmatpush.bf16.msrb.mxu0 %v10110_v46  ;;  %4149 = vmatpush.bf16.msrb.mxu1 %v10114_v29  ;;  %11366 = vst [vmem:[#allocation42_spill] sm:$0xff] %v10320_v49  ;;  %v3576_v49 = vadd.f32 %v3575_v6, %v10336_v1 }
 0xb73   :  { %4162 = vmatpush.bf16.msrb.mxu2 %v10136_v37  ;;  %4175 = vmatpush.bf16.msrb.mxu3 %v10116_v54 }
 0xb76   :  { %4137 = vmatpush.bf16.msrb.mxu0 %v10124_v26  ;;  %4150 = vmatpush.bf16.msrb.mxu1 %v10130_v33 }
 0xb77   :  { %4163 = vmatpush.bf16.msrb.mxu2 %v10151_v50  ;;  %4176 = vmatpush.bf16.msrb.mxu3 %v10132_v27 }
 0xb7a   :  { %4138 = vmatpush.bf16.msrb.mxu0 %v10140_v63  ;;  %4151 = vmatpush.bf16.msrb.mxu1 %v10144_v2 }
 0xb7b   :  { %4164 = vmatpush.bf16.msrb.mxu2 %v10174_v51  ;;  %4177 = vmatpush.bf16.msrb.mxu3 %v10146_v11 }
 0xb7e   :  { %4139 = vmatpush.bf16.msrb.mxu0 %v10159_v19  ;;  %4152 = vmatpush.bf16.msrb.mxu1 %v10168_v43 }
 0xb7f   :  { %4165 = vmatpush.bf16.msrb.mxu2 %v10193_v48  ;;  %4178 = vmatpush.bf16.msrb.mxu3 %v10177_v57 }
 0xb82   :  { %4140 = vmatpush.bf16.msrb.mxu0 %v10189_v34  ;;  %4153 = vmatpush.bf16.msrb.mxu1 %v10191_v42 }
 0xb83   :  { %4166 = vmatpush.bf16.msrb.mxu2 %v10212_v12  ;;  %4179 = vmatpush.bf16.msrb.mxu3 %v10203_v44 }
 0xbd1   :  { %v10324_v21 = vpop.f32.mrf.mxu0  ;;  %v10326_v45 = vpop.f32.mrf.mxu1 }
 0xbd2   :  { %11368 = vst [vmem:[#allocation48_spill] sm:$0xff] %v10324_v21 }
 0xbd3   :  { %11369 = vst [vmem:[#allocation29_spill] sm:$0xff] %v10326_v45 }
 0xbd8   :  { %v10328_v14 = vpop.f32.mrf.mxu2  ;;  %v10330_v41 = vpop.f32.mrf.mxu3 }
 0xbd9   :  { %11370 = vst [vmem:[#allocation46_spill] sm:$0xff] %v10328_v14  ;;  %v10332_v22 = vpop.f32.mrf.mxu0  ;;  %v10334_v31 = vpop.f32.mrf.mxu1 }
 0xbda   :  { %11371 = vst [vmem:[#allocation50_spill] sm:$0xff] %v10330_v41 }
 0xbdb   :  { %11372 = vst [vmem:[#allocation27_spill] sm:$0xff] %v10332_v22 }
 0xbdc   :  { %11373 = vst [vmem:[#allocation26_spill] sm:$0xff] %v10334_v31 }
 0xbe0   :  { %v10342_v21 = vpop.f32.mrf.mxu2  ;;  %v10344_v45 = vpop.f32.mrf.mxu3 }
 0xbe1   :  { %11374 = vst [vmem:[#allocation47_spill] sm:$0xff] %v10342_v21  ;;  %v3892_v14 = vpop.f32.mrf.mxu0  ;;  %v3905_v40 = vpop.f32.mrf.mxu1 }
 0xbe2   :  { %11375 = vst [vmem:[#allocation51_spill] sm:$0xff] %v10344_v45  ;;  %v3935_v41 = vadd.f32 %v3892_v14, %v3576_v49  ;;  %v3936_v24 = vadd.f32 %v3905_v40, %v3605_v62  ;;  %v10349_v40 = vperm.slane %v3384_v15, 2 }
 0xbe4   :  { %v7435_v22 = vmul.f32 -1.442695, %v3935_v41  ;;  %v7436_v31 = vmul.f32 -1.442695, %v3936_v24  ;;  %11376 = vst [vmem:[#allocation49_spill] sm:$0xff] %v10349_v40  ;;  %v3634_v35 = vadd.f32 %v3633_v5, %v10349_v40 }
 0xbe6   :  { %8313 = vpow2.f32 %v7435_v22 }
 0xbe7   :  { %8315 = vpow2.f32 %v7436_v31 }
 0xbe8   :  { %v3918_v8 = vpop.f32.mrf.mxu2  ;;  %v3931_v6 = vpop.f32.mrf.mxu3 }
 0xbe9   :  { %v3938_v7 = vadd.f32 %v3931_v6, %v3663_v9  ;;  %v3894_v20 = vpop.f32.mrf.mxu0  ;;  %v3907_v10 = vpop.f32.mrf.mxu1  ;;  %v3937_v9 = vadd.f32 %v3918_v8, %v3634_v35 }
 0xbeb   :  { %v7437_v21 = vmul.f32 -1.442695, %v3938_v7 }
 0xbec   :  { %v8314_v30 = vpop.eup %8313 }
 0xbed   :  { %v8316_v45 = vpop.eup %8315  ;;  %v3942_v28 = vadd.f32 1.0, %v8314_v30  ;;  %8317 = vpow2.f32 %v7437_v21 }
 0xbee   :  { %v3961_v49 = vadd.f32 1.0, %v8316_v45 }
 0xbef   :  { %8319 = vrcp.f32 %v3942_v28  ;;  %v3954_v21 = vand.u32 2147483648, %v3942_v28  ;;  %v3952_v20 = vand.u32 2147483647, %v3942_v28  ;;  %vm3948_vm2 = vweird.f32 %v3942_v28 }
 0xbf0   :  { %8321 = vrcp.f32 %v3961_v49  ;;  %v3933_v24 = vpop.f32.mrf.mxu3  ;;  %v3920_v62 = vpop.f32.mrf.mxu2  ;;  %v3973_v45 = vand.u32 2147483648, %v3961_v49  ;;  %vm3967_vm3 = vweird.f32 %v3961_v49 }
 0xbf1   :  { %v3971_v62 = vand.u32 2147483647, %v3961_v49  ;;  %v3955_v8 = vor.u32 1.1754944e-38, %v3954_v21  ;;  %vm3953_vm6 = vcmp.eq.f32.partialorder %v3952_v20, 8.507059e+37 }
 0xbf3   :  { %v8318_v14 = vpop.eup %8317  ;;  %vm3972_vm7 = vcmp.eq.f32.partialorder %v3971_v62, 8.507059e+37 }
 0xbf4   :  { %v3981_v41 = vadd.f32 1.0, %v8318_v14 }
 0xbf5   :  { %v8320_v22 = vpop.eup %8319 }
 0xbf6   :  { %v8322_v31 = vpop.eup %8321  ;;  %v3944_v10 = vmul.f32 %v8320_v22, %v3942_v28  ;;  %8323 = vrcp.f32 %v3981_v41  ;;  %vm3949_vm0 = vweird.f32 %v8320_v22  ;;  %v3993_v21 = vand.u32 2147483648, %v3981_v41 }
 0xbf7   :  { %v3963_v7 = vmul.f32 %v8322_v31, %v3961_v49  ;;  %8325 = vtanh.f32 %v3937_v9  ;;  %vm3968_vm1 = vweird.f32 %v8322_v31  ;;  %vm3950_vm4 = vmor %vm3948_vm2, %vm3949_vm0  ;;  %vm3987_vm9 = vweird.f32 %v3981_v41 }
 0xbf8   :  { %v3945_v6 = vsub.f32 1.0, %v3944_v10  ;;  %vm3969_vm5 = vmor %vm3967_vm3, %vm3968_vm1  ;;  %v3974_v10 = vor.u32 1.1754944e-38, %v3973_v45  ;;  %v3991_v45 = vand.u32 2147483647, %v3981_v41  ;;  %v3994_v20 = vor.u32 1.1754944e-38, %v3993_v21 }
 0xbf9   :  { %v3964_v30 = vsub.f32 1.0, %v3963_v7  ;;  %v3717_v7 = vld [vmem:[#allocation9 + $0x10] sm:$0xff] }
 0xbfa   :  { %v3946_v15 = vmul.f32 %v8320_v22, %v3945_v6  ;;  %vm3992_vm11 = vcmp.eq.f32.partialorder %v3991_v45, 8.507059e+37 }
 0xbfb   :  { %v3965_v24 = vmul.f32 %v8322_v31, %v3964_v30 }
 0xbfc   :  { %v8324_v17 = vpop.eup %8323  ;;  %v3947_v5 = vadd.f32 %v8320_v22, %v3946_v15 }
 0xbfd   :  { %v3966_v14 = vadd.f32 %v8322_v31, %v3965_v24  ;;  %v3983_v35 = vmul.f32 %v8324_v17, %v3981_v41  ;;  %v8326_v9 = vpop.eup %8325  ;;  %vm3988_vm8 = vweird.f32 %v8324_v17 }
 0xbfe   :  { %v3951_v39 = vsel %vm3950_vm4, %v8320_v22, %v3947_v5  ;;  %vm3989_vm10 = vmor %vm3987_vm9, %vm3988_vm8 }
 0xbff   :  { %v3956_v6 = vsel %vm3953_vm6, %v3955_v8, %v3951_v39  ;;  %v3970_v55 = vsel %vm3969_vm5, %v8322_v31, %v3966_v14  ;;  %v3984_v30 = vsub.f32 1.0, %v3983_v35  ;;  %v3665_v14 = vadd.f32 %v10290_v59, %v10346_v47 }
 0xc00   :  { %v3975_v4 = vsel %vm3972_vm7, %v3974_v10, %v3970_v55  ;;  %v3998_v13 = vmul.f32 %v8326_v9, %v3956_v6  ;;  %v3607_v55 = vadd.f32 %v10286_v18, %v10338_v60 }
 0xc01   :  { %v3997_v40 = vmul.f32 %v3975_v4, %v3717_v7  ;;  %v3985_v15 = vmul.f32 %v8324_v17, %v3984_v30 }
 0xc03   :  { %v10352_v28 = vadd.f32 %v3998_v13, %v3997_v40  ;;  %v3986_v49 = vadd.f32 %v8324_v17, %v3985_v15  ;;  %v3578_v13 = vadd.f32 %v10284_v58, %v10336_v1 }
 0xc05   :  { %8327 = vtanh.f32 %v10352_v28  ;;  %v3990_v22 = vsel %vm3989_vm10, %v8324_v17, %v3986_v49 }
 0xc06   :  { %v3995_v31 = vsel %vm3992_vm11, %v3994_v20, %v3990_v22  ;;  %v11377_v20 = vld [vmem:[#allocation49_spill] sm:$0xff] }
 0xc0b   :  { %v8328_v39 = vpop.eup %8327 }
 0xc0c   :  { %v10355_v24 = vmul.f32 %v8328_v39, %v3995_v31  ;;  %v11378_v39 = vld [vmem:[#allocation28_spill] sm:$0xff] }
 0xc0d   :  { %v3636_v59 = vadd.f32 %v11378_v39, %v11377_v20 }
 0xc0e   :  { %v4007_v4 = vpack.c.bf16 %v10355_v24, %v10355_v24 }
 0xc10   :  { %4016 = vmatmul.bf16.vlgmr.msra.gmra.mxu0 %v4007_v4  ;;  %4029 = vmatmul.bf16.vlgmr.msra.gmra.mxu1 %v4007_v4 }
 0xc11   :  { %4042 = vmatmul.bf16.vlgmr.msra.gmra.mxu2 %v4007_v4  ;;  %4055 = vmatmul.bf16.vlgmr.msra.gmra.mxu3 %v4007_v4 }
 0xc12   :  { %4258 = vmatpush.bf16.msra.mxu0 %v10068_v25  ;;  %4271 = vmatpush.bf16.msra.mxu1 %v10070_v53 }
 0xc13   :  { %4284 = vmatpush.bf16.msra.mxu2 %v10081_v36  ;;  %4297 = vmatpush.bf16.msra.mxu3 %v10078_v52 }
 0xc16   :  { %4259 = vmatpush.bf16.msra.mxu0 %v10088_v61  ;;  %4272 = vmatpush.bf16.msra.mxu1 %v10090_v38 }
 0xc17   :  { %4285 = vmatpush.bf16.msra.mxu2 %v10107_v0  ;;  %4298 = vmatpush.bf16.msra.mxu3 %v10092_v32 }
 0xc1a   :  { %4260 = vmatpush.bf16.msra.mxu0 %v10097_v56  ;;  %4273 = vmatpush.bf16.msra.mxu1 %v10101_v23 }
 0xc1b   :  { %4286 = vmatpush.bf16.msra.mxu2 %v10119_v16  ;;  %4299 = vmatpush.bf16.msra.mxu3 %v10103_v3 }
 0xc1e   :  { %4261 = vmatpush.bf16.msra.mxu0 %v10110_v46  ;;  %4274 = vmatpush.bf16.msra.mxu1 %v10114_v29 }
 0xc1f   :  { %4287 = vmatpush.bf16.msra.mxu2 %v10136_v37  ;;  %4300 = vmatpush.bf16.msra.mxu3 %v10116_v54 }
 0xc22   :  { %4262 = vmatpush.bf16.msra.mxu0 %v10124_v26  ;;  %4275 = vmatpush.bf16.msra.mxu1 %v10130_v33 }
 0xc23   :  { %4288 = vmatpush.bf16.msra.mxu2 %v10151_v50  ;;  %4301 = vmatpush.bf16.msra.mxu3 %v10132_v27 }
 0xc26   :  { %4263 = vmatpush.bf16.msra.mxu0 %v10140_v63  ;;  %4276 = vmatpush.bf16.msra.mxu1 %v10144_v2 }
 0xc27   :  { %4289 = vmatpush.bf16.msra.mxu2 %v10174_v51  ;;  %4302 = vmatpush.bf16.msra.mxu3 %v10146_v11 }
 0xc2a   :  { %4264 = vmatpush.bf16.msra.mxu0 %v10159_v19  ;;  %4277 = vmatpush.bf16.msra.mxu1 %v10168_v43 }
 0xc2b   :  { %4290 = vmatpush.bf16.msra.mxu2 %v10193_v48  ;;  %4303 = vmatpush.bf16.msra.mxu3 %v10177_v57 }
 0xc2e   :  { %4265 = vmatpush.bf16.msra.mxu0 %v10189_v34  ;;  %4278 = vmatpush.bf16.msra.mxu1 %v10191_v42 }
 0xc2f   :  { %4291 = vmatpush.bf16.msra.mxu2 %v10212_v12  ;;  %4304 = vmatpush.bf16.msra.mxu3 %v10203_v44 }
 0xc8d   :  { %v4017_v17 = vpop.f32.mrf.mxu0  ;;  %v4030_v40 = vpop.f32.mrf.mxu1 }
 0xc8e   :  { %v4060_v41 = vadd.f32 %v4017_v17, %v3578_v13  ;;  %v4061_v62 = vadd.f32 %v4030_v40, %v3607_v55 }
 0xc90   :  { %v7438_v5 = vmul.f32 -1.442695, %v4060_v41  ;;  %v7439_v8 = vmul.f32 -1.442695, %v4061_v62 }
 0xc92   :  { %8329 = vpow2.f32 %v7438_v5 }
 0xc93   :  { %8331 = vpow2.f32 %v7439_v8 }
 0xc94   :  { %v4043_v35 = vpop.f32.mrf.mxu2  ;;  %v4056_v10 = vpop.f32.mrf.mxu3 }
 0xc95   :  { %v4063_v7 = vadd.f32 %v4056_v10, %v3665_v14  ;;  %v4019_v9 = vpop.f32.mrf.mxu0  ;;  %v4032_v6 = vpop.f32.mrf.mxu1  ;;  %v4062_v13 = vadd.f32 %v4043_v35, %v3636_v59 }
 0xc97   :  { %v7440_v58 = vmul.f32 -1.442695, %v4063_v7 }
 0xc98   :  { %v8330_v30 = vpop.eup %8329 }
 0xc99   :  { %v8332_v15 = vpop.eup %8331  ;;  %v4067_v18 = vadd.f32 1.0, %v8330_v30  ;;  %8333 = vpow2.f32 %v7440_v58 }
 0xc9a   :  { %v4086_v49 = vadd.f32 1.0, %v8332_v15 }
 0xc9b   :  { %8335 = vrcp.f32 %v4067_v18  ;;  %v4079_v5 = vand.u32 2147483648, %v4067_v18  ;;  %v4077_v10 = vand.u32 2147483647, %v4067_v18  ;;  %vm4073_vm14 = vweird.f32 %v4067_v18 }
 0xc9c   :  { %8337 = vrcp.f32 %v4086_v49  ;;  %v4045_v21 = vpop.f32.mrf.mxu2  ;;  %v4058_v45 = vpop.f32.mrf.mxu3  ;;  %v4098_v8 = vand.u32 2147483648, %v4086_v49  ;;  %v4096_v9 = vand.u32 2147483647, %v4086_v49  ;;  %vm4092_vm15 = vweird.f32 %v4086_v49 }
 0xc9d   :  { %v4080_v35 = vor.u32 1.1754944e-38, %v4079_v5  ;;  %vm4078_vm2 = vcmp.eq.f32.partialorder %v4077_v10, 8.507059e+37 }
 0xc9e   :  { %v4099_v21 = vor.u32 1.1754944e-38, %v4098_v8  ;;  %vm4097_vm3 = vcmp.eq.f32.partialorder %v4096_v9, 8.507059e+37 }
 0xc9f   :  { %v8334_v22 = vpop.eup %8333 }
 0xca0   :  { %v4106_v31 = vadd.f32 1.0, %v8334_v22 }
 0xca1   :  { %v8336_v4 = vpop.eup %8335 }
 0xca2   :  { %v8338_v55 = vpop.eup %8337  ;;  %v4069_v17 = vmul.f32 %v8336_v4, %v4067_v18  ;;  %8339 = vrcp.f32 %v4106_v31  ;;  %vm4074_vm12 = vweird.f32 %v8336_v4  ;;  %v4118_v5 = vand.u32 2147483648, %v4106_v31 }
 0xca3   :  { %v4088_v40 = vmul.f32 %v8338_v55, %v4086_v49  ;;  %8341 = vtanh.f32 %v4062_v13  ;;  %vm4093_vm13 = vweird.f32 %v8338_v55  ;;  %vm4075_vm0 = vmor %vm4073_vm14, %vm4074_vm12  ;;  %vm4112_vm5 = vweird.f32 %v4106_v31 }
 0xca4   :  { %v4070_v41 = vsub.f32 1.0, %v4069_v17  ;;  %vm4094_vm1 = vmor %vm4092_vm15, %vm4093_vm13 }
 0xca5   :  { %v4089_v62 = vsub.f32 1.0, %v4088_v40 }
 0xca6   :  { %v4071_v14 = vmul.f32 %v8336_v4, %v4070_v41 }
 0xca7   :  { %v4090_v7 = vmul.f32 %v8338_v55, %v4089_v62 }
 0xca8   :  { %v8340_v6 = vpop.eup %8339  ;;  %v4072_v58 = vadd.f32 %v8336_v4, %v4071_v14  ;;  %v4119_v14 = vor.u32 1.1754944e-38, %v4118_v5 }
 0xca9   :  { %v4091_v30 = vadd.f32 %v8338_v55, %v4090_v7  ;;  %v4108_v15 = vmul.f32 %v8340_v6, %v4106_v31  ;;  %v8342_v22 = vpop.eup %8341  ;;  %vm4113_vm4 = vweird.f32 %v8340_v6 }
 0xcaa   :  { %v4076_v45 = vsel %vm4075_vm0, %v8336_v4, %v4072_v58  ;;  %v4116_v4 = vand.u32 2147483647, %v4106_v31  ;;  %vm4114_vm6 = vmor %vm4112_vm5, %vm4113_vm4  ;;  %v11379_v31 = vld [vmem:[#allocation32_spill] sm:$0xff] }
 0xcab   :  { %v4081_v39 = vsel %vm4078_vm2, %v4080_v35, %v4076_v45  ;;  %v4095_v59 = vsel %vm4094_vm1, %v8338_v55, %v4091_v30  ;;  %v4109_v13 = vsub.f32 1.0, %v4108_v15  ;;  %v3581_v9 = vadd.f32 %v11379_v31, %v10336_v1  ;;  %v11382_v31 = vld [vmem:[#allocation30_spill] sm:$0xff] }
 0xcac   :  { %v4100_v17 = vsel %vm4097_vm3, %v4099_v21, %v4095_v59  ;;  %v4123_v40 = vmul.f32 %v8342_v22, %v4081_v39  ;;  %vm4117_vm7 = vcmp.eq.f32.partialorder %v4116_v4, 8.507059e+37  ;;  %v11381_v39 = vld [vmem:[#allocation33_spill] sm:$0xff] }
 0xcad   :  { %v4122_v41 = vmul.f32 %v4100_v17, %v10352_v28  ;;  %v4110_v62 = vmul.f32 %v8340_v6, %v4109_v13  ;;  %v3668_v59 = vadd.f32 %v11381_v39, %v10346_v47 }
 0xcaf   :  { %v10400_v18 = vadd.f32 %v4123_v40, %v4122_v41  ;;  %v4111_v49 = vadd.f32 %v8340_v6, %v4110_v62 }
 0xcb1   :  { %8343 = vtanh.f32 %v10400_v18  ;;  %v4115_v8 = vsel %vm4114_vm6, %v8340_v6, %v4111_v49  ;;  %v11380_v6 = vld [vmem:[#allocation31_spill] sm:$0xff] }
 0xcb2   :  { %v4120_v10 = vsel %vm4117_vm7, %v4119_v14, %v4115_v8  ;;  %v3610_v58 = vadd.f32 %v11380_v6, %v10338_v60 }
 0xcb7   :  { %v8344_v55 = vpop.eup %8343 }
 0xcb8   :  { %v10403_v7 = vmul.f32 %v8344_v55, %v4120_v10 }
 0xcba   :  { %v4132_v28 = vpack.c.bf16 %v10403_v7, %v10403_v7 }
 0xcbc   :  { %4141 = vmatmul.bf16.vlgmr.msrb.gmra.mxu0 %v4132_v28  ;;  %4154 = vmatmul.bf16.vlgmr.msrb.gmra.mxu1 %v4132_v28 }
 0xcbd   :  { %4167 = vmatmul.bf16.vlgmr.msrb.gmra.mxu2 %v4132_v28  ;;  %4180 = vmatmul.bf16.vlgmr.msrb.gmra.mxu3 %v4132_v28 }
 0xcbe   :  { %4383 = vmatpush.bf16.msrb.mxu0 %v10068_v25  ;;  %4396 = vmatpush.bf16.msrb.mxu1 %v10070_v53 }
 0xcbf   :  { %4409 = vmatpush.bf16.msrb.mxu2 %v10081_v36  ;;  %4422 = vmatpush.bf16.msrb.mxu3 %v10078_v52 }
 0xcc2   :  { %4384 = vmatpush.bf16.msrb.mxu0 %v10088_v61  ;;  %4397 = vmatpush.bf16.msrb.mxu1 %v10090_v38 }
 0xcc3   :  { %4410 = vmatpush.bf16.msrb.mxu2 %v10107_v0  ;;  %4423 = vmatpush.bf16.msrb.mxu3 %v10092_v32 }
 0xcc6   :  { %4385 = vmatpush.bf16.msrb.mxu0 %v10097_v56  ;;  %4398 = vmatpush.bf16.msrb.mxu1 %v10101_v23 }
 0xcc7   :  { %4411 = vmatpush.bf16.msrb.mxu2 %v10119_v16  ;;  %4424 = vmatpush.bf16.msrb.mxu3 %v10103_v3 }
 0xcca   :  { %4386 = vmatpush.bf16.msrb.mxu0 %v10110_v46  ;;  %4399 = vmatpush.bf16.msrb.mxu1 %v10114_v29 }
 0xccb   :  { %4412 = vmatpush.bf16.msrb.mxu2 %v10136_v37  ;;  %4425 = vmatpush.bf16.msrb.mxu3 %v10116_v54 }
 0xcce   :  { %4387 = vmatpush.bf16.msrb.mxu0 %v10124_v26  ;;  %4400 = vmatpush.bf16.msrb.mxu1 %v10130_v33 }
 0xccf   :  { %4413 = vmatpush.bf16.msrb.mxu2 %v10151_v50  ;;  %4426 = vmatpush.bf16.msrb.mxu3 %v10132_v27 }
 0xcd2   :  { %4388 = vmatpush.bf16.msrb.mxu0 %v10140_v63  ;;  %4401 = vmatpush.bf16.msrb.mxu1 %v10144_v2 }
 0xcd3   :  { %4414 = vmatpush.bf16.msrb.mxu2 %v10174_v51  ;;  %4427 = vmatpush.bf16.msrb.mxu3 %v10146_v11 }
 0xcd6   :  { %4389 = vmatpush.bf16.msrb.mxu0 %v10159_v19  ;;  %4402 = vmatpush.bf16.msrb.mxu1 %v10168_v43 }
 0xcd7   :  { %4415 = vmatpush.bf16.msrb.mxu2 %v10193_v48  ;;  %4428 = vmatpush.bf16.msrb.mxu3 %v10177_v57 }
 0xcda   :  { %4390 = vmatpush.bf16.msrb.mxu0 %v10189_v34  ;;  %4403 = vmatpush.bf16.msrb.mxu1 %v10191_v42 }
 0xcdb   :  { %4416 = vmatpush.bf16.msrb.mxu2 %v10212_v12  ;;  %4429 = vmatpush.bf16.msrb.mxu3 %v10203_v44 }
 0xd39   :  { %v4142_v35 = vpop.f32.mrf.mxu0  ;;  %v4155_v30 = vpop.f32.mrf.mxu1 }
 0xd3a   :  { %v4185_v15 = vadd.f32 %v4142_v35, %v3581_v9  ;;  %v4186_v21 = vadd.f32 %v4155_v30, %v3610_v58  ;;  %v3639_v9 = vadd.f32 %v11382_v31, %v11377_v20 }
 0xd3c   :  { %v7441_v45 = vmul.f32 -1.442695, %v4185_v15  ;;  %v7442_v22 = vmul.f32 -1.442695, %v4186_v21 }
 0xd3e   :  { %8345 = vpow2.f32 %v7441_v45 }
 0xd3f   :  { %8347 = vpow2.f32 %v7442_v22 }
 0xd40   :  { %v4168_v13 = vpop.f32.mrf.mxu2  ;;  %v4181_v17 = vpop.f32.mrf.mxu3 }
 0xd41   :  { %v4188_v40 = vadd.f32 %v4181_v17, %v3668_v59  ;;  %v4144_v41 = vpop.f32.mrf.mxu0  ;;  %v4157_v62 = vpop.f32.mrf.mxu1  ;;  %v4187_v35 = vadd.f32 %v4168_v13, %v3639_v9 }
 0xd43   :  { %v7443_v49 = vmul.f32 -1.442695, %v4188_v40 }
 0xd44   :  { %v8346_v5 = vpop.eup %8345 }
 0xd45   :  { %v8348_v4 = vpop.eup %8347  ;;  %v4192_v8 = vadd.f32 1.0, %v8346_v5  ;;  %8349 = vpow2.f32 %v7443_v49 }
 0xd46   :  { %v4211_v14 = vadd.f32 1.0, %v8348_v4 }
 0xd47   :  { %8351 = vrcp.f32 %v4192_v8  ;;  %v4204_v39 = vand.u32 2147483648, %v4192_v8  ;;  %v4202_v40 = vand.u32 2147483647, %v4192_v8  ;;  %vm4198_vm10 = vweird.f32 %v4192_v8 }
 0xd48   :  { %8353 = vrcp.f32 %v4211_v14  ;;  %v4170_v55 = vpop.f32.mrf.mxu2  ;;  %v4183_v10 = vpop.f32.mrf.mxu3  ;;  %v4223_v59 = vand.u32 2147483648, %v4211_v14  ;;  %v4221_v62 = vand.u32 2147483647, %v4211_v14  ;;  %vm4217_vm11 = vweird.f32 %v4211_v14 }
 0xd49   :  { %v4205_v13 = vor.u32 1.1754944e-38, %v4204_v39  ;;  %vm4203_vm14 = vcmp.eq.f32.partialorder %v4202_v40, 8.507059e+37 }
 0xd4a   :  { %v4224_v10 = vor.u32 1.1754944e-38, %v4223_v59  ;;  %vm4222_vm15 = vcmp.eq.f32.partialorder %v4221_v62, 8.507059e+37 }
 0xd4b   :  { %v8350_v28 = vpop.eup %8349 }
 0xd4c   :  { %v4231_v6 = vadd.f32 1.0, %v8350_v28 }
 0xd4d   :  { %v8352_v58 = vpop.eup %8351 }
 0xd4e   :  { %v8354_v30 = vpop.eup %8353  ;;  %v4194_v15 = vmul.f32 %v8352_v58, %v4192_v8  ;;  %8355 = vrcp.f32 %v4231_v6  ;;  %vm4199_vm8 = vweird.f32 %v8352_v58  ;;  %v4243_v39 = vand.u32 2147483648, %v4231_v6 }
 0xd4f   :  { %v4213_v21 = vmul.f32 %v8354_v30, %v4211_v14  ;;  %8357 = vtanh.f32 %v4187_v35  ;;  %vm4218_vm9 = vweird.f32 %v8354_v30  ;;  %vm4200_vm12 = vmor %vm4198_vm10, %vm4199_vm8  ;;  %vm4237_vm1 = vweird.f32 %v4231_v6 }
 0xd50   :  { %v4195_v45 = vsub.f32 1.0, %v4194_v15  ;;  %vm4219_vm13 = vmor %vm4217_vm11, %vm4218_vm9  ;;  %v4244_v40 = vor.u32 1.1754944e-38, %v4243_v39 }
 0xd51   :  { %v4214_v22 = vsub.f32 1.0, %v4213_v21 }
 0xd52   :  { %v4196_v17 = vmul.f32 %v8352_v58, %v4195_v45 }
 0xd53   :  { %v4215_v41 = vmul.f32 %v8354_v30, %v4214_v22 }
 0xd54   :  { %v8356_v49 = vpop.eup %8355  ;;  %v4197_v5 = vadd.f32 %v8352_v58, %v4196_v17 }
 0xd55   :  { %v4216_v4 = vadd.f32 %v8354_v30, %v4215_v41  ;;  %v4233_v55 = vmul.f32 %v8356_v49, %v4231_v6  ;;  %v8358_v31 = vpop.eup %8357  ;;  %vm4238_vm0 = vweird.f32 %v8356_v49 }
 0xd56   :  { %v4201_v28 = vsel %vm4200_vm12, %v8352_v58, %v4197_v5  ;;  %v4241_v58 = vand.u32 2147483647, %v4231_v6  ;;  %vm4239_vm2 = vmor %vm4237_vm1, %vm4238_vm0  ;;  %v11384_v6 = vld [vmem:[#allocation35_spill] sm:$0xff]  ;;  %v11385_v5 = vld [vmem:[#allocation36_spill] sm:$0xff] }
 0xd57   :  { %v4206_v9 = vsel %vm4203_vm14, %v4205_v13, %v4201_v28  ;;  %v4220_v35 = vsel %vm4219_vm13, %v8354_v30, %v4216_v4  ;;  %v4234_v15 = vsub.f32 1.0, %v4233_v55  ;;  %v3612_v13 = vadd.f32 %v11385_v5, %v10338_v60 }
 0xd58   :  { %v4225_v21 = vsel %vm4222_vm15, %v4224_v10, %v4220_v35  ;;  %v4248_v45 = vmul.f32 %v8358_v31, %v4206_v9  ;;  %vm4242_vm3 = vcmp.eq.f32.partialorder %v4241_v58, 8.507059e+37  ;;  %v11386_v35 = vld [vmem:[#allocation37_spill] sm:$0xff] }
 0xd59   :  { %v4247_v22 = vmul.f32 %v4225_v21, %v10400_v18  ;;  %v4235_v17 = vmul.f32 %v8356_v49, %v4234_v15  ;;  %v3670_v15 = vadd.f32 %v11386_v35, %v10346_v47 }
 0xd5b   :  { %v10448_v8 = vadd.f32 %v4248_v45, %v4247_v22  ;;  %v4236_v14 = vadd.f32 %v8356_v49, %v4235_v17 }
 0xd5d   :  { %8359 = vtanh.f32 %v10448_v8  ;;  %v4240_v59 = vsel %vm4239_vm2, %v8356_v49, %v4236_v14  ;;  %v3583_v49 = vadd.f32 %v11384_v6, %v10336_v1 }
 0xd5e   :  { %v4245_v41 = vsel %vm4242_vm3, %v4244_v40, %v4240_v59 }
 0xd63   :  { %v8360_v30 = vpop.eup %8359 }
 0xd64   :  { %v10451_v62 = vmul.f32 %v8360_v30, %v4245_v41 }
 0xd66   :  { %11383 = vst [vmem:[#allocation49_spill] sm:$0xff] %v10451_v62  ;;  %v4257_v18 = vpack.c.bf16 %v10451_v62, %v10451_v62 }
 0xd68   :  { %4266 = vmatmul.bf16.vlgmr.msra.gmra.mxu0 %v4257_v18  ;;  %4279 = vmatmul.bf16.vlgmr.msra.gmra.mxu1 %v4257_v18 }
 0xd69   :  { %4292 = vmatmul.bf16.vlgmr.msra.gmra.mxu2 %v4257_v18  ;;  %4305 = vmatmul.bf16.vlgmr.msra.gmra.mxu3 %v4257_v18 }
 0xd6a   :  { %4508 = vmatpush.bf16.msra.mxu0 %v10068_v25  ;;  %4521 = vmatpush.bf16.msra.mxu1 %v10070_v53 }
 0xd6b   :  { %4534 = vmatpush.bf16.msra.mxu2 %v10081_v36  ;;  %4547 = vmatpush.bf16.msra.mxu3 %v10078_v52 }
 0xd6e   :  { %4509 = vmatpush.bf16.msra.mxu0 %v10088_v61  ;;  %4522 = vmatpush.bf16.msra.mxu1 %v10090_v38 }
 0xd6f   :  { %4535 = vmatpush.bf16.msra.mxu2 %v10107_v0  ;;  %4548 = vmatpush.bf16.msra.mxu3 %v10092_v32 }
 0xd72   :  { %4510 = vmatpush.bf16.msra.mxu0 %v10097_v56  ;;  %4523 = vmatpush.bf16.msra.mxu1 %v10101_v23 }
 0xd73   :  { %4536 = vmatpush.bf16.msra.mxu2 %v10119_v16  ;;  %4549 = vmatpush.bf16.msra.mxu3 %v10103_v3 }
 0xd76   :  { %4511 = vmatpush.bf16.msra.mxu0 %v10110_v46  ;;  %4524 = vmatpush.bf16.msra.mxu1 %v10114_v29 }
 0xd77   :  { %4537 = vmatpush.bf16.msra.mxu2 %v10136_v37  ;;  %4550 = vmatpush.bf16.msra.mxu3 %v10116_v54 }
 0xd7a   :  { %4512 = vmatpush.bf16.msra.mxu0 %v10124_v26  ;;  %4525 = vmatpush.bf16.msra.mxu1 %v10130_v33 }
 0xd7b   :  { %4538 = vmatpush.bf16.msra.mxu2 %v10151_v50  ;;  %4551 = vmatpush.bf16.msra.mxu3 %v10132_v27 }
 0xd7e   :  { %4513 = vmatpush.bf16.msra.mxu0 %v10140_v63  ;;  %4526 = vmatpush.bf16.msra.mxu1 %v10144_v2 }
 0xd7f   :  { %4539 = vmatpush.bf16.msra.mxu2 %v10174_v51  ;;  %4552 = vmatpush.bf16.msra.mxu3 %v10146_v11 }
 0xd82   :  { %4514 = vmatpush.bf16.msra.mxu0 %v10159_v19  ;;  %4527 = vmatpush.bf16.msra.mxu1 %v10168_v43 }
 0xd83   :  { %4540 = vmatpush.bf16.msra.mxu2 %v10193_v48  ;;  %4553 = vmatpush.bf16.msra.mxu3 %v10177_v57 }
 0xd86   :  { %4515 = vmatpush.bf16.msra.mxu0 %v10189_v34  ;;  %4528 = vmatpush.bf16.msra.mxu1 %v10191_v42 }
 0xd87   :  { %4541 = vmatpush.bf16.msra.mxu2 %v10212_v12  ;;  %4554 = vmatpush.bf16.msra.mxu3 %v10203_v44 }
 0xde5   :  { %v4267_v4 = vpop.f32.mrf.mxu0  ;;  %v4280_v55 = vpop.f32.mrf.mxu1 }
 0xde6   :  { %v4310_v10 = vadd.f32 %v4267_v4, %v3583_v49  ;;  %v4311_v28 = vadd.f32 %v4280_v55, %v3612_v13  ;;  %v11387_v49 = vld [vmem:[#allocation34_spill] sm:$0xff] }
 0xde7   :  { %v3641_v5 = vadd.f32 %v11387_v49, %v11377_v20 }
 0xde8   :  { %v7444_v31 = vmul.f32 -1.442695, %v4310_v10  ;;  %v7445_v9 = vmul.f32 -1.442695, %v4311_v28 }
 0xdea   :  { %8361 = vpow2.f32 %v7444_v31 }
 0xdeb   :  { %8363 = vpow2.f32 %v7445_v9 }
 0xdec   :  { %v4293_v21 = vpop.f32.mrf.mxu2  ;;  %v4306_v45 = vpop.f32.mrf.mxu3 }
 0xded   :  { %v4313_v22 = vadd.f32 %v4306_v45, %v3670_v15  ;;  %v4269_v17 = vpop.f32.mrf.mxu0  ;;  %v4282_v14 = vpop.f32.mrf.mxu1  ;;  %v4312_v55 = vadd.f32 %v4293_v21, %v3641_v5 }
 0xdef   :  { %v7446_v39 = vmul.f32 -1.442695, %v4313_v22 }
 0xdf0   :  { %v8362_v58 = vpop.eup %8361 }
 0xdf1   :  { %v8364_v59 = vpop.eup %8363  ;;  %v4317_v40 = vadd.f32 1.0, %v8362_v58  ;;  %8365 = vpow2.f32 %v7446_v39 }
 0xdf2   :  { %v4336_v30 = vadd.f32 1.0, %v8364_v59 }
 0xdf3   :  { %8367 = vrcp.f32 %v4317_v40  ;;  %v4329_v15 = vand.u32 2147483648, %v4317_v40  ;;  %v4327_v17 = vand.u32 2147483647, %v4317_v40  ;;  %vm4323_vm6 = vweird.f32 %v4317_v40 }
 0xdf4   :  { %8369 = vrcp.f32 %v4336_v30  ;;  %v4295_v41 = vpop.f32.mrf.mxu2  ;;  %v4308_v18 = vpop.f32.mrf.mxu3  ;;  %v4348_v45 = vand.u32 2147483648, %v4336_v30  ;;  %v4346_v39 = vand.u32 2147483647, %v4336_v30  ;;  %vm4342_vm7 = vweird.f32 %v4336_v30 }
 0xdf5   :  { %v4330_v21 = vor.u32 1.1754944e-38, %v4329_v15  ;;  %vm4328_vm10 = vcmp.eq.f32.partialorder %v4327_v17, 8.507059e+37 }
 0xdf6   :  { %vm4347_vm11 = vcmp.eq.f32.partialorder %v4346_v39, 8.507059e+37 }
 0xdf7   :  { %v8366_v6 = vpop.eup %8365 }
 0xdf8   :  { %v4356_v13 = vadd.f32 1.0, %v8366_v6  ;;  %v4349_v6 = vor.u32 1.1754944e-38, %v4348_v45 }
 0xdf9   :  { %v8368_v4 = vpop.eup %8367 }
 0xdfa   :  { %v8370_v10 = vpop.eup %8369  ;;  %v4319_v28 = vmul.f32 %v8368_v4, %v4317_v40  ;;  %8371 = vrcp.f32 %v4356_v13  ;;  %vm4324_vm4 = vweird.f32 %v8368_v4  ;;  %v4368_v15 = vand.u32 2147483648, %v4356_v13 }
 0xdfb   :  { %v4338_v31 = vmul.f32 %v8370_v10, %v4336_v30  ;;  %8373 = vtanh.f32 %v4312_v55  ;;  %vm4343_vm5 = vweird.f32 %v8370_v10  ;;  %vm4325_vm8 = vmor %vm4323_vm6, %vm4324_vm4  ;;  %vm4362_vm13 = vweird.f32 %v4356_v13 }
 0xdfc   :  { %v4320_v9 = vsub.f32 1.0, %v4319_v28  ;;  %vm4344_vm9 = vmor %vm4342_vm7, %vm4343_vm5  ;;  %v4369_v17 = vor.u32 1.1754944e-38, %v4368_v15 }
 0xdfd   :  { %v4339_v35 = vsub.f32 1.0, %v4338_v31 }
 0xdfe   :  { %v4321_v22 = vmul.f32 %v8368_v4, %v4320_v9 }
 0xdff   :  { %v4340_v14 = vmul.f32 %v8370_v10, %v4339_v35 }
 0xe00   :  { %v8372_v58 = vpop.eup %8371  ;;  %v4322_v59 = vadd.f32 %v8368_v4, %v4321_v22 }
 0xe01   :  { %v4341_v41 = vadd.f32 %v8370_v10, %v4340_v14  ;;  %v4358_v18 = vmul.f32 %v8372_v58, %v4356_v13  ;;  %v8374_v5 = vpop.eup %8373  ;;  %vm4363_vm12 = vweird.f32 %v8372_v58 }
 0xe02   :  { %v4326_v49 = vsel %vm4325_vm8, %v8368_v4, %v4322_v59  ;;  %v4366_v4 = vand.u32 2147483647, %v4356_v13  ;;  %vm4364_vm14 = vmor %vm4362_vm13, %vm4363_vm12 }
 0xe03   :  { %v4331_v55 = vsel %vm4328_vm10, %v4330_v21, %v4326_v49  ;;  %v4345_v28 = vsel %vm4344_vm9, %v8370_v10, %v4341_v41  ;;  %v4359_v31 = vsub.f32 1.0, %v4358_v18 }
 0xe04   :  { %v4350_v9 = vsel %vm4347_vm11, %v4349_v6, %v4345_v28  ;;  %v4373_v35 = vmul.f32 %v8374_v5, %v4331_v55  ;;  %vm4367_vm15 = vcmp.eq.f32.partialorder %v4366_v4, 8.507059e+37  ;;  %v11391_v55 = vld [vmem:[#allocation41_spill] sm:$0xff] }
 0xe05   :  { %v4372_v62 = vmul.f32 %v4350_v9, %v10448_v8  ;;  %v4360_v22 = vmul.f32 %v8372_v58, %v4359_v31  ;;  %v3673_v28 = vadd.f32 %v11391_v55, %v10346_v47 }
 0xe07   :  { %v10496_v40 = vadd.f32 %v4373_v35, %v4372_v62  ;;  %v4361_v30 = vadd.f32 %v8372_v58, %v4360_v22  ;;  %v11389_v62 = vld [vmem:[#allocation40_spill] sm:$0xff] }
 0xe08   :  { %v3586_v13 = vadd.f32 %v11389_v62, %v10336_v1 }
 0xe09   :  { %8375 = vtanh.f32 %v10496_v40  ;;  %v4365_v45 = vsel %vm4364_vm14, %v8372_v58, %v4361_v30  ;;  %v11390_v58 = vld [vmem:[#allocation39_spill] sm:$0xff] }
 0xe0a   :  { %v4370_v14 = vsel %vm4367_vm15, %v4369_v17, %v4365_v45  ;;  %v3615_v59 = vadd.f32 %v11390_v58, %v10338_v60 }
 0xe0f   :  { %v8376_v10 = vpop.eup %8375 }
 0xe10   :  { %v10499_v39 = vmul.f32 %v8376_v10, %v4370_v14 }
 0xe12   :  { %11388 = vst [vmem:[#allocation28_spill] sm:$0xff] %v10499_v39  ;;  %v4382_v8 = vpack.c.bf16 %v10499_v39, %v10499_v39 }
 0xe14   :  { %4391 = vmatmul.bf16.vlgmr.msrb.gmra.mxu0 %v4382_v8  ;;  %4404 = vmatmul.bf16.vlgmr.msrb.gmra.mxu1 %v4382_v8 }
 0xe15   :  { %4417 = vmatmul.bf16.vlgmr.msrb.gmra.mxu2 %v4382_v8  ;;  %4430 = vmatmul.bf16.vlgmr.msrb.gmra.mxu3 %v4382_v8 }
 0xe16   :  { %4633 = vmatpush.bf16.msrb.mxu0 %v10068_v25  ;;  %4646 = vmatpush.bf16.msrb.mxu1 %v10070_v53 }
 0xe17   :  { %4659 = vmatpush.bf16.msrb.mxu2 %v10081_v36  ;;  %4672 = vmatpush.bf16.msrb.mxu3 %v10078_v52 }
 0xe1a   :  { %4634 = vmatpush.bf16.msrb.mxu0 %v10088_v61  ;;  %4647 = vmatpush.bf16.msrb.mxu1 %v10090_v38 }
 0xe1b   :  { %4660 = vmatpush.bf16.msrb.mxu2 %v10107_v0  ;;  %4673 = vmatpush.bf16.msrb.mxu3 %v10092_v32 }
 0xe1e   :  { %4635 = vmatpush.bf16.msrb.mxu0 %v10097_v56  ;;  %4648 = vmatpush.bf16.msrb.mxu1 %v10101_v23 }
 0xe1f   :  { %4661 = vmatpush.bf16.msrb.mxu2 %v10119_v16  ;;  %4674 = vmatpush.bf16.msrb.mxu3 %v10103_v3 }
 0xe22   :  { %4636 = vmatpush.bf16.msrb.mxu0 %v10110_v46  ;;  %4649 = vmatpush.bf16.msrb.mxu1 %v10114_v29 }
 0xe23   :  { %4662 = vmatpush.bf16.msrb.mxu2 %v10136_v37  ;;  %4675 = vmatpush.bf16.msrb.mxu3 %v10116_v54 }
 0xe26   :  { %4637 = vmatpush.bf16.msrb.mxu0 %v10124_v26  ;;  %4650 = vmatpush.bf16.msrb.mxu1 %v10130_v33 }
 0xe27   :  { %4663 = vmatpush.bf16.msrb.mxu2 %v10151_v50  ;;  %4676 = vmatpush.bf16.msrb.mxu3 %v10132_v27 }
 0xe2a   :  { %4638 = vmatpush.bf16.msrb.mxu0 %v10140_v63  ;;  %4651 = vmatpush.bf16.msrb.mxu1 %v10144_v2 }
 0xe2b   :  { %4664 = vmatpush.bf16.msrb.mxu2 %v10174_v51  ;;  %4677 = vmatpush.bf16.msrb.mxu3 %v10146_v11 }
 0xe2e   :  { %4639 = vmatpush.bf16.msrb.mxu0 %v10159_v19  ;;  %4652 = vmatpush.bf16.msrb.mxu1 %v10168_v43 }
 0xe2f   :  { %4665 = vmatpush.bf16.msrb.mxu2 %v10193_v48  ;;  %4678 = vmatpush.bf16.msrb.mxu3 %v10177_v57 }
 0xe32   :  { %4640 = vmatpush.bf16.msrb.mxu0 %v10189_v34  ;;  %4653 = vmatpush.bf16.msrb.mxu1 %v10191_v42 }
 0xe33   :  { %4666 = vmatpush.bf16.msrb.mxu2 %v10212_v12  ;;  %4679 = vmatpush.bf16.msrb.mxu3 %v10203_v44 }
 0xe91   :  { %v4392_v21 = vpop.f32.mrf.mxu0  ;;  %v4405_v41 = vpop.f32.mrf.mxu1 }
 0xe92   :  { %v4435_v18 = vadd.f32 %v4392_v21, %v3586_v13  ;;  %v4436_v6 = vadd.f32 %v4405_v41, %v3615_v59  ;;  %v11392_v13 = vld [vmem:[#allocation38_spill] sm:$0xff] }
 0xe93   :  { %v3644_v58 = vadd.f32 %v11392_v13, %v11377_v20 }
 0xe94   :  { %v7447_v49 = vmul.f32 -1.442695, %v4435_v18  ;;  %v7448_v5 = vmul.f32 -1.442695, %v4436_v6 }
 0xe96   :  { %8377 = vpow2.f32 %v7447_v49 }
 0xe97   :  { %8379 = vpow2.f32 %v7448_v5 }
 0xe98   :  { %v4418_v31 = vpop.f32.mrf.mxu2  ;;  %v4431_v9 = vpop.f32.mrf.mxu3 }
 0xe99   :  { %v4438_v35 = vadd.f32 %v4431_v9, %v3673_v28  ;;  %v4394_v22 = vpop.f32.mrf.mxu0  ;;  %v4407_v30 = vpop.f32.mrf.mxu1  ;;  %v4437_v41 = vadd.f32 %v4418_v31, %v3644_v58 }
 0xe9b   :  { %v7449_v15 = vmul.f32 -1.442695, %v4438_v35 }
 0xe9c   :  { %v8378_v4 = vpop.eup %8377 }
 0xe9d   :  { %v8380_v45 = vpop.eup %8379  ;;  %v4442_v17 = vadd.f32 1.0, %v8378_v4  ;;  %8381 = vpow2.f32 %v7449_v15 }
 0xe9e   :  { %v4461_v10 = vadd.f32 1.0, %v8380_v45 }
 0xe9f   :  { %8383 = vrcp.f32 %v4442_v17  ;;  %v4454_v28 = vand.u32 2147483648, %v4442_v17  ;;  %v4452_v22 = vand.u32 2147483647, %v4442_v17  ;;  %vm4448_vm2 = vweird.f32 %v4442_v17 }
 0xea0   :  { %8385 = vrcp.f32 %v4461_v10  ;;  %v4420_v14 = vpop.f32.mrf.mxu2  ;;  %v4433_v8 = vpop.f32.mrf.mxu3  ;;  %v4473_v9 = vand.u32 2147483648, %v4461_v10  ;;  %v4471_v15 = vand.u32 2147483647, %v4461_v10  ;;  %vm4467_vm3 = vweird.f32 %v4461_v10 }
 0xea1   :  { %v4455_v31 = vor.u32 1.1754944e-38, %v4454_v28  ;;  %vm4453_vm6 = vcmp.eq.f32.partialorder %v4452_v22, 8.507059e+37 }
 0xea2   :  { %vm4472_vm7 = vcmp.eq.f32.partialorder %v4471_v15, 8.507059e+37 }
 0xea3   :  { %v8382_v62 = vpop.eup %8381 }
 0xea4   :  { %v4481_v59 = vadd.f32 1.0, %v8382_v62  ;;  %v4474_v62 = vor.u32 1.1754944e-38, %v4473_v9 }
 0xea5   :  { %v8384_v21 = vpop.eup %8383 }
 0xea6   :  { %v8386_v18 = vpop.eup %8385  ;;  %v4444_v6 = vmul.f32 %v8384_v21, %v4442_v17  ;;  %8387 = vrcp.f32 %v4481_v59  ;;  %vm4449_vm0 = vweird.f32 %v8384_v21  ;;  %v4493_v28 = vand.u32 2147483648, %v4481_v59 }
 0xea7   :  { %v4463_v49 = vmul.f32 %v8386_v18, %v4461_v10  ;;  %8389 = vtanh.f32 %v4437_v41  ;;  %vm4468_vm1 = vweird.f32 %v8386_v18  ;;  %vm4450_vm4 = vmor %vm4448_vm2, %vm4449_vm0  ;;  %vm4487_vm9 = vweird.f32 %v4481_v59 }
 0xea8   :  { %v4445_v5 = vsub.f32 1.0, %v4444_v6  ;;  %vm4469_vm5 = vmor %vm4467_vm3, %vm4468_vm1  ;;  %v4494_v22 = vor.u32 1.1754944e-38, %v4493_v28 }
 0xea9   :  { %v4464_v55 = vsub.f32 1.0, %v4463_v49 }
 0xeaa   :  { %v4446_v35 = vmul.f32 %v8384_v21, %v4445_v5 }
 0xeab   :  { %v4465_v30 = vmul.f32 %v8386_v18, %v4464_v55 }
 0xeac   :  { %v8388_v4 = vpop.eup %8387  ;;  %v4447_v45 = vadd.f32 %v8384_v21, %v4446_v35 }
 0xead   :  { %v4466_v14 = vadd.f32 %v8386_v18, %v4465_v30  ;;  %v4483_v8 = vmul.f32 %v8388_v4, %v4481_v59  ;;  %v8390_v58 = vpop.eup %8389  ;;  %vm4488_vm8 = vweird.f32 %v8388_v4 }
 0xeae   :  { %v4451_v13 = vsel %vm4450_vm4, %v8384_v21, %v4447_v45  ;;  %v4491_v21 = vand.u32 2147483647, %v4481_v59  ;;  %vm4489_vm10 = vmor %vm4487_vm9, %vm4488_vm8 }
 0xeaf   :  { %v4456_v41 = vsel %vm4453_vm6, %v4455_v31, %v4451_v13  ;;  %v4470_v6 = vsel %vm4469_vm5, %v8386_v18, %v4466_v14  ;;  %v4484_v49 = vsub.f32 1.0, %v4483_v8 }
 0xeb0   :  { %v4475_v5 = vsel %vm4472_vm7, %v4474_v62, %v4470_v6  ;;  %v4498_v55 = vmul.f32 %v8390_v58, %v4456_v41  ;;  %vm4492_vm11 = vcmp.eq.f32.partialorder %v4491_v21, 8.507059e+37 }
 0xeb1   :  { %v4497_v39 = vmul.f32 %v4475_v5, %v10496_v40  ;;  %v4485_v35 = vmul.f32 %v8388_v4, %v4484_v49 }
 0xeb3   :  { %v10544_v17 = vadd.f32 %v4498_v55, %v4497_v39  ;;  %v4486_v10 = vadd.f32 %v8388_v4, %v4485_v35 }
 0xeb5   :  { %8391 = vtanh.f32 %v10544_v17  ;;  %v4490_v9 = vsel %vm4489_vm10, %v8388_v4, %v4486_v10 }
 0xeb6   :  { %v4495_v30 = vsel %vm4492_vm11, %v4494_v22, %v4490_v9 }
 0xebb   :  { %v8392_v18 = vpop.eup %8391 }
 0xebc   :  { %v10547_v15 = vmul.f32 %v8392_v18, %v4495_v30 }
 0xebe   :  { %v4507_v40 = vpack.c.bf16 %v10547_v15, %v10547_v15 }
 0xec0   :  { %4516 = vmatmul.bf16.vlgmr.msra.gmra.mxu0 %v4507_v40  ;;  %4529 = vmatmul.bf16.vlgmr.msra.gmra.mxu1 %v4507_v40 }
 0xec1   :  { %4542 = vmatmul.bf16.vlgmr.msra.gmra.mxu2 %v4507_v40  ;;  %4555 = vmatmul.bf16.vlgmr.msra.gmra.mxu3 %v4507_v40 }
 0xec2   :  { %4758 = vmatpush.bf16.msra.mxu0 %v10068_v25  ;;  %4771 = vmatpush.bf16.msra.mxu1 %v10070_v53  ;;  %v11393_v25 = vld [vmem:[#allocation43_spill] sm:$0xff] }
 0xec3   :  { %4784 = vmatpush.bf16.msra.mxu2 %v10081_v36  ;;  %4797 = vmatpush.bf16.msra.mxu3 %v10078_v52  ;;  %v3588_v53 = vadd.f32 %v11393_v25, %v10336_v1  ;;  %v11394_v52 = vld [vmem:[#allocation44_spill] sm:$0xff] }
 0xec4   :  { %v3617_v36 = vadd.f32 %v11394_v52, %v10338_v60 }
 0xec6   :  { %4759 = vmatpush.bf16.msra.mxu0 %v10088_v61  ;;  %4772 = vmatpush.bf16.msra.mxu1 %v10090_v38 }
 0xec7   :  { %4785 = vmatpush.bf16.msra.mxu2 %v10107_v0  ;;  %4798 = vmatpush.bf16.msra.mxu3 %v10092_v32  ;;  %v11395_v0 = vld [vmem:[#allocation45_spill] sm:$0xff] }
 0xeca   :  { %4760 = vmatpush.bf16.msra.mxu0 %v10097_v56  ;;  %4773 = vmatpush.bf16.msra.mxu1 %v10101_v23 }
 0xecb   :  { %4786 = vmatpush.bf16.msra.mxu2 %v10119_v16  ;;  %4799 = vmatpush.bf16.msra.mxu3 %v10103_v3 }
 0xece   :  { %4761 = vmatpush.bf16.msra.mxu0 %v10110_v46  ;;  %4774 = vmatpush.bf16.msra.mxu1 %v10114_v29  ;;  %v3675_v46 = vadd.f32 %v11395_v0, %v10346_v47  ;;  %v7998_v0 = vld [vmem:[#allocation10 + $0x3ec] sm:$0xf0] }
 0xecf   :  { %4787 = vmatpush.bf16.msra.mxu2 %v10136_v37  ;;  %4800 = vmatpush.bf16.msra.mxu3 %v10116_v54 }
 0xed2   :  { %4762 = vmatpush.bf16.msra.mxu0 %v10124_v26  ;;  %4775 = vmatpush.bf16.msra.mxu1 %v10130_v33 }
 0xed3   :  { %4788 = vmatpush.bf16.msra.mxu2 %v10151_v50  ;;  %4801 = vmatpush.bf16.msra.mxu3 %v10132_v27 }
 0xed6   :  { %4763 = vmatpush.bf16.msra.mxu0 %v10140_v63  ;;  %4776 = vmatpush.bf16.msra.mxu1 %v10144_v2 }
 0xed7   :  { %4789 = vmatpush.bf16.msra.mxu2 %v10174_v51  ;;  %4802 = vmatpush.bf16.msra.mxu3 %v10146_v11  ;;  %v11396_v51 = vld [vmem:[#allocation42_spill] sm:$0xff] }
 0xeda   :  { %4764 = vmatpush.bf16.msra.mxu0 %v10159_v19  ;;  %4777 = vmatpush.bf16.msra.mxu1 %v10168_v43 }
 0xedb   :  { %4790 = vmatpush.bf16.msra.mxu2 %v10193_v48  ;;  %4803 = vmatpush.bf16.msra.mxu3 %v10177_v57  ;;  %v3646_v57 = vadd.f32 %v11396_v51, %v11377_v20  ;;  %v7583_v51 = vld [vmem:[#allocation10 + $0x3f8] sm:$0xf0] }
 0xede   :  { %4765 = vmatpush.bf16.msra.mxu0 %v10189_v34  ;;  %4778 = vmatpush.bf16.msra.mxu1 %v10191_v42 }
 0xedf   :  { %4791 = vmatpush.bf16.msra.mxu2 %v10212_v12  ;;  %4804 = vmatpush.bf16.msra.mxu3 %v10203_v44 }
 0xf3d   :  { %v4517_v61 = vpop.f32.mrf.mxu0  ;;  %v4530_v38 = vpop.f32.mrf.mxu1 }
 0xf3e   :  { %v4560_v32 = vadd.f32 %v4517_v61, %v3588_v53  ;;  %v4561_v56 = vadd.f32 %v4530_v38, %v3617_v36 }
 0xf40   :  { %v7450_v23 = vmul.f32 -1.442695, %v4560_v32  ;;  %v7451_v3 = vmul.f32 -1.442695, %v4561_v56 }
 0xf42   :  { %8393 = vpow2.f32 %v7450_v23 }
 0xf43   :  { %8395 = vpow2.f32 %v7451_v3  ;;  %v7573_v3 = vld [vmem:[#allocation10 + $0x3e0] sm:$0xf] }
 0xf44   :  { %v4543_v29 = vpop.f32.mrf.mxu2  ;;  %v4556_v54 = vpop.f32.mrf.mxu3 }
 0xf45   :  { %v4563_v16 = vadd.f32 %v4556_v54, %v3675_v46  ;;  %v4519_v26 = vpop.f32.mrf.mxu0  ;;  %v4532_v33 = vpop.f32.mrf.mxu1  ;;  %v4562_v48 = vadd.f32 %v4543_v29, %v3646_v57  ;;  %v7996_v46 = vld [vmem:[#allocation10 + $0x3e4] sm:$0xf]  ;;  %v11397_v29 = vld [vmem:[#allocation48_spill] sm:$0xff] }
 0xf46   :  { %v3591_v54 = vadd.f32 %v11397_v29, %v10336_v1  ;;  %v7574_v33 = vor.u32 %v7998_v0, %v7573_v3  ;;  %v7984_v3 = vld [vmem:[#allocation10 + $0x384] sm:$0xf]  ;;  %v7533_v29 = vld [vmem:[#allocation10 + $0x388] sm:$0xf] }
 0xf47   :  { %v7452_v27 = vmul.f32 -1.442695, %v4563_v16  ;;  %v11398_v16 = vld [vmem:[#allocation29_spill] sm:$0xff] }
 0xf48   :  { %v8394_v37 = vpop.eup %8393  ;;  %v3620_v26 = vadd.f32 %v11398_v16, %v10338_v60 }
 0xf49   :  { %v8396_v63 = vpop.eup %8395  ;;  %v4567_v2 = vadd.f32 1.0, %v8394_v37  ;;  %8397 = vpow2.f32 %v7452_v27  ;;  %v7575_v27 = vld [vmem:[#allocation10 + $0x3f0] sm:$0xf0]  ;;  %v7581_v37 = vld [vmem:[#allocation10 + $0x3e8] sm:$0xf] }
 0xf4a   :  { %v4586_v11 = vadd.f32 1.0, %v8396_v63  ;;  %v7999_v63 = vld [vmem:[#allocation10 + $0x3f4] sm:$0xf0] }
 0xf4b   :  { %8399 = vrcp.f32 %v4567_v2  ;;  %v4579_v45 = vand.u32 2147483648, %v4567_v2  ;;  %v4577_v8 = vand.u32 2147483647, %v4567_v2  ;;  %vm4573_vm14 = vweird.f32 %v4567_v2 }
 0xf4c   :  { %8401 = vrcp.f32 %v4586_v11  ;;  %v4545_v50 = vpop.f32.mrf.mxu2  ;;  %v4558_v19 = vpop.f32.mrf.mxu3  ;;  %v4598_v31 = vand.u32 2147483648, %v4586_v11  ;;  %v4596_v13 = vand.u32 2147483647, %v4586_v11  ;;  %vm4592_vm15 = vweird.f32 %v4586_v11 }
 0xf4d   :  { %v4580_v6 = vor.u32 1.1754944e-38, %v4579_v45  ;;  %vm4578_vm2 = vcmp.eq.f32.partialorder %v4577_v8, 8.507059e+37  ;;  %v7578_v50 = vor.u32 %v7996_v46, %v7575_v27  ;;  %v7582_v19 = vor.u32 %v7999_v63, %v7581_v37  ;;  %v7559_v45 = vld [vmem:[#allocation10 + $0x3d0] sm:$0xf0]  ;;  %v7995_v8 = vld [vmem:[#allocation10 + $0x3d4] sm:$0xf0] }
 0xf4e   :  { %v4599_v55 = vor.u32 1.1754944e-38, %v4598_v31  ;;  %vm4597_vm3 = vcmp.eq.f32.partialorder %v4596_v13, 8.507059e+37  ;;  %v7527_v46 = vld [vmem:[#allocation10 + $0x390] sm:$0xf0]  ;;  %v7535_v27 = vld [vmem:[#allocation10 + $0x398] sm:$0xf0] }
 0xf4f   :  { %v8398_v43 = vpop.eup %8397 }
 0xf50   :  { %v4606_v34 = vadd.f32 1.0, %v8398_v43  ;;  %v7997_v43 = vld [vmem:[#allocation10 + $0x3ec] sm:$0xf] }
 0xf51   :  { %v8400_v42 = vpop.eup %8399 }
 0xf52   :  { %v8402_v44 = vpop.eup %8401  ;;  %v4569_v12 = vmul.f32 %v8400_v42, %v4567_v2  ;;  %8403 = vrcp.f32 %v4606_v34  ;;  %vm4574_vm12 = vweird.f32 %v8400_v42  ;;  %v4618_v52 = vand.u32 2147483648, %v4606_v34 }
 0xf53   :  { %v4588_v39 = vmul.f32 %v8402_v44, %v4586_v11  ;;  %8405 = vtanh.f32 %v4562_v48  ;;  %vm4593_vm13 = vweird.f32 %v8402_v44  ;;  %vm4575_vm0 = vmor %vm4573_vm14, %vm4574_vm12  ;;  %vm4612_vm5 = vweird.f32 %v4606_v34  ;;  %v7557_v48 = vld [vmem:[#allocation10 + $0x3c0] sm:$0xf] }
 0xf54   :  { %v4570_v59 = vsub.f32 1.0, %v4569_v12  ;;  %vm4594_vm1 = vmor %vm4592_vm15, %vm4593_vm13  ;;  %v4616_v36 = vand.u32 2147483647, %v4606_v34  ;;  %v4619_v38 = vor.u32 1.1754944e-38, %v4618_v52  ;;  %v7992_v12 = vld [vmem:[#allocation10 + $0x3c4] sm:$0xf] }
 0xf55   :  { %v4589_v4 = vsub.f32 1.0, %v4588_v39  ;;  %v7562_v31 = vor.u32 %v7992_v12, %v7559_v45  ;;  %v7980_v12 = vld [vmem:[#allocation10 + $0x364] sm:$0xf]  ;;  %v7517_v45 = vld [vmem:[#allocation10 + $0x368] sm:$0xf] }
 0xf56   :  { %v4571_v14 = vmul.f32 %v8400_v42, %v4570_v59  ;;  %vm4617_vm7 = vcmp.eq.f32.partialorder %v4616_v36, 8.507059e+37 }
 0xf57   :  { %v4590_v62 = vmul.f32 %v8402_v44, %v4589_v4 }
 0xf58   :  { %v8404_v58 = vpop.eup %8403  ;;  %v4572_v41 = vadd.f32 %v8400_v42, %v4571_v14  ;;  %v7565_v14 = vld [vmem:[#allocation10 + $0x3c8] sm:$0xf] }
 0xf59   :  { %v4591_v49 = vadd.f32 %v8402_v44, %v4590_v62  ;;  %v4608_v5 = vmul.f32 %v8404_v58, %v4606_v34  ;;  %v8406_v10 = vpop.eup %8405  ;;  %vm4613_vm4 = vweird.f32 %v8404_v58  ;;  %v7993_v62 = vld [vmem:[#allocation10 + $0x3cc] sm:$0xf]  ;;  %v7566_v13 = vor.u32 %v7995_v8, %v7565_v14 }
 0xf5a   :  { %v4576_v35 = vsel %vm4575_vm0, %v8400_v42, %v4572_v41  ;;  %vm4614_vm6 = vmor %vm4612_vm5, %vm4613_vm4  ;;  %v7586_v42 = vor.u32 %v7997_v43, %v7583_v51  ;;  %v7541_v41 = vld [vmem:[#allocation10 + $0x3a0] sm:$0xf] }
 0xf5b   :  { %v4581_v28 = vsel %vm4578_vm2, %v4580_v6, %v4576_v35  ;;  %v4595_v21 = vsel %vm4594_vm1, %v8402_v44, %v4591_v49  ;;  %v4609_v9 = vsub.f32 1.0, %v4608_v5  ;;  %v7994_v44 = vld [vmem:[#allocation10 + $0x3cc] sm:$0xf0]  ;;  %v11399_v49 = vld [vmem:[#allocation50_spill] sm:$0xff]  ;;  %v7509_v43 = vld [vmem:[#allocation10 + $0x360] sm:$0xf] }
 0xf5c   :  { %v4600_v22 = vsel %vm4597_vm3, %v4599_v55, %v4595_v21  ;;  %v4623_v18 = vmul.f32 %v8406_v10, %v4581_v28  ;;  %v7558_v4 = vor.u32 %v7994_v44, %v7557_v48  ;;  %v7990_v6 = vld [vmem:[#allocation10 + $0x3ac] sm:$0xf0]  ;;  %v3678_v5 = vadd.f32 %v11399_v49, %v10346_v47  ;;  %v7988_v10 = vld [vmem:[#allocation10 + $0x3a4] sm:$0xf]  ;;  %v7543_v28 = vld [vmem:[#allocation10 + $0x3b0] sm:$0xf0] }
 0xf5d   :  { %v4622_v30 = vmul.f32 %v4600_v22, %v10544_v17  ;;  %v4610_v40 = vmul.f32 %v8404_v58, %v4609_v9  ;;  %v7542_v35 = vor.u32 %v7990_v6, %v7541_v41  ;;  %v7549_v21 = vld [vmem:[#allocation10 + $0x3a8] sm:$0xf]  ;;  %v7493_v41 = vld [vmem:[#allocation10 + $0x340] sm:$0xf] }
 0xf5f   :  { %v10592_v25 = vadd.f32 %v4623_v18, %v4622_v30  ;;  %v4611_v53 = vadd.f32 %v8404_v58, %v4610_v40  ;;  %v7546_v18 = vor.u32 %v7988_v10, %v7543_v28  ;;  %v7991_v30 = vld [vmem:[#allocation10 + $0x3b4] sm:$0xf0]  ;;  %v7989_v40 = vld [vmem:[#allocation10 + $0x3ac] sm:$0xf]  ;;  %v7495_v28 = vld [vmem:[#allocation10 + $0x350] sm:$0xf0] }
 0xf61   :  { %8407 = vtanh.f32 %v10592_v25  ;;  %v4615_v61 = vsel %vm4614_vm6, %v8404_v58, %v4611_v53  ;;  %v7567_v58 = vld [vmem:[#allocation10 + $0x3d8] sm:$0xf0] }
 0xf62   :  { %v4620_v56 = vsel %vm4617_vm7, %v4619_v38, %v4615_v61  ;;  %v7570_v55 = vor.u32 %v7993_v62, %v7567_v58  ;;  %v7551_v53 = vld [vmem:[#allocation10 + $0x3b8] sm:$0xf0]  ;;  %v7550_v38 = vor.u32 %v7991_v30, %v7549_v21  ;;  %v7501_v21 = vld [vmem:[#allocation10 + $0x348] sm:$0xf]  ;;  %v7977_v30 = vld [vmem:[#allocation10 + $0x34c] sm:$0xf] }
 0xf63   :  { %v7519_v58 = vld [vmem:[#allocation10 + $0x378] sm:$0xf0] }
 0xf67   :  { %v8408_v32 = vpop.eup %8407 }
 0xf68   :  { %v10595_v23 = vmul.f32 %v8408_v32, %v4620_v56  ;;  %v7554_v32 = vor.u32 %v7989_v40, %v7551_v53  ;;  %v7525_v56 = vld [vmem:[#allocation10 + $0x380] sm:$0xf]  ;;  %v7503_v40 = vld [vmem:[#allocation10 + $0x358] sm:$0xf0] }
 0xf69   :  { %v7477_v53 = vld [vmem:[#allocation10 + $0x320] sm:$0xf] }
 0xf6a   :  { %v4632_v17 = vpack.c.bf16 %v10595_v23, %v10595_v23 }
 0xf6c   :  { %4641 = vmatmul.bf16.vlgmr.msrb.gmra.mxu0 %v4632_v17  ;;  %4654 = vmatmul.bf16.vlgmr.msrb.gmra.mxu1 %v4632_v17 }
 0xf6d   :  { %4667 = vmatmul.bf16.vlgmr.msrb.gmra.mxu2 %v4632_v17  ;;  %4680 = vmatmul.bf16.vlgmr.msrb.gmra.mxu3 %v4632_v17  ;;  %v7986_v17 = vld [vmem:[#allocation10 + $0x38c] sm:$0xf0] }
 0xf6e   :  { %5131 = vmatpush.bf16.msrb.mxu0 %v7574_v33  ;;  %5160 = vmatpush.bf16.msrb.mxu1 %v7578_v50  ;;  %v7526_v0 = vor.u32 %v7986_v17, %v7525_v56  ;;  %v7985_v33 = vld [vmem:[#allocation10 + $0x38c] sm:$0xf] }
 0xf6f   :  { %5189 = vmatpush.bf16.msrb.mxu2 %v7582_v19  ;;  %5218 = vmatpush.bf16.msrb.mxu3 %v7586_v42  ;;  %v7538_v50 = vor.u32 %v7985_v33, %v7535_v27  ;;  %v11400_v42 = vld [vmem:[#allocation46_spill] sm:$0xff]  ;;  %v7485_v33 = vld [vmem:[#allocation10 + $0x328] sm:$0xf] }
 0xf70   :  { %v3649_v48 = vadd.f32 %v11400_v42, %v11377_v20  ;;  %v7970_v42 = vld [vmem:[#allocation10 + $0x30c] sm:$0xf0] }
 0xf72   :  { %5132 = vmatpush.bf16.msrb.mxu0 %v7558_v4  ;;  %5161 = vmatpush.bf16.msrb.mxu1 %v7562_v31  ;;  %v7983_v31 = vld [vmem:[#allocation10 + $0x374] sm:$0xf0] }
 0xf73   :  { %5190 = vmatpush.bf16.msrb.mxu2 %v7566_v13  ;;  %5219 = vmatpush.bf16.msrb.mxu3 %v7570_v55  ;;  %v7518_v62 = vor.u32 %v7983_v31, %v7517_v45  ;;  %v7981_v13 = vld [vmem:[#allocation10 + $0x36c] sm:$0xf]  ;;  %v7976_v55 = vld [vmem:[#allocation10 + $0x344] sm:$0xf]  ;;  %v7971_v45 = vld [vmem:[#allocation10 + $0x314] sm:$0xf0] }
 0xf74   :  { %v7522_v49 = vor.u32 %v7981_v13, %v7519_v58  ;;  %v7498_v56 = vor.u32 %v7976_v55, %v7495_v28  ;;  %v7969_v58 = vld [vmem:[#allocation10 + $0x30c] sm:$0xf] }
 0xf76   :  { %5133 = vmatpush.bf16.msrb.mxu0 %v7542_v35  ;;  %5162 = vmatpush.bf16.msrb.mxu1 %v7546_v18 }
 0xf77   :  { %5191 = vmatpush.bf16.msrb.mxu2 %v7550_v38  ;;  %5220 = vmatpush.bf16.msrb.mxu3 %v7554_v32  ;;  %v7974_v38 = vld [vmem:[#allocation10 + $0x32c] sm:$0xf0] }
 0xf7a   :  { %5134 = vmatpush.bf16.msrb.mxu0 %v7526_v0  ;;  %v7972_v0 = vld [vmem:[#allocation10 + $0x324] sm:$0xf] }
 0xf7b   :  { %5221 = vmatpush.bf16.msrb.mxu3 %v7538_v50  ;;  %v7487_v50 = vld [vmem:[#allocation10 + $0x338] sm:$0xf0] }
 0xf7f   :  { %5222 = vmatpush.bf16.msrb.mxu3 %v7522_v49 }
 0xfe9   :  { %v4642_v2 = vpop.f32.mrf.mxu0  ;;  %v4655_v11 = vpop.f32.mrf.mxu1 }
 0xfea   :  { %v4685_v57 = vadd.f32 %v4642_v2, %v3591_v54  ;;  %v4686_v34 = vadd.f32 %v4655_v11, %v3620_v26  ;;  %v7987_v54 = vld [vmem:[#allocation10 + $0x394] sm:$0xf0]  ;;  %v7530_v26 = vor.u32 %v7984_v3, %v7527_v46  ;;  %v7506_v3 = vor.u32 %v7977_v30, %v7503_v40  ;;  %v7479_v46 = vld [vmem:[#allocation10 + $0x330] sm:$0xf0] }
 0xfeb   :  { %v7534_v63 = vor.u32 %v7987_v54, %v7533_v29  ;;  %v11403_v54 = vld [vmem:[#allocation49_spill] sm:$0xff] }
 0xfec   :  { %v7453_v39 = vmul.f32 -1.442695, %v4685_v57  ;;  %v7454_v59 = vmul.f32 -1.442695, %v4686_v34  ;;  %5163 = vmatpush.bf16.msrb.mxu1 %v7530_v26  ;;  %v7982_v34 = vld [vmem:[#allocation10 + $0x36c] sm:$0xf0]  ;;  %v7478_v26 = vor.u32 %v7974_v38, %v7477_v53  ;;  %5223 = vmatpush.bf16.msrb.mxu3 %v7506_v3 }
 0xfed   :  { %5192 = vmatpush.bf16.msrb.mxu2 %v7534_v63  ;;  %v7510_v44 = vor.u32 %v7982_v34, %v7509_v43  ;;  %v7975_v63 = vld [vmem:[#allocation10 + $0x334] sm:$0xf0]  ;;  %v7461_v34 = vld [vmem:[#allocation10 + $0x300] sm:$0xf]  ;;  %v8028_v3 = vld [vmem:[#allocation12 + $0x3e4] sm:$0xf] }
 0xfee   :  { %8409 = vpow2.f32 %v7453_v39  ;;  %v7511_v39 = vld [vmem:[#allocation10 + $0x370] sm:$0xf0] }
 0xfef   :  { %8411 = vpow2.f32 %v7454_v59  ;;  %v7514_v4 = vor.u32 %v7980_v12, %v7511_v39  ;;  %5135 = vmatpush.bf16.msrb.mxu0 %v7510_v44  ;;  %v7462_v39 = vor.u32 %v7970_v42, %v7461_v34 }
 0xff0   :  { %v4668_v9 = vpop.f32.mrf.mxu2  ;;  %v4681_v22 = vpop.f32.mrf.mxu3 }
 0xff1   :  { %v4688_v52 = vadd.f32 %v4681_v22, %v3678_v5  ;;  %v4644_v36 = vpop.f32.mrf.mxu0  ;;  %v4657_v61 = vpop.f32.mrf.mxu1  ;;  %v4687_v8 = vadd.f32 %v4668_v9, %v3649_v48  ;;  %5164 = vmatpush.bf16.msrb.mxu1 %v7514_v4  ;;  %v7978_v5 = vld [vmem:[#allocation10 + $0x34c] sm:$0xf0]  ;;  %5193 = vmatpush.bf16.msrb.mxu2 %v7518_v62  ;;  %v7979_v22 = vld [vmem:[#allocation10 + $0x354] sm:$0xf0]  ;;  %v7968_v48 = vld [vmem:[#allocation10 + $0x304] sm:$0xf] }
 0xff2   :  { %v7494_v10 = vor.u32 %v7978_v5, %v7493_v41  ;;  %v7502_v17 = vor.u32 %v7979_v22, %v7501_v21  ;;  %v7469_v4 = vld [vmem:[#allocation10 + $0x308] sm:$0xf]  ;;  %v7471_v41 = vld [vmem:[#allocation10 + $0x318] sm:$0xf0] }
 0xff3   :  { %v7455_v16 = vmul.f32 -1.442695, %v4688_v52  ;;  %v7470_v5 = vor.u32 %v7971_v45, %v7469_v4  ;;  %v7474_v21 = vor.u32 %v7969_v58, %v7471_v41  ;;  %v8025_v4 = vld [vmem:[#allocation12 + $0x3cc] sm:$0xf]  ;;  %v7695_v45 = vld [vmem:[#allocation12 + $0x3d8] sm:$0xf0] }
 0xff4   :  { %v8410_v37 = vpop.eup %8409  ;;  %5136 = vmatpush.bf16.msrb.mxu0 %v7494_v10  ;;  %v8020_v58 = vld [vmem:[#allocation12 + $0x3a4] sm:$0xf] }
 0xff5   :  { %v8412_v2 = vpop.eup %8411  ;;  %v10605_v11 = vadd.f32 1.0, %v8410_v37  ;;  %8413 = vpow2.f32 %v7455_v16  ;;  %5165 = vmatpush.bf16.msrb.mxu1 %v7498_v56  ;;  %5194 = vmatpush.bf16.msrb.mxu2 %v7502_v17  ;;  %v7482_v37 = vor.u32 %v7972_v0, %v7479_v46  ;;  %v4958_v56 = vpack.c.bf16 %v10403_v7, %v10355_v24  ;;  %v8030_v17 = vld [vmem:[#allocation12 + $0x3ec] sm:$0xf0]  ;;  %v7703_v46 = vld [vmem:[#allocation12 + $0x3f0] sm:$0xf0] }
 0xff6   :  { %v10607_v19 = vadd.f32 1.0, %v8412_v2  ;;  %v7973_v2 = vld [vmem:[#allocation10 + $0x32c] sm:$0xf]  ;;  %v4960_v24 = vpack.c.bf16 %v10595_v23, %v10547_v15 }
 0xff7   :  { %8415 = vrcp.f32 %v10605_v11  ;;  %v4702_v59 = vand.u32 2147483647, %v10605_v11  ;;  %v4704_v61 = vand.u32 2147483648, %v10605_v11  ;;  %vm4698_vm12 = vweird.f32 %v10605_v11  ;;  %v8029_v7 = vld [vmem:[#allocation12 + $0x3ec] sm:$0xf] }
 0xff8   :  { %8417 = vrcp.f32 %v10607_v19  ;;  %v4670_v51 = vpop.f32.mrf.mxu2  ;;  %v4683_v57 = vpop.f32.mrf.mxu3  ;;  %v4723_v36 = vand.u32 2147483648, %v10607_v19  ;;  %v4721_v16 = vand.u32 2147483647, %v10607_v19  ;;  %5137 = vmatpush.bf16.msrb.mxu0 %v7478_v26  ;;  %vm4717_vm11 = vweird.f32 %v10607_v19 }
 0xff9   :  { %vm10627_vm8 = vcmp.eq.f32.partialorder %v4702_v59, 8.507059e+37  ;;  %v7486_v51 = vor.u32 %v7975_v63, %v7485_v33  ;;  %v7490_v57 = vor.u32 %v7973_v2, %v7487_v50  ;;  %v7463_v59 = vld [vmem:[#allocation10 + $0x310] sm:$0xf0]  ;;  %5166 = vmatpush.bf16.msrb.mxu1 %v7482_v37  ;;  %v7711_v33 = vld [vmem:[#allocation12 + $0x3f8] sm:$0xf0]  ;;  %v11405_v50 = vld [vmem:[#allocation27_spill] sm:$0xff] }
 0xffa   :  { %vm4722_vm15 = vcmp.eq.f32.partialorder %v4721_v16, 8.507059e+37  ;;  %v7466_v49 = vor.u32 %v7968_v48, %v7463_v59  ;;  %v11404_v16 = vld [vmem:[#allocation28_spill] sm:$0xff]  ;;  %v8031_v63 = vld [vmem:[#allocation12 + $0x3f4] sm:$0xf0]  ;;  %v7685_v48 = vld [vmem:[#allocation12 + $0x3c0] sm:$0xf] }
 0xffb   :  { %v8414_v14 = vpop.eup %8413  ;;  %5195 = vmatpush.bf16.msrb.mxu2 %v7486_v51  ;;  %5224 = vmatpush.bf16.msrb.mxu3 %v7490_v57  ;;  %v4959_v26 = vpack.c.bf16 %v11404_v16, %v11403_v54  ;;  %v7709_v37 = vld [vmem:[#allocation12 + $0x3e8] sm:$0xf]  ;;  %v11406_v51 = vld [vmem:[#allocation26_spill] sm:$0xff]  ;;  %v7687_v59 = vld [vmem:[#allocation12 + $0x3d0] sm:$0xf0] }
 0xffc   :  { %v10614_v6 = vadd.f32 1.0, %v8414_v14  ;;  %v4724_v14 = vor.u32 1.1754944e-38, %v4723_v36  ;;  %5138 = vmatpush.bf16.msrb.mxu0 %v7462_v39  ;;  %v10677_v2 = vor.u32 %v8031_v63, %v7709_v37  ;;  %v3622_v15 = vadd.f32 %v11406_v51, %v10338_v60  ;;  %v7693_v60 = vld [vmem:[#allocation12 + $0x3c8] sm:$0xf]  ;;  %v7637_v54 = vld [vmem:[#allocation12 + $0x360] sm:$0xf] }
 0xffd   :  { %v10616_v35 = vpop.eup %8415  ;;  %5167 = vmatpush.bf16.msrb.mxu1 %v7466_v49  ;;  %v8021_v49 = vld [vmem:[#allocation12 + $0x3ac] sm:$0xf]  ;;  %v8014_v16 = vld [vmem:[#allocation12 + $0x36c] sm:$0xf0]  ;;  %v8019_v51 = vld [vmem:[#allocation12 + $0x394] sm:$0xf0] }
 0xffe   :  { %v10618_v18 = vpop.eup %8417  ;;  %v4694_v9 = vmul.f32 %v10616_v35, %v10605_v11  ;;  %8419 = vrcp.f32 %v10614_v6  ;;  %vm4699_vm9 = vweird.f32 %v10616_v35  ;;  %vm4737_vm1 = vweird.f32 %v10614_v6  ;;  %v8013_v37 = vld [vmem:[#allocation12 + $0x36c] sm:$0xf] }
 0xfff   :  { %v4713_v52 = vmul.f32 %v10618_v18, %v10607_v19  ;;  %8421 = vtanh.f32 %v4687_v8  ;;  %vm4718_vm10 = vweird.f32 %v10618_v18  ;;  %vm4700_vm13 = vmor %vm4698_vm12, %vm4699_vm9  ;;  %v4705_v8 = vor.u32 1.1754944e-38, %v4704_v61  ;;  %5196 = vmatpush.bf16.msrb.mxu2 %v7470_v5  ;;  %5225 = vmatpush.bf16.msrb.mxu3 %v7474_v21  ;;  %v7679_v5 = vld [vmem:[#allocation12 + $0x3b8] sm:$0xf0] }
0x1000   :  { %v4695_v32 = vsub.f32 1.0, %v4694_v9  ;;  %vm4719_vm14 = vmor %vm4717_vm11, %vm4718_vm10  ;;  %v4741_v53 = vand.u32 2147483647, %v10614_v6  ;;  %v10699_v21 = vor.u32 %v8021_v49, %v7679_v5 }
0x1001   :  { %v4714_v29 = vsub.f32 1.0, %v4713_v52 }
0x1002   :  { %v4696_v27 = vmul.f32 %v10616_v35, %v4695_v32  ;;  %vm4742_vm3 = vcmp.eq.f32.partialorder %v4741_v53, 8.507059e+37  ;;  %v8016_v53 = vld [vmem:[#allocation12 + $0x384] sm:$0xf] }
0x1003   :  { %v4715_v43 = vmul.f32 %v10618_v18, %v4714_v29  ;;  %v10666_v29 = vor.u32 %v8028_v3, %v7703_v46 }
0x1004   :  { %v8420_v44 = vpop.eup %8419  ;;  %v4697_v12 = vadd.f32 %v10616_v35, %v4696_v27  ;;  %v10674_v27 = vor.u32 %v8029_v7, %v7711_v33  ;;  %v7639_v33 = vld [vmem:[#allocation12 + $0x370] sm:$0xf0] }
0x1005   :  { %v8422_v31 = vpop.eup %8421  ;;  %v4716_v62 = vadd.f32 %v10618_v18, %v4715_v43  ;;  %v4733_v13 = vmul.f32 %v8420_v44, %v10614_v6  ;;  %vm4738_vm0 = vweird.f32 %v8420_v44  ;;  %v3593_v43 = vadd.f32 %v11405_v50, %v10336_v1  ;;  %v7647_v50 = vld [vmem:[#allocation12 + $0x378] sm:$0xf0] }
0x1006   :  { %v4701_v11 = vsel %vm4700_vm13, %v10616_v35, %v4697_v12  ;;  %vm4739_vm2 = vmor %vm4737_vm1, %vm4738_vm0  ;;  %v8024_v12 = vld [vmem:[#allocation12 + $0x3c4] sm:$0xf] }
0x1007   :  { %v4706_v55 = vsel %vm10627_vm8, %v4705_v8, %v4701_v11  ;;  %v4720_v10 = vsel %vm4719_vm14, %v10618_v18, %v4716_v62  ;;  %v4734_v28 = vsub.f32 1.0, %v4733_v13  ;;  %v4743_v18 = vand.u32 2147483648, %v10614_v6  ;;  %v7701_v6 = vld [vmem:[#allocation12 + $0x3e0] sm:$0xf]  ;;  %v8022_v13 = vld [vmem:[#allocation12 + $0x3ac] sm:$0xf0] }
0x1008   :  { %v4725_v22 = vsel %vm4722_vm15, %v4724_v14, %v4720_v10  ;;  %v4748_v9 = vmul.f32 %v8422_v31, %v4706_v55  ;;  %v10664_v0 = vor.u32 %v8030_v17, %v7701_v6  ;;  %v10686_v1 = vor.u32 %v8024_v12, %v7687_v59  ;;  %v7669_v62 = vld [vmem:[#allocation12 + $0x3a0] sm:$0xf]  ;;  %v7671_v11 = vld [vmem:[#allocation12 + $0x3b0] sm:$0xf0]  ;;  %v7677_v6 = vld [vmem:[#allocation12 + $0x3a8] sm:$0xf] }
0x1009   :  { %v4747_v19 = vmul.f32 %v4725_v22, %v10592_v25  ;;  %v4735_v30 = vmul.f32 %v8420_v44, %v4734_v28  ;;  %v4744_v36 = vor.u32 1.1754944e-38, %v4743_v18  ;;  %v10688_v8 = vor.u32 %v8025_v4, %v7695_v45  ;;  %v11407_v55 = vld [vmem:[#allocation51_spill] sm:$0xff]  ;;  %v8027_v22 = vld [vmem:[#allocation12 + $0x3d4] sm:$0xf0]  ;;  %v8010_v12 = vld [vmem:[#allocation12 + $0x34c] sm:$0xf0] }
0x100a   :  { %v10693_v41 = vor.u32 %v8022_v13, %v7669_v62  ;;  %v3680_v10 = vadd.f32 %v11407_v55, %v10346_v47  ;;  %v10697_v28 = vor.u32 %v8020_v58, %v7671_v11  ;;  %v10703_v18 = vor.u32 %v8027_v22, %v7693_v60  ;;  %v8023_v17 = vld [vmem:[#allocation12 + $0x3b4] sm:$0xf0]  ;;  %v8008_v4 = vld [vmem:[#allocation12 + $0x344] sm:$0xf]  ;;  %v7623_v45 = vld [vmem:[#allocation12 + $0x350] sm:$0xf0] }
0x100b   :  { %v10652_v35 = vadd.f32 %v4748_v9, %v4747_v19  ;;  %v4736_v40 = vadd.f32 %v8420_v44, %v4735_v30  ;;  %v7653_v9 = vld [vmem:[#allocation12 + $0x380] sm:$0xf]  ;;  %v8018_v19 = vld [vmem:[#allocation12 + $0x38c] sm:$0xf0]  ;;  %v10715_v7 = vor.u32 %v8023_v17, %v7677_v6  ;;  %v7631_v62 = vld [vmem:[#allocation12 + $0x358] sm:$0xf0]  ;;  %v10740_v49 = vor.u32 %v8008_v4, %v7623_v45 }
0x100c   :  { %v10706_v47 = vor.u32 %v8018_v19, %v7653_v9  ;;  %v7645_v58 = vld [vmem:[#allocation12 + $0x368] sm:$0xf]  ;;  %v8015_v11 = vld [vmem:[#allocation12 + $0x374] sm:$0xf0]  ;;  %v7605_v55 = vld [vmem:[#allocation12 + $0x320] sm:$0xf] }
0x100d   :  { %8423 = vtanh.f32 %v10652_v35  ;;  %v4740_v52 = vsel %vm4739_vm2, %v8420_v44, %v4736_v40  ;;  %v8026_v44 = vld [vmem:[#allocation12 + $0x3cc] sm:$0xf0]  ;;  %v11408_v9 = vld [vmem:[#allocation47_spill] sm:$0xff]  ;;  %v8005_v17 = vld [vmem:[#allocation12 + $0x32c] sm:$0xf] }
0x100e   :  { %v4745_v61 = vsel %vm4742_vm3, %v4744_v36, %v4740_v52  ;;  %v10684_v39 = vor.u32 %v8026_v44, %v7685_v48  ;;  %v7655_v52 = vld [vmem:[#allocation12 + $0x390] sm:$0xf0]  ;;  %v8017_v36 = vld [vmem:[#allocation12 + $0x38c] sm:$0xf]  ;;  %v10728_v48 = vor.u32 %v8013_v37, %v7647_v50  ;;  %v7621_v44 = vld [vmem:[#allocation12 + $0x340] sm:$0xf]  ;;  %v3651_v19 = vadd.f32 %v11408_v9, %v11377_v20 }
0x100f   :  { %v10710_v3 = vor.u32 %v8016_v53, %v7655_v52  ;;  %v10736_v13 = vor.u32 %v8010_v12, %v7621_v44  ;;  %v8004_v53 = vld [vmem:[#allocation12 + $0x324] sm:$0xf]  ;;  %v7607_v52 = vld [vmem:[#allocation12 + $0x330] sm:$0xf0]  ;;  %v7615_v20 = vld [vmem:[#allocation12 + $0x338] sm:$0xf0] }
0x1010   :  { %v10773_v50 = vor.u32 %v8005_v17, %v7615_v20  ;;  %v7589_v12 = vld [vmem:[#allocation12 + $0x300] sm:$0xf]  ;;  %v8002_v4 = vld [vmem:[#allocation12 + $0x30c] sm:$0xf0] }
0x1013   :  { %v8424_v25 = vpop.eup %8423 }
0x1014   :  { %v10658_v38 = vmul.f32 %v8424_v25, %v4745_v61 }
0x1016   :  { %v4757_v32 = vpack.c.bf16 %v10658_v38, %v10658_v38 }
0x1018   :  { %4766 = vmatmul.bf16.vlgmr.msra.gmra.mxu0 %v4757_v32  ;;  %4779 = vmatmul.bf16.vlgmr.msra.gmra.mxu1 %v4757_v32 }
0x1019   :  { %4792 = vmatmul.bf16.vlgmr.msra.gmra.mxu2 %v4757_v32  ;;  %4805 = vmatmul.bf16.vlgmr.msra.gmra.mxu3 %v4757_v32 }
0x101a   :  { %5448 = vmatpush.bf16.msra.mxu0 %v10664_v0  ;;  %5461 = vmatpush.bf16.msra.mxu1 %v10666_v29 }
0x101b   :  { %5487 = vmatpush.bf16.msra.mxu3 %v10674_v27  ;;  %5474 = vmatpush.bf16.msra.mxu2 %v10677_v2 }
0x101e   :  { %5449 = vmatpush.bf16.msra.mxu0 %v10684_v39  ;;  %5462 = vmatpush.bf16.msra.mxu1 %v10686_v1 }
0x101f   :  { %5488 = vmatpush.bf16.msra.mxu3 %v10688_v8  ;;  %5475 = vmatpush.bf16.msra.mxu2 %v10703_v18 }
0x1022   :  { %5450 = vmatpush.bf16.msra.mxu0 %v10693_v41  ;;  %5463 = vmatpush.bf16.msra.mxu1 %v10697_v28 }
0x1023   :  { %5489 = vmatpush.bf16.msra.mxu3 %v10699_v21  ;;  %5476 = vmatpush.bf16.msra.mxu2 %v10715_v7 }
0x1026   :  { %5451 = vmatpush.bf16.msra.mxu0 %v10706_v47  ;;  %5464 = vmatpush.bf16.msra.mxu1 %v10710_v3 }
0x1028   :  { %5139 = vmatmul.bf16.vlgmr.msrb.gmra.mxu0 %v4958_v56  ;;  %5168 = vmatmul.bf16.vlgmr.msrb.gmra.mxu1 %v4958_v56 }
0x1029   :  { %5197 = vmatmul.bf16.vlgmr.msrb.gmra.mxu2 %v4958_v56  ;;  %5226 = vmatmul.bf16.vlgmr.msrb.gmra.mxu3 %v4958_v56  ;;  %v7663_v56 = vld [vmem:[#allocation12 + $0x398] sm:$0xf0] }
0x102a   :  { %v10712_v46 = vor.u32 %v8017_v36, %v7663_v56 }
0x102c   :  { %5490 = vmatpush.bf16.msra.mxu3 %v10712_v46 }
0x1030   :  { %5491 = vmatpush.bf16.msra.mxu3 %v10728_v48 }
0x1038   :  { %5144 = vmatmul.bf16.gmra.mxu0 %v4959_v26  ;;  %5173 = vmatmul.bf16.gmra.mxu1 %v4959_v26 }
0x1039   :  { %5202 = vmatmul.bf16.gmra.mxu2 %v4959_v26  ;;  %5231 = vmatmul.bf16.gmra.mxu3 %v4959_v26  ;;  %v8012_v26 = vld [vmem:[#allocation12 + $0x364] sm:$0xf] }
0x1048   :  { %5149 = vmatmul.bf16.gmra.mxu0 %v4960_v24  ;;  %5178 = vmatmul.bf16.gmra.mxu1 %v4960_v24 }
0x1049   :  { %5207 = vmatmul.bf16.gmra.mxu2 %v4960_v24  ;;  %5236 = vmatmul.bf16.gmra.mxu3 %v4960_v24 }
0x1095   :  { %v4767_v23 = vpop.f32.mrf.mxu0  ;;  %v4780_v57 = vpop.f32.mrf.mxu1 }
0x1096   :  { %v4810_v34 = vadd.f32 %v4767_v23, %v3593_v43  ;;  %v4811_v42 = vadd.f32 %v4780_v57, %v3622_v15  ;;  %v7661_v43 = vld [vmem:[#allocation12 + $0x388] sm:$0xf]  ;;  %v10720_v57 = vor.u32 %v8014_v16, %v7637_v54 }
0x1097   :  { %v10732_v59 = vor.u32 %v8019_v51, %v7661_v43  ;;  %v7613_v43 = vld [vmem:[#allocation12 + $0x328] sm:$0xf]  ;;  %v8007_v51 = vld [vmem:[#allocation12 + $0x334] sm:$0xf0] }
0x1098   :  { %v7456_v31 = vmul.f32 -1.442695, %v4810_v34  ;;  %v7457_v14 = vmul.f32 -1.442695, %v4811_v42  ;;  %v10726_v42 = vor.u32 %v8012_v26, %v7639_v33  ;;  %5452 = vmatpush.bf16.msra.mxu0 %v10720_v57  ;;  %v10764_v26 = vor.u32 %v8004_v53, %v7607_v52  ;;  %v8003_v53 = vld [vmem:[#allocation12 + $0x314] sm:$0xf0] }
0x1099   :  { %5477 = vmatpush.bf16.msra.mxu2 %v10732_v59  ;;  %v7599_v52 = vld [vmem:[#allocation12 + $0x318] sm:$0xf0] }
0x109a   :  { %8425 = vpow2.f32 %v7456_v31  ;;  %v8009_v31 = vld [vmem:[#allocation12 + $0x34c] sm:$0xf]  ;;  %5465 = vmatpush.bf16.msra.mxu1 %v10726_v42 }
0x109b   :  { %8427 = vpow2.f32 %v7457_v14  ;;  %v10742_v5 = vor.u32 %v8009_v31, %v7631_v62 }
0x109c   :  { %v10701_v30 = vpop.f32.mrf.mxu2  ;;  %v4806_v40 = vpop.f32.mrf.mxu3  ;;  %5453 = vmatpush.bf16.msra.mxu0 %v10736_v13 }
0x109d   :  { %v4813_v25 = vadd.f32 %v4806_v40, %v3680_v10  ;;  %v4769_v61 = vpop.f32.mrf.mxu0  ;;  %v4782_v32 = vpop.f32.mrf.mxu1  ;;  %v8006_v10 = vld [vmem:[#allocation12 + $0x32c] sm:$0xf0]  ;;  %v10747_v40 = vor.u32 %v8015_v11, %v7645_v58  ;;  %v4812_v56 = vadd.f32 %v10701_v30, %v3651_v19  ;;  %5492 = vmatpush.bf16.msra.mxu3 %v10742_v5  ;;  %v10785_v58 = vor.u32 %v8002_v4, %v7589_v12  ;;  %v7597_v19 = vld [vmem:[#allocation12 + $0x308] sm:$0xf] }
0x109e   :  { %v8011_v61 = vld [vmem:[#allocation12 + $0x354] sm:$0xf0]  ;;  %v10755_v6 = vor.u32 %v8006_v10, %v7605_v55  ;;  %5466 = vmatpush.bf16.msra.mxu1 %v10740_v49  ;;  %v10789_v55 = vor.u32 %v8007_v51, %v7613_v43  ;;  %v8001_v10 = vld [vmem:[#allocation12 + $0x30c] sm:$0xf] }
0x109f   :  { %v7458_v24 = vmul.f32 -1.442695, %v4813_v25  ;;  %v7629_v25 = vld [vmem:[#allocation12 + $0x348] sm:$0xf]  ;;  %5478 = vmatpush.bf16.msra.mxu2 %v10747_v40  ;;  %v10799_v17 = vor.u32 %v8001_v10, %v7599_v52 }
0x10a0   :  { %v8426_v63 = vpop.eup %8425  ;;  %v10770_v33 = vor.u32 %v8011_v61, %v7629_v25  ;;  %5454 = vmatpush.bf16.msra.mxu0 %v10755_v6 }
0x10a1   :  { %v8428_v15 = vpop.eup %8427  ;;  %v10717_v23 = vadd.f32 1.0, %v8426_v63  ;;  %8429 = vpow2.f32 %v7458_v24  ;;  %5493 = vmatpush.bf16.msra.mxu3 %v10773_v50 }
0x10a2   :  { %v10722_v34 = vadd.f32 1.0, %v8428_v15  ;;  %5467 = vmatpush.bf16.msra.mxu1 %v10764_v26 }
0x10a3   :  { %8431 = vrcp.f32 %v10717_v23  ;;  %v4827_v24 = vand.u32 2147483647, %v10717_v23  ;;  %v4829_v63 = vand.u32 2147483648, %v10717_v23  ;;  %5479 = vmatpush.bf16.msra.mxu2 %v10770_v33  ;;  %vm4823_vm7 = vweird.f32 %v10717_v23 }
0x10a4   :  { %8433 = vrcp.f32 %v10722_v34  ;;  %v4795_v14 = vpop.f32.mrf.mxu2  ;;  %v4808_v60 = vpop.f32.mrf.mxu3  ;;  %v4848_v44 = vand.u32 2147483648, %v10722_v34  ;;  %v4846_v31 = vand.u32 2147483647, %v10722_v34  ;;  %vm4842_vm6 = vweird.f32 %v10722_v34  ;;  %5455 = vmatpush.bf16.msra.mxu0 %v10785_v58 }
0x10a5   :  { %v8000_v14 = vld [vmem:[#allocation12 + $0x304] sm:$0xf]  ;;  %v7591_v60 = vld [vmem:[#allocation12 + $0x310] sm:$0xf0]  ;;  %v4830_v25 = vor.u32 1.1754944e-38, %v4829_v63  ;;  %vm4828_vm10 = vcmp.eq.f32.partialorder %v4827_v24, 8.507059e+37  ;;  %v10808_v63 = vor.u32 %v8003_v53, %v7597_v19  ;;  %5494 = vmatpush.bf16.msra.mxu3 %v10799_v17  ;;  %v5169_v10 = vpop.f32.mrf.mxu1 }
0x10a6   :  { %v10787_v11 = vor.u32 %v8000_v14, %v7591_v60  ;;  %vm4847_vm11 = vcmp.eq.f32.partialorder %v4846_v31, 8.507059e+37 }
0x10a7   :  { %v8430_v22 = vpop.eup %8429  ;;  %5480 = vmatpush.bf16.msra.mxu2 %v10789_v55 }
0x10a8   :  { %v10749_v36 = vadd.f32 1.0, %v8430_v22  ;;  %5468 = vmatpush.bf16.msra.mxu1 %v10787_v11  ;;  %5572 = vmatpush.bf16.msrb.mxu0 %v10664_v0 }
0x10a9   :  { %v10751_v32 = vpop.eup %8431  ;;  %5611 = vmatpush.bf16.msrb.mxu3 %v10674_v27 }
0x10aa   :  { %v10757_v54 = vpop.eup %8433  ;;  %v4819_v16 = vmul.f32 %v10751_v32, %v10717_v23  ;;  %8435 = vrcp.f32 %v10749_v36  ;;  %vm4824_vm5 = vweird.f32 %v10751_v32  ;;  %vm4862_vm13 = vweird.f32 %v10749_v36 }
0x10ab   :  { %v4838_v30 = vmul.f32 %v10757_v54, %v10722_v34  ;;  %8437 = vtanh.f32 %v4812_v56  ;;  %vm4843_vm4 = vweird.f32 %v10757_v54  ;;  %vm4825_vm8 = vmor %vm4823_vm7, %vm4824_vm5  ;;  %v4849_v34 = vor.u32 1.1754944e-38, %v4848_v44  ;;  %5481 = vmatpush.bf16.msra.mxu2 %v10808_v63 }
0x10ac   :  { %v4820_v37 = vsub.f32 1.0, %v4819_v16  ;;  %vm4844_vm9 = vmor %vm4842_vm6, %vm4843_vm4  ;;  %5585 = vmatpush.bf16.msrb.mxu1 %v10666_v29  ;;  %5573 = vmatpush.bf16.msrb.mxu0 %v10684_v39  ;;  %v4868_v44 = vand.u32 2147483648, %v10749_v36 }
0x10ad   :  { %v4839_v15 = vsub.f32 1.0, %v4838_v30  ;;  %5612 = vmatpush.bf16.msrb.mxu3 %v10688_v8  ;;  %v10882_v53 = vpop.f32.mrf.mxu1 }
0x10ae   :  { %v4821_v45 = vmul.f32 %v10751_v32, %v4820_v37  ;;  %v4869_v4 = vor.u32 1.1754944e-38, %v4868_v44 }
0x10af   :  { %v4840_v62 = vmul.f32 %v10757_v54, %v4839_v15  ;;  %5598 = vmatpush.bf16.msrb.mxu2 %v10677_v2 }
0x10b0   :  { %v8436_v22 = vpop.eup %8435  ;;  %v4822_v9 = vadd.f32 %v10751_v32, %v4821_v45  ;;  %5586 = vmatpush.bf16.msrb.mxu1 %v10686_v1  ;;  %5574 = vmatpush.bf16.msrb.mxu0 %v10693_v41 }
0x10b1   :  { %v4841_v61 = vadd.f32 %v10757_v54, %v4840_v62  ;;  %v4858_v56 = vmul.f32 %v8436_v22, %v10749_v36  ;;  %v8438_v20 = vpop.eup %8437  ;;  %vm4863_vm12 = vweird.f32 %v8436_v22  ;;  %5613 = vmatpush.bf16.msrb.mxu3 %v10699_v21  ;;  %v5140_v62 = vpop.f32.mrf.mxu0 }
0x10b2   :  { %v4826_v23 = vsel %vm4825_vm8, %v10751_v32, %v4822_v9  ;;  %vm4864_vm14 = vmor %vm4862_vm13, %vm4863_vm12  ;;  %v5227_v9 = vpop.f32.mrf.mxu3 }
0x10b3   :  { %v4831_v16 = vsel %vm4828_vm10, %v4830_v25, %v4826_v23  ;;  %v4845_v30 = vsel %vm4844_vm9, %v10757_v54, %v4841_v61  ;;  %v4859_v37 = vsub.f32 1.0, %v4858_v56  ;;  %5599 = vmatpush.bf16.msrb.mxu2 %v10703_v18 }
0x10b4   :  { %v4850_v43 = vsel %vm4847_vm11, %v4849_v34, %v4845_v30  ;;  %v4873_v51 = vmul.f32 %v8438_v20, %v4831_v16  ;;  %5587 = vmatpush.bf16.msrb.mxu1 %v10697_v28  ;;  %5575 = vmatpush.bf16.msrb.mxu0 %v10706_v47 }
0x10b5   :  { %v4872_v32 = vmul.f32 %v4850_v43, %v10652_v35  ;;  %v4860_v24 = vmul.f32 %v8436_v22, %v4859_v37  ;;  %v4866_v35 = vand.u32 2147483647, %v10749_v36  ;;  %5614 = vmatpush.bf16.msrb.mxu3 %v10712_v46  ;;  %v10890_v56 = vpop.f32.mrf.mxu1 }
0x10b6   :  { %11411 = vst [vmem:[#allocation33_spill] sm:$0xff] %v10890_v56 }
0x10b7   :  { %v4874_v15 = vadd.f32 %v4873_v51, %v4872_v32  ;;  %v4861_v54 = vadd.f32 %v8436_v22, %v4860_v24  ;;  %vm4867_vm15 = vcmp.eq.f32.partialorder %v4866_v35, 8.507059e+37  ;;  %5600 = vmatpush.bf16.msrb.mxu2 %v10715_v7 }
0x10b8   :  { %5588 = vmatpush.bf16.msrb.mxu1 %v10710_v3  ;;  %5576 = vmatpush.bf16.msrb.mxu0 %v10720_v57 }
0x10b9   :  { %8439 = vtanh.f32 %v4874_v15  ;;  %4881 = vst [vmem:[#allocation19 + $0x10] sm:$0xff] %v4874_v15  ;;  %v4865_v12 = vsel %vm4864_vm14, %v8436_v22, %v4861_v54  ;;  %5615 = vmatpush.bf16.msrb.mxu3 %v10728_v48  ;;  %v5198_v22 = vpop.f32.mrf.mxu2  ;;  %v10880_v19 = vpop.f32.mrf.mxu0 }
0x10ba   :  { %v4870_v31 = vsel %vm4867_vm15, %v4869_v4, %v4865_v12  ;;  %v10886_v25 = vpop.f32.mrf.mxu3 }
0x10bb   :  { %5601 = vmatpush.bf16.msrb.mxu2 %v10732_v59 }
0x10bc   :  { %5589 = vmatpush.bf16.msrb.mxu1 %v10726_v42  ;;  %5577 = vmatpush.bf16.msrb.mxu0 %v10736_v13 }
0x10bd   :  { %5616 = vmatpush.bf16.msrb.mxu3 %v10742_v5  ;;  %v10898_v16 = vpop.f32.mrf.mxu1 }
0x10be   :  { %11415 = vst [vmem:[#allocation37_spill] sm:$0xff] %v10898_v16 }
0x10bf   :  { %v8440_v45 = vpop.eup %8439  ;;  %5602 = vmatpush.bf16.msrb.mxu2 %v10747_v40 }
0x10c0   :  { %v4876_v14 = vmul.f32 %v8440_v45, %v4870_v31  ;;  %5590 = vmatpush.bf16.msrb.mxu1 %v10740_v49  ;;  %5578 = vmatpush.bf16.msrb.mxu0 %v10755_v6 }
0x10c1   :  { %5617 = vmatpush.bf16.msrb.mxu3 %v10773_v50  ;;  %v10884_v52 = vpop.f32.mrf.mxu2  ;;  %v10888_v61 = vpop.f32.mrf.mxu0 }
0x10c2   :  { %4879 = vst [vmem:[#allocation17 + $0x10] sm:$0xff] %v4876_v14  ;;  %v4961_v36 = vpack.c.bf16 %v4876_v14, %v10658_v38  ;;  %v5280_v38 = vld [vmem:[#allocation7 + $0x18] sm:$0xff]  ;;  %v10894_v23 = vpop.f32.mrf.mxu3  ;;  %v4949_v14 = vld [vmem:[#allocation13 + $0xc] sm:$0xf] }
0x10c3   :  { %5603 = vmatpush.bf16.msrb.mxu2 %v10770_v33  ;;  %v5287_v60 = vpack.c.bf16 %v5280_v38, %v5280_v38  ;;  %11409 = vst [vmem:[#allocation32_spill] sm:$0xff] %v10884_v52 }
0x10c4   :  { %5154 = vmatmul.bf16.gmra.mxu0 %v4961_v36  ;;  %5183 = vmatmul.bf16.gmra.mxu1 %v4961_v36  ;;  %11410 = vst [vmem:[#allocation31_spill] sm:$0xff] %v10888_v61 }
0x10c5   :  { %5212 = vmatmul.bf16.gmra.mxu2 %v4961_v36  ;;  %5241 = vmatmul.bf16.gmra.mxu3 %v4961_v36  ;;  %11413 = vst [vmem:[#allocation35_spill] sm:$0xff] %v10894_v23  ;;  %v10906_v51 = vpop.f32.mrf.mxu1 }
0x10c6   :  { %5591 = vmatpush.bf16.msrb.mxu1 %v10764_v26  ;;  %5579 = vmatpush.bf16.msrb.mxu0 %v10785_v58  ;;  %11419 = vst [vmem:[#allocation41_spill] sm:$0xff] %v10906_v51 }
0x10c7   :  { %5604 = vmatpush.bf16.msrb.mxu2 %v10789_v55  ;;  %5618 = vmatpush.bf16.msrb.mxu3 %v10799_v17 }
0x10c9   :  { %v10892_v34 = vpop.f32.mrf.mxu2  ;;  %v10896_v20 = vpop.f32.mrf.mxu0 }
0x10ca   :  { %5592 = vmatpush.bf16.msrb.mxu1 %v10787_v11  ;;  %11412 = vst [vmem:[#allocation30_spill] sm:$0xff] %v10892_v34  ;;  %v10902_v37 = vpop.f32.mrf.mxu3 }
0x10cb   :  { %5605 = vmatpush.bf16.msrb.mxu2 %v10808_v63  ;;  %11414 = vst [vmem:[#allocation36_spill] sm:$0xff] %v10896_v20 }
0x10cc   :  { %11417 = vst [vmem:[#allocation40_spill] sm:$0xff] %v10902_v37 }
0x10cd   :  { %v10914_v54 = vpop.f32.mrf.mxu1 }
0x10ce   :  { %11423 = vst [vmem:[#allocation45_spill] sm:$0xff] %v10914_v54  ;;  %v10934_v54 = vperm.slane %v4949_v14, 1 }
0x10d1   :  { %v10900_v30 = vpop.f32.mrf.mxu2  ;;  %v10904_v43 = vpop.f32.mrf.mxu0 }
0x10d2   :  { %11416 = vst [vmem:[#allocation34_spill] sm:$0xff] %v10900_v30  ;;  %v10910_v24 = vpop.f32.mrf.mxu3 }
0x10d3   :  { %11418 = vst [vmem:[#allocation39_spill] sm:$0xff] %v10904_v43 }
0x10d4   :  { %5456 = vmatmul.bf16.vlgmr.msra.gmra.mxu0 %v5287_v60  ;;  %5469 = vmatmul.bf16.vlgmr.msra.gmra.mxu1 %v5287_v60  ;;  %11421 = vst [vmem:[#allocation43_spill] sm:$0xff] %v10910_v24  ;;  %v10942_v24 = vperm.slane %v4949_v14, 3 }
0x10d5   :  { %5482 = vmatmul.bf16.vlgmr.msra.gmra.mxu2 %v5287_v60  ;;  %5495 = vmatmul.bf16.vlgmr.msra.gmra.mxu3 %v5287_v60  ;;  %v10932_v60 = vperm.slane %v4949_v14, 0 }
0x10d6   :  { %5696 = vmatpush.bf16.msra.mxu0 %v10664_v0  ;;  %5709 = vmatpush.bf16.msra.mxu1 %v10666_v29  ;;  %v5228_v51 = vadd.f32 %v5227_v9, %v10942_v24 }
0x10d7   :  { %5722 = vmatpush.bf16.msra.mxu2 %v10677_v2  ;;  %5735 = vmatpush.bf16.msra.mxu3 %v10674_v27 }
0x10d9   :  { %v10908_v32 = vpop.f32.mrf.mxu2  ;;  %v10912_v15 = vpop.f32.mrf.mxu0 }
0x10da   :  { %5697 = vmatpush.bf16.msra.mxu0 %v10684_v39  ;;  %5710 = vmatpush.bf16.msra.mxu1 %v10686_v1  ;;  %11420 = vst [vmem:[#allocation38_spill] sm:$0xff] %v10908_v32  ;;  %v10918_v35 = vpop.f32.mrf.mxu3 }
0x10db   :  { %5723 = vmatpush.bf16.msra.mxu2 %v10703_v18  ;;  %5736 = vmatpush.bf16.msra.mxu3 %v10688_v8  ;;  %11422 = vst [vmem:[#allocation44_spill] sm:$0xff] %v10912_v15 }
0x10dc   :  { %11425 = vst [vmem:[#allocation48_spill] sm:$0xff] %v10918_v35  ;;  %v5170_v35 = vadd.f32 %v5169_v10, %v10934_v54 }
0x10de   :  { %5698 = vmatpush.bf16.msra.mxu0 %v10693_v41  ;;  %5711 = vmatpush.bf16.msra.mxu1 %v10697_v28 }
0x10df   :  { %5724 = vmatpush.bf16.msra.mxu2 %v10715_v7  ;;  %5737 = vmatpush.bf16.msra.mxu3 %v10699_v21 }
0x10e1   :  { %v10916_v44 = vpop.f32.mrf.mxu2 }
0x10e2   :  { %5699 = vmatpush.bf16.msra.mxu0 %v10706_v47  ;;  %5712 = vmatpush.bf16.msra.mxu1 %v10710_v3  ;;  %11424 = vst [vmem:[#allocation42_spill] sm:$0xff] %v10916_v44  ;;  %v5141_v44 = vadd.f32 %v5140_v62, %v10932_v60 }
0x10e3   :  { %5725 = vmatpush.bf16.msra.mxu2 %v10732_v59  ;;  %5738 = vmatpush.bf16.msra.mxu3 %v10712_v46 }
0x10e6   :  { %5700 = vmatpush.bf16.msra.mxu0 %v10720_v57  ;;  %5713 = vmatpush.bf16.msra.mxu1 %v10726_v42 }
0x10e7   :  { %5726 = vmatpush.bf16.msra.mxu2 %v10747_v40  ;;  %5739 = vmatpush.bf16.msra.mxu3 %v10728_v48 }
0x10ea   :  { %5701 = vmatpush.bf16.msra.mxu0 %v10736_v13  ;;  %5714 = vmatpush.bf16.msra.mxu1 %v10740_v49 }
0x10eb   :  { %5727 = vmatpush.bf16.msra.mxu2 %v10770_v33  ;;  %5740 = vmatpush.bf16.msra.mxu3 %v10742_v5 }
0x10ee   :  { %5702 = vmatpush.bf16.msra.mxu0 %v10755_v6  ;;  %5715 = vmatpush.bf16.msra.mxu1 %v10764_v26 }
0x10ef   :  { %5728 = vmatpush.bf16.msra.mxu2 %v10789_v55  ;;  %5741 = vmatpush.bf16.msra.mxu3 %v10773_v50 }
0x10f2   :  { %5703 = vmatpush.bf16.msra.mxu0 %v10785_v58  ;;  %5716 = vmatpush.bf16.msra.mxu1 %v10787_v11 }
0x10f3   :  { %5729 = vmatpush.bf16.msra.mxu2 %v10808_v63  ;;  %5742 = vmatpush.bf16.msra.mxu3 %v10799_v17 }
0x1141   :  { %v10920_v12 = vpop.f32.mrf.mxu0  ;;  %v10922_v4 = vpop.f32.mrf.mxu1 }
0x1142   :  { %11426 = vst [vmem:[#allocation29_spill] sm:$0xff] %v10920_v12 }
0x1143   :  { %11427 = vst [vmem:[#allocation50_spill] sm:$0xff] %v10922_v4 }
0x1148   :  { %v10924_v45 = vpop.f32.mrf.mxu2  ;;  %v10926_v31 = vpop.f32.mrf.mxu3 }
0x1149   :  { %11428 = vst [vmem:[#allocation46_spill] sm:$0xff] %v10924_v45  ;;  %v10928_v36 = vpop.f32.mrf.mxu0  ;;  %v10930_v38 = vpop.f32.mrf.mxu1 }
0x114a   :  { %11429 = vst [vmem:[#allocation49_spill] sm:$0xff] %v10926_v31 }
0x114b   :  { %11430 = vst [vmem:[#allocation28_spill] sm:$0xff] %v10928_v36 }
0x114c   :  { %11431 = vst [vmem:[#allocation27_spill] sm:$0xff] %v10930_v38 }
0x1150   :  { %v10938_v12 = vpop.f32.mrf.mxu2  ;;  %v10940_v4 = vpop.f32.mrf.mxu3 }
0x1151   :  { %11432 = vst [vmem:[#allocation26_spill] sm:$0xff] %v10938_v12  ;;  %v5457_v45 = vpop.f32.mrf.mxu0  ;;  %v5470_v15 = vpop.f32.mrf.mxu1 }
0x1152   :  { %11433 = vst [vmem:[#allocation51_spill] sm:$0xff] %v10940_v4  ;;  %v5500_v31 = vadd.f32 %v5457_v45, %v5141_v44  ;;  %v5501_v32 = vadd.f32 %v5470_v15, %v5170_v35  ;;  %v10945_v15 = vperm.slane %v4949_v14, 2 }
0x1154   :  { %v7715_v36 = vmul.f32 -1.442695, %v5500_v31  ;;  %v7716_v38 = vmul.f32 -1.442695, %v5501_v32  ;;  %11434 = vst [vmem:[#allocation47_spill] sm:$0xff] %v10945_v15  ;;  %v5199_v9 = vadd.f32 %v5198_v22, %v10945_v15 }
0x1156   :  { %8441 = vpow2.f32 %v7715_v36 }
0x1157   :  { %8443 = vpow2.f32 %v7716_v38 }
0x1158   :  { %v5483_v43 = vpop.f32.mrf.mxu2  ;;  %v5496_v62 = vpop.f32.mrf.mxu3 }
0x1159   :  { %v5503_v30 = vadd.f32 %v5496_v62, %v5228_v51  ;;  %v5459_v10 = vpop.f32.mrf.mxu0  ;;  %v5472_v37 = vpop.f32.mrf.mxu1  ;;  %v5502_v51 = vadd.f32 %v5483_v43, %v5199_v9 }
0x115b   :  { %v7717_v12 = vmul.f32 -1.442695, %v5503_v30 }
0x115c   :  { %v8442_v16 = vpop.eup %8441 }
0x115d   :  { %v8444_v4 = vpop.eup %8443  ;;  %v5507_v20 = vadd.f32 1.0, %v8442_v16  ;;  %8445 = vpow2.f32 %v7717_v12 }
0x115e   :  { %v5526_v44 = vadd.f32 1.0, %v8444_v4 }
0x115f   :  { %8447 = vrcp.f32 %v5507_v20  ;;  %v5519_v12 = vand.u32 2147483648, %v5507_v20  ;;  %v5517_v10 = vand.u32 2147483647, %v5507_v20  ;;  %vm5513_vm2 = vweird.f32 %v5507_v20 }
0x1160   :  { %8449 = vrcp.f32 %v5526_v44  ;;  %v5498_v32 = vpop.f32.mrf.mxu3  ;;  %v5485_v35 = vpop.f32.mrf.mxu2  ;;  %v5538_v4 = vand.u32 2147483648, %v5526_v44  ;;  %vm5532_vm3 = vweird.f32 %v5526_v44 }
0x1161   :  { %v5536_v35 = vand.u32 2147483647, %v5526_v44  ;;  %v5520_v43 = vor.u32 1.1754944e-38, %v5519_v12  ;;  %vm5518_vm6 = vcmp.eq.f32.partialorder %v5517_v10, 8.507059e+37 }
0x1163   :  { %v8446_v45 = vpop.eup %8445  ;;  %vm5537_vm7 = vcmp.eq.f32.partialorder %v5536_v35, 8.507059e+37 }
0x1164   :  { %v5546_v31 = vadd.f32 1.0, %v8446_v45 }
0x1165   :  { %v8448_v36 = vpop.eup %8447 }
0x1166   :  { %v8450_v38 = vpop.eup %8449  ;;  %v5509_v37 = vmul.f32 %v8448_v36, %v5507_v20  ;;  %8451 = vrcp.f32 %v5546_v31  ;;  %vm5514_vm0 = vweird.f32 %v8448_v36  ;;  %v5558_v12 = vand.u32 2147483648, %v5546_v31 }
0x1167   :  { %v5528_v30 = vmul.f32 %v8450_v38, %v5526_v44  ;;  %8453 = vtanh.f32 %v5502_v51  ;;  %vm5533_vm1 = vweird.f32 %v8450_v38  ;;  %vm5515_vm4 = vmor %vm5513_vm2, %vm5514_vm0  ;;  %vm5552_vm9 = vweird.f32 %v5546_v31 }
0x1168   :  { %v5510_v62 = vsub.f32 1.0, %v5509_v37  ;;  %vm5534_vm5 = vmor %vm5532_vm3, %vm5533_vm1  ;;  %v5539_v37 = vor.u32 1.1754944e-38, %v5538_v4  ;;  %v5556_v4 = vand.u32 2147483647, %v5546_v31  ;;  %v5559_v10 = vor.u32 1.1754944e-38, %v5558_v12 }
0x1169   :  { %v5529_v16 = vsub.f32 1.0, %v5528_v30  ;;  %v5282_v30 = vld [vmem:[#allocation9 + $0x18] sm:$0xff] }
0x116a   :  { %v5511_v14 = vmul.f32 %v8448_v36, %v5510_v62  ;;  %vm5557_vm11 = vcmp.eq.f32.partialorder %v5556_v4, 8.507059e+37 }
0x116b   :  { %v5530_v32 = vmul.f32 %v8450_v38, %v5529_v16 }
0x116c   :  { %v8452_v34 = vpop.eup %8451  ;;  %v5512_v22 = vadd.f32 %v8448_v36, %v5511_v14 }
0x116d   :  { %v5531_v45 = vadd.f32 %v8450_v38, %v5530_v32  ;;  %v5548_v9 = vmul.f32 %v8452_v34, %v5546_v31  ;;  %v8454_v51 = vpop.eup %8453  ;;  %vm5553_vm8 = vweird.f32 %v8452_v34 }
0x116e   :  { %v5516_v23 = vsel %vm5515_vm4, %v8448_v36, %v5512_v22  ;;  %vm5554_vm10 = vmor %vm5552_vm9, %vm5553_vm8 }
0x116f   :  { %v5521_v62 = vsel %vm5518_vm6, %v5520_v43, %v5516_v23  ;;  %v5535_v56 = vsel %vm5534_vm5, %v8450_v38, %v5531_v45  ;;  %v5549_v16 = vsub.f32 1.0, %v5548_v9  ;;  %v5230_v45 = vadd.f32 %v10886_v25, %v10942_v24 }
0x1170   :  { %v5540_v61 = vsel %vm5537_vm7, %v5539_v37, %v5535_v56  ;;  %v5563_v52 = vmul.f32 %v8454_v51, %v5521_v62 }
0x1171   :  { %v5562_v15 = vmul.f32 %v5540_v61, %v5282_v30  ;;  %v5550_v14 = vmul.f32 %v8452_v34, %v5549_v16  ;;  %v5172_v61 = vadd.f32 %v10882_v53, %v10934_v54 }
0x1173   :  { %v10948_v20 = vadd.f32 %v5563_v52, %v5562_v15  ;;  %v5551_v44 = vadd.f32 %v8452_v34, %v5550_v14  ;;  %v5143_v52 = vadd.f32 %v10880_v19, %v10932_v60 }
0x1175   :  { %8455 = vtanh.f32 %v10948_v20  ;;  %v5555_v36 = vsel %vm5554_vm10, %v8452_v34, %v5551_v44 }
0x1176   :  { %v5560_v38 = vsel %vm5557_vm11, %v5559_v10, %v5555_v36  ;;  %v11435_v10 = vld [vmem:[#allocation47_spill] sm:$0xff] }
0x117b   :  { %v8456_v23 = vpop.eup %8455 }
0x117c   :  { %v5566_v32 = vmul.f32 %v8456_v23, %v5560_v38  ;;  %v11436_v23 = vld [vmem:[#allocation32_spill] sm:$0xff] }
0x117d   :  { %v5201_v25 = vadd.f32 %v11436_v23, %v11435_v10 }
0x117e   :  { %v5571_v56 = vpack.c.bf16 %v5566_v32, %v5566_v32 }
0x1180   :  { %5580 = vmatmul.bf16.vlgmr.msrb.gmra.mxu0 %v5571_v56  ;;  %5593 = vmatmul.bf16.vlgmr.msrb.gmra.mxu1 %v5571_v56 }
0x1181   :  { %5606 = vmatmul.bf16.vlgmr.msrb.gmra.mxu2 %v5571_v56  ;;  %5619 = vmatmul.bf16.vlgmr.msrb.gmra.mxu3 %v5571_v56 }
0x1182   :  { %5820 = vmatpush.bf16.msrb.mxu0 %v10664_v0  ;;  %5833 = vmatpush.bf16.msrb.mxu1 %v10666_v29 }
0x1183   :  { %5846 = vmatpush.bf16.msrb.mxu2 %v10677_v2  ;;  %5859 = vmatpush.bf16.msrb.mxu3 %v10674_v27 }
0x1186   :  { %5821 = vmatpush.bf16.msrb.mxu0 %v10684_v39  ;;  %5834 = vmatpush.bf16.msrb.mxu1 %v10686_v1 }
0x1187   :  { %5847 = vmatpush.bf16.msrb.mxu2 %v10703_v18  ;;  %5860 = vmatpush.bf16.msrb.mxu3 %v10688_v8 }
0x118a   :  { %5822 = vmatpush.bf16.msrb.mxu0 %v10693_v41  ;;  %5835 = vmatpush.bf16.msrb.mxu1 %v10697_v28 }
0x118b   :  { %5848 = vmatpush.bf16.msrb.mxu2 %v10715_v7  ;;  %5861 = vmatpush.bf16.msrb.mxu3 %v10699_v21 }
0x118e   :  { %5823 = vmatpush.bf16.msrb.mxu0 %v10706_v47  ;;  %5836 = vmatpush.bf16.msrb.mxu1 %v10710_v3 }
0x118f   :  { %5849 = vmatpush.bf16.msrb.mxu2 %v10732_v59  ;;  %5862 = vmatpush.bf16.msrb.mxu3 %v10712_v46 }
0x1192   :  { %5824 = vmatpush.bf16.msrb.mxu0 %v10720_v57  ;;  %5837 = vmatpush.bf16.msrb.mxu1 %v10726_v42 }
0x1193   :  { %5850 = vmatpush.bf16.msrb.mxu2 %v10747_v40  ;;  %5863 = vmatpush.bf16.msrb.mxu3 %v10728_v48 }
0x1196   :  { %5825 = vmatpush.bf16.msrb.mxu0 %v10736_v13  ;;  %5838 = vmatpush.bf16.msrb.mxu1 %v10740_v49 }
0x1197   :  { %5851 = vmatpush.bf16.msrb.mxu2 %v10770_v33  ;;  %5864 = vmatpush.bf16.msrb.mxu3 %v10742_v5 }
0x119a   :  { %5826 = vmatpush.bf16.msrb.mxu0 %v10755_v6  ;;  %5839 = vmatpush.bf16.msrb.mxu1 %v10764_v26 }
0x119b   :  { %5852 = vmatpush.bf16.msrb.mxu2 %v10789_v55  ;;  %5865 = vmatpush.bf16.msrb.mxu3 %v10773_v50 }
0x119e   :  { %5827 = vmatpush.bf16.msrb.mxu0 %v10785_v58  ;;  %5840 = vmatpush.bf16.msrb.mxu1 %v10787_v11 }
0x119f   :  { %5853 = vmatpush.bf16.msrb.mxu2 %v10808_v63  ;;  %5866 = vmatpush.bf16.msrb.mxu3 %v10799_v17 }
0x11fd   :  { %v5581_v34 = vpop.f32.mrf.mxu0  ;;  %v5594_v15 = vpop.f32.mrf.mxu1 }
0x11fe   :  { %v5624_v31 = vadd.f32 %v5581_v34, %v5143_v52  ;;  %v5625_v35 = vadd.f32 %v5594_v15, %v5172_v61 }
0x1200   :  { %v7718_v22 = vmul.f32 -1.442695, %v5624_v31  ;;  %v7719_v43 = vmul.f32 -1.442695, %v5625_v35 }
0x1202   :  { %8457 = vpow2.f32 %v7718_v22 }
0x1203   :  { %8459 = vpow2.f32 %v7719_v43 }
0x1204   :  { %v5607_v9 = vpop.f32.mrf.mxu2  ;;  %v5620_v37 = vpop.f32.mrf.mxu3 }
0x1205   :  { %v5627_v30 = vadd.f32 %v5620_v37, %v5230_v45  ;;  %v5583_v51 = vpop.f32.mrf.mxu0  ;;  %v5596_v62 = vpop.f32.mrf.mxu1  ;;  %v5626_v56 = vadd.f32 %v5607_v9, %v5201_v25 }
0x1207   :  { %v7720_v19 = vmul.f32 -1.442695, %v5627_v30 }
0x1208   :  { %v8458_v16 = vpop.eup %8457 }
0x1209   :  { %v8460_v14 = vpop.eup %8459  ;;  %v5631_v53 = vadd.f32 1.0, %v8458_v16  ;;  %8461 = vpow2.f32 %v7720_v19 }
0x120a   :  { %v5650_v44 = vadd.f32 1.0, %v8460_v14 }
0x120b   :  { %8463 = vrcp.f32 %v5631_v53  ;;  %v5643_v35 = vand.u32 2147483648, %v5631_v53  ;;  %v5641_v45 = vand.u32 2147483647, %v5631_v53  ;;  %vm5637_vm14 = vweird.f32 %v5631_v53 }
0x120c   :  { %8465 = vrcp.f32 %v5650_v44  ;;  %v5609_v12 = vpop.f32.mrf.mxu2  ;;  %v5622_v4 = vpop.f32.mrf.mxu3  ;;  %v5662_v22 = vand.u32 2147483648, %v5650_v44  ;;  %v5660_v30 = vand.u32 2147483647, %v5650_v44  ;;  %vm5656_vm15 = vweird.f32 %v5650_v44 }
0x120d   :  { %v5644_v9 = vor.u32 1.1754944e-38, %v5643_v35  ;;  %vm5642_vm2 = vcmp.eq.f32.partialorder %v5641_v45, 8.507059e+37 }
0x120e   :  { %v5663_v14 = vor.u32 1.1754944e-38, %v5662_v22  ;;  %vm5661_vm3 = vcmp.eq.f32.partialorder %v5660_v30, 8.507059e+37  ;;  %v11438_v30 = vld [vmem:[#allocation33_spill] sm:$0xff] }
0x120f   :  { %v8462_v36 = vpop.eup %8461 }
0x1210   :  { %v5670_v38 = vadd.f32 1.0, %v8462_v36 }
0x1211   :  { %v8464_v32 = vpop.eup %8463 }
0x1212   :  { %v8466_v52 = vpop.eup %8465  ;;  %v5633_v61 = vmul.f32 %v8464_v32, %v5631_v53  ;;  %8467 = vrcp.f32 %v5670_v38  ;;  %vm5638_vm12 = vweird.f32 %v8464_v32  ;;  %vm5676_vm5 = vweird.f32 %v5670_v38 }
0x1213   :  { %v5652_v34 = vmul.f32 %v8466_v52, %v5650_v44  ;;  %8469 = vtanh.f32 %v5626_v56  ;;  %vm5657_vm13 = vweird.f32 %v8466_v52  ;;  %vm5639_vm0 = vmor %vm5637_vm14, %vm5638_vm12 }
0x1214   :  { %v5634_v15 = vsub.f32 1.0, %v5633_v61  ;;  %vm5658_vm1 = vmor %vm5656_vm15, %vm5657_vm13 }
0x1215   :  { %v5653_v31 = vsub.f32 1.0, %v5652_v34 }
0x1216   :  { %v5635_v43 = vmul.f32 %v8464_v32, %v5634_v15 }
0x1217   :  { %v5654_v37 = vmul.f32 %v8466_v52, %v5653_v31  ;;  %v5682_v31 = vand.u32 2147483648, %v5670_v38 }
0x1218   :  { %v8468_v51 = vpop.eup %8467  ;;  %v5636_v62 = vadd.f32 %v8464_v32, %v5635_v43 }
0x1219   :  { %v5655_v19 = vadd.f32 %v8466_v52, %v5654_v37  ;;  %v5672_v16 = vmul.f32 %v8468_v51, %v5670_v38  ;;  %v8470_v4 = vpop.eup %8469  ;;  %vm5677_vm4 = vweird.f32 %v8468_v51  ;;  %v5683_v22 = vor.u32 1.1754944e-38, %v5682_v31 }
0x121a   :  { %v5640_v12 = vsel %vm5639_vm0, %v8464_v32, %v5636_v62  ;;  %v5680_v32 = vand.u32 2147483647, %v5670_v38  ;;  %vm5678_vm6 = vmor %vm5676_vm5, %vm5677_vm4 }
0x121b   :  { %v5645_v36 = vsel %vm5642_vm2, %v5644_v9, %v5640_v12  ;;  %v5659_v23 = vsel %vm5658_vm1, %v8466_v52, %v5655_v19  ;;  %v5673_v25 = vsub.f32 1.0, %v5672_v16 }
0x121c   :  { %v5664_v56 = vsel %vm5661_vm3, %v5663_v14, %v5659_v23  ;;  %v5687_v61 = vmul.f32 %v8470_v4, %v5645_v36  ;;  %vm5681_vm7 = vcmp.eq.f32.partialorder %v5680_v32, 8.507059e+37  ;;  %v11439_v4 = vld [vmem:[#allocation35_spill] sm:$0xff] }
0x121d   :  { %v5686_v34 = vmul.f32 %v5664_v56, %v10948_v20  ;;  %v5674_v15 = vmul.f32 %v8468_v51, %v5673_v25  ;;  %v11437_v20 = vld [vmem:[#allocation31_spill] sm:$0xff]  ;;  %v5233_v36 = vadd.f32 %v11439_v4, %v10942_v24 }
0x121e   :  { %v5146_v38 = vadd.f32 %v11437_v20, %v10932_v60 }
0x121f   :  { %v10992_v53 = vadd.f32 %v5687_v61, %v5686_v34  ;;  %v5675_v44 = vadd.f32 %v8468_v51, %v5674_v15 }
0x1221   :  { %8471 = vtanh.f32 %v10992_v53  ;;  %v5679_v35 = vsel %vm5678_vm6, %v8468_v51, %v5675_v44  ;;  %v5175_v51 = vadd.f32 %v11438_v30, %v10934_v54 }
0x1222   :  { %v5684_v43 = vsel %vm5681_vm7, %v5683_v22, %v5679_v35 }
0x1227   :  { %v8472_v52 = vpop.eup %8471 }
0x1228   :  { %v5690_v45 = vmul.f32 %v8472_v52, %v5684_v43 }
0x122a   :  { %v5695_v37 = vpack.c.bf16 %v5690_v45, %v5690_v45  ;;  %v11440_v45 = vld [vmem:[#allocation30_spill] sm:$0xff] }
0x122c   :  { %5704 = vmatmul.bf16.vlgmr.msra.gmra.mxu0 %v5695_v37  ;;  %5717 = vmatmul.bf16.vlgmr.msra.gmra.mxu1 %v5695_v37 }
0x122d   :  { %5730 = vmatmul.bf16.vlgmr.msra.gmra.mxu2 %v5695_v37  ;;  %5743 = vmatmul.bf16.vlgmr.msra.gmra.mxu3 %v5695_v37  ;;  %v5204_v37 = vadd.f32 %v11440_v45, %v11435_v10 }
0x122e   :  { %5944 = vmatpush.bf16.msra.mxu0 %v10664_v0  ;;  %5957 = vmatpush.bf16.msra.mxu1 %v10666_v29 }
0x122f   :  { %5970 = vmatpush.bf16.msra.mxu2 %v10677_v2  ;;  %5983 = vmatpush.bf16.msra.mxu3 %v10674_v27 }
0x1232   :  { %5945 = vmatpush.bf16.msra.mxu0 %v10684_v39  ;;  %5958 = vmatpush.bf16.msra.mxu1 %v10686_v1 }
0x1233   :  { %5971 = vmatpush.bf16.msra.mxu2 %v10703_v18  ;;  %5984 = vmatpush.bf16.msra.mxu3 %v10688_v8 }
0x1236   :  { %5946 = vmatpush.bf16.msra.mxu0 %v10693_v41  ;;  %5959 = vmatpush.bf16.msra.mxu1 %v10697_v28 }
0x1237   :  { %5972 = vmatpush.bf16.msra.mxu2 %v10715_v7  ;;  %5985 = vmatpush.bf16.msra.mxu3 %v10699_v21 }
0x123a   :  { %5947 = vmatpush.bf16.msra.mxu0 %v10706_v47  ;;  %5960 = vmatpush.bf16.msra.mxu1 %v10710_v3 }
0x123b   :  { %5973 = vmatpush.bf16.msra.mxu2 %v10732_v59  ;;  %5986 = vmatpush.bf16.msra.mxu3 %v10712_v46 }
0x123e   :  { %5948 = vmatpush.bf16.msra.mxu0 %v10720_v57  ;;  %5961 = vmatpush.bf16.msra.mxu1 %v10726_v42 }
0x123f   :  { %5974 = vmatpush.bf16.msra.mxu2 %v10747_v40  ;;  %5987 = vmatpush.bf16.msra.mxu3 %v10728_v48 }
0x1242   :  { %5949 = vmatpush.bf16.msra.mxu0 %v10736_v13  ;;  %5962 = vmatpush.bf16.msra.mxu1 %v10740_v49 }
0x1243   :  { %5975 = vmatpush.bf16.msra.mxu2 %v10770_v33  ;;  %5988 = vmatpush.bf16.msra.mxu3 %v10742_v5 }
0x1246   :  { %5950 = vmatpush.bf16.msra.mxu0 %v10755_v6  ;;  %5963 = vmatpush.bf16.msra.mxu1 %v10764_v26 }
0x1247   :  { %5976 = vmatpush.bf16.msra.mxu2 %v10789_v55  ;;  %5989 = vmatpush.bf16.msra.mxu3 %v10773_v50 }
0x124a   :  { %5951 = vmatpush.bf16.msra.mxu0 %v10785_v58  ;;  %5964 = vmatpush.bf16.msra.mxu1 %v10787_v11 }
0x124b   :  { %5977 = vmatpush.bf16.msra.mxu2 %v10808_v63  ;;  %5990 = vmatpush.bf16.msra.mxu3 %v10799_v17 }
0x12a9   :  { %v5705_v62 = vpop.f32.mrf.mxu0  ;;  %v5718_v9 = vpop.f32.mrf.mxu1 }
0x12aa   :  { %v5748_v19 = vadd.f32 %v5705_v62, %v5146_v38  ;;  %v5749_v16 = vadd.f32 %v5718_v9, %v5175_v51 }
0x12ac   :  { %v7721_v14 = vmul.f32 -1.442695, %v5748_v19  ;;  %v7722_v12 = vmul.f32 -1.442695, %v5749_v16 }
0x12ae   :  { %8473 = vpow2.f32 %v7721_v14 }
0x12af   :  { %8475 = vpow2.f32 %v7722_v12 }
0x12b0   :  { %v5731_v23 = vpop.f32.mrf.mxu2  ;;  %v5744_v25 = vpop.f32.mrf.mxu3 }
0x12b1   :  { %v5751_v56 = vadd.f32 %v5744_v25, %v5233_v36  ;;  %v5707_v61 = vpop.f32.mrf.mxu0  ;;  %v5720_v34 = vpop.f32.mrf.mxu1  ;;  %v5750_v30 = vadd.f32 %v5731_v23, %v5204_v37 }
0x12b3   :  { %v7723_v15 = vmul.f32 -1.442695, %v5751_v56 }
0x12b4   :  { %v8474_v44 = vpop.eup %8473 }
0x12b5   :  { %v8476_v31 = vpop.eup %8475  ;;  %v5755_v32 = vadd.f32 1.0, %v8474_v44  ;;  %8477 = vpow2.f32 %v7723_v15 }
0x12b6   :  { %v5774_v35 = vadd.f32 1.0, %v8476_v31 }
0x12b7   :  { %8479 = vrcp.f32 %v5755_v32  ;;  %v5767_v14 = vand.u32 2147483648, %v5755_v32  ;;  %v5765_v36 = vand.u32 2147483647, %v5755_v32  ;;  %vm5761_vm10 = vweird.f32 %v5755_v32 }
0x12b8   :  { %8481 = vrcp.f32 %v5774_v35  ;;  %v5733_v22 = vpop.f32.mrf.mxu2  ;;  %v5746_v52 = vpop.f32.mrf.mxu3  ;;  %v5786_v12 = vand.u32 2147483648, %v5774_v35  ;;  %v5784_v56 = vand.u32 2147483647, %v5774_v35  ;;  %vm5780_vm11 = vweird.f32 %v5774_v35 }
0x12b9   :  { %v5768_v23 = vor.u32 1.1754944e-38, %v5767_v14  ;;  %vm5766_vm14 = vcmp.eq.f32.partialorder %v5765_v36, 8.507059e+37 }
0x12ba   :  { %v5787_v31 = vor.u32 1.1754944e-38, %v5786_v12  ;;  %vm5785_vm15 = vcmp.eq.f32.partialorder %v5784_v56, 8.507059e+37  ;;  %v11442_v56 = vld [vmem:[#allocation37_spill] sm:$0xff] }
0x12bb   :  { %v8478_v43 = vpop.eup %8477 }
0x12bc   :  { %v5794_v20 = vadd.f32 1.0, %v8478_v43 }
0x12bd   :  { %v8480_v38 = vpop.eup %8479 }
0x12be   :  { %v8482_v51 = vpop.eup %8481  ;;  %v5757_v62 = vmul.f32 %v8480_v38, %v5755_v32  ;;  %8483 = vrcp.f32 %v5794_v20  ;;  %vm5762_vm8 = vweird.f32 %v8480_v38  ;;  %vm5800_vm1 = vweird.f32 %v5794_v20 }
0x12bf   :  { %v5776_v9 = vmul.f32 %v8482_v51, %v5774_v35  ;;  %8485 = vtanh.f32 %v5750_v30  ;;  %vm5781_vm9 = vweird.f32 %v8482_v51  ;;  %vm5763_vm12 = vmor %vm5761_vm10, %vm5762_vm8 }
0x12c0   :  { %v5758_v19 = vsub.f32 1.0, %v5757_v62  ;;  %vm5782_vm13 = vmor %vm5780_vm11, %vm5781_vm9 }
0x12c1   :  { %v5777_v16 = vsub.f32 1.0, %v5776_v9 }
0x12c2   :  { %v5759_v4 = vmul.f32 %v8480_v38, %v5758_v19 }
0x12c3   :  { %v5778_v25 = vmul.f32 %v8482_v51, %v5777_v16  ;;  %v5806_v16 = vand.u32 2147483648, %v5794_v20 }
0x12c4   :  { %v8484_v61 = vpop.eup %8483  ;;  %v5760_v34 = vadd.f32 %v8480_v38, %v5759_v4 }
0x12c5   :  { %v5779_v15 = vadd.f32 %v8482_v51, %v5778_v25  ;;  %v5796_v44 = vmul.f32 %v8484_v61, %v5794_v20  ;;  %v8486_v52 = vpop.eup %8485  ;;  %vm5801_vm0 = vweird.f32 %v8484_v61  ;;  %v5807_v12 = vor.u32 1.1754944e-38, %v5806_v16 }
0x12c6   :  { %v5764_v22 = vsel %vm5763_vm12, %v8480_v38, %v5760_v34  ;;  %v5804_v38 = vand.u32 2147483647, %v5794_v20  ;;  %vm5802_vm2 = vmor %vm5800_vm1, %vm5801_vm0 }
0x12c7   :  { %v5769_v43 = vsel %vm5766_vm14, %v5768_v23, %v5764_v22  ;;  %v5783_v45 = vsel %vm5782_vm13, %v8482_v51, %v5779_v15  ;;  %v5797_v37 = vsub.f32 1.0, %v5796_v44 }
0x12c8   :  { %v5788_v30 = vsel %vm5785_vm15, %v5787_v31, %v5783_v45  ;;  %v5811_v62 = vmul.f32 %v8486_v52, %v5769_v43  ;;  %vm5805_vm3 = vcmp.eq.f32.partialorder %v5804_v38, 8.507059e+37  ;;  %v11443_v52 = vld [vmem:[#allocation40_spill] sm:$0xff] }
0x12c9   :  { %v5810_v9 = vmul.f32 %v5788_v30, %v10992_v53  ;;  %v5798_v19 = vmul.f32 %v8484_v61, %v5797_v37  ;;  %v11441_v53 = vld [vmem:[#allocation36_spill] sm:$0xff]  ;;  %v5235_v43 = vadd.f32 %v11443_v52, %v10942_v24 }
0x12ca   :  { %v5148_v20 = vadd.f32 %v11441_v53, %v10932_v60 }
0x12cb   :  { %v11036_v32 = vadd.f32 %v5811_v62, %v5810_v9  ;;  %v5799_v35 = vadd.f32 %v8484_v61, %v5798_v19 }
0x12cd   :  { %8487 = vtanh.f32 %v11036_v32  ;;  %v5803_v14 = vsel %vm5802_vm2, %v8484_v61, %v5799_v35  ;;  %v5177_v61 = vadd.f32 %v11442_v56, %v10934_v54 }
0x12ce   :  { %v5808_v4 = vsel %vm5805_vm3, %v5807_v12, %v5803_v14 }
0x12d3   :  { %v8488_v51 = vpop.eup %8487 }
0x12d4   :  { %v5814_v36 = vmul.f32 %v8488_v51, %v5808_v4 }
0x12d6   :  { %v5819_v25 = vpack.c.bf16 %v5814_v36, %v5814_v36  ;;  %v11444_v36 = vld [vmem:[#allocation34_spill] sm:$0xff] }
0x12d8   :  { %5828 = vmatmul.bf16.vlgmr.msrb.gmra.mxu0 %v5819_v25  ;;  %5841 = vmatmul.bf16.vlgmr.msrb.gmra.mxu1 %v5819_v25 }
0x12d9   :  { %5854 = vmatmul.bf16.vlgmr.msrb.gmra.mxu2 %v5819_v25  ;;  %5867 = vmatmul.bf16.vlgmr.msrb.gmra.mxu3 %v5819_v25  ;;  %v5206_v25 = vadd.f32 %v11444_v36, %v11435_v10 }
0x12da   :  { %6068 = vmatpush.bf16.msrb.mxu0 %v10664_v0  ;;  %6081 = vmatpush.bf16.msrb.mxu1 %v10666_v29 }
0x12db   :  { %6094 = vmatpush.bf16.msrb.mxu2 %v10677_v2  ;;  %6107 = vmatpush.bf16.msrb.mxu3 %v10674_v27 }
0x12de   :  { %6069 = vmatpush.bf16.msrb.mxu0 %v10684_v39  ;;  %6082 = vmatpush.bf16.msrb.mxu1 %v10686_v1 }
0x12df   :  { %6095 = vmatpush.bf16.msrb.mxu2 %v10703_v18  ;;  %6108 = vmatpush.bf16.msrb.mxu3 %v10688_v8 }
0x12e2   :  { %6070 = vmatpush.bf16.msrb.mxu0 %v10693_v41  ;;  %6083 = vmatpush.bf16.msrb.mxu1 %v10697_v28 }
0x12e3   :  { %6096 = vmatpush.bf16.msrb.mxu2 %v10715_v7  ;;  %6109 = vmatpush.bf16.msrb.mxu3 %v10699_v21 }
0x12e6   :  { %6071 = vmatpush.bf16.msrb.mxu0 %v10706_v47  ;;  %6084 = vmatpush.bf16.msrb.mxu1 %v10710_v3 }
0x12e7   :  { %6097 = vmatpush.bf16.msrb.mxu2 %v10732_v59  ;;  %6110 = vmatpush.bf16.msrb.mxu3 %v10712_v46 }
0x12ea   :  { %6072 = vmatpush.bf16.msrb.mxu0 %v10720_v57  ;;  %6085 = vmatpush.bf16.msrb.mxu1 %v10726_v42 }
0x12eb   :  { %6098 = vmatpush.bf16.msrb.mxu2 %v10747_v40  ;;  %6111 = vmatpush.bf16.msrb.mxu3 %v10728_v48 }
0x12ee   :  { %6073 = vmatpush.bf16.msrb.mxu0 %v10736_v13  ;;  %6086 = vmatpush.bf16.msrb.mxu1 %v10740_v49 }
0x12ef   :  { %6099 = vmatpush.bf16.msrb.mxu2 %v10770_v33  ;;  %6112 = vmatpush.bf16.msrb.mxu3 %v10742_v5 }
0x12f2   :  { %6074 = vmatpush.bf16.msrb.mxu0 %v10755_v6  ;;  %6087 = vmatpush.bf16.msrb.mxu1 %v10764_v26 }
0x12f3   :  { %6100 = vmatpush.bf16.msrb.mxu2 %v10789_v55  ;;  %6113 = vmatpush.bf16.msrb.mxu3 %v10773_v50 }
0x12f6   :  { %6075 = vmatpush.bf16.msrb.mxu0 %v10785_v58  ;;  %6088 = vmatpush.bf16.msrb.mxu1 %v10787_v11 }
0x12f7   :  { %6101 = vmatpush.bf16.msrb.mxu2 %v10808_v63  ;;  %6114 = vmatpush.bf16.msrb.mxu3 %v10799_v17 }
0x1355   :  { %v5829_v34 = vpop.f32.mrf.mxu0  ;;  %v5842_v23 = vpop.f32.mrf.mxu1 }
0x1356   :  { %v5872_v15 = vadd.f32 %v5829_v34, %v5148_v20  ;;  %v5873_v44 = vadd.f32 %v5842_v23, %v5177_v61 }
0x1358   :  { %v7724_v31 = vmul.f32 -1.442695, %v5872_v15  ;;  %v7725_v22 = vmul.f32 -1.442695, %v5873_v44 }
0x135a   :  { %8489 = vpow2.f32 %v7724_v31 }
0x135b   :  { %8491 = vpow2.f32 %v7725_v22 }
0x135c   :  { %v5855_v45 = vpop.f32.mrf.mxu2  ;;  %v5868_v37 = vpop.f32.mrf.mxu3 }
0x135d   :  { %v5875_v30 = vadd.f32 %v5868_v37, %v5235_v43  ;;  %v5831_v62 = vpop.f32.mrf.mxu0  ;;  %v5844_v9 = vpop.f32.mrf.mxu1  ;;  %v5874_v56 = vadd.f32 %v5855_v45, %v5206_v25 }
0x135f   :  { %v7726_v19 = vmul.f32 -1.442695, %v5875_v30 }
0x1360   :  { %v8490_v35 = vpop.eup %8489 }
0x1361   :  { %v8492_v16 = vpop.eup %8491  ;;  %v5879_v38 = vadd.f32 1.0, %v8490_v35  ;;  %8493 = vpow2.f32 %v7726_v19 }
0x1362   :  { %v5898_v14 = vadd.f32 1.0, %v8492_v16 }
0x1363   :  { %8495 = vrcp.f32 %v5879_v38  ;;  %v5891_v31 = vand.u32 2147483648, %v5879_v38  ;;  %v5889_v43 = vand.u32 2147483647, %v5879_v38  ;;  %vm5885_vm6 = vweird.f32 %v5879_v38 }
0x1364   :  { %8497 = vrcp.f32 %v5898_v14  ;;  %v5857_v12 = vpop.f32.mrf.mxu2  ;;  %v5870_v51 = vpop.f32.mrf.mxu3  ;;  %v5910_v22 = vand.u32 2147483648, %v5898_v14  ;;  %v5908_v30 = vand.u32 2147483647, %v5898_v14  ;;  %vm5904_vm7 = vweird.f32 %v5898_v14 }
0x1365   :  { %v5892_v45 = vor.u32 1.1754944e-38, %v5891_v31  ;;  %vm5890_vm10 = vcmp.eq.f32.partialorder %v5889_v43, 8.507059e+37 }
0x1366   :  { %v5911_v16 = vor.u32 1.1754944e-38, %v5910_v22  ;;  %vm5909_vm11 = vcmp.eq.f32.partialorder %v5908_v30, 8.507059e+37  ;;  %v11446_v30 = vld [vmem:[#allocation41_spill] sm:$0xff] }
0x1367   :  { %v8494_v4 = vpop.eup %8493 }
0x1368   :  { %v5918_v53 = vadd.f32 1.0, %v8494_v4 }
0x1369   :  { %v8496_v20 = vpop.eup %8495 }
0x136a   :  { %v8498_v61 = vpop.eup %8497  ;;  %v5881_v34 = vmul.f32 %v8496_v20, %v5879_v38  ;;  %8499 = vrcp.f32 %v5918_v53  ;;  %vm5886_vm4 = vweird.f32 %v8496_v20  ;;  %vm5924_vm13 = vweird.f32 %v5918_v53 }
0x136b   :  { %v5900_v23 = vmul.f32 %v8498_v61, %v5898_v14  ;;  %8501 = vtanh.f32 %v5874_v56  ;;  %vm5905_vm5 = vweird.f32 %v8498_v61  ;;  %vm5887_vm8 = vmor %vm5885_vm6, %vm5886_vm4 }
0x136c   :  { %v5882_v15 = vsub.f32 1.0, %v5881_v34  ;;  %vm5906_vm9 = vmor %vm5904_vm7, %vm5905_vm5 }
0x136d   :  { %v5901_v44 = vsub.f32 1.0, %v5900_v23 }
0x136e   :  { %v5883_v52 = vmul.f32 %v8496_v20, %v5882_v15 }
0x136f   :  { %v5902_v37 = vmul.f32 %v8498_v61, %v5901_v44  ;;  %v5930_v44 = vand.u32 2147483648, %v5918_v53 }
0x1370   :  { %v8500_v62 = vpop.eup %8499  ;;  %v5884_v9 = vadd.f32 %v8496_v20, %v5883_v52 }
0x1371   :  { %v5903_v19 = vadd.f32 %v8498_v61, %v5902_v37  ;;  %v5920_v35 = vmul.f32 %v8500_v62, %v5918_v53  ;;  %v8502_v51 = vpop.eup %8501  ;;  %vm5925_vm12 = vweird.f32 %v8500_v62  ;;  %v5931_v22 = vor.u32 1.1754944e-38, %v5930_v44 }
0x1372   :  { %v5888_v12 = vsel %vm5887_vm8, %v8496_v20, %v5884_v9  ;;  %v5928_v20 = vand.u32 2147483647, %v5918_v53  ;;  %vm5926_vm14 = vmor %vm5924_vm13, %vm5925_vm12 }
0x1373   :  { %v5893_v4 = vsel %vm5890_vm10, %v5892_v45, %v5888_v12  ;;  %v5907_v36 = vsel %vm5906_vm9, %v8498_v61, %v5903_v19  ;;  %v5921_v25 = vsub.f32 1.0, %v5920_v35 }
0x1374   :  { %v5912_v56 = vsel %vm5909_vm11, %v5911_v16, %v5907_v36  ;;  %v5935_v34 = vmul.f32 %v8502_v51, %v5893_v4  ;;  %vm5929_vm15 = vcmp.eq.f32.partialorder %v5928_v20, 8.507059e+37  ;;  %v11447_v51 = vld [vmem:[#allocation43_spill] sm:$0xff] }
0x1375   :  { %v5934_v23 = vmul.f32 %v5912_v56, %v11036_v32  ;;  %v5922_v15 = vmul.f32 %v8500_v62, %v5921_v25  ;;  %v11445_v32 = vld [vmem:[#allocation39_spill] sm:$0xff]  ;;  %v5238_v4 = vadd.f32 %v11447_v51, %v10942_v24 }
0x1376   :  { %v5151_v53 = vadd.f32 %v11445_v32, %v10932_v60 }
0x1377   :  { %v11080_v38 = vadd.f32 %v5935_v34, %v5934_v23  ;;  %v5923_v14 = vadd.f32 %v8500_v62, %v5922_v15 }
0x1379   :  { %8503 = vtanh.f32 %v11080_v38  ;;  %v5927_v31 = vsel %vm5926_vm14, %v8500_v62, %v5923_v14  ;;  %v5180_v62 = vadd.f32 %v11446_v30, %v10934_v54 }
0x137a   :  { %v5932_v52 = vsel %vm5929_vm15, %v5931_v22, %v5927_v31 }
0x137f   :  { %v8504_v61 = vpop.eup %8503 }
0x1380   :  { %v5938_v43 = vmul.f32 %v8504_v61, %v5932_v52 }
0x1382   :  { %v5943_v37 = vpack.c.bf16 %v5938_v43, %v5938_v43  ;;  %v11448_v43 = vld [vmem:[#allocation38_spill] sm:$0xff] }
0x1384   :  { %5952 = vmatmul.bf16.vlgmr.msra.gmra.mxu0 %v5943_v37  ;;  %5965 = vmatmul.bf16.vlgmr.msra.gmra.mxu1 %v5943_v37 }
0x1385   :  { %5978 = vmatmul.bf16.vlgmr.msra.gmra.mxu2 %v5943_v37  ;;  %5991 = vmatmul.bf16.vlgmr.msra.gmra.mxu3 %v5943_v37  ;;  %v5209_v37 = vadd.f32 %v11448_v43, %v11435_v10 }
0x1386   :  { %6192 = vmatpush.bf16.msra.mxu0 %v10664_v0  ;;  %6205 = vmatpush.bf16.msra.mxu1 %v10666_v29 }
0x1387   :  { %6218 = vmatpush.bf16.msra.mxu2 %v10677_v2  ;;  %6231 = vmatpush.bf16.msra.mxu3 %v10674_v27 }
0x138a   :  { %6193 = vmatpush.bf16.msra.mxu0 %v10684_v39  ;;  %6206 = vmatpush.bf16.msra.mxu1 %v10686_v1 }
0x138b   :  { %6219 = vmatpush.bf16.msra.mxu2 %v10703_v18  ;;  %6232 = vmatpush.bf16.msra.mxu3 %v10688_v8 }
0x138e   :  { %6194 = vmatpush.bf16.msra.mxu0 %v10693_v41  ;;  %6207 = vmatpush.bf16.msra.mxu1 %v10697_v28 }
0x138f   :  { %6220 = vmatpush.bf16.msra.mxu2 %v10715_v7  ;;  %6233 = vmatpush.bf16.msra.mxu3 %v10699_v21 }
0x1392   :  { %6195 = vmatpush.bf16.msra.mxu0 %v10706_v47  ;;  %6208 = vmatpush.bf16.msra.mxu1 %v10710_v3 }
0x1393   :  { %6221 = vmatpush.bf16.msra.mxu2 %v10732_v59  ;;  %6234 = vmatpush.bf16.msra.mxu3 %v10712_v46 }
0x1396   :  { %6196 = vmatpush.bf16.msra.mxu0 %v10720_v57  ;;  %6209 = vmatpush.bf16.msra.mxu1 %v10726_v42 }
0x1397   :  { %6222 = vmatpush.bf16.msra.mxu2 %v10747_v40  ;;  %6235 = vmatpush.bf16.msra.mxu3 %v10728_v48 }
0x139a   :  { %6197 = vmatpush.bf16.msra.mxu0 %v10736_v13  ;;  %6210 = vmatpush.bf16.msra.mxu1 %v10740_v49 }
0x139b   :  { %6223 = vmatpush.bf16.msra.mxu2 %v10770_v33  ;;  %6236 = vmatpush.bf16.msra.mxu3 %v10742_v5 }
0x139e   :  { %6198 = vmatpush.bf16.msra.mxu0 %v10755_v6  ;;  %6211 = vmatpush.bf16.msra.mxu1 %v10764_v26 }
0x139f   :  { %6224 = vmatpush.bf16.msra.mxu2 %v10789_v55  ;;  %6237 = vmatpush.bf16.msra.mxu3 %v10773_v50 }
0x13a2   :  { %6199 = vmatpush.bf16.msra.mxu0 %v10785_v58  ;;  %6212 = vmatpush.bf16.msra.mxu1 %v10787_v11 }
0x13a3   :  { %6225 = vmatpush.bf16.msra.mxu2 %v10808_v63  ;;  %6238 = vmatpush.bf16.msra.mxu3 %v10799_v17 }
0x1401   :  { %v5953_v9 = vpop.f32.mrf.mxu0  ;;  %v5966_v45 = vpop.f32.mrf.mxu1 }
0x1402   :  { %v5996_v19 = vadd.f32 %v5953_v9, %v5151_v53  ;;  %v5997_v35 = vadd.f32 %v5966_v45, %v5180_v62 }
0x1404   :  { %v7727_v16 = vmul.f32 -1.442695, %v5996_v19  ;;  %v7728_v12 = vmul.f32 -1.442695, %v5997_v35 }
0x1406   :  { %8505 = vpow2.f32 %v7727_v16 }
0x1407   :  { %8507 = vpow2.f32 %v7728_v12 }
0x1408   :  { %v5979_v36 = vpop.f32.mrf.mxu2  ;;  %v5992_v25 = vpop.f32.mrf.mxu3 }
0x1409   :  { %v5999_v56 = vadd.f32 %v5992_v25, %v5238_v4  ;;  %v5955_v34 = vpop.f32.mrf.mxu0  ;;  %v5968_v23 = vpop.f32.mrf.mxu1  ;;  %v5998_v30 = vadd.f32 %v5979_v36, %v5209_v37 }
0x140b   :  { %v7729_v15 = vmul.f32 -1.442695, %v5999_v56 }
0x140c   :  { %v8506_v14 = vpop.eup %8505 }
0x140d   :  { %v8508_v44 = vpop.eup %8507  ;;  %v6003_v20 = vadd.f32 1.0, %v8506_v14  ;;  %8509 = vpow2.f32 %v7729_v15 }
0x140e   :  { %v6022_v31 = vadd.f32 1.0, %v8508_v44 }
0x140f   :  { %8511 = vrcp.f32 %v6003_v20  ;;  %v6015_v16 = vand.u32 2147483648, %v6003_v20  ;;  %v6013_v4 = vand.u32 2147483647, %v6003_v20  ;;  %vm6009_vm2 = vweird.f32 %v6003_v20 }
0x1410   :  { %8513 = vrcp.f32 %v6022_v31  ;;  %v5981_v22 = vpop.f32.mrf.mxu2  ;;  %v5994_v61 = vpop.f32.mrf.mxu3  ;;  %v6034_v12 = vand.u32 2147483648, %v6022_v31  ;;  %v6032_v56 = vand.u32 2147483647, %v6022_v31  ;;  %vm6028_vm3 = vweird.f32 %v6022_v31 }
0x1411   :  { %v6016_v36 = vor.u32 1.1754944e-38, %v6015_v16  ;;  %vm6014_vm6 = vcmp.eq.f32.partialorder %v6013_v4, 8.507059e+37 }
0x1412   :  { %v6035_v44 = vor.u32 1.1754944e-38, %v6034_v12  ;;  %vm6033_vm7 = vcmp.eq.f32.partialorder %v6032_v56, 8.507059e+37 }
0x1413   :  { %v8510_v52 = vpop.eup %8509 }
0x1414   :  { %v6042_v32 = vadd.f32 1.0, %v8510_v52 }
0x1415   :  { %v8512_v53 = vpop.eup %8511 }
0x1416   :  { %v8514_v62 = vpop.eup %8513  ;;  %v6005_v9 = vmul.f32 %v8512_v53, %v6003_v20  ;;  %8515 = vrcp.f32 %v6042_v32  ;;  %vm6010_vm0 = vweird.f32 %v8512_v53  ;;  %vm6048_vm9 = vweird.f32 %v6042_v32 }
0x1417   :  { %v6024_v45 = vmul.f32 %v8514_v62, %v6022_v31  ;;  %8517 = vtanh.f32 %v5998_v30  ;;  %vm6029_vm1 = vweird.f32 %v8514_v62  ;;  %vm6011_vm4 = vmor %vm6009_vm2, %vm6010_vm0 }
0x1418   :  { %v6006_v19 = vsub.f32 1.0, %v6005_v9  ;;  %vm6030_vm5 = vmor %vm6028_vm3, %vm6029_vm1 }
0x1419   :  { %v6025_v35 = vsub.f32 1.0, %v6024_v45 }
0x141a   :  { %v6007_v51 = vmul.f32 %v8512_v53, %v6006_v19 }
0x141b   :  { %v6026_v25 = vmul.f32 %v8514_v62, %v6025_v35  ;;  %v6054_v35 = vand.u32 2147483648, %v6042_v32 }
0x141c   :  { %v8516_v34 = vpop.eup %8515  ;;  %v6008_v23 = vadd.f32 %v8512_v53, %v6007_v51 }
0x141d   :  { %v6027_v15 = vadd.f32 %v8514_v62, %v6026_v25  ;;  %v6044_v14 = vmul.f32 %v8516_v34, %v6042_v32  ;;  %v8518_v61 = vpop.eup %8517  ;;  %vm6049_vm8 = vweird.f32 %v8516_v34  ;;  %v6055_v12 = vor.u32 1.1754944e-38, %v6054_v35 }
0x141e   :  { %v6012_v22 = vsel %vm6011_vm4, %v8512_v53, %v6008_v23  ;;  %v6052_v53 = vand.u32 2147483647, %v6042_v32  ;;  %vm6050_vm10 = vmor %vm6048_vm9, %vm6049_vm8 }
0x141f   :  { %v6017_v52 = vsel %vm6014_vm6, %v6016_v36, %v6012_v22  ;;  %v6031_v43 = vsel %vm6030_vm5, %v8514_v62, %v6027_v15  ;;  %v6045_v37 = vsub.f32 1.0, %v6044_v14 }
0x1420   :  { %v6036_v30 = vsel %vm6033_vm7, %v6035_v44, %v6031_v43  ;;  %v6059_v9 = vmul.f32 %v8518_v61, %v6017_v52  ;;  %vm6053_vm11 = vcmp.eq.f32.partialorder %v6052_v53, 8.507059e+37 }
0x1421   :  { %v6058_v45 = vmul.f32 %v6036_v30, %v11080_v38  ;;  %v6046_v19 = vmul.f32 %v8516_v34, %v6045_v37 }
0x1423   :  { %v11124_v20 = vadd.f32 %v6059_v9, %v6058_v45  ;;  %v6047_v31 = vadd.f32 %v8516_v34, %v6046_v19 }
0x1425   :  { %8519 = vtanh.f32 %v11124_v20  ;;  %v6051_v16 = vsel %vm6050_vm10, %v8516_v34, %v6047_v31 }
0x1426   :  { %v6056_v51 = vsel %vm6053_vm11, %v6055_v12, %v6051_v16 }
0x142b   :  { %v8520_v62 = vpop.eup %8519 }
0x142c   :  { %v6062_v4 = vmul.f32 %v8520_v62, %v6056_v51 }
0x142e   :  { %v6067_v25 = vpack.c.bf16 %v6062_v4, %v6062_v4 }
0x1430   :  { %6076 = vmatmul.bf16.vlgmr.msrb.gmra.mxu0 %v6067_v25  ;;  %6089 = vmatmul.bf16.vlgmr.msrb.gmra.mxu1 %v6067_v25 }
0x1431   :  { %6102 = vmatmul.bf16.vlgmr.msrb.gmra.mxu2 %v6067_v25  ;;  %6115 = vmatmul.bf16.vlgmr.msrb.gmra.mxu3 %v6067_v25 }
0x1432   :  { %6316 = vmatpush.bf16.msrb.mxu0 %v10664_v0  ;;  %6329 = vmatpush.bf16.msrb.mxu1 %v10666_v29  ;;  %v11449_v0 = vld [vmem:[#allocation44_spill] sm:$0xff] }
0x1433   :  { %6342 = vmatpush.bf16.msrb.mxu2 %v10677_v2  ;;  %6355 = vmatpush.bf16.msrb.mxu3 %v10674_v27  ;;  %v5153_v29 = vadd.f32 %v11449_v0, %v10932_v60  ;;  %v11450_v27 = vld [vmem:[#allocation45_spill] sm:$0xff] }
0x1434   :  { %v5182_v2 = vadd.f32 %v11450_v27, %v10934_v54 }
0x1436   :  { %6317 = vmatpush.bf16.msrb.mxu0 %v10684_v39  ;;  %6330 = vmatpush.bf16.msrb.mxu1 %v10686_v1 }
0x1437   :  { %6343 = vmatpush.bf16.msrb.mxu2 %v10703_v18  ;;  %6356 = vmatpush.bf16.msrb.mxu3 %v10688_v8  ;;  %v11451_v18 = vld [vmem:[#allocation48_spill] sm:$0xff] }
0x143a   :  { %6318 = vmatpush.bf16.msrb.mxu0 %v10693_v41  ;;  %6331 = vmatpush.bf16.msrb.mxu1 %v10697_v28 }
0x143b   :  { %6344 = vmatpush.bf16.msrb.mxu2 %v10715_v7  ;;  %6357 = vmatpush.bf16.msrb.mxu3 %v10699_v21 }
0x143e   :  { %6319 = vmatpush.bf16.msrb.mxu0 %v10706_v47  ;;  %6332 = vmatpush.bf16.msrb.mxu1 %v10710_v3  ;;  %v5240_v47 = vadd.f32 %v11451_v18, %v10942_v24 }
0x143f   :  { %6345 = vmatpush.bf16.msrb.mxu2 %v10732_v59  ;;  %6358 = vmatpush.bf16.msrb.mxu3 %v10712_v46 }
0x1442   :  { %6320 = vmatpush.bf16.msrb.mxu0 %v10720_v57  ;;  %6333 = vmatpush.bf16.msrb.mxu1 %v10726_v42 }
0x1443   :  { %6346 = vmatpush.bf16.msrb.mxu2 %v10747_v40  ;;  %6359 = vmatpush.bf16.msrb.mxu3 %v10728_v48 }
0x1446   :  { %6321 = vmatpush.bf16.msrb.mxu0 %v10736_v13  ;;  %6334 = vmatpush.bf16.msrb.mxu1 %v10740_v49 }
0x1447   :  { %6347 = vmatpush.bf16.msrb.mxu2 %v10770_v33  ;;  %6360 = vmatpush.bf16.msrb.mxu3 %v10742_v5  ;;  %v11452_v33 = vld [vmem:[#allocation42_spill] sm:$0xff] }
0x144a   :  { %6322 = vmatpush.bf16.msrb.mxu0 %v10755_v6  ;;  %6335 = vmatpush.bf16.msrb.mxu1 %v10764_v26 }
0x144b   :  { %6348 = vmatpush.bf16.msrb.mxu2 %v10789_v55  ;;  %6361 = vmatpush.bf16.msrb.mxu3 %v10773_v50  ;;  %v5211_v50 = vadd.f32 %v11452_v33, %v11435_v10 }
0x144e   :  { %6323 = vmatpush.bf16.msrb.mxu0 %v10785_v58  ;;  %6336 = vmatpush.bf16.msrb.mxu1 %v10787_v11 }
0x144f   :  { %6349 = vmatpush.bf16.msrb.mxu2 %v10808_v63  ;;  %6362 = vmatpush.bf16.msrb.mxu3 %v10799_v17 }
0x14ad   :  { %v6077_v39 = vpop.f32.mrf.mxu0  ;;  %v6090_v1 = vpop.f32.mrf.mxu1 }
0x14ae   :  { %v6120_v8 = vadd.f32 %v6077_v39, %v5153_v29  ;;  %v6121_v41 = vadd.f32 %v6090_v1, %v5182_v2 }
0x14b0   :  { %v7730_v28 = vmul.f32 -1.442695, %v6120_v8  ;;  %v7731_v21 = vmul.f32 -1.442695, %v6121_v41 }
0x14b2   :  { %8521 = vpow2.f32 %v7730_v28  ;;  %v11454_v28 = vld [vmem:[#allocation50_spill] sm:$0xff] }
0x14b3   :  { %8523 = vpow2.f32 %v7731_v21  ;;  %v5185_v21 = vadd.f32 %v11454_v28, %v10934_v54 }
0x14b4   :  { %v6103_v3 = vpop.f32.mrf.mxu2  ;;  %v6116_v46 = vpop.f32.mrf.mxu3 }
0x14b5   :  { %v6123_v7 = vadd.f32 %v6116_v46, %v5240_v47  ;;  %v6079_v57 = vpop.f32.mrf.mxu0  ;;  %v6092_v42 = vpop.f32.mrf.mxu1  ;;  %v6122_v55 = vadd.f32 %v6103_v3, %v5211_v50 }
0x14b6   :  { %v11455_v42 = vld [vmem:[#allocation49_spill] sm:$0xff] }
0x14b7   :  { %v7732_v48 = vmul.f32 -1.442695, %v6123_v7 }
0x14b8   :  { %v8522_v59 = vpop.eup %8521 }
0x14b9   :  { %v8524_v13 = vpop.eup %8523  ;;  %v6127_v49 = vadd.f32 1.0, %v8522_v59  ;;  %8525 = vpow2.f32 %v7732_v48  ;;  %v5243_v48 = vadd.f32 %v11455_v42, %v10942_v24  ;;  %v11457_v42 = vld [vmem:[#allocation28_spill] sm:$0xff] }
0x14ba   :  { %v6146_v5 = vadd.f32 1.0, %v8524_v13 }
0x14bb   :  { %8527 = vrcp.f32 %v6127_v49  ;;  %v6139_v34 = vand.u32 2147483648, %v6127_v49  ;;  %v6137_v15 = vand.u32 2147483647, %v6127_v49  ;;  %vm6133_vm14 = vweird.f32 %v6127_v49 }
0x14bc   :  { %8529 = vrcp.f32 %v6146_v5  ;;  %v6105_v40 = vpop.f32.mrf.mxu2  ;;  %v6118_v6 = vpop.f32.mrf.mxu3  ;;  %v6158_v23 = vand.u32 2147483648, %v6146_v5  ;;  %v6156_v44 = vand.u32 2147483647, %v6146_v5  ;;  %vm6152_vm15 = vweird.f32 %v6146_v5 }
0x14bd   :  { %v6140_v52 = vor.u32 1.1754944e-38, %v6139_v34  ;;  %vm6138_vm2 = vcmp.eq.f32.partialorder %v6137_v15, 8.507059e+37 }
0x14be   :  { %v6159_v30 = vor.u32 1.1754944e-38, %v6158_v23  ;;  %vm6157_vm3 = vcmp.eq.f32.partialorder %v6156_v44, 8.507059e+37 }
0x14bf   :  { %v8526_v26 = vpop.eup %8525 }
0x14c0   :  { %v6166_v58 = vadd.f32 1.0, %v8526_v26 }
0x14c1   :  { %v8528_v11 = vpop.eup %8527 }
0x14c2   :  { %v8530_v17 = vpop.eup %8529  ;;  %v6129_v63 = vmul.f32 %v8528_v11, %v6127_v49  ;;  %8531 = vrcp.f32 %v6166_v58  ;;  %vm6134_vm12 = vweird.f32 %v8528_v11  ;;  %v6178_v25 = vand.u32 2147483648, %v6166_v58 }
0x14c3   :  { %v6148_v38 = vmul.f32 %v8530_v17, %v6146_v5  ;;  %8533 = vtanh.f32 %v6122_v55  ;;  %vm6153_vm13 = vweird.f32 %v8530_v17  ;;  %vm6135_vm0 = vmor %vm6133_vm14, %vm6134_vm12  ;;  %vm6172_vm5 = vweird.f32 %v6166_v58 }
0x14c4   :  { %v6130_v32 = vsub.f32 1.0, %v6129_v63  ;;  %vm6154_vm1 = vmor %vm6152_vm15, %vm6153_vm13  ;;  %v6176_v0 = vand.u32 2147483647, %v6166_v58  ;;  %v6179_v27 = vor.u32 1.1754944e-38, %v6178_v25  ;;  %v11456_v63 = vld [vmem:[#allocation46_spill] sm:$0xff] }
0x14c5   :  { %v6149_v56 = vsub.f32 1.0, %v6148_v38  ;;  %v5214_v38 = vadd.f32 %v11456_v63, %v11435_v10 }
0x14c6   :  { %v6131_v36 = vmul.f32 %v8528_v11, %v6130_v32  ;;  %vm6177_vm7 = vcmp.eq.f32.partialorder %v6176_v0, 8.507059e+37 }
0x14c7   :  { %v6150_v14 = vmul.f32 %v8530_v17, %v6149_v56 }
0x14c8   :  { %v8532_v22 = vpop.eup %8531  ;;  %v6132_v61 = vadd.f32 %v8528_v11, %v6131_v36 }
0x14c9   :  { %v6151_v43 = vadd.f32 %v8530_v17, %v6150_v14  ;;  %v6168_v37 = vmul.f32 %v8532_v22, %v6166_v58  ;;  %v8534_v45 = vpop.eup %8533  ;;  %vm6173_vm4 = vweird.f32 %v8532_v22 }
0x14ca   :  { %v6136_v9 = vsel %vm6135_vm0, %v8528_v11, %v6132_v61  ;;  %vm6174_vm6 = vmor %vm6172_vm5, %vm6173_vm4 }
0x14cb   :  { %v6141_v19 = vsel %vm6138_vm2, %v6140_v52, %v6136_v9  ;;  %v6155_v31 = vsel %vm6154_vm1, %v8530_v17, %v6151_v43  ;;  %v6169_v35 = vsub.f32 1.0, %v6168_v37 }
0x14cc   :  { %v6160_v53 = vsel %vm6157_vm3, %v6159_v30, %v6155_v31  ;;  %v6183_v16 = vmul.f32 %v8534_v45, %v6141_v19 }
0x14cd   :  { %v6182_v12 = vmul.f32 %v6160_v53, %v11124_v20  ;;  %v6170_v62 = vmul.f32 %v8532_v22, %v6169_v35  ;;  %v11453_v20 = vld [vmem:[#allocation29_spill] sm:$0xff] }
0x14ce   :  { %v5156_v41 = vadd.f32 %v11453_v20, %v10932_v60 }
0x14cf   :  { %v11168_v51 = vadd.f32 %v6183_v16, %v6182_v12  ;;  %v6171_v4 = vadd.f32 %v8532_v22, %v6170_v62 }
0x14d1   :  { %8535 = vtanh.f32 %v11168_v51  ;;  %v6175_v29 = vsel %vm6174_vm6, %v8532_v22, %v6171_v4 }
0x14d2   :  { %v6180_v39 = vsel %vm6177_vm7, %v6179_v27, %v6175_v29 }
0x14d7   :  { %v8536_v2 = vpop.eup %8535 }
0x14d8   :  { %v6186_v1 = vmul.f32 %v8536_v2, %v6180_v39 }
0x14da   :  { %v6191_v8 = vpack.c.bf16 %v6186_v1, %v6186_v1 }
0x14dc   :  { %6200 = vmatmul.bf16.vlgmr.msra.gmra.mxu0 %v6191_v8  ;;  %6213 = vmatmul.bf16.vlgmr.msra.gmra.mxu1 %v6191_v8 }
0x14dd   :  { %6226 = vmatmul.bf16.vlgmr.msra.gmra.mxu2 %v6191_v8  ;;  %6239 = vmatmul.bf16.vlgmr.msra.gmra.mxu3 %v6191_v8 }
0x1559   :  { %v6201_v18 = vpop.f32.mrf.mxu0  ;;  %v6214_v47 = vpop.f32.mrf.mxu1 }
0x155a   :  { %v6244_v3 = vadd.f32 %v6201_v18, %v5156_v41  ;;  %v6245_v46 = vadd.f32 %v6214_v47, %v5185_v21 }
0x155c   :  { %v7733_v7 = vmul.f32 -1.442695, %v6244_v3  ;;  %v7734_v57 = vmul.f32 -1.442695, %v6245_v46  ;;  %v8038_v46 = vld [vmem:[#allocation15 + $0x30] sm:$0xff] }
0x155e   :  { %8537 = vpow2.f32 %v7733_v7  ;;  %v8037_v7 = vld [vmem:[#allocation15 + $0x28] sm:$0xff] }
0x155f   :  { %8539 = vpow2.f32 %v7734_v57  ;;  %v8036_v57 = vld [vmem:[#allocation15 + $0x20] sm:$0xff] }
0x1560   :  { %v6227_v59 = vpop.f32.mrf.mxu2  ;;  %v6240_v13 = vpop.f32.mrf.mxu3 }
0x1561   :  { %v6247_v49 = vadd.f32 %v6240_v13, %v5243_v48  ;;  %v6203_v5 = vpop.f32.mrf.mxu0  ;;  %v6216_v40 = vpop.f32.mrf.mxu1  ;;  %v6246_v34 = vadd.f32 %v6227_v59, %v5214_v38  ;;  %v5158_v48 = vadd.f32 %v11457_v42, %v10932_v60  ;;  %v11458_v59 = vld [vmem:[#allocation27_spill] sm:$0xff] }
0x1562   :  { %v5187_v13 = vadd.f32 %v11458_v59, %v10934_v54 }
0x1563   :  { %v7735_v6 = vmul.f32 -1.442695, %v6247_v49  ;;  %v8035_v49 = vld [vmem:[#allocation15 + $0x18] sm:$0xff] }
0x1564   :  { %v8538_v26 = vpop.eup %8537 }
0x1565   :  { %v8540_v33 = vpop.eup %8539  ;;  %v6251_v50 = vadd.f32 1.0, %v8538_v26  ;;  %8541 = vpow2.f32 %v7735_v6 }
0x1566   :  { %v6270_v58 = vadd.f32 1.0, %v8540_v33 }
0x1567   :  { %8543 = vrcp.f32 %v6251_v50  ;;  %v6263_v22 = vand.u32 2147483648, %v6251_v50  ;;  %v6261_v43 = vand.u32 2147483647, %v6251_v50  ;;  %vm6257_vm10 = vweird.f32 %v6251_v50 }
0x1568   :  { %8545 = vrcp.f32 %v6270_v58  ;;  %v6229_v11 = vpop.f32.mrf.mxu2  ;;  %v6242_v55 = vpop.f32.mrf.mxu3  ;;  %v6282_v61 = vand.u32 2147483648, %v6270_v58  ;;  %v6280_v30 = vand.u32 2147483647, %v6270_v58  ;;  %vm6276_vm11 = vweird.f32 %v6270_v58 }
0x1569   :  { %v6264_v19 = vor.u32 1.1754944e-38, %v6263_v22  ;;  %vm6262_vm14 = vcmp.eq.f32.partialorder %v6261_v43, 8.507059e+37  ;;  %v8033_v11 = vld [vmem:[#allocation15 + $0x8] sm:$0xff]  ;;  %v11459_v55 = vld [vmem:[#allocation51_spill] sm:$0xff] }
0x156a   :  { %v6283_v53 = vor.u32 1.1754944e-38, %v6282_v61  ;;  %vm6281_vm15 = vcmp.eq.f32.partialorder %v6280_v30, 8.507059e+37  ;;  %v11460_v61 = vld [vmem:[#allocation26_spill] sm:$0xff] }
0x156b   :  { %v8542_v17 = vpop.eup %8541 }
0x156c   :  { %v6290_v32 = vadd.f32 1.0, %v8542_v17  ;;  %v5245_v17 = vadd.f32 %v11459_v55, %v10942_v24 }
0x156d   :  { %v8544_v56 = vpop.eup %8543 }
0x156e   :  { %v8546_v23 = vpop.eup %8545  ;;  %v6253_v36 = vmul.f32 %v8544_v56, %v6251_v50  ;;  %8547 = vrcp.f32 %v6290_v32  ;;  %vm6258_vm8 = vweird.f32 %v8544_v56  ;;  %v6302_v8 = vand.u32 2147483648, %v6290_v32 }
0x156f   :  { %v6272_v15 = vmul.f32 %v8546_v23, %v6270_v58  ;;  %8549 = vtanh.f32 %v6246_v34  ;;  %vm6277_vm9 = vweird.f32 %v8546_v23  ;;  %vm6259_vm12 = vmor %vm6257_vm10, %vm6258_vm8  ;;  %vm6296_vm1 = vweird.f32 %v6290_v32  ;;  %v8034_v58 = vld [vmem:[#allocation15 + $0x10] sm:$0xff] }
0x1570   :  { %v6254_v14 = vsub.f32 1.0, %v6253_v36  ;;  %vm6278_vm13 = vmor %vm6276_vm11, %vm6277_vm9  ;;  %v6300_v20 = vand.u32 2147483647, %v6290_v32  ;;  %v6303_v28 = vor.u32 1.1754944e-38, %v6302_v8 }
0x1571   :  { %v6273_v44 = vsub.f32 1.0, %v6272_v15 }
0x1572   :  { %v6255_v52 = vmul.f32 %v8544_v56, %v6254_v14  ;;  %vm6301_vm3 = vcmp.eq.f32.partialorder %v6300_v20, 8.507059e+37 }
0x1573   :  { %v6274_v37 = vmul.f32 %v8546_v23, %v6273_v44 }
0x1574   :  { %v8548_v9 = vpop.eup %8547  ;;  %v6256_v45 = vadd.f32 %v8544_v56, %v6255_v52  ;;  %v5216_v52 = vadd.f32 %v11460_v61, %v11435_v10 }
0x1575   :  { %v6275_v31 = vadd.f32 %v8546_v23, %v6274_v37  ;;  %v6292_v35 = vmul.f32 %v8548_v9, %v6290_v32  ;;  %v8550_v12 = vpop.eup %8549  ;;  %vm6297_vm0 = vweird.f32 %v8548_v9 }
0x1576   :  { %v6260_v16 = vsel %vm6259_vm12, %v8544_v56, %v6256_v45  ;;  %vm6298_vm2 = vmor %vm6296_vm1, %vm6297_vm0  ;;  %v8032_v56 = vld [vmem:[#allocation15] sm:$0xff] }
0x1577   :  { %v6265_v62 = vsel %vm6262_vm14, %v6264_v19, %v6260_v16  ;;  %v6279_v4 = vsel %vm6278_vm13, %v8546_v23, %v6275_v31  ;;  %v6293_v25 = vsub.f32 1.0, %v6292_v35 }
0x1578   :  { %v6284_v0 = vsel %vm6281_vm15, %v6283_v53, %v6279_v4  ;;  %v6307_v29 = vmul.f32 %v8550_v12, %v6265_v62 }
0x1579   :  { %v6306_v27 = vmul.f32 %v6284_v0, %v11168_v51  ;;  %v6294_v2 = vmul.f32 %v8548_v9, %v6293_v25  ;;  %v8039_v51 = vld [vmem:[#allocation15 + $0x38] sm:$0xff] }
0x157a   :  { %6508 = vmatpush.bf16.msra.mxu0 %v8039_v51 }
0x157b   :  { %v11180_v39 = vadd.f32 %v6307_v29, %v6306_v27  ;;  %v6295_v1 = vadd.f32 %v8548_v9, %v6294_v2 }
0x157d   :  { %8551 = vtanh.f32 %v11180_v39  ;;  %v6299_v41 = vsel %vm6298_vm2, %v8548_v9, %v6295_v1 }
0x157e   :  { %v6304_v18 = vsel %vm6301_vm3, %v6303_v28, %v6299_v41  ;;  %6509 = vmatpush.bf16.msra.mxu0 %v8038_v46 }
0x1582   :  { %6510 = vmatpush.bf16.msra.mxu0 %v8037_v7 }
0x1583   :  { %v8552_v21 = vpop.eup %8551 }
0x1584   :  { %v6310_v47 = vmul.f32 %v8552_v21, %v6304_v18 }
0x1586   :  { %v6315_v3 = vpack.c.bf16 %v6310_v47, %v6310_v47  ;;  %6511 = vmatpush.bf16.msra.mxu0 %v8036_v57 }
0x1588   :  { %6324 = vmatmul.bf16.vlgmr.msrb.gmra.mxu0 %v6315_v3  ;;  %6337 = vmatmul.bf16.vlgmr.msrb.gmra.mxu1 %v6315_v3 }
0x1589   :  { %6350 = vmatmul.bf16.vlgmr.msrb.gmra.mxu2 %v6315_v3  ;;  %6363 = vmatmul.bf16.vlgmr.msrb.gmra.mxu3 %v6315_v3 }
0x158a   :  { %6512 = vmatpush.bf16.msra.mxu0 %v8035_v49 }
0x158e   :  { %6513 = vmatpush.bf16.msra.mxu0 %v8034_v58 }
0x1592   :  { %6514 = vmatpush.bf16.msra.mxu0 %v8033_v11 }
0x1596   :  { %6515 = vmatpush.bf16.msra.mxu0 %v8032_v56 }
0x1605   :  { %v6325_v5 = vpop.f32.mrf.mxu0  ;;  %v6338_v40 = vpop.f32.mrf.mxu1 }
0x1606   :  { %v6368_v6 = vadd.f32 %v6325_v5, %v5158_v48  ;;  %v6369_v26 = vadd.f32 %v6338_v40, %v5187_v13 }
0x1608   :  { %v7736_v33 = vmul.f32 -1.442695, %v6368_v6  ;;  %v7737_v50 = vmul.f32 -1.442695, %v6369_v26 }
0x160a   :  { %8553 = vpow2.f32 %v7736_v33 }
0x160b   :  { %8555 = vpow2.f32 %v7737_v50 }
0x160c   :  { %v6351_v60 = vpop.f32.mrf.mxu2  ;;  %v6364_v63 = vpop.f32.mrf.mxu3 }
0x160d   :  { %v6371_v38 = vadd.f32 %v6364_v63, %v5245_v17  ;;  %v6327_v54 = vpop.f32.mrf.mxu0  ;;  %v6340_v32 = vpop.f32.mrf.mxu1  ;;  %v6370_v30 = vadd.f32 %v6351_v60, %v5216_v52 }
0x160f   :  { %v7738_v34 = vmul.f32 -1.442695, %v6371_v38 }
0x1610   :  { %v8554_v23 = vpop.eup %8553 }
0x1611   :  { %v8556_v36 = vpop.eup %8555  ;;  %v6375_v15 = vadd.f32 1.0, %v8554_v23  ;;  %8557 = vpow2.f32 %v7738_v34 }
0x1612   :  { %v6394_v14 = vadd.f32 1.0, %v8556_v36 }
0x1613   :  { %8559 = vrcp.f32 %v6375_v15  ;;  %v6387_v53 = vand.u32 2147483648, %v6375_v15  ;;  %v6385_v62 = vand.u32 2147483647, %v6375_v15  ;;  %vm6381_vm6 = vweird.f32 %v6375_v15 }
0x1614   :  { %8561 = vrcp.f32 %v6394_v14  ;;  %v6353_v44 = vpop.f32.mrf.mxu2  ;;  %v6366_v22 = vpop.f32.mrf.mxu3  ;;  %v6406_v16 = vand.u32 2147483648, %v6394_v14  ;;  %v6404_v25 = vand.u32 2147483647, %v6394_v14  ;;  %vm6400_vm7 = vweird.f32 %v6394_v14 }
0x1615   :  { %v6388_v29 = vor.u32 1.1754944e-38, %v6387_v53  ;;  %vm6386_vm10 = vcmp.eq.f32.partialorder %v6385_v62, 8.507059e+37 }
0x1616   :  { %v6407_v1 = vor.u32 1.1754944e-38, %v6406_v16  ;;  %vm6405_vm11 = vcmp.eq.f32.partialorder %v6404_v25, 8.507059e+37 }
0x1617   :  { %v8558_v24 = vpop.eup %8557 }
0x1618   :  { %v6414_v43 = vadd.f32 1.0, %v8558_v24 }
0x1619   :  { %v8560_v37 = vpop.eup %8559 }
0x161a   :  { %v8562_v9 = vpop.eup %8561  ;;  %v6377_v45 = vmul.f32 %v8560_v37, %v6375_v15  ;;  %8563 = vrcp.f32 %v6414_v43  ;;  %vm6382_vm4 = vweird.f32 %v8560_v37  ;;  %v6426_v57 = vand.u32 2147483648, %v6414_v43 }
0x161b   :  { %v6396_v19 = vmul.f32 %v8562_v9, %v6394_v14  ;;  %8565 = vtanh.f32 %v6370_v30  ;;  %vm6401_vm5 = vweird.f32 %v8562_v9  ;;  %vm6383_vm8 = vmor %vm6381_vm6, %vm6382_vm4  ;;  %vm6420_vm13 = vweird.f32 %v6414_v43 }
0x161c   :  { %v6378_v31 = vsub.f32 1.0, %v6377_v45  ;;  %vm6402_vm9 = vmor %vm6400_vm7, %vm6401_vm5  ;;  %v6424_v42 = vand.u32 2147483647, %v6414_v43  ;;  %v6427_v59 = vor.u32 1.1754944e-38, %v6426_v57 }
0x161d   :  { %v6397_v35 = vsub.f32 1.0, %v6396_v19 }
0x161e   :  { %v6379_v12 = vmul.f32 %v8560_v37, %v6378_v31  ;;  %vm6425_vm15 = vcmp.eq.f32.partialorder %v6424_v42, 8.507059e+37 }
0x161f   :  { %v6398_v4 = vmul.f32 %v8562_v9, %v6397_v35 }
0x1620   :  { %v8564_v0 = vpop.eup %8563  ;;  %v6380_v10 = vadd.f32 %v8560_v37, %v6379_v12 }
0x1621   :  { %v6399_v27 = vadd.f32 %v8562_v9, %v6398_v4  ;;  %v6416_v2 = vmul.f32 %v8564_v0, %v6414_v43  ;;  %v8566_v20 = vpop.eup %8565  ;;  %vm6421_vm12 = vweird.f32 %v8564_v0 }
0x1622   :  { %v6384_v8 = vsel %vm6383_vm8, %v8560_v37, %v6380_v10  ;;  %vm6422_vm14 = vmor %vm6420_vm13, %vm6421_vm12 }
0x1623   :  { %v6389_v41 = vsel %vm6386_vm10, %v6388_v29, %v6384_v8  ;;  %v6403_v28 = vsel %vm6402_vm9, %v8562_v9, %v6399_v27  ;;  %v6417_v21 = vsub.f32 1.0, %v6416_v2 }
0x1624   :  { %v6408_v18 = vsel %vm6405_vm11, %v6407_v1, %v6403_v28  ;;  %v6431_v47 = vmul.f32 %v8566_v20, %v6389_v41 }
0x1625   :  { %v6430_v3 = vmul.f32 %v6408_v18, %v11180_v39  ;;  %v6418_v51 = vmul.f32 %v8564_v0, %v6417_v21  ;;  %v8056_v39 = vld [vmem:[%s11217_s7] ss:$0 sm:$0xff]  ;;  %s6548_s7 = sshll.u32 %s11218_s8, 4  ;;  %s6549_s7 = int_to_ptr.hbm [resolvable:$true] %s6548_s7 }
0x1627   :  { %v6432_v46 = vadd.f32 %v6431_v47, %v6430_v3  ;;  %v6419_v7 = vadd.f32 %v8564_v0, %v6418_v51 }
0x1629   :  { %8567 = vtanh.f32 %v6432_v46  ;;  %6438 = vst [vmem:[#allocation19 + $0x18] sm:$0xff] %v6432_v46  ;;  %v6423_v48 = vsel %vm6422_vm14, %v8564_v0, %v6419_v7 }
0x162a   :  { %v6428_v49 = vsel %vm6425_vm15, %v6427_v59, %v6423_v48 }
0x162f   :  { %v8568_v13 = vpop.eup %8567 }
0x1630   :  { %v6434_v5 = vmul.f32 %v8568_v13, %v6428_v49 }
0x1632   :  { %v6439_v40 = vpack.c.bf16 %v6434_v5, %v6434_v5  ;;  %6436 = vst [vmem:[#allocation17 + $0x18] sm:$0xff] %v6434_v5 }
0x1633   :  { %6564 = dma.vmem_to_hbm [thread:$0]  %s6557_s11, 512, %s6559_s25, [#allocation18], %s8826_s21, %s8826_s21, %s8827_s22  }
0x1634   :  { %6516 = vmatmul.bf16.vlgmr.msra.gmra.mxu0 %v6439_v40  ;;  %6577 = dma.vmem_to_hbm [thread:$0]  %s6570_s13, 512, %s6572_s16, [#allocation18], %s8826_s21, %s8826_s21, %s8827_s22  }
0x1635   :  { %s6546_s21 = sshll.u32 %s8840_s10, 4  ;;  %s6547_s21 = int_to_ptr.vmem [resolvable:$true] %s6546_s21 }
0x16b1   :  { %v6517_v6 = vpop.f32.mrf.mxu0 }
0x16b2   :  { %v6518_v26 = vadd.f32 %v8056_v39, %v6517_v6 }
0x16b4   :  { %v7771_v33 = vmul.f32 -1.442695, %v6518_v26 }
0x16b6   :  { %8569 = vpow2.f32 %v7771_v33 }
0x16b9   :  { %v6519_v50 = vpop.f32.mrf.mxu0 }
0x16bc   :  { %v8570_v58 = vpop.eup %8569 }
0x16bd   :  { %v6524_v11 = vadd.f32 1.0, %v8570_v58 }
0x16bf   :  { %8571 = vrcp.f32 %v6524_v11  ;;  %v6536_v63 = vand.u32 2147483648, %v6524_v11  ;;  %v6534_v54 = vand.u32 2147483647, %v6524_v11  ;;  %vm6530_vm1 = vweird.f32 %v6524_v11 }
0x16c1   :  { %v6537_v56 = vor.u32 1.1754944e-38, %v6536_v63  ;;  %vm6535_vm3 = vcmp.eq.f32.partialorder %v6534_v54, 8.507059e+37 }
0x16c5   :  { %v8572_v55 = vpop.eup %8571 }
0x16c6   :  { %v6526_v17 = vmul.f32 %v8572_v55, %v6524_v11  ;;  %vm6531_vm0 = vweird.f32 %v8572_v55 }
0x16c7   :  { %vm6532_vm2 = vmor %vm6530_vm1, %vm6531_vm0 }
0x16c8   :  { %v6527_v60 = vsub.f32 1.0, %v6526_v17 }
0x16ca   :  { %v6528_v38 = vmul.f32 %v8572_v55, %v6527_v60 }
0x16cc   :  { %v6529_v32 = vadd.f32 %v8572_v55, %v6528_v38 }
0x16ce   :  { %v6533_v34 = vsel %vm6532_vm2, %v8572_v55, %v6529_v32 }
0x16cf   :  { %v6538_v23 = vsel %vm6535_vm3, %v6537_v56, %v6533_v34 }
0x16d0   :  { %6540 = vst [vmem:[#allocation16] sm:$0xff] %v6538_v23 }
0x16d1   :  { %6551 = dma.vmem_to_hbm [thread:$0]  %s6547_s21, 128, %s6549_s7, [#allocation6]  }
0x16d2   :  { %8821 = dma.done.wait [#allocation6], 128  }
0x16d3   :  { %8822 = vsyncadd [#allocation6], 4294967168 }
0x16d4   :  { %8823 = dma.done.wait [#allocation18], 1024  }
0x16d5   :  { %8824 = vsyncadd [#allocation18], 4294966272 }
0x16d6   :  { %6590 = vsyncpa [#allocation5], 1 }
0x16d7   :  { %6591 = vsyncpa [#allocation8], 1 }
0x16d8   :  { %6592 = vsyncpa [#allocation11], 1 }
0x16d9   :  { %6593 = vsyncpa [#allocation14], 1 }
0x16da   :  { %6594 = vsyncpa [#allocation6], 1 }
0x16db   :  { %6595 = vsyncpa [#allocation18], 1 }

</bundles_post_ra>
